<compile_context>
chip_gen: v6e
topology: v6e:2x2x1
jax: 0.10.0
libtpu: 0.0.40
codegen_flags: <defaults>
</compile_context>

<pallas_src>
import functools
import math

import jax
import jax.numpy as jnp
from jax.experimental import pallas as pl
from jax.experimental.pallas import tpu as pltpu

# ----------------------------- model config ---------------------------------
HIDDEN = 768          # D_in of the classifier (matches BertModel hidden size)
N_LAYERS = 2          # small synthetic encoder (bert-base has 12)
N_HEADS = 6           # head dim = 128 -> lane-aligned head slices
HEAD_DIM = HIDDEN // N_HEADS
INTERMEDIATE = 1536   # small synthetic FFN (bert-base has 3072)
VOCAB = 1000
MAX_POS = 64
H_CLS = 100
H_CLS_PAD = 128       # padded to lane-dense width
D_OUT = 2
D_OUT_PAD = 128       # padded to lane-dense width
LN_EPS = 1e-12

TILE_N = 256          # MXU-friendly output tile (matches 256x256 MXU on v6e/v7x)


def _pick_tile_m(m, candidates=(512, 256, 128, 64, 32, 16, 8)):
    """Largest row-tile that divides m (falls back to m itself for tiny shapes)."""
    for c in candidates:
        if m % c == 0:
            return c
    return m


def _pick_batch_tile(b, s):
    """Batch elements per attention grid step: pack batches when S is small."""
    cap = max(1, 128 // s) if s < 128 else 1
    bt = 1
    for c in range(1, min(b, cap) + 1):
        if b % c == 0:
            bt = c
    return bt


# ----------------------------- Pallas kernels -------------------------------
def _dense_kernel(x_ref, w_ref, b_ref, o_ref, *, act):
    """y = act(x @ w + b) for one (tile_m, tile_n) output block; full K in one dot."""
    y = jnp.dot(x_ref[...], w_ref[...], preferred_element_type=jnp.float32)
    y = y + b_ref[...]
    if act == "relu":
        y = jnp.maximum(y, 0.0)
    elif act == "gelu":
        # TODO(synk): HF BERT uses exact erf-based GELU; tanh approximation used here.
        y = jax.nn.gelu(y, approximate=True)
    o_ref[...] = y.astype(o_ref.dtype)


def dense(x, w, b, act=None, tile_n=TILE_N):
    """y = act(x @ w + b).  x: (M, K) bf16, w: (K, N) bf16, b: (N,) f32 -> (M, N) bf16.

    Grid = (N_tiles, M_tiles); M is innermost and the weight index is constant across M
    so each (K, tile_n) weight block is DMA'd once and stays resident in VMEM.
    """
    M, K = x.shape
    N = w.shape[1]
    tile_n = min(tile_n, N)
    assert N % tile_n == 0
    tile_m = _pick_tile_m(M)
    kernel = functools.partial(_dense_kernel, act=act)
    return pl.pallas_call(
        kernel,
        out_shape=jax.ShapeDtypeStruct((M, N), jnp.bfloat16),
        grid=(N // tile_n, M // tile_m),
        in_specs=[pl.BlockSpec((tile_m, K), lambda j, i: (i, 0)),
                  pl.BlockSpec((K, tile_n), lambda j, i: (0, j)),
                  pl.BlockSpec((1, tile_n), lambda j, i: (0, j))],
        out_specs=pl.BlockSpec((tile_m, tile_n), lambda j, i: (i, j)),
        compiler_params=pltpu.CompilerParams(
            dimension_semantics=("parallel", "parallel")),
    )(x, w, b.reshape(1, N))


def _dense_res_ln_kernel(x_ref, w_ref, b_ref, r_ref, g_ref, be_ref, o_ref, *, eps):
    """Fused LayerNorm(res + x @ w + b) for one row tile; full K & N in one shot."""
    y = jnp.dot(x_ref[...], w_ref[...], preferred_element_type=jnp.float32)
    y = y + b_ref[...] + r_ref[...].astype(jnp.float32)
    mean = jnp.mean(y, axis=-1, keepdims=True)
    var = jnp.mean((y - mean) ** 2, axis=-1, keepdims=True)
    yn = (y - mean) * jax.lax.rsqrt(var + eps)
    o_ref[...] = (yn * g_ref[...] + be_ref[...]).astype(o_ref.dtype)


def dense_residual_layernorm(x, w, b, res, gamma, beta, eps=LN_EPS):
    """LayerNorm(res + x @ w + b).  x: (M, K) bf16, w: (K, N) bf16, res: (M, N) bf16."""
    M, K = x.shape
    N = w.shape[1]
    tile_m = _pick_tile_m(M)
    kernel = functools.partial(_dense_res_ln_kernel, eps=eps)
    return pl.pallas_call(
        kernel,
        out_shape=jax.ShapeDtypeStruct((M, N), jnp.bfloat16),
        grid=(M // tile_m,),
        in_specs=[pl.BlockSpec((tile_m, K), lambda i: (i, 0)),
                  pl.BlockSpec((K, N), lambda i: (0, 0)),
                  pl.BlockSpec((1, N), lambda i: (0, 0)),
                  pl.BlockSpec((tile_m, N), lambda i: (i, 0)),
                  pl.BlockSpec((1, N), lambda i: (0, 0)),
                  pl.BlockSpec((1, N), lambda i: (0, 0))],
        out_specs=pl.BlockSpec((tile_m, N), lambda i: (i, 0)),
        compiler_params=pltpu.CompilerParams(dimension_semantics=("parallel",)),
    )(x, w, b.reshape(1, N), res, gamma.reshape(1, N), beta.reshape(1, N))


def _layernorm_kernel(x_ref, g_ref, b_ref, o_ref, *, eps):
    xv = x_ref[...].astype(jnp.float32)
    mean = jnp.mean(xv, axis=-1, keepdims=True)
    var = jnp.mean((xv - mean) ** 2, axis=-1, keepdims=True)
    yn = (xv - mean) * jax.lax.rsqrt(var + eps)
    o_ref[...] = (yn * g_ref[...] + b_ref[...]).astype(o_ref.dtype)


def layernorm(x, gamma, beta, eps=LN_EPS):
    """Row-wise LayerNorm over last dim, tiled & parallel over rows.  (Embeddings LN.)"""
    M, D = x.shape
    tile_m = _pick_tile_m(M)
    kernel = functools.partial(_layernorm_kernel, eps=eps)
    return pl.pallas_call(
        kernel,
        out_shape=jax.ShapeDtypeStruct((M, D), jnp.bfloat16),
        grid=(M // tile_m,),
        in_specs=[pl.BlockSpec((tile_m, D), lambda i: (i, 0)),
                  pl.BlockSpec((1, D), lambda i: (0, 0)),
                  pl.BlockSpec((1, D), lambda i: (0, 0))],
        out_specs=pl.BlockSpec((tile_m, D), lambda i: (i, 0)),
        compiler_params=pltpu.CompilerParams(dimension_semantics=("parallel",)),
    )(x, gamma.reshape(1, D), beta.reshape(1, D))


def _attn_kernel(qkv_ref, bias_ref, o_ref, *, bt, n_heads, dh):
    """bt batch elements per grid step, all heads, from the fused (S, 3D) QKV block.

    q/k/v are sliced per head straight from the ref (128-lane-aligned slices, no full
    QKV value materialized) and each head's context is stored directly to its output
    slice (no concatenate). 1/sqrt(dh) is already folded into W_q.
    """
    D = n_heads * dh
    for b in range(bt):                       # static unroll over packed batch elements
        bias = bias_ref[b]                    # (1, S) f32 additive mask bias
        for h in range(n_heads):              # static unroll; dh=128 lane-aligned slices
            q = qkv_ref[b, :, h * dh:(h + 1) * dh]                    # (S, dh) bf16
            k = qkv_ref[b, :, D + h * dh:D + (h + 1) * dh]
            v = qkv_ref[b, :, 2 * D + h * dh:2 * D + (h + 1) * dh]
            # contract last dims directly -> no in-kernel transpose of k
            s = jax.lax.dot_general(q, k, (((1,), (1,)), ((), ())),
                                    preferred_element_type=jnp.float32)
            s = s + bias
            s = s - jnp.max(s, axis=-1, keepdims=True)
            p = jnp.exp(s)
            p = p * pl.reciprocal(jnp.sum(p, axis=-1, keepdims=True))
            ctx = jnp.dot(p.astype(jnp.bfloat16), v,
                          preferred_element_type=jnp.float32)
            o_ref[b, :, h * dh:(h + 1) * dh] = ctx.astype(o_ref.dtype)


def mha_attention(qkv, mask_bias):
    """Masked MHA.  qkv: (B, S, 3D) bf16 fused Q|K|V, mask_bias: (B, 1, S) f32."""
    # TODO(synk): for large S (>=256) switch to a flash-style online-softmax loop over
    # KV tiles instead of materializing the (S, S) score matrix per head.
    B, S, threeD = qkv.shape
    D = threeD // 3
    bt = _pick_batch_tile(B, S)
    kernel = functools.partial(_attn_kernel, bt=bt, n_heads=N_HEADS, dh=HEAD_DIM)
    return pl.pallas_call(
        kernel,
        out_shape=jax.ShapeDtypeStruct((B, S, D), jnp.bfloat16),
        grid=(B // bt,),
        in_specs=[pl.BlockSpec((bt, S, threeD), lambda b: (b, 0, 0)),
                  pl.BlockSpec((bt, 1, S), lambda b: (b, 0, 0))],
        out_specs=pl.BlockSpec((bt, S, D), lambda b: (b, 0, 0)),
        compiler_params=pltpu.CompilerParams(dimension_semantics=("parallel",)),
    )(qkv, mask_bias)


def _classifier_kernel(x_ref, w1_ref, b1_ref, w2_ref, b2_ref, o_ref):
    """Fused Linear(768->128pad) -> ReLU -> Linear(128pad->128pad); lane-dense store."""
    hid = jnp.dot(x_ref[...], w1_ref[...], preferred_element_type=jnp.float32)
    hid = jnp.maximum(hid + b1_ref[...], 0.0)
    out = jnp.dot(hid.astype(jnp.bfloat16), w2_ref[...],
                  preferred_element_type=jnp.float32) + b2_ref[...]
    o_ref[...] = out.astype(o_ref.dtype)


def classifier_head(cls, w1p, b1p, w2p, b2p):
    B = cls.shape[0]
    out = pl.pallas_call(
        _classifier_kernel,
        out_shape=jax.ShapeDtypeStruct((B, D_OUT_PAD), jnp.float32),
        grid=(1,),
        in_specs=[pl.BlockSpec((B, HIDDEN), lambda i: (0, 0)),
                  pl.BlockSpec((HIDDEN, H_CLS_PAD), lambda i: (0, 0)),
                  pl.BlockSpec((1, H_CLS_PAD), lambda i: (0, 0)),
                  pl.BlockSpec((H_CLS_PAD, D_OUT_PAD), lambda i: (0, 0)),
                  pl.BlockSpec((1, D_OUT_PAD), lambda i: (0, 0))],
        out_specs=pl.BlockSpec((B, D_OUT_PAD), lambda i: (0, 0)),
    )(cls, w1p, b1p.reshape(1, -1), w2p, b2p.reshape(1, -1))
    return out[:, :D_OUT]                  # slice the 2 real logit columns


# ----------------------------- parameter init -------------------------------
def init_params(key):
    ks = iter(jax.random.split(key, 128))

    def nrm32(shape):
        return 0.02 * jax.random.normal(next(ks), shape, jnp.float32)

    zeros = lambda shape: jnp.zeros(shape, jnp.float32)
    ones = lambda shape: jnp.ones(shape, jnp.float32)

    params = {
        "word_emb": nrm32((VOCAB, HIDDEN)),
        "pos_emb": nrm32((MAX_POS, HIDDEN)),
        "type_emb": nrm32((2, HIDDEN)),
        "emb_ln_g": ones((HIDDEN,)), "emb_ln_b": zeros((HIDDEN,)),
        "layers": [],
    }

    # classifier: nn.Linear(768,100) -> ReLU -> nn.Linear(100,2), zero-padded to 128 lanes
    w1 = nrm32((HIDDEN, H_CLS))
    w2 = nrm32((H_CLS, D_OUT))
    params["cls_w1"] = jnp.pad(w1, ((0, 0), (0, H_CLS_PAD - H_CLS))).astype(jnp.bfloat16)
    params["cls_b1"] = zeros((H_CLS_PAD,))
    params["cls_w2"] = jnp.pad(w2, ((0, H_CLS_PAD - H_CLS),
                                    (0, D_OUT_PAD - D_OUT))).astype(jnp.bfloat16)
    params["cls_b2"] = zeros((D_OUT_PAD,))

    scale = 1.0 / math.sqrt(HEAD_DIM)
    for _ in range(N_LAYERS):
        wq, wk, wv = nrm32((HIDDEN, HIDDEN)), nrm32((HIDDEN, HIDDEN)), nrm32((HIDDEN, HIDDEN))
        # fold the 1/sqrt(head_dim) attention scale into W_q (and b_q) at init time
        wqkv = jnp.concatenate([wq * scale, wk, wv], axis=1).astype(jnp.bfloat16)
        bqkv = zeros((3 * HIDDEN,))   # b_q slice would be scaled too (zeros here)
        params["layers"].append({
            "wqkv": wqkv, "bqkv": bqkv,                                  # fused (768, 2304)
            "wo": nrm32((HIDDEN, HIDDEN)).astype(jnp.bfloat16), "bo": zeros((HIDDEN,)),
            "ln1_g": ones((HIDDEN,)), "ln1_b": zeros((HIDDEN,)),
            "wi": nrm32((HIDDEN, INTERMEDIATE)).astype(jnp.bfloat16), "bi": zeros((INTERMEDIATE,)),
            "wf": nrm32((INTERMEDIATE, HIDDEN)).astype(jnp.bfloat16), "bf": zeros((HIDDEN,)),
            "ln2_g": ones((HIDDEN,)), "ln2_b": zeros((HIDDEN,)),
        })
    return params


# ----------------------------- forward pass ---------------------------------
def bert_classifier_forward(params, input_ids, attention_mask):
    B, S = input_ids.shape
    D = HIDDEN

    # Embedding gather + sum in plain JAX glue; matmuls / LN / attention in Pallas.
    # TODO(synk): embedding gather itself is left to XLA (no dedicated Pallas gather kernel).
    h = (params["word_emb"][input_ids]
         + params["pos_emb"][:S][None, :, :]
         + params["type_emb"][0][None, None, :])
    x = layernorm(h.reshape(B * S, D), params["emb_ln_g"], params["emb_ln_b"])  # (B*S, D) bf16

    # Additive attention-mask bias precomputed once per batch.
    mask_bias = ((1.0 - attention_mask.astype(jnp.float32)) * -10000.0).reshape(B, 1, S)

    for lyr in params["layers"]:
        # fused Q|K|V projection: one matmul, one launch (scale already folded into W_q)
        qkv = dense(x, lyr["wqkv"], lyr["bqkv"])                        # (B*S, 3D) bf16
        ctx = mha_attention(qkv.reshape(B, S, 3 * D), mask_bias)        # (B, S, D) bf16
        # output projection + residual + LayerNorm fused
        x_attn = dense_residual_layernorm(ctx.reshape(B * S, D), lyr["wo"], lyr["bo"],
                                          x, lyr["ln1_g"], lyr["ln1_b"])
        # FFN: matmul + GELU fused; second matmul + residual + LayerNorm fused
        inter = dense(x_attn, lyr["wi"], lyr["bi"], act="gelu")         # (B*S, 1536) bf16
        x = dense_residual_layernorm(inter, lyr["wf"], lyr["bf"],
                                     x_attn, lyr["ln2_g"], lyr["ln2_b"])

    # outputs[0][:, 0, :] -> CLS token hidden state
    cls = x.reshape(B, S, D)[:, 0, :]                                   # (B, 768) bf16

    # classifier head: Linear(768,100) -> ReLU -> Linear(100,2), fused & lane-padded
    logits = classifier_head(cls, params["cls_w1"], params["cls_b1"],
                             params["cls_w2"], params["cls_b2"])        # (B, 2) f32
    return logits


# ----------------------------- main ------------------------------------------
if __name__ == "__main__":
    key = jax.random.PRNGKey(0)
    k_param, k_ids = jax.random.split(key)

    B, S = 2, 8
    params = init_params(k_param)

    input_ids = jax.random.randint(k_ids, (B, S), 0, VOCAB, dtype=jnp.int32)
    attention_mask = jnp.array([[1, 1, 1, 1, 1, 1, 1, 1],
                                [1, 1, 1, 1, 1, 1, 0, 0]], dtype=jnp.int32)

    fwd = jax.jit(bert_classifier_forward)
    logits = fwd(params, input_ids, attention_mask)
    logits = jax.block_until_ready(logits)

    assert logits.shape == (B, D_OUT) and logits.dtype == jnp.float32
    assert bool(jnp.all(jnp.isfinite(logits)))
    print("KERNEL_OK")
</pallas_src>

<mosaic_0001>
module attributes {stable_mosaic.version = 11 : i64} {
  func.func @_layernorm_kernel(%arg0: i32, %arg1: memref<16x768xf32, #tpu.memory_space<vmem>>, %arg2: memref<1x768xf32, #tpu.memory_space<vmem>>, %arg3: memref<1x768xf32, #tpu.memory_space<vmem>>, %arg4: memref<16x768xbf16, #tpu.memory_space<vmem>>) attributes {dimension_semantics = [#tpu.dimension_semantics<parallel>], iteration_bounds = array<i64: 1>, scalar_prefetch = 0 : i64, scratch_operands = 0 : i64, tpu.core_type = #tpu.core_type<tc>, window_params = [{transform_indices = @transform_0, window_bounds = array<i64: 16, 768>}, {pipeline_mode = #tpu.pipeline_mode<synchronous>, transform_indices = @transform_1, window_bounds = array<i64: 1, 768>}, {pipeline_mode = #tpu.pipeline_mode<synchronous>, transform_indices = @transform_2, window_bounds = array<i64: 1, 768>}, {transform_indices = @transform_3, window_bounds = array<i64: 16, 768>}]} {
    %c0 = arith.constant 0 : index
    %c0_0 = arith.constant 0 : index
    %0 = vector.load %arg1[%c0, %c0_0] : memref<16x768xf32, #tpu.memory_space<vmem>>, vector<16x768xf32>
    %cst = arith.constant dense<0.000000e+00> : vector<16xf32>
    %1 = vector.multi_reduction <add>, %0, %cst [1] : vector<16x768xf32> to vector<16xf32>
    %2 = vector.shape_cast %1 : vector<16xf32> to vector<16x1xf32>
    %cst_1 = arith.constant 7.680000e+02 : f32
    %3 = vector.broadcast %cst_1 : f32 to vector<16x1xf32>
    %4 = arith.divf %2, %3 : vector<16x1xf32>
    %5 = vector.broadcast %4 : vector<16x1xf32> to vector<16x768xf32>
    %6 = arith.subf %0, %5 : vector<16x768xf32>
    %7 = arith.mulf %6, %6 : vector<16x768xf32>
    %cst_2 = arith.constant dense<0.000000e+00> : vector<16xf32>
    %8 = vector.multi_reduction <add>, %7, %cst_2 [1] : vector<16x768xf32> to vector<16xf32>
    %9 = vector.shape_cast %8 : vector<16xf32> to vector<16x1xf32>
    %cst_3 = arith.constant 7.680000e+02 : f32
    %10 = vector.broadcast %cst_3 : f32 to vector<16x1xf32>
    %11 = arith.divf %9, %10 : vector<16x1xf32>
    %12 = vector.broadcast %4 : vector<16x1xf32> to vector<16x768xf32>
    %13 = arith.subf %0, %12 : vector<16x768xf32>
    %cst_4 = arith.constant 9.99999996E-13 : f32
    %14 = vector.broadcast %cst_4 : f32 to vector<16x1xf32>
    %15 = arith.addf %11, %14 : vector<16x1xf32>
    %16 = math.rsqrt %15 : vector<16x1xf32>
    %17 = vector.broadcast %16 : vector<16x1xf32> to vector<16x768xf32>
    %18 = arith.mulf %13, %17 : vector<16x768xf32>
    %c0_5 = arith.constant 0 : index
    %c0_6 = arith.constant 0 : index
    %19 = vector.load %arg2[%c0_5, %c0_6] : memref<1x768xf32, #tpu.memory_space<vmem>>, vector<1x768xf32>
    %20 = vector.broadcast %19 : vector<1x768xf32> to vector<16x768xf32>
    %21 = arith.mulf %18, %20 : vector<16x768xf32>
    %c0_7 = arith.constant 0 : index
    %c0_8 = arith.constant 0 : index
    %22 = vector.load %arg3[%c0_7, %c0_8] : memref<1x768xf32, #tpu.memory_space<vmem>>, vector<1x768xf32>
    %23 = vector.broadcast %22 : vector<1x768xf32> to vector<16x768xf32>
    %24 = arith.addf %21, %23 : vector<16x768xf32>
    %25 = arith.truncf %24 : vector<16x768xf32> to vector<16x768xbf16>
    %c0_9 = arith.constant 0 : index
    %c0_10 = arith.constant 0 : index
    %26 = vector.load %arg4[%c0_9, %c0_10] : memref<16x768xbf16, #tpu.memory_space<vmem>>, vector<16x768xbf16>
    tpu.vector_store %arg4[%c0_9, %c0_10], %25 {strides = array<i32>} : memref<16x768xbf16, #tpu.memory_space<vmem>>, vector<16x768xbf16>,
    return
  }
  func.func @transform_0(%arg0: i32) -> (i32, i32) {
    %c0_i32 = arith.constant 0 : i32
    %c0_i32_0 = arith.constant 0 : i32
    return %arg0, %c0_i32 : i32, i32
  }
  func.func @transform_1(%arg0: i32) -> (i32, i32) {
    %c0_i32 = arith.constant 0 : i32
    %c0_i32_0 = arith.constant 0 : i32
    %c0_i32_1 = arith.constant 0 : i32
    return %c0_i32, %c0_i32_0 : i32, i32
  }
  func.func @transform_2(%arg0: i32) -> (i32, i32) {
    %c0_i32 = arith.constant 0 : i32
    %c0_i32_0 = arith.constant 0 : i32
    %c0_i32_1 = arith.constant 0 : i32
    return %c0_i32, %c0_i32_0 : i32, i32
  }
  func.func @transform_3(%arg0: i32) -> (i32, i32) {
    %c0_i32 = arith.constant 0 : i32
    %c0_i32_0 = arith.constant 0 : i32
    return %arg0, %c0_i32 : i32, i32
  }
}

module attributes {stable_mosaic.version = 11 : i64} {
  func.func @_dense_res_ln_kernel(%arg0: i32, %arg1: memref<16x768xbf16, #tpu.memory_space<vmem>>, %arg2: memref<768x768xbf16, #tpu.memory_space<vmem>>, %arg3: memref<1x768xf32, #tpu.memory_space<vmem>>, %arg4: memref<16x768xbf16, #tpu.memory_space<vmem>>, %arg5: memref<1x768xf32, #tpu.memory_space<vmem>>, %arg6: memref<1x768xf32, #tpu.memory_space<vmem>>, %arg7: memref<16x768xbf16, #tpu.memory_space<vmem>>) attributes {dimension_semantics = [#tpu.dimension_semantics<parallel>], iteration_bounds = array<i64: 1>, scalar_prefetch = 0 : i64, scratch_operands = 0 : i64, tpu.core_type = #tpu.core_type<tc>, window_params = [{transform_indices = @transform_0, window_bounds = array<i64: 16, 768>}, {pipeline_mode = #tpu.pipeline_mode<synchronous>, transform_indices = @transform_1, window_bounds = array<i64: 768, 768>}, {pipeline_mode = #tpu.pipeline_mode<synchronous>, transform_indices = @transform_2, window_bounds = array<i64: 1, 768>}, {transform_indices = @transform_3, window_bounds = array<i64: 16, 768>}, {pipeline_mode = #tpu.pipeline_mode<synchronous>, transform_indices = @transform_4, window_bounds = array<i64: 1, 768>}, {pipeline_mode = #tpu.pipeline_mode<synchronous>, transform_indices = @transform_5, window_bounds = array<i64: 1, 768>}, {transform_indices = @transform_6, window_bounds = array<i64: 16, 768>}]} {
    %c0 = arith.constant 0 : index
    %c0_0 = arith.constant 0 : index
    %0 = vector.load %arg1[%c0, %c0_0] : memref<16x768xbf16, #tpu.memory_space<vmem>>, vector<16x768xbf16>
    %c0_1 = arith.constant 0 : index
    %c0_2 = arith.constant 0 : index
    %1 = vector.load %arg2[%c0_1, %c0_2] : memref<768x768xbf16, #tpu.memory_space<vmem>>, vector<768x768xbf16>
    %cst = arith.constant dense<0.000000e+00> : vector<16x768xf32>
    %2 = tpu.matmul %0, %1, %cst {dimension_numbers = #tpu.dot_dimension_numbers<[1], [0], [0], [1], [0, 0, 1, 1], [], []>} : vector<16x768xbf16>, vector<768x768xbf16>, vector<16x768xf32> -> vector<16x768xf32>
    %c0_3 = arith.constant 0 : index
    %c0_4 = arith.constant 0 : index
    %3 = vector.load %arg3[%c0_3, %c0_4] : memref<1x768xf32, #tpu.memory_space<vmem>>, vector<1x768xf32>
    %4 = vector.broadcast %3 : vector<1x768xf32> to vector<16x768xf32>
    %5 = arith.addf %2, %4 : vector<16x768xf32>
    %c0_5 = arith.constant 0 : index
    %c0_6 = arith.constant 0 : index
    %6 = vector.load %arg4[%c0_5, %c0_6] : memref<16x768xbf16, #tpu.memory_space<vmem>>, vector<16x768xbf16>
    %7 = arith.extf %6 : vector<16x768xbf16> to vector<16x768xf32>
    %8 = arith.addf %5, %7 : vector<16x768xf32>
    %cst_7 = arith.constant dense<0.000000e+00> : vector<16xf32>
    %9 = vector.multi_reduction <add>, %8, %cst_7 [1] : vector<16x768xf32> to vector<16xf32>
    %10 = vector.shape_cast %9 : vector<16xf32> to vector<16x1xf32>
    %cst_8 = arith.constant 7.680000e+02 : f32
    %11 = vector.broadcast %cst_8 : f32 to vector<16x1xf32>
    %12 = arith.divf %10, %11 : vector<16x1xf32>
    %13 = vector.broadcast %12 : vector<16x1xf32> to vector<16x768xf32>
    %14 = arith.subf %8, %13 : vector<16x768xf32>
    %15 = arith.mulf %14, %14 : vector<16x768xf32>
    %cst_9 = arith.constant dense<0.000000e+00> : vector<16xf32>
    %16 = vector.multi_reduction <add>, %15, %cst_9 [1] : vector<16x768xf32> to vector<16xf32>
    %17 = vector.shape_cast %16 : vector<16xf32> to vector<16x1xf32>
    %cst_10 = arith.constant 7.680000e+02 : f32
    %18 = vector.broadcast %cst_10 : f32 to vector<16x1xf32>
    %19 = arith.divf %17, %18 : vector<16x1xf32>
    %20 = vector.broadcast %12 : vector<16x1xf32> to vector<16x768xf32>
    %21 = arith.subf %8, %20 : vector<16x768xf32>
    %cst_11 = arith.constant 9.99999996E-13 : f32
    %22 = vector.broadcast %cst_11 : f32 to vector<16x1xf32>
    %23 = arith.addf %19, %22 : vector<16x1xf32>
    %24 = math.rsqrt %23 : vector<16x1xf32>
    %25 = vector.broadcast %24 : vector<16x1xf32> to vector<16x768xf32>
    %26 = arith.mulf %21, %25 : vector<16x768xf32>
    %c0_12 = arith.constant 0 : index
    %c0_13 = arith.constant 0 : index
    %27 = vector.load %arg5[%c0_12, %c0_13] : memref<1x768xf32, #tpu.memory_space<vmem>>, vector<1x768xf32>
    %28 = vector.broadcast %27 : vector<1x768xf32> to vector<16x768xf32>
    %29 = arith.mulf %26, %28 : vector<16x768xf32>
    %c0_14 = arith.constant 0 : index
    %c0_15 = arith.constant 0 : index
    %30 = vector.load %arg6[%c0_14, %c0_15] : memref<1x768xf32, #tpu.memory_space<vmem>>, vector<1x768xf32>
    %31 = vector.broadcast %30 : vector<1x768xf32> to vector<16x768xf32>
    %32 = arith.addf %29, %31 : vector<16x768xf32>
    %33 = arith.truncf %32 : vector<16x768xf32> to vector<16x768xbf16>
    %c0_16 = arith.constant 0 : index
    %c0_17 = arith.constant 0 : index
    %34 = vector.load %arg7[%c0_16, %c0_17] : memref<16x768xbf16, #tpu.memory_space<vmem>>, vector<16x768xbf16>
    tpu.vector_store %arg7[%c0_16, %c0_17], %33 {strides = array<i32>} : memref<16x768xbf16, #tpu.memory_space<vmem>>, vector<16x768xbf16>,
    return
  }
  func.func @transform_0(%arg0: i32) -> (i32, i32) {
    %c0_i32 = arith.constant 0 : i32
    %c0_i32_0 = arith.constant 0 : i32
    return %arg0, %c0_i32 : i32, i32
  }
  func.func @transform_1(%arg0: i32) -> (i32, i32) {
    %c0_i32 = arith.constant 0 : i32
    %c0_i32_0 = arith.constant 0 : i32
    %c0_i32_1 = arith.constant 0 : i32
    return %c0_i32, %c0_i32_0 : i32, i32
  }
  func.func @transform_2(%arg0: i32) -> (i32, i32) {
    %c0_i32 = arith.constant 0 : i32
    %c0_i32_0 = arith.constant 0 : i32
    %c0_i32_1 = arith.constant 0 : i32
    return %c0_i32, %c0_i32_0 : i32, i32
  }
  func.func @transform_3(%arg0: i32) -> (i32, i32) {
    %c0_i32 = arith.constant 0 : i32
    %c0_i32_0 = arith.constant 0 : i32
    return %arg0, %c0_i32 : i32, i32
  }
  func.func @transform_4(%arg0: i32) -> (i32, i32) {
    %c0_i32 = arith.constant 0 : i32
    %c0_i32_0 = arith.constant 0 : i32
    %c0_i32_1 = arith.constant 0 : i32
    return %c0_i32, %c0_i32_0 : i32, i32
  }
  func.func @transform_5(%arg0: i32) -> (i32, i32) {
    %c0_i32 = arith.constant 0 : i32
    %c0_i32_0 = arith.constant 0 : i32
    %c0_i32_1 = arith.constant 0 : i32
    return %c0_i32, %c0_i32_0 : i32, i32
  }
  func.func @transform_6(%arg0: i32) -> (i32, i32) {
    %c0_i32 = arith.constant 0 : i32
    %c0_i32_0 = arith.constant 0 : i32
    return %arg0, %c0_i32 : i32, i32
  }
}

module attributes {stable_mosaic.version = 11 : i64} {
  func.func @_attn_kernel(%arg0: i32, %arg1: memref<2x8x2304xbf16, #tpu.memory_space<vmem>>, %arg2: memref<2x1x8xf32, #tpu.memory_space<vmem>>, %arg3: memref<2x8x768xbf16, #tpu.memory_space<vmem>>) attributes {dimension_semantics = [#tpu.dimension_semantics<parallel>], iteration_bounds = array<i64: 1>, scalar_prefetch = 0 : i64, scratch_operands = 0 : i64, tpu.core_type = #tpu.core_type<tc>, window_params = [{transform_indices = @transform_0, window_bounds = array<i64: 2, 8, 2304>}, {transform_indices = @transform_1, window_bounds = array<i64: 2, 1, 8>}, {transform_indices = @transform_2, window_bounds = array<i64: 2, 8, 768>}]} {
    %c0 = arith.constant 0 : index
    %c0_0 = arith.constant 0 : index
    %c0_1 = arith.constant 0 : index
    %0 = vector.load %arg2[%c0, %c0_0, %c0_1] : memref<2x1x8xf32, #tpu.memory_space<vmem>>, vector<1x1x8xf32>
    %1 = vector.shape_cast %0 : vector<1x1x8xf32> to vector<1x8xf32>
    %c0_2 = arith.constant 0 : index
    %c0_3 = arith.constant 0 : index
    %c0_4 = arith.constant 0 : index
    %2 = vector.load %arg1[%c0_2, %c0_3, %c0_4] : memref<2x8x2304xbf16, #tpu.memory_space<vmem>>, vector<1x8x128xbf16>
    %3 = vector.shape_cast %2 : vector<1x8x128xbf16> to vector<8x128xbf16>
    %c0_5 = arith.constant 0 : index
    %c0_6 = arith.constant 0 : index
    %c768 = arith.constant 768 : index
    %4 = vector.load %arg1[%c0_5, %c0_6, %c768] : memref<2x8x2304xbf16, #tpu.memory_space<vmem>>, vector<1x8x128xbf16>
    %5 = vector.shape_cast %4 : vector<1x8x128xbf16> to vector<8x128xbf16>
    %c0_7 = arith.constant 0 : index
    %c0_8 = arith.constant 0 : index
    %c1536 = arith.constant 1536 : index
    %6 = vector.load %arg1[%c0_7, %c0_8, %c1536] : memref<2x8x2304xbf16, #tpu.memory_space<vmem>>, vector<1x8x128xbf16>
    %7 = vector.shape_cast %6 : vector<1x8x128xbf16> to vector<8x128xbf16>
    %cst = arith.constant dense<0.000000e+00> : vector<8x8xf32>
    %8 = tpu.matmul %3, %5, %cst {dimension_numbers = #tpu.dot_dimension_numbers<[1], [1], [0], [0], [0, 0, 1, 0], [], []>} : vector<8x128xbf16>, vector<8x128xbf16>, vector<8x8xf32> -> vector<8x8xf32>
    %9 = vector.broadcast %1 : vector<1x8xf32> to vector<8x8xf32>
    %10 = arith.addf %8, %9 : vector<8x8xf32>
    %cst_9 = arith.constant dense<0xFF800000> : vector<8xf32>
    %11 = vector.multi_reduction <maximumf>, %10, %cst_9 [1] : vector<8x8xf32> to vector<8xf32>
    %12 = vector.shape_cast %11 : vector<8xf32> to vector<8x1xf32>
    %13 = vector.broadcast %12 : vector<8x1xf32> to vector<8x8xf32>
    %14 = arith.subf %10, %13 : vector<8x8xf32>
    %15 = math.exp %14 : vector<8x8xf32>
    %cst_10 = arith.constant dense<0.000000e+00> : vector<8xf32>
    %16 = vector.multi_reduction <add>, %15, %cst_10 [1] : vector<8x8xf32> to vector<8xf32>
    %17 = vector.shape_cast %16 : vector<8xf32> to vector<8x1xf32>
    %18 = tpu.reciprocal %17 : vector<8x1xf32> -> vector<8x1xf32>
    %19 = vector.broadcast %18 : vector<8x1xf32> to vector<8x8xf32>
    %20 = arith.mulf %15, %19 : vector<8x8xf32>
    %21 = arith.truncf %20 : vector<8x8xf32> to vector<8x8xbf16>
    %cst_11 = arith.constant dense<0.000000e+00> : vector<8x128xf32>
    %22 = tpu.matmul %21, %7, %cst_11 {dimension_numbers = #tpu.dot_dimension_numbers<[1], [0], [0], [1], [0, 0, 1, 1], [], []>} : vector<8x8xbf16>, vector<8x128xbf16>, vector<8x128xf32> -> vector<8x128xf32>
    %23 = arith.truncf %22 : vector<8x128xf32> to vector<8x128xbf16>
    %c0_12 = arith.constant 0 : index
    %c0_13 = arith.constant 0 : index
    %c0_14 = arith.constant 0 : index
    %24 = vector.load %arg3[%c0_12, %c0_13, %c0_14] : memref<2x8x768xbf16, #tpu.memory_space<vmem>>, vector<1x8x128xbf16>
    %25 = vector.shape_cast %24 : vector<1x8x128xbf16> to vector<8x128xbf16>
    %26 = vector.shape_cast %23 : vector<8x128xbf16> to vector<1x8x128xbf16>
    tpu.vector_store %arg3[%c0_12, %c0_13, %c0_14], %26 {strides = array<i32>} : memref<2x8x768xbf16, #tpu.memory_space<vmem>>, vector<1x8x128xbf16>,
    %c0_15 = arith.constant 0 : index
    %c0_16 = arith.constant 0 : index
    %c128 = arith.constant 128 : index
    %27 = vector.load %arg1[%c0_15, %c0_16, %c128] : memref<2x8x2304xbf16, #tpu.memory_space<vmem>>, vector<1x8x128xbf16>
    %28 = vector.shape_cast %27 : vector<1x8x128xbf16> to vector<8x128xbf16>
    %c0_17 = arith.constant 0 : index
    %c0_18 = arith.constant 0 : index
    %c896 = arith.constant 896 : index
    %29 = vector.load %arg1[%c0_17, %c0_18, %c896] : memref<2x8x2304xbf16, #tpu.memory_space<vmem>>, vector<1x8x128xbf16>
    %30 = vector.shape_cast %29 : vector<1x8x128xbf16> to vector<8x128xbf16>
    %c0_19 = arith.constant 0 : index
    %c0_20 = arith.constant 0 : index
    %c1664 = arith.constant 1664 : index
    %31 = vector.load %arg1[%c0_19, %c0_20, %c1664] : memref<2x8x2304xbf16, #tpu.memory_space<vmem>>, vector<1x8x128xbf16>
    %32 = vector.shape_cast %31 : vector<1x8x128xbf16> to vector<8x128xbf16>
    %cst_21 = arith.constant dense<0.000000e+00> : vector<8x8xf32>
    %33 = tpu.matmul %28, %30, %cst_21 {dimension_numbers = #tpu.dot_dimension_numbers<[1], [1], [0], [0], [0, 0, 1, 0], [], []>} : vector<8x128xbf16>, vector<8x128xbf16>, vector<8x8xf32> -> vector<8x8xf32>
    %34 = vector.broadcast %1 : vector<1x8xf32> to vector<8x8xf32>
    %35 = arith.addf %33, %34 : vector<8x8xf32>
    %cst_22 = arith.constant dense<0xFF800000> : vector<8xf32>
    %36 = vector.multi_reduction <maximumf>, %35, %cst_22 [1] : vector<8x8xf32> to vector<8xf32>
    %37 = vector.shape_cast %36 : vector<8xf32> to vector<8x1xf32>
    %38 = vector.broadcast %37 : vector<8x1xf32> to vector<8x8xf32>
    %39 = arith.subf %35, %38 : vector<8x8xf32>
    %40 = math.exp %39 : vector<8x8xf32>
    %cst_23 = arith.constant dense<0.000000e+00> : vector<8xf32>
    %41 = vector.multi_reduction <add>, %40, %cst_23 [1] : vector<8x8xf32> to vector<8xf32>
    %42 = vector.shape_cast %41 : vector<8xf32> to vector<8x1xf32>
    %43 = tpu.reciprocal %42 : vector<8x1xf32> -> vector<8x1xf32>
    %44 = vector.broadcast %43 : vector<8x1xf32> to vector<8x8xf32>
    %45 = arith.mulf %40, %44 : vector<8x8xf32>
    %46 = arith.truncf %45 : vector<8x8xf32> to vector<8x8xbf16>
    %cst_24 = arith.constant dense<0.000000e+00> : vector<8x128xf32>
    %47 = tpu.matmul %46, %32, %cst_24 {dimension_numbers = #tpu.dot_dimension_numbers<[1], [0], [0], [1], [0, 0, 1, 1], [], []>} : vector<8x8xbf16>, vector<8x128xbf16>, vector<8x128xf32> -> vector<8x128xf32>
    %48 = arith.truncf %47 : vector<8x128xf32> to vector<8x128xbf16>
    %c0_25 = arith.constant 0 : index
    %c0_26 = arith.constant 0 : index
    %c128_27 = arith.constant 128 : index
    %49 = vector.load %arg3[%c0_25, %c0_26, %c128_27] : memref<2x8x768xbf16, #tpu.memory_space<vmem>>, vector<1x8x128xbf16>
    %50 = vector.shape_cast %49 : vector<1x8x128xbf16> to vector<8x128xbf16>
    %51 = vector.shape_cast %48 : vector<8x128xbf16> to vector<1x8x128xbf16>
    tpu.vector_store %arg3[%c0_25, %c0_26, %c128_27], %51 {strides = array<i32>} : memref<2x8x768xbf16, #tpu.memory_space<vmem>>, vector<1x8x128xbf16>,
    %c0_28 = arith.constant 0 : index
    %c0_29 = arith.constant 0 : index
    %c256 = arith.constant 256 : index
    %52 = vector.load %arg1[%c0_28, %c0_29, %c256] : memref<2x8x2304xbf16, #tpu.memory_space<vmem>>, vector<1x8x128xbf16>
    %53 = vector.shape_cast %52 : vector<1x8x128xbf16> to vector<8x128xbf16>
    %c0_30 = arith.constant 0 : index
    %c0_31 = arith.constant 0 : index
    %c1024 = arith.constant 1024 : index
    %54 = vector.load %arg1[%c0_30, %c0_31, %c1024] : memref<2x8x2304xbf16, #tpu.memory_space<vmem>>, vector<1x8x128xbf16>
    %55 = vector.shape_cast %54 : vector<1x8x128xbf16> to vector<8x128xbf16>
    %c0_32 = arith.constant 0 : index
    %c0_33 = arith.constant 0 : index
    %c1792 = arith.constant 1792 : index
    %56 = vector.load %arg1[%c0_32, %c0_33, %c1792] : memref<2x8x2304xbf16, #tpu.memory_space<vmem>>, vector<1x8x128xbf16>
    %57 = vector.shape_cast %56 : vector<1x8x128xbf16> to vector<8x128xbf16>
    %cst_34 = arith.constant dense<0.000000e+00> : vector<8x8xf32>
    %58 = tpu.matmul %53, %55, %cst_34 {dimension_numbers = #tpu.dot_dimension_numbers<[1], [1], [0], [0], [0, 0, 1, 0], [], []>} : vector<8x128xbf16>, vector<8x128xbf16>, vector<8x8xf32> -> vector<8x8xf32>
    %59 = vector.broadcast %1 : vector<1x8xf32> to vector<8x8xf32>
    %60 = arith.addf %58, %59 : vector<8x8xf32>
    %cst_35 = arith.constant dense<0xFF800000> : vector<8xf32>
    %61 = vector.multi_reduction <maximumf>, %60, %cst_35 [1] : vector<8x8xf32> to vector<8xf32>
    %62 = vector.shape_cast %61 : vector<8xf32> to vector<8x1xf32>
    %63 = vector.broadcast %62 : vector<8x1xf32> to vector<8x8xf32>
    %64 = arith.subf %60, %63 : vector<8x8xf32>
    %65 = math.exp %64 : vector<8x8xf32>
    %cst_36 = arith.constant dense<0.000000e+00> : vector<8xf32>
    %66 = vector.multi_reduction <add>, %65, %cst_36 [1] : vector<8x8xf32> to vector<8xf32>
    %67 = vector.shape_cast %66 : vector<8xf32> to vector<8x1xf32>
    %68 = tpu.reciprocal %67 : vector<8x1xf32> -> vector<8x1xf32>
    %69 = vector.broadcast %68 : vector<8x1xf32> to vector<8x8xf32>
    %70 = arith.mulf %65, %69 : vector<8x8xf32>
    %71 = arith.truncf %70 : vector<8x8xf32> to vector<8x8xbf16>
    %cst_37 = arith.constant dense<0.000000e+00> : vector<8x128xf32>
    %72 = tpu.matmul %71, %57, %cst_37 {dimension_numbers = #tpu.dot_dimension_numbers<[1], [0], [0], [1], [0, 0, 1, 1], [], []>} : vector<8x8xbf16>, vector<8x128xbf16>, vector<8x128xf32> -> vector<8x128xf32>
    %73 = arith.truncf %72 : vector<8x128xf32> to vector<8x128xbf16>
    %c0_38 = arith.constant 0 : index
    %c0_39 = arith.constant 0 : index
    %c256_40 = arith.constant 256 : index
    %74 = vector.load %arg3[%c0_38, %c0_39, %c256_40] : memref<2x8x768xbf16, #tpu.memory_space<vmem>>, vector<1x8x128xbf16>
    %75 = vector.shape_cast %74 : vector<1x8x128xbf16> to vector<8x128xbf16>
    %76 = vector.shape_cast %73 : vector<8x128xbf16> to vector<1x8x128xbf16>
    tpu.vector_store %arg3[%c0_38, %c0_39, %c256_40], %76 {strides = array<i32>} : memref<2x8x768xbf16, #tpu.memory_space<vmem>>, vector<1x8x128xbf16>,
    %c0_41 = arith.constant 0 : index
    %c0_42 = arith.constant 0 : index
    %c384 = arith.constant 384 : index
    %77 = vector.load %arg1[%c0_41, %c0_42, %c384] : memref<2x8x2304xbf16, #tpu.memory_space<vmem>>, vector<1x8x128xbf16>
    %78 = vector.shape_cast %77 : vector<1x8x128xbf16> to vector<8x128xbf16>
    %c0_43 = arith.constant 0 : index
    %c0_44 = arith.constant 0 : index
    %c1152 = arith.constant 1152 : index
    %79 = vector.load %arg1[%c0_43, %c0_44, %c1152] : memref<2x8x2304xbf16, #tpu.memory_space<vmem>>, vector<1x8x128xbf16>
    %80 = vector.shape_cast %79 : vector<1x8x128xbf16> to vector<8x128xbf16>
    %c0_45 = arith.constant 0 : index
    %c0_46 = arith.constant 0 : index
    %c1920 = arith.constant 1920 : index
    %81 = vector.load %arg1[%c0_45, %c0_46, %c1920] : memref<2x8x2304xbf16, #tpu.memory_space<vmem>>, vector<1x8x128xbf16>
    %82 = vector.shape_cast %81 : vector<1x8x128xbf16> to vector<8x128xbf16>
    %cst_47 = arith.constant dense<0.000000e+00> : vector<8x8xf32>
    %83 = tpu.matmul %78, %80, %cst_47 {dimension_numbers = #tpu.dot_dimension_numbers<[1], [1], [0], [0], [0, 0, 1, 0], [], []>} : vector<8x128xbf16>, vector<8x128xbf16>, vector<8x8xf32> -> vector<8x8xf32>
    %84 = vector.broadcast %1 : vector<1x8xf32> to vector<8x8xf32>
    %85 = arith.addf %83, %84 : vector<8x8xf32>
    %cst_48 = arith.constant dense<0xFF800000> : vector<8xf32>
    %86 = vector.multi_reduction <maximumf>, %85, %cst_48 [1] : vector<8x8xf32> to vector<8xf32>
    %87 = vector.shape_cast %86 : vector<8xf32> to vector<8x1xf32>
    %88 = vector.broadcast %87 : vector<8x1xf32> to vector<8x8xf32>
    %89 = arith.subf %85, %88 : vector<8x8xf32>
    %90 = math.exp %89 : vector<8x8xf32>
    %cst_49 = arith.constant dense<0.000000e+00> : vector<8xf32>
    %91 = vector.multi_reduction <add>, %90, %cst_49 [1] : vector<8x8xf32> to vector<8xf32>
    %92 = vector.shape_cast %91 : vector<8xf32> to vector<8x1xf32>
    %93 = tpu.reciprocal %92 : vector<8x1xf32> -> vector<8x1xf32>
    %94 = vector.broadcast %93 : vector<8x1xf32> to vector<8x8xf32>
    %95 = arith.mulf %90, %94 : vector<8x8xf32>
    %96 = arith.truncf %95 : vector<8x8xf32> to vector<8x8xbf16>
    %cst_50 = arith.constant dense<0.000000e+00> : vector<8x128xf32>
    %97 = tpu.matmul %96, %82, %cst_50 {dimension_numbers = #tpu.dot_dimension_numbers<[1], [0], [0], [1], [0, 0, 1, 1], [], []>} : vector<8x8xbf16>, vector<8x128xbf16>, vector<8x128xf32> -> vector<8x128xf32>
    %98 = arith.truncf %97 : vector<8x128xf32> to vector<8x128xbf16>
    %c0_51 = arith.constant 0 : index
    %c0_52 = arith.constant 0 : index
    %c384_53 = arith.constant 384 : index
    %99 = vector.load %arg3[%c0_51, %c0_52, %c384_53] : memref<2x8x768xbf16, #tpu.memory_space<vmem>>, vector<1x8x128xbf16>
    %100 = vector.shape_cast %99 : vector<1x8x128xbf16> to vector<8x128xbf16>
    %101 = vector.shape_cast %98 : vector<8x128xbf16> to vector<1x8x128xbf16>
    tpu.vector_store %arg3[%c0_51, %c0_52, %c384_53], %101 {strides = array<i32>} : memref<2x8x768xbf16, #tpu.memory_space<vmem>>, vector<1x8x128xbf16>,
    %c0_54 = arith.constant 0 : index
    %c0_55 = arith.constant 0 : index
    %c512 = arith.constant 512 : index
    %102 = vector.load %arg1[%c0_54, %c0_55, %c512] : memref<2x8x2304xbf16, #tpu.memory_space<vmem>>, vector<1x8x128xbf16>
    %103 = vector.shape_cast %102 : vector<1x8x128xbf16> to vector<8x128xbf16>
    %c0_56 = arith.constant 0 : index
    %c0_57 = arith.constant 0 : index
    %c1280 = arith.constant 1280 : index
    %104 = vector.load %arg1[%c0_56, %c0_57, %c1280] : memref<2x8x2304xbf16, #tpu.memory_space<vmem>>, vector<1x8x128xbf16>
    %105 = vector.shape_cast %104 : vector<1x8x128xbf16> to vector<8x128xbf16>
    %c0_58 = arith.constant 0 : index
    %c0_59 = arith.constant 0 : index
    %c2048 = arith.constant 2048 : index
    %106 = vector.load %arg1[%c0_58, %c0_59, %c2048] : memref<2x8x2304xbf16, #tpu.memory_space<vmem>>, vector<1x8x128xbf16>
    %107 = vector.shape_cast %106 : vector<1x8x128xbf16> to vector<8x128xbf16>
    %cst_60 = arith.constant dense<0.000000e+00> : vector<8x8xf32>
    %108 = tpu.matmul %103, %105, %cst_60 {dimension_numbers = #tpu.dot_dimension_numbers<[1], [1], [0], [0], [0, 0, 1, 0], [], []>} : vector<8x128xbf16>, vector<8x128xbf16>, vector<8x8xf32> -> vector<8x8xf32>
    %109 = vector.broadcast %1 : vector<1x8xf32> to vector<8x8xf32>
    %110 = arith.addf %108, %109 : vector<8x8xf32>
    %cst_61 = arith.constant dense<0xFF800000> : vector<8xf32>
    %111 = vector.multi_reduction <maximumf>, %110, %cst_61 [1] : vector<8x8xf32> to vector<8xf32>
    %112 = vector.shape_cast %111 : vector<8xf32> to vector<8x1xf32>
    %113 = vector.broadcast %112 : vector<8x1xf32> to vector<8x8xf32>
    %114 = arith.subf %110, %113 : vector<8x8xf32>
    %115 = math.exp %114 : vector<8x8xf32>
    %cst_62 = arith.constant dense<0.000000e+00> : vector<8xf32>
    %116 = vector.multi_reduction <add>, %115, %cst_62 [1] : vector<8x8xf32> to vector<8xf32>
    %117 = vector.shape_cast %116 : vector<8xf32> to vector<8x1xf32>
    %118 = tpu.reciprocal %117 : vector<8x1xf32> -> vector<8x1xf32>
    %119 = vector.broadcast %118 : vector<8x1xf32> to vector<8x8xf32>
    %120 = arith.mulf %115, %119 : vector<8x8xf32>
    %121 = arith.truncf %120 : vector<8x8xf32> to vector<8x8xbf16>
    %cst_63 = arith.constant dense<0.000000e+00> : vector<8x128xf32>
    %122 = tpu.matmul %121, %107, %cst_63 {dimension_numbers = #tpu.dot_dimension_numbers<[1], [0], [0], [1], [0, 0, 1, 1], [], []>} : vector<8x8xbf16>, vector<8x128xbf16>, vector<8x128xf32> -> vector<8x128xf32>
    %123 = arith.truncf %122 : vector<8x128xf32> to vector<8x128xbf16>
    %c0_64 = arith.constant 0 : index
    %c0_65 = arith.constant 0 : index
    %c512_66 = arith.constant 512 : index
    %124 = vector.load %arg3[%c0_64, %c0_65, %c512_66] : memref<2x8x768xbf16, #tpu.memory_space<vmem>>, vector<1x8x128xbf16>
    %125 = vector.shape_cast %124 : vector<1x8x128xbf16> to vector<8x128xbf16>
    %126 = vector.shape_cast %123 : vector<8x128xbf16> to vector<1x8x128xbf16>
    tpu.vector_store %arg3[%c0_64, %c0_65, %c512_66], %126 {strides = array<i32>} : memref<2x8x768xbf16, #tpu.memory_space<vmem>>, vector<1x8x128xbf16>,
    %c0_67 = arith.constant 0 : index
    %c0_68 = arith.constant 0 : index
    %c640 = arith.constant 640 : index
    %127 = vector.load %arg1[%c0_67, %c0_68, %c640] : memref<2x8x2304xbf16, #tpu.memory_space<vmem>>, vector<1x8x128xbf16>
    %128 = vector.shape_cast %127 : vector<1x8x128xbf16> to vector<8x128xbf16>
    %c0_69 = arith.constant 0 : index
    %c0_70 = arith.constant 0 : index
    %c1408 = arith.constant 1408 : index
    %129 = vector.load %arg1[%c0_69, %c0_70, %c1408] : memref<2x8x2304xbf16, #tpu.memory_space<vmem>>, vector<1x8x128xbf16>
    %130 = vector.shape_cast %129 : vector<1x8x128xbf16> to vector<8x128xbf16>
    %c0_71 = arith.constant 0 : index
    %c0_72 = arith.constant 0 : index
    %c2176 = arith.constant 2176 : index
    %131 = vector.load %arg1[%c0_71, %c0_72, %c2176] : memref<2x8x2304xbf16, #tpu.memory_space<vmem>>, vector<1x8x128xbf16>
    %132 = vector.shape_cast %131 : vector<1x8x128xbf16> to vector<8x128xbf16>
    %cst_73 = arith.constant dense<0.000000e+00> : vector<8x8xf32>
    %133 = tpu.matmul %128, %130, %cst_73 {dimension_numbers = #tpu.dot_dimension_numbers<[1], [1], [0], [0], [0, 0, 1, 0], [], []>} : vector<8x128xbf16>, vector<8x128xbf16>, vector<8x8xf32> -> vector<8x8xf32>
    %134 = vector.broadcast %1 : vector<1x8xf32> to vector<8x8xf32>
    %135 = arith.addf %133, %134 : vector<8x8xf32>
    %cst_74 = arith.constant dense<0xFF800000> : vector<8xf32>
    %136 = vector.multi_reduction <maximumf>, %135, %cst_74 [1] : vector<8x8xf32> to vector<8xf32>
    %137 = vector.shape_cast %136 : vector<8xf32> to vector<8x1xf32>
    %138 = vector.broadcast %137 : vector<8x1xf32> to vector<8x8xf32>
    %139 = arith.subf %135, %138 : vector<8x8xf32>
    %140 = math.exp %139 : vector<8x8xf32>
    %cst_75 = arith.constant dense<0.000000e+00> : vector<8xf32>
    %141 = vector.multi_reduction <add>, %140, %cst_75 [1] : vector<8x8xf32> to vector<8xf32>
    %142 = vector.shape_cast %141 : vector<8xf32> to vector<8x1xf32>
    %143 = tpu.reciprocal %142 : vector<8x1xf32> -> vector<8x1xf32>
    %144 = vector.broadcast %143 : vector<8x1xf32> to vector<8x8xf32>
    %145 = arith.mulf %140, %144 : vector<8x8xf32>
    %146 = arith.truncf %145 : vector<8x8xf32> to vector<8x8xbf16>
    %cst_76 = arith.constant dense<0.000000e+00> : vector<8x128xf32>
    %147 = tpu.matmul %146, %132, %cst_76 {dimension_numbers = #tpu.dot_dimension_numbers<[1], [0], [0], [1], [0, 0, 1, 1], [], []>} : vector<8x8xbf16>, vector<8x128xbf16>, vector<8x128xf32> -> vector<8x128xf32>
    %148 = arith.truncf %147 : vector<8x128xf32> to vector<8x128xbf16>
    %c0_77 = arith.constant 0 : index
    %c0_78 = arith.constant 0 : index
    %c640_79 = arith.constant 640 : index
    %149 = vector.load %arg3[%c0_77, %c0_78, %c640_79] : memref<2x8x768xbf16, #tpu.memory_space<vmem>>, vector<1x8x128xbf16>
    %150 = vector.shape_cast %149 : vector<1x8x128xbf16> to vector<8x128xbf16>
    %151 = vector.shape_cast %148 : vector<8x128xbf16> to vector<1x8x128xbf16>
    tpu.vector_store %arg3[%c0_77, %c0_78, %c640_79], %151 {strides = array<i32>} : memref<2x8x768xbf16, #tpu.memory_space<vmem>>, vector<1x8x128xbf16>,
    %c1 = arith.constant 1 : index
    %c0_80 = arith.constant 0 : index
    %c0_81 = arith.constant 0 : index
    %152 = vector.load %arg2[%c1, %c0_80, %c0_81] : memref<2x1x8xf32, #tpu.memory_space<vmem>>, vector<1x1x8xf32>
    %153 = vector.shape_cast %152 : vector<1x1x8xf32> to vector<1x8xf32>
    %c1_82 = arith.constant 1 : index
    %c0_83 = arith.constant 0 : index
    %c0_84 = arith.constant 0 : index
    %154 = vector.load %arg1[%c1_82, %c0_83, %c0_84] : memref<2x8x2304xbf16, #tpu.memory_space<vmem>>, vector<1x8x128xbf16>
    %155 = vector.shape_cast %154 : vector<1x8x128xbf16> to vector<8x128xbf16>
    %c1_85 = arith.constant 1 : index
    %c0_86 = arith.constant 0 : index
    %c768_87 = arith.constant 768 : index
    %156 = vector.load %arg1[%c1_85, %c0_86, %c768_87] : memref<2x8x2304xbf16, #tpu.memory_space<vmem>>, vector<1x8x128xbf16>
    %157 = vector.shape_cast %156 : vector<1x8x128xbf16> to vector<8x128xbf16>
    %c1_88 = arith.constant 1 : index
    %c0_89 = arith.constant 0 : index
    %c1536_90 = arith.constant 1536 : index
    %158 = vector.load %arg1[%c1_88, %c0_89, %c1536_90] : memref<2x8x2304xbf16, #tpu.memory_space<vmem>>, vector<1x8x128xbf16>
    %159 = vector.shape_cast %158 : vector<1x8x128xbf16> to vector<8x128xbf16>
    %cst_91 = arith.constant dense<0.000000e+00> : vector<8x8xf32>
    %160 = tpu.matmul %155, %157, %cst_91 {dimension_numbers = #tpu.dot_dimension_numbers<[1], [1], [0], [0], [0, 0, 1, 0], [], []>} : vector<8x128xbf16>, vector<8x128xbf16>, vector<8x8xf32> -> vector<8x8xf32>
    %161 = vector.broadcast %153 : vector<1x8xf32> to vector<8x8xf32>
    %162 = arith.addf %160, %161 : vector<8x8xf32>
    %cst_92 = arith.constant dense<0xFF800000> : vector<8xf32>
    %163 = vector.multi_reduction <maximumf>, %162, %cst_92 [1] : vector<8x8xf32> to vector<8xf32>
    %164 = vector.shape_cast %163 : vector<8xf32> to vector<8x1xf32>
    %165 = vector.broadcast %164 : vector<8x1xf32> to vector<8x8xf32>
    %166 = arith.subf %162, %165 : vector<8x8xf32>
    %167 = math.exp %166 : vector<8x8xf32>
    %cst_93 = arith.constant dense<0.000000e+00> : vector<8xf32>
    %168 = vector.multi_reduction <add>, %167, %cst_93 [1] : vector<8x8xf32> to vector<8xf32>
    %169 = vector.shape_cast %168 : vector<8xf32> to vector<8x1xf32>
    %170 = tpu.reciprocal %169 : vector<8x1xf32> -> vector<8x1xf32>
    %171 = vector.broadcast %170 : vector<8x1xf32> to vector<8x8xf32>
    %172 = arith.mulf %167, %171 : vector<8x8xf32>
    %173 = arith.truncf %172 : vector<8x8xf32> to vector<8x8xbf16>
    %cst_94 = arith.constant dense<0.000000e+00> : vector<8x128xf32>
    %174 = tpu.matmul %173, %159, %cst_94 {dimension_numbers = #tpu.dot_dimension_numbers<[1], [0], [0], [1], [0, 0, 1, 1], [], []>} : vector<8x8xbf16>, vector<8x128xbf16>, vector<8x128xf32> -> vector<8x128xf32>
    %175 = arith.truncf %174 : vector<8x128xf32> to vector<8x128xbf16>
    %c1_95 = arith.constant 1 : index
    %c0_96 = arith.constant 0 : index
    %c0_97 = arith.constant 0 : index
    %176 = vector.load %arg3[%c1_95, %c0_96, %c0_97] : memref<2x8x768xbf16, #tpu.memory_space<vmem>>, vector<1x8x128xbf16>
    %177 = vector.shape_cast %176 : vector<1x8x128xbf16> to vector<8x128xbf16>
    %178 = vector.shape_cast %175 : vector<8x128xbf16> to vector<1x8x128xbf16>
    tpu.vector_store %arg3[%c1_95, %c0_96, %c0_97], %178 {strides = array<i32>} : memref<2x8x768xbf16, #tpu.memory_space<vmem>>, vector<1x8x128xbf16>,
    %c1_98 = arith.constant 1 : index
    %c0_99 = arith.constant 0 : index
    %c128_100 = arith.constant 128 : index
    %179 = vector.load %arg1[%c1_98, %c0_99, %c128_100] : memref<2x8x2304xbf16, #tpu.memory_space<vmem>>, vector<1x8x128xbf16>
    %180 = vector.shape_cast %179 : vector<1x8x128xbf16> to vector<8x128xbf16>
    %c1_101 = arith.constant 1 : index
    %c0_102 = arith.constant 0 : index
    %c896_103 = arith.constant 896 : index
    %181 = vector.load %arg1[%c1_101, %c0_102, %c896_103] : memref<2x8x2304xbf16, #tpu.memory_space<vmem>>, vector<1x8x128xbf16>
    %182 = vector.shape_cast %181 : vector<1x8x128xbf16> to vector<8x128xbf16>
    %c1_104 = arith.constant 1 : index
    %c0_105 = arith.constant 0 : index
    %c1664_106 = arith.constant 1664 : index
    %183 = vector.load %arg1[%c1_104, %c0_105, %c1664_106] : memref<2x8x2304xbf16, #tpu.memory_space<vmem>>, vector<1x8x128xbf16>
    %184 = vector.shape_cast %183 : vector<1x8x128xbf16> to vector<8x128xbf16>
    %cst_107 = arith.constant dense<0.000000e+00> : vector<8x8xf32>
    %185 = tpu.matmul %180, %182, %cst_107 {dimension_numbers = #tpu.dot_dimension_numbers<[1], [1], [0], [0], [0, 0, 1, 0], [], []>} : vector<8x128xbf16>, vector<8x128xbf16>, vector<8x8xf32> -> vector<8x8xf32>
    %186 = vector.broadcast %153 : vector<1x8xf32> to vector<8x8xf32>
    %187 = arith.addf %185, %186 : vector<8x8xf32>
    %cst_108 = arith.constant dense<0xFF800000> : vector<8xf32>
    %188 = vector.multi_reduction <maximumf>, %187, %cst_108 [1] : vector<8x8xf32> to vector<8xf32>
    %189 = vector.shape_cast %188 : vector<8xf32> to vector<8x1xf32>
    %190 = vector.broadcast %189 : vector<8x1xf32> to vector<8x8xf32>
    %191 = arith.subf %187, %190 : vector<8x8xf32>
    %192 = math.exp %191 : vector<8x8xf32>
    %cst_109 = arith.constant dense<0.000000e+00> : vector<8xf32>
    %193 = vector.multi_reduction <add>, %192, %cst_109 [1] : vector<8x8xf32> to vector<8xf32>
    %194 = vector.shape_cast %193 : vector<8xf32> to vector<8x1xf32>
    %195 = tpu.reciprocal %194 : vector<8x1xf32> -> vector<8x1xf32>
    %196 = vector.broadcast %195 : vector<8x1xf32> to vector<8x8xf32>
    %197 = arith.mulf %192, %196 : vector<8x8xf32>
    %198 = arith.truncf %197 : vector<8x8xf32> to vector<8x8xbf16>
    %cst_110 = arith.constant dense<0.000000e+00> : vector<8x128xf32>
    %199 = tpu.matmul %198, %184, %cst_110 {dimension_numbers = #tpu.dot_dimension_numbers<[1], [0], [0], [1], [0, 0, 1, 1], [], []>} : vector<8x8xbf16>, vector<8x128xbf16>, vector<8x128xf32> -> vector<8x128xf32>
    %200 = arith.truncf %199 : vector<8x128xf32> to vector<8x128xbf16>
    %c1_111 = arith.constant 1 : index
    %c0_112 = arith.constant 0 : index
    %c128_113 = arith.constant 128 : index
    %201 = vector.load %arg3[%c1_111, %c0_112, %c128_113] : memref<2x8x768xbf16, #tpu.memory_space<vmem>>, vector<1x8x128xbf16>
    %202 = vector.shape_cast %201 : vector<1x8x128xbf16> to vector<8x128xbf16>
    %203 = vector.shape_cast %200 : vector<8x128xbf16> to vector<1x8x128xbf16>
    tpu.vector_store %arg3[%c1_111, %c0_112, %c128_113], %203 {strides = array<i32>} : memref<2x8x768xbf16, #tpu.memory_space<vmem>>, vector<1x8x128xbf16>,
    %c1_114 = arith.constant 1 : index
    %c0_115 = arith.constant 0 : index
    %c256_116 = arith.constant 256 : index
    %204 = vector.load %arg1[%c1_114, %c0_115, %c256_116] : memref<2x8x2304xbf16, #tpu.memory_space<vmem>>, vector<1x8x128xbf16>
    %205 = vector.shape_cast %204 : vector<1x8x128xbf16> to vector<8x128xbf16>
    %c1_117 = arith.constant 1 : index
    %c0_118 = arith.constant 0 : index
    %c1024_119 = arith.constant 1024 : index
    %206 = vector.load %arg1[%c1_117, %c0_118, %c1024_119] : memref<2x8x2304xbf16, #tpu.memory_space<vmem>>, vector<1x8x128xbf16>
    %207 = vector.shape_cast %206 : vector<1x8x128xbf16> to vector<8x128xbf16>
    %c1_120 = arith.constant 1 : index
    %c0_121 = arith.constant 0 : index
    %c1792_122 = arith.constant 1792 : index
    %208 = vector.load %arg1[%c1_120, %c0_121, %c1792_122] : memref<2x8x2304xbf16, #tpu.memory_space<vmem>>, vector<1x8x128xbf16>
    %209 = vector.shape_cast %208 : vector<1x8x128xbf16> to vector<8x128xbf16>
    %cst_123 = arith.constant dense<0.000000e+00> : vector<8x8xf32>
    %210 = tpu.matmul %205, %207, %cst_123 {dimension_numbers = #tpu.dot_dimension_numbers<[1], [1], [0], [0], [0, 0, 1, 0], [], []>} : vector<8x128xbf16>, vector<8x128xbf16>, vector<8x8xf32> -> vector<8x8xf32>
    %211 = vector.broadcast %153 : vector<1x8xf32> to vector<8x8xf32>
    %212 = arith.addf %210, %211 : vector<8x8xf32>
    %cst_124 = arith.constant dense<0xFF800000> : vector<8xf32>
    %213 = vector.multi_reduction <maximumf>, %212, %cst_124 [1] : vector<8x8xf32> to vector<8xf32>
    %214 = vector.shape_cast %213 : vector<8xf32> to vector<8x1xf32>
    %215 = vector.broadcast %214 : vector<8x1xf32> to vector<8x8xf32>
    %216 = arith.subf %212, %215 : vector<8x8xf32>
    %217 = math.exp %216 : vector<8x8xf32>
    %cst_125 = arith.constant dense<0.000000e+00> : vector<8xf32>
    %218 = vector.multi_reduction <add>, %217, %cst_125 [1] : vector<8x8xf32> to vector<8xf32>
    %219 = vector.shape_cast %218 : vector<8xf32> to vector<8x1xf32>
    %220 = tpu.reciprocal %219 : vector<8x1xf32> -> vector<8x1xf32>
    %221 = vector.broadcast %220 : vector<8x1xf32> to vector<8x8xf32>
    %222 = arith.mulf %217, %221 : vector<8x8xf32>
    %223 = arith.truncf %222 : vector<8x8xf32> to vector<8x8xbf16>
    %cst_126 = arith.constant dense<0.000000e+00> : vector<8x128xf32>
    %224 = tpu.matmul %223, %209, %cst_126 {dimension_numbers = #tpu.dot_dimension_numbers<[1], [0], [0], [1], [0, 0, 1, 1], [], []>} : vector<8x8xbf16>, vector<8x128xbf16>, vector<8x128xf32> -> vector<8x128xf32>
    %225 = arith.truncf %224 : vector<8x128xf32> to vector<8x128xbf16>
    %c1_127 = arith.constant 1 : index
    %c0_128 = arith.constant 0 : index
    %c256_129 = arith.constant 256 : index
    %226 = vector.load %arg3[%c1_127, %c0_128, %c256_129] : memref<2x8x768xbf16, #tpu.memory_space<vmem>>, vector<1x8x128xbf16>
    %227 = vector.shape_cast %226 : vector<1x8x128xbf16> to vector<8x128xbf16>
    %228 = vector.shape_cast %225 : vector<8x128xbf16> to vector<1x8x128xbf16>
    tpu.vector_store %arg3[%c1_127, %c0_128, %c256_129], %228 {strides = array<i32>} : memref<2x8x768xbf16, #tpu.memory_space<vmem>>, vector<1x8x128xbf16>,
    %c1_130 = arith.constant 1 : index
    %c0_131 = arith.constant 0 : index
    %c384_132 = arith.constant 384 : index
    %229 = vector.load %arg1[%c1_130, %c0_131, %c384_132] : memref<2x8x2304xbf16, #tpu.memory_space<vmem>>, vector<1x8x128xbf16>
    %230 = vector.shape_cast %229 : vector<1x8x128xbf16> to vector<8x128xbf16>
    %c1_133 = arith.constant 1 : index
    %c0_134 = arith.constant 0 : index
    %c1152_135 = arith.constant 1152 : index
    %231 = vector.load %arg1[%c1_133, %c0_134, %c1152_135] : memref<2x8x2304xbf16, #tpu.memory_space<vmem>>, vector<1x8x128xbf16>
    %232 = vector.shape_cast %231 : vector<1x8x128xbf16> to vector<8x128xbf16>
    %c1_136 = arith.constant 1 : index
    %c0_137 = arith.constant 0 : index
    %c1920_138 = arith.constant 1920 : index
    %233 = vector.load %arg1[%c1_136, %c0_137, %c1920_138] : memref<2x8x2304xbf16, #tpu.memory_space<vmem>>, vector<1x8x128xbf16>
    %234 = vector.shape_cast %233 : vector<1x8x128xbf16> to vector<8x128xbf16>
    %cst_139 = arith.constant dense<0.000000e+00> : vector<8x8xf32>
    %235 = tpu.matmul %230, %232, %cst_139 {dimension_numbers = #tpu.dot_dimension_numbers<[1], [1], [0], [0], [0, 0, 1, 0], [], []>} : vector<8x128xbf16>, vector<8x128xbf16>, vector<8x8xf32> -> vector<8x8xf32>
    %236 = vector.broadcast %153 : vector<1x8xf32> to vector<8x8xf32>
    %237 = arith.addf %235, %236 : vector<8x8xf32>
    %cst_140 = arith.constant dense<0xFF800000> : vector<8xf32>
    %238 = vector.multi_reduction <maximumf>, %237, %cst_140 [1] : vector<8x8xf32> to vector<8xf32>
    %239 = vector.shape_cast %238 : vector<8xf32> to vector<8x1xf32>
    %240 = vector.broadcast %239 : vector<8x1xf32> to vector<8x8xf32>
    %241 = arith.subf %237, %240 : vector<8x8xf32>
    %242 = math.exp %241 : vector<8x8xf32>
    %cst_141 = arith.constant dense<0.000000e+00> : vector<8xf32>
    %243 = vector.multi_reduction <add>, %242, %cst_141 [1] : vector<8x8xf32> to vector<8xf32>
    %244 = vector.shape_cast %243 : vector<8xf32> to vector<8x1xf32>
    %245 = tpu.reciprocal %244 : vector<8x1xf32> -> vector<8x1xf32>
    %246 = vector.broadcast %245 : vector<8x1xf32> to vector<8x8xf32>
    %247 = arith.mulf %242, %246 : vector<8x8xf32>
    %248 = arith.truncf %247 : vector<8x8xf32> to vector<8x8xbf16>
    %cst_142 = arith.constant dense<0.000000e+00> : vector<8x128xf32>
    %249 = tpu.matmul %248, %234, %cst_142 {dimension_numbers = #tpu.dot_dimension_numbers<[1], [0], [0], [1], [0, 0, 1, 1], [], []>} : vector<8x8xbf16>, vector<8x128xbf16>, vector<8x128xf32> -> vector<8x128xf32>
    %250 = arith.truncf %249 : vector<8x128xf32> to vector<8x128xbf16>
    %c1_143 = arith.constant 1 : index
    %c0_144 = arith.constant 0 : index
    %c384_145 = arith.constant 384 : index
    %251 = vector.load %arg3[%c1_143, %c0_144, %c384_145] : memref<2x8x768xbf16, #tpu.memory_space<vmem>>, vector<1x8x128xbf16>
    %252 = vector.shape_cast %251 : vector<1x8x128xbf16> to vector<8x128xbf16>
    %253 = vector.shape_cast %250 : vector<8x128xbf16> to vector<1x8x128xbf16>
    tpu.vector_store %arg3[%c1_143, %c0_144, %c384_145], %253 {strides = array<i32>} : memref<2x8x768xbf16, #tpu.memory_space<vmem>>, vector<1x8x128xbf16>,
    %c1_146 = arith.constant 1 : index
    %c0_147 = arith.constant 0 : index
    %c512_148 = arith.constant 512 : index
    %254 = vector.load %arg1[%c1_146, %c0_147, %c512_148] : memref<2x8x2304xbf16, #tpu.memory_space<vmem>>, vector<1x8x128xbf16>
    %255 = vector.shape_cast %254 : vector<1x8x128xbf16> to vector<8x128xbf16>
    %c1_149 = arith.constant 1 : index
    %c0_150 = arith.constant 0 : index
    %c1280_151 = arith.constant 1280 : index
    %256 = vector.load %arg1[%c1_149, %c0_150, %c1280_151] : memref<2x8x2304xbf16, #tpu.memory_space<vmem>>, vector<1x8x128xbf16>
    %257 = vector.shape_cast %256 : vector<1x8x128xbf16> to vector<8x128xbf16>
    %c1_152 = arith.constant 1 : index
    %c0_153 = arith.constant 0 : index
    %c2048_154 = arith.constant 2048 : index
    %258 = vector.load %arg1[%c1_152, %c0_153, %c2048_154] : memref<2x8x2304xbf16, #tpu.memory_space<vmem>>, vector<1x8x128xbf16>
    %259 = vector.shape_cast %258 : vector<1x8x128xbf16> to vector<8x128xbf16>
    %cst_155 = arith.constant dense<0.000000e+00> : vector<8x8xf32>
    %260 = tpu.matmul %255, %257, %cst_155 {dimension_numbers = #tpu.dot_dimension_numbers<[1], [1], [0], [0], [0, 0, 1, 0], [], []>} : vector<8x128xbf16>, vector<8x128xbf16>, vector<8x8xf32> -> vector<8x8xf32>
    %261 = vector.broadcast %153 : vector<1x8xf32> to vector<8x8xf32>
    %262 = arith.addf %260, %261 : vector<8x8xf32>
    %cst_156 = arith.constant dense<0xFF800000> : vector<8xf32>
    %263 = vector.multi_reduction <maximumf>, %262, %cst_156 [1] : vector<8x8xf32> to vector<8xf32>
    %264 = vector.shape_cast %263 : vector<8xf32> to vector<8x1xf32>
    %265 = vector.broadcast %264 : vector<8x1xf32> to vector<8x8xf32>
    %266 = arith.subf %262, %265 : vector<8x8xf32>
    %267 = math.exp %266 : vector<8x8xf32>
    %cst_157 = arith.constant dense<0.000000e+00> : vector<8xf32>
    %268 = vector.multi_reduction <add>, %267, %cst_157 [1] : vector<8x8xf32> to vector<8xf32>
    %269 = vector.shape_cast %268 : vector<8xf32> to vector<8x1xf32>
    %270 = tpu.reciprocal %269 : vector<8x1xf32> -> vector<8x1xf32>
    %271 = vector.broadcast %270 : vector<8x1xf32> to vector<8x8xf32>
    %272 = arith.mulf %267, %271 : vector<8x8xf32>
    %273 = arith.truncf %272 : vector<8x8xf32> to vector<8x8xbf16>
    %cst_158 = arith.constant dense<0.000000e+00> : vector<8x128xf32>
    %274 = tpu.matmul %273, %259, %cst_158 {dimension_numbers = #tpu.dot_dimension_numbers<[1], [0], [0], [1], [0, 0, 1, 1], [], []>} : vector<8x8xbf16>, vector<8x128xbf16>, vector<8x128xf32> -> vector<8x128xf32>
    %275 = arith.truncf %274 : vector<8x128xf32> to vector<8x128xbf16>
    %c1_159 = arith.constant 1 : index
    %c0_160 = arith.constant 0 : index
    %c512_161 = arith.constant 512 : index
    %276 = vector.load %arg3[%c1_159, %c0_160, %c512_161] : memref<2x8x768xbf16, #tpu.memory_space<vmem>>, vector<1x8x128xbf16>
    %277 = vector.shape_cast %276 : vector<1x8x128xbf16> to vector<8x128xbf16>
    %278 = vector.shape_cast %275 : vector<8x128xbf16> to vector<1x8x128xbf16>
    tpu.vector_store %arg3[%c1_159, %c0_160, %c512_161], %278 {strides = array<i32>} : memref<2x8x768xbf16, #tpu.memory_space<vmem>>, vector<1x8x128xbf16>,
    %c1_162 = arith.constant 1 : index
    %c0_163 = arith.constant 0 : index
    %c640_164 = arith.constant 640 : index
    %279 = vector.load %arg1[%c1_162, %c0_163, %c640_164] : memref<2x8x2304xbf16, #tpu.memory_space<vmem>>, vector<1x8x128xbf16>
    %280 = vector.shape_cast %279 : vector<1x8x128xbf16> to vector<8x128xbf16>
    %c1_165 = arith.constant 1 : index
    %c0_166 = arith.constant 0 : index
    %c1408_167 = arith.constant 1408 : index
    %281 = vector.load %arg1[%c1_165, %c0_166, %c1408_167] : memref<2x8x2304xbf16, #tpu.memory_space<vmem>>, vector<1x8x128xbf16>
    %282 = vector.shape_cast %281 : vector<1x8x128xbf16> to vector<8x128xbf16>
    %c1_168 = arith.constant 1 : index
    %c0_169 = arith.constant 0 : index
    %c2176_170 = arith.constant 2176 : index
    %283 = vector.load %arg1[%c1_168, %c0_169, %c2176_170] : memref<2x8x2304xbf16, #tpu.memory_space<vmem>>, vector<1x8x128xbf16>
    %284 = vector.shape_cast %283 : vector<1x8x128xbf16> to vector<8x128xbf16>
    %cst_171 = arith.constant dense<0.000000e+00> : vector<8x8xf32>
    %285 = tpu.matmul %280, %282, %cst_171 {dimension_numbers = #tpu.dot_dimension_numbers<[1], [1], [0], [0], [0, 0, 1, 0], [], []>} : vector<8x128xbf16>, vector<8x128xbf16>, vector<8x8xf32> -> vector<8x8xf32>
    %286 = vector.broadcast %153 : vector<1x8xf32> to vector<8x8xf32>
    %287 = arith.addf %285, %286 : vector<8x8xf32>
    %cst_172 = arith.constant dense<0xFF800000> : vector<8xf32>
    %288 = vector.multi_reduction <maximumf>, %287, %cst_172 [1] : vector<8x8xf32> to vector<8xf32>
    %289 = vector.shape_cast %288 : vector<8xf32> to vector<8x1xf32>
    %290 = vector.broadcast %289 : vector<8x1xf32> to vector<8x8xf32>
    %291 = arith.subf %287, %290 : vector<8x8xf32>
    %292 = math.exp %291 : vector<8x8xf32>
    %cst_173 = arith.constant dense<0.000000e+00> : vector<8xf32>
    %293 = vector.multi_reduction <add>, %292, %cst_173 [1] : vector<8x8xf32> to vector<8xf32>
    %294 = vector.shape_cast %293 : vector<8xf32> to vector<8x1xf32>
    %295 = tpu.reciprocal %294 : vector<8x1xf32> -> vector<8x1xf32>
    %296 = vector.broadcast %295 : vector<8x1xf32> to vector<8x8xf32>
    %297 = arith.mulf %292, %296 : vector<8x8xf32>
    %298 = arith.truncf %297 : vector<8x8xf32> to vector<8x8xbf16>
    %cst_174 = arith.constant dense<0.000000e+00> : vector<8x128xf32>
    %299 = tpu.matmul %298, %284, %cst_174 {dimension_numbers = #tpu.dot_dimension_numbers<[1], [0], [0], [1], [0, 0, 1, 1], [], []>} : vector<8x8xbf16>, vector<8x128xbf16>, vector<8x128xf32> -> vector<8x128xf32>
    %300 = arith.truncf %299 : vector<8x128xf32> to vector<8x128xbf16>
    %c1_175 = arith.constant 1 : index
    %c0_176 = arith.constant 0 : index
    %c640_177 = arith.constant 640 : index
    %301 = vector.load %arg3[%c1_175, %c0_176, %c640_177] : memref<2x8x768xbf16, #tpu.memory_space<vmem>>, vector<1x8x128xbf16>
    %302 = vector.shape_cast %301 : vector<1x8x128xbf16> to vector<8x128xbf16>
    %303 = vector.shape_cast %300 : vector<8x128xbf16> to vector<1x8x128xbf16>
    tpu.vector_store %arg3[%c1_175, %c0_176, %c640_177], %303 {strides = array<i32>} : memref<2x8x768xbf16, #tpu.memory_space<vmem>>, vector<1x8x128xbf16>,
    return
  }
  func.func @transform_0(%arg0: i32) -> (i32, i32, i32) {
    %c0_i32 = arith.constant 0 : i32
    %c0_i32_0 = arith.constant 0 : i32
    %c0_i32_1 = arith.constant 0 : i32
    return %arg0, %c0_i32, %c0_i32_0 : i32, i32, i32
  }
  func.func @transform_1(%arg0: i32) -> (i32, i32, i32) {
    %c0_i32 = arith.constant 0 : i32
    %c0_i32_0 = arith.constant 0 : i32
    %c0_i32_1 = arith.constant 0 : i32
    return %arg0, %c0_i32, %c0_i32_0 : i32, i32, i32
  }
  func.func @transform_2(%arg0: i32) -> (i32, i32, i32) {
    %c0_i32 = arith.constant 0 : i32
    %c0_i32_0 = arith.constant 0 : i32
    %c0_i32_1 = arith.constant 0 : i32
    return %arg0, %c0_i32, %c0_i32_0 : i32, i32, i32
  }
}

module attributes {stable_mosaic.version = 11 : i64} {
  func.func @_dense_kernel(%arg0: i32, %arg1: i32, %arg2: memref<16x768xbf16, #tpu.memory_space<vmem>>, %arg3: memref<768x256xbf16, #tpu.memory_space<vmem>>, %arg4: memref<1x256xf32, #tpu.memory_space<vmem>>, %arg5: memref<16x256xbf16, #tpu.memory_space<vmem>>) attributes {dimension_semantics = [#tpu.dimension_semantics<parallel>, #tpu.dimension_semantics<parallel>], iteration_bounds = array<i64: 9, 1>, scalar_prefetch = 0 : i64, scratch_operands = 0 : i64, tpu.core_type = #tpu.core_type<tc>, window_params = [{transform_indices = @transform_0, window_bounds = array<i64: 16, 768>}, {transform_indices = @transform_1, window_bounds = array<i64: 768, 256>}, {transform_indices = @transform_2, window_bounds = array<i64: 1, 256>}, {transform_indices = @transform_3, window_bounds = array<i64: 16, 256>}]} {
    %c0 = arith.constant 0 : index
    %c0_0 = arith.constant 0 : index
    %0 = vector.load %arg2[%c0, %c0_0] : memref<16x768xbf16, #tpu.memory_space<vmem>>, vector<16x768xbf16>
    %c0_1 = arith.constant 0 : index
    %c0_2 = arith.constant 0 : index
    %1 = vector.load %arg3[%c0_1, %c0_2] : memref<768x256xbf16, #tpu.memory_space<vmem>>, vector<768x256xbf16>
    %cst = arith.constant dense<0.000000e+00> : vector<16x256xf32>
    %2 = tpu.matmul %0, %1, %cst {dimension_numbers = #tpu.dot_dimension_numbers<[1], [0], [0], [1], [0, 0, 1, 1], [], []>} : vector<16x768xbf16>, vector<768x256xbf16>, vector<16x256xf32> -> vector<16x256xf32>
    %c0_3 = arith.constant 0 : index
    %c0_4 = arith.constant 0 : index
    %3 = vector.load %arg4[%c0_3, %c0_4] : memref<1x256xf32, #tpu.memory_space<vmem>>, vector<1x256xf32>
    %4 = vector.broadcast %3 : vector<1x256xf32> to vector<16x256xf32>
    %5 = arith.addf %2, %4 : vector<16x256xf32>
    %6 = arith.truncf %5 : vector<16x256xf32> to vector<16x256xbf16>
    %c0_5 = arith.constant 0 : index
    %c0_6 = arith.constant 0 : index
    %7 = vector.load %arg5[%c0_5, %c0_6] : memref<16x256xbf16, #tpu.memory_space<vmem>>, vector<16x256xbf16>
    tpu.vector_store %arg5[%c0_5, %c0_6], %6 {strides = array<i32>} : memref<16x256xbf16, #tpu.memory_space<vmem>>, vector<16x256xbf16>,
    return
  }
  func.func @transform_0(%arg0: i32, %arg1: i32) -> (i32, i32) {
    %c0_i32 = arith.constant 0 : i32
    %c0_i32_0 = arith.constant 0 : i32
    return %arg1, %c0_i32 : i32, i32
  }
  func.func @transform_1(%arg0: i32, %arg1: i32) -> (i32, i32) {
    %c0_i32 = arith.constant 0 : i32
    %c0_i32_0 = arith.constant 0 : i32
    return %c0_i32, %arg0 : i32, i32
  }
  func.func @transform_2(%arg0: i32, %arg1: i32) -> (i32, i32) {
    %c0_i32 = arith.constant 0 : i32
    %c0_i32_0 = arith.constant 0 : i32
    return %c0_i32, %arg0 : i32, i32
  }
  func.func @transform_3(%arg0: i32, %arg1: i32) -> (i32, i32) {
    %c0_i32 = arith.constant 0 : i32
    return %arg1, %arg0 : i32, i32
  }
}

module attributes {stable_mosaic.version = 11 : i64} {
  func.func @_dense_kernel(%arg0: i32, %arg1: i32, %arg2: memref<16x768xbf16, #tpu.memory_space<vmem>>, %arg3: memref<768x256xbf16, #tpu.memory_space<vmem>>, %arg4: memref<1x256xf32, #tpu.memory_space<vmem>>, %arg5: memref<16x256xbf16, #tpu.memory_space<vmem>>) attributes {dimension_semantics = [#tpu.dimension_semantics<parallel>, #tpu.dimension_semantics<parallel>], iteration_bounds = array<i64: 6, 1>, scalar_prefetch = 0 : i64, scratch_operands = 0 : i64, tpu.core_type = #tpu.core_type<tc>, window_params = [{transform_indices = @transform_0, window_bounds = array<i64: 16, 768>}, {transform_indices = @transform_1, window_bounds = array<i64: 768, 256>}, {transform_indices = @transform_2, window_bounds = array<i64: 1, 256>}, {transform_indices = @transform_3, window_bounds = array<i64: 16, 256>}]} {
    %c0 = arith.constant 0 : index
    %c0_0 = arith.constant 0 : index
    %0 = vector.load %arg2[%c0, %c0_0] : memref<16x768xbf16, #tpu.memory_space<vmem>>, vector<16x768xbf16>
    %c0_1 = arith.constant 0 : index
    %c0_2 = arith.constant 0 : index
    %1 = vector.load %arg3[%c0_1, %c0_2] : memref<768x256xbf16, #tpu.memory_space<vmem>>, vector<768x256xbf16>
    %cst = arith.constant dense<0.000000e+00> : vector<16x256xf32>
    %2 = tpu.matmul %0, %1, %cst {dimension_numbers = #tpu.dot_dimension_numbers<[1], [0], [0], [1], [0, 0, 1, 1], [], []>} : vector<16x768xbf16>, vector<768x256xbf16>, vector<16x256xf32> -> vector<16x256xf32>
    %c0_3 = arith.constant 0 : index
    %c0_4 = arith.constant 0 : index
    %3 = vector.load %arg4[%c0_3, %c0_4] : memref<1x256xf32, #tpu.memory_space<vmem>>, vector<1x256xf32>
    %4 = vector.broadcast %3 : vector<1x256xf32> to vector<16x256xf32>
    %5 = arith.addf %2, %4 : vector<16x256xf32>
    %6 = arith.mulf %5, %5 : vector<16x256xf32>
    %7 = arith.mulf %5, %6 : vector<16x256xf32>
    %cst_5 = arith.constant 4.471500e-02 : f32
    %8 = vector.broadcast %cst_5 : f32 to vector<16x256xf32>
    %9 = arith.mulf %8, %7 : vector<16x256xf32>
    %10 = arith.addf %5, %9 : vector<16x256xf32>
    %cst_6 = arith.constant 0.797884583 : f32
    %11 = vector.broadcast %cst_6 : f32 to vector<16x256xf32>
    %12 = arith.mulf %11, %10 : vector<16x256xf32>
    %13 = math.tanh %12 : vector<16x256xf32>
    %cst_7 = arith.constant 1.000000e+00 : f32
    %14 = vector.broadcast %cst_7 : f32 to vector<16x256xf32>
    %15 = arith.addf %14, %13 : vector<16x256xf32>
    %cst_8 = arith.constant 5.000000e-01 : f32
    %16 = vector.broadcast %cst_8 : f32 to vector<16x256xf32>
    %17 = arith.mulf %16, %15 : vector<16x256xf32>
    %18 = arith.mulf %5, %17 : vector<16x256xf32>
    %19 = arith.truncf %18 : vector<16x256xf32> to vector<16x256xbf16>
    %c0_9 = arith.constant 0 : index
    %c0_10 = arith.constant 0 : index
    %20 = vector.load %arg5[%c0_9, %c0_10] : memref<16x256xbf16, #tpu.memory_space<vmem>>, vector<16x256xbf16>
    tpu.vector_store %arg5[%c0_9, %c0_10], %19 {strides = array<i32>} : memref<16x256xbf16, #tpu.memory_space<vmem>>, vector<16x256xbf16>,
    return
  }
  func.func @transform_0(%arg0: i32, %arg1: i32) -> (i32, i32) {
    %c0_i32 = arith.constant 0 : i32
    %c0_i32_0 = arith.constant 0 : i32
    return %arg1, %c0_i32 : i32, i32
  }
  func.func @transform_1(%arg0: i32, %arg1: i32) -> (i32, i32) {
    %c0_i32 = arith.constant 0 : i32
    %c0_i32_0 = arith.constant 0 : i32
    return %c0_i32, %arg0 : i32, i32
  }
  func.func @transform_2(%arg0: i32, %arg1: i32) -> (i32, i32) {
    %c0_i32 = arith.constant 0 : i32
    %c0_i32_0 = arith.constant 0 : i32
    return %c0_i32, %arg0 : i32, i32
  }
  func.func @transform_3(%arg0: i32, %arg1: i32) -> (i32, i32) {
    %c0_i32 = arith.constant 0 : i32
    return %arg1, %arg0 : i32, i32
  }
}

module attributes {stable_mosaic.version = 11 : i64} {
  func.func @_dense_res_ln_kernel(%arg0: i32, %arg1: memref<16x1536xbf16, #tpu.memory_space<vmem>>, %arg2: memref<1536x768xbf16, #tpu.memory_space<vmem>>, %arg3: memref<1x768xf32, #tpu.memory_space<vmem>>, %arg4: memref<16x768xbf16, #tpu.memory_space<vmem>>, %arg5: memref<1x768xf32, #tpu.memory_space<vmem>>, %arg6: memref<1x768xf32, #tpu.memory_space<vmem>>, %arg7: memref<16x768xbf16, #tpu.memory_space<vmem>>) attributes {dimension_semantics = [#tpu.dimension_semantics<parallel>], iteration_bounds = array<i64: 1>, scalar_prefetch = 0 : i64, scratch_operands = 0 : i64, tpu.core_type = #tpu.core_type<tc>, window_params = [{transform_indices = @transform_0, window_bounds = array<i64: 16, 1536>}, {pipeline_mode = #tpu.pipeline_mode<synchronous>, transform_indices = @transform_1, window_bounds = array<i64: 1536, 768>}, {pipeline_mode = #tpu.pipeline_mode<synchronous>, transform_indices = @transform_2, window_bounds = array<i64: 1, 768>}, {transform_indices = @transform_3, window_bounds = array<i64: 16, 768>}, {pipeline_mode = #tpu.pipeline_mode<synchronous>, transform_indices = @transform_4, window_bounds = array<i64: 1, 768>}, {pipeline_mode = #tpu.pipeline_mode<synchronous>, transform_indices = @transform_5, window_bounds = array<i64: 1, 768>}, {transform_indices = @transform_6, window_bounds = array<i64: 16, 768>}]} {
    %c0 = arith.constant 0 : index
    %c0_0 = arith.constant 0 : index
    %0 = vector.load %arg1[%c0, %c0_0] : memref<16x1536xbf16, #tpu.memory_space<vmem>>, vector<16x1536xbf16>
    %c0_1 = arith.constant 0 : index
    %c0_2 = arith.constant 0 : index
    %1 = vector.load %arg2[%c0_1, %c0_2] : memref<1536x768xbf16, #tpu.memory_space<vmem>>, vector<1536x768xbf16>
    %cst = arith.constant dense<0.000000e+00> : vector<16x768xf32>
    %2 = tpu.matmul %0, %1, %cst {dimension_numbers = #tpu.dot_dimension_numbers<[1], [0], [0], [1], [0, 0, 1, 1], [], []>} : vector<16x1536xbf16>, vector<1536x768xbf16>, vector<16x768xf32> -> vector<16x768xf32>
    %c0_3 = arith.constant 0 : index
    %c0_4 = arith.constant 0 : index
    %3 = vector.load %arg3[%c0_3, %c0_4] : memref<1x768xf32, #tpu.memory_space<vmem>>, vector<1x768xf32>
    %4 = vector.broadcast %3 : vector<1x768xf32> to vector<16x768xf32>
    %5 = arith.addf %2, %4 : vector<16x768xf32>
    %c0_5 = arith.constant 0 : index
    %c0_6 = arith.constant 0 : index
    %6 = vector.load %arg4[%c0_5, %c0_6] : memref<16x768xbf16, #tpu.memory_space<vmem>>, vector<16x768xbf16>
    %7 = arith.extf %6 : vector<16x768xbf16> to vector<16x768xf32>
    %8 = arith.addf %5, %7 : vector<16x768xf32>
    %cst_7 = arith.constant dense<0.000000e+00> : vector<16xf32>
    %9 = vector.multi_reduction <add>, %8, %cst_7 [1] : vector<16x768xf32> to vector<16xf32>
    %10 = vector.shape_cast %9 : vector<16xf32> to vector<16x1xf32>
    %cst_8 = arith.constant 7.680000e+02 : f32
    %11 = vector.broadcast %cst_8 : f32 to vector<16x1xf32>
    %12 = arith.divf %10, %11 : vector<16x1xf32>
    %13 = vector.broadcast %12 : vector<16x1xf32> to vector<16x768xf32>
    %14 = arith.subf %8, %13 : vector<16x768xf32>
    %15 = arith.mulf %14, %14 : vector<16x768xf32>
    %cst_9 = arith.constant dense<0.000000e+00> : vector<16xf32>
    %16 = vector.multi_reduction <add>, %15, %cst_9 [1] : vector<16x768xf32> to vector<16xf32>
    %17 = vector.shape_cast %16 : vector<16xf32> to vector<16x1xf32>
    %cst_10 = arith.constant 7.680000e+02 : f32
    %18 = vector.broadcast %cst_10 : f32 to vector<16x1xf32>
    %19 = arith.divf %17, %18 : vector<16x1xf32>
    %20 = vector.broadcast %12 : vector<16x1xf32> to vector<16x768xf32>
    %21 = arith.subf %8, %20 : vector<16x768xf32>
    %cst_11 = arith.constant 9.99999996E-13 : f32
    %22 = vector.broadcast %cst_11 : f32 to vector<16x1xf32>
    %23 = arith.addf %19, %22 : vector<16x1xf32>
    %24 = math.rsqrt %23 : vector<16x1xf32>
    %25 = vector.broadcast %24 : vector<16x1xf32> to vector<16x768xf32>
    %26 = arith.mulf %21, %25 : vector<16x768xf32>
    %c0_12 = arith.constant 0 : index
    %c0_13 = arith.constant 0 : index
    %27 = vector.load %arg5[%c0_12, %c0_13] : memref<1x768xf32, #tpu.memory_space<vmem>>, vector<1x768xf32>
    %28 = vector.broadcast %27 : vector<1x768xf32> to vector<16x768xf32>
    %29 = arith.mulf %26, %28 : vector<16x768xf32>
    %c0_14 = arith.constant 0 : index
    %c0_15 = arith.constant 0 : index
    %30 = vector.load %arg6[%c0_14, %c0_15] : memref<1x768xf32, #tpu.memory_space<vmem>>, vector<1x768xf32>
    %31 = vector.broadcast %30 : vector<1x768xf32> to vector<16x768xf32>
    %32 = arith.addf %29, %31 : vector<16x768xf32>
    %33 = arith.truncf %32 : vector<16x768xf32> to vector<16x768xbf16>
    %c0_16 = arith.constant 0 : index
    %c0_17 = arith.constant 0 : index
    %34 = vector.load %arg7[%c0_16, %c0_17] : memref<16x768xbf16, #tpu.memory_space<vmem>>, vector<16x768xbf16>
    tpu.vector_store %arg7[%c0_16, %c0_17], %33 {strides = array<i32>} : memref<16x768xbf16, #tpu.memory_space<vmem>>, vector<16x768xbf16>,
    return
  }
  func.func @transform_0(%arg0: i32) -> (i32, i32) {
    %c0_i32 = arith.constant 0 : i32
    %c0_i32_0 = arith.constant 0 : i32
    return %arg0, %c0_i32 : i32, i32
  }
  func.func @transform_1(%arg0: i32) -> (i32, i32) {
    %c0_i32 = arith.constant 0 : i32
    %c0_i32_0 = arith.constant 0 : i32
    %c0_i32_1 = arith.constant 0 : i32
    return %c0_i32, %c0_i32_0 : i32, i32
  }
  func.func @transform_2(%arg0: i32) -> (i32, i32) {
    %c0_i32 = arith.constant 0 : i32
    %c0_i32_0 = arith.constant 0 : i32
    %c0_i32_1 = arith.constant 0 : i32
    return %c0_i32, %c0_i32_0 : i32, i32
  }
  func.func @transform_3(%arg0: i32) -> (i32, i32) {
    %c0_i32 = arith.constant 0 : i32
    %c0_i32_0 = arith.constant 0 : i32
    return %arg0, %c0_i32 : i32, i32
  }
  func.func @transform_4(%arg0: i32) -> (i32, i32) {
    %c0_i32 = arith.constant 0 : i32
    %c0_i32_0 = arith.constant 0 : i32
    %c0_i32_1 = arith.constant 0 : i32
    return %c0_i32, %c0_i32_0 : i32, i32
  }
  func.func @transform_5(%arg0: i32) -> (i32, i32) {
    %c0_i32 = arith.constant 0 : i32
    %c0_i32_0 = arith.constant 0 : i32
    %c0_i32_1 = arith.constant 0 : i32
    return %c0_i32, %c0_i32_0 : i32, i32
  }
  func.func @transform_6(%arg0: i32) -> (i32, i32) {
    %c0_i32 = arith.constant 0 : i32
    %c0_i32_0 = arith.constant 0 : i32
    return %arg0, %c0_i32 : i32, i32
  }
}

module attributes {stable_mosaic.version = 11 : i64} {
  func.func @_dense_kernel(%arg0: i32, %arg1: i32, %arg2: memref<16x768xbf16, #tpu.memory_space<vmem>>, %arg3: memref<768x256xbf16, #tpu.memory_space<vmem>>, %arg4: memref<1x256xf32, #tpu.memory_space<vmem>>, %arg5: memref<16x256xbf16, #tpu.memory_space<vmem>>) attributes {dimension_semantics = [#tpu.dimension_semantics<parallel>, #tpu.dimension_semantics<parallel>], iteration_bounds = array<i64: 9, 1>, scalar_prefetch = 0 : i64, scratch_operands = 0 : i64, tpu.core_type = #tpu.core_type<tc>, window_params = [{transform_indices = @transform_0, window_bounds = array<i64: 16, 768>}, {transform_indices = @transform_1, window_bounds = array<i64: 768, 256>}, {transform_indices = @transform_2, window_bounds = array<i64: 1, 256>}, {transform_indices = @transform_3, window_bounds = array<i64: 16, 256>}]} {
    %c0 = arith.constant 0 : index
    %c0_0 = arith.constant 0 : index
    %0 = vector.load %arg2[%c0, %c0_0] : memref<16x768xbf16, #tpu.memory_space<vmem>>, vector<16x768xbf16>
    %c0_1 = arith.constant 0 : index
    %c0_2 = arith.constant 0 : index
    %1 = vector.load %arg3[%c0_1, %c0_2] : memref<768x256xbf16, #tpu.memory_space<vmem>>, vector<768x256xbf16>
    %cst = arith.constant dense<0.000000e+00> : vector<16x256xf32>
    %2 = tpu.matmul %0, %1, %cst {dimension_numbers = #tpu.dot_dimension_numbers<[1], [0], [0], [1], [0, 0, 1, 1], [], []>} : vector<16x768xbf16>, vector<768x256xbf16>, vector<16x256xf32> -> vector<16x256xf32>
    %c0_3 = arith.constant 0 : index
    %c0_4 = arith.constant 0 : index
    %3 = vector.load %arg4[%c0_3, %c0_4] : memref<1x256xf32, #tpu.memory_space<vmem>>, vector<1x256xf32>
    %4 = vector.broadcast %3 : vector<1x256xf32> to vector<16x256xf32>
    %5 = arith.addf %2, %4 : vector<16x256xf32>
    %6 = arith.truncf %5 : vector<16x256xf32> to vector<16x256xbf16>
    %c0_5 = arith.constant 0 : index
    %c0_6 = arith.constant 0 : index
    %7 = vector.load %arg5[%c0_5, %c0_6] : memref<16x256xbf16, #tpu.memory_space<vmem>>, vector<16x256xbf16>
    tpu.vector_store %arg5[%c0_5, %c0_6], %6 {strides = array<i32>} : memref<16x256xbf16, #tpu.memory_space<vmem>>, vector<16x256xbf16>,
    return
  }
  func.func @transform_0(%arg0: i32, %arg1: i32) -> (i32, i32) {
    %c0_i32 = arith.constant 0 : i32
    %c0_i32_0 = arith.constant 0 : i32
    return %arg1, %c0_i32 : i32, i32
  }
  func.func @transform_1(%arg0: i32, %arg1: i32) -> (i32, i32) {
    %c0_i32 = arith.constant 0 : i32
    %c0_i32_0 = arith.constant 0 : i32
    return %c0_i32, %arg0 : i32, i32
  }
  func.func @transform_2(%arg0: i32, %arg1: i32) -> (i32, i32) {
    %c0_i32 = arith.constant 0 : i32
    %c0_i32_0 = arith.constant 0 : i32
    return %c0_i32, %arg0 : i32, i32
  }
  func.func @transform_3(%arg0: i32, %arg1: i32) -> (i32, i32) {
    %c0_i32 = arith.constant 0 : i32
    return %arg1, %arg0 : i32, i32
  }
}

module attributes {stable_mosaic.version = 11 : i64} {
  func.func @_classifier_kernel(%arg0: i32, %arg1: memref<2x768xbf16, #tpu.memory_space<vmem>>, %arg2: memref<768x128xbf16, #tpu.memory_space<vmem>>, %arg3: memref<1x128xf32, #tpu.memory_space<vmem>>, %arg4: memref<128x128xbf16, #tpu.memory_space<vmem>>, %arg5: memref<1x128xf32, #tpu.memory_space<vmem>>, %arg6: memref<2x128xf32, #tpu.memory_space<vmem>>) attributes {dimension_semantics = [#tpu.dimension_semantics<arbitrary>], iteration_bounds = array<i64: 1>, scalar_prefetch = 0 : i64, scratch_operands = 0 : i64, tpu.core_type = #tpu.core_type<tc>, window_params = [{pipeline_mode = #tpu.pipeline_mode<synchronous>, transform_indices = @transform_0, window_bounds = array<i64: 2, 768>}, {pipeline_mode = #tpu.pipeline_mode<synchronous>, transform_indices = @transform_1, window_bounds = array<i64: 768, 128>}, {pipeline_mode = #tpu.pipeline_mode<synchronous>, transform_indices = @transform_2, window_bounds = array<i64: 1, 128>}, {pipeline_mode = #tpu.pipeline_mode<synchronous>, transform_indices = @transform_3, window_bounds = array<i64: 128, 128>}, {pipeline_mode = #tpu.pipeline_mode<synchronous>, transform_indices = @transform_4, window_bounds = array<i64: 1, 128>}, {pipeline_mode = #tpu.pipeline_mode<synchronous>, transform_indices = @transform_5, window_bounds = array<i64: 2, 128>}]} {
    %c0 = arith.constant 0 : index
    %c0_0 = arith.constant 0 : index
    %0 = vector.load %arg1[%c0, %c0_0] : memref<2x768xbf16, #tpu.memory_space<vmem>>, vector<2x768xbf16>
    %c0_1 = arith.constant 0 : index
    %c0_2 = arith.constant 0 : index
    %1 = vector.load %arg2[%c0_1, %c0_2] : memref<768x128xbf16, #tpu.memory_space<vmem>>, vector<768x128xbf16>
    %cst = arith.constant dense<0.000000e+00> : vector<2x128xf32>
    %2 = tpu.matmul %0, %1, %cst {dimension_numbers = #tpu.dot_dimension_numbers<[1], [0], [0], [1], [0, 0, 1, 1], [], []>} : vector<2x768xbf16>, vector<768x128xbf16>, vector<2x128xf32> -> vector<2x128xf32>
    %c0_3 = arith.constant 0 : index
    %c0_4 = arith.constant 0 : index
    %3 = vector.load %arg3[%c0_3, %c0_4] : memref<1x128xf32, #tpu.memory_space<vmem>>, vector<1x128xf32>
    %4 = vector.broadcast %3 : vector<1x128xf32> to vector<2x128xf32>
    %5 = arith.addf %2, %4 : vector<2x128xf32>
    %cst_5 = arith.constant 0.000000e+00 : f32
    %6 = vector.broadcast %cst_5 : f32 to vector<2x128xf32>
    %7 = arith.maximumf %5, %6 : vector<2x128xf32>
    %8 = arith.truncf %7 : vector<2x128xf32> to vector<2x128xbf16>
    %c0_6 = arith.constant 0 : index
    %c0_7 = arith.constant 0 : index
    %9 = vector.load %arg4[%c0_6, %c0_7] : memref<128x128xbf16, #tpu.memory_space<vmem>>, vector<128x128xbf16>
    %cst_8 = arith.constant dense<0.000000e+00> : vector<2x128xf32>
    %10 = tpu.matmul %8, %9, %cst_8 {dimension_numbers = #tpu.dot_dimension_numbers<[1], [0], [0], [1], [0, 0, 1, 1], [], []>} : vector<2x128xbf16>, vector<128x128xbf16>, vector<2x128xf32> -> vector<2x128xf32>
    %c0_9 = arith.constant 0 : index
    %c0_10 = arith.constant 0 : index
    %11 = vector.load %arg5[%c0_9, %c0_10] : memref<1x128xf32, #tpu.memory_space<vmem>>, vector<1x128xf32>
    %12 = vector.broadcast %11 : vector<1x128xf32> to vector<2x128xf32>
    %13 = arith.addf %10, %12 : vector<2x128xf32>
    %c0_11 = arith.constant 0 : index
    %c0_12 = arith.constant 0 : index
    %14 = vector.load %arg6[%c0_11, %c0_12] : memref<2x128xf32, #tpu.memory_space<vmem>>, vector<2x128xf32>
    tpu.vector_store %arg6[%c0_11, %c0_12], %13 {strides = array<i32>} : memref<2x128xf32, #tpu.memory_space<vmem>>, vector<2x128xf32>,
    return
  }
  func.func @transform_0(%arg0: i32) -> (i32, i32) {
    %c0_i32 = arith.constant 0 : i32
    %c0_i32_0 = arith.constant 0 : i32
    %c0_i32_1 = arith.constant 0 : i32
    return %c0_i32, %c0_i32_0 : i32, i32
  }
  func.func @transform_1(%arg0: i32) -> (i32, i32) {
    %c0_i32 = arith.constant 0 : i32
    %c0_i32_0 = arith.constant 0 : i32
    %c0_i32_1 = arith.constant 0 : i32
    return %c0_i32, %c0_i32_0 : i32, i32
  }
  func.func @transform_2(%arg0: i32) -> (i32, i32) {
    %c0_i32 = arith.constant 0 : i32
    %c0_i32_0 = arith.constant 0 : i32
    %c0_i32_1 = arith.constant 0 : i32
    return %c0_i32, %c0_i32_0 : i32, i32
  }
  func.func @transform_3(%arg0: i32) -> (i32, i32) {
    %c0_i32 = arith.constant 0 : i32
    %c0_i32_0 = arith.constant 0 : i32
    %c0_i32_1 = arith.constant 0 : i32
    return %c0_i32, %c0_i32_0 : i32, i32
  }
  func.func @transform_4(%arg0: i32) -> (i32, i32) {
    %c0_i32 = arith.constant 0 : i32
    %c0_i32_0 = arith.constant 0 : i32
    %c0_i32_1 = arith.constant 0 : i32
    return %c0_i32, %c0_i32_0 : i32, i32
  }
  func.func @transform_5(%arg0: i32) -> (i32, i32) {
    %c0_i32 = arith.constant 0 : i32
    %c0_i32_0 = arith.constant 0 : i32
    %c0_i32_1 = arith.constant 0 : i32
    return %c0_i32, %c0_i32_0 : i32, i32
  }
}

</mosaic_0001>

<bundles_post_ra>
// kernel: bert_classifier_forward.12
= control target key start
LH: loop header
LB: loop body
LE: loop exit
PB: predicated region body
PF: predicated region fallthrough
CT: control target
= control target key end

     0   :  { %v101_v63 = vlaneseq  ;;  %s384_s0 = inlined_call_operand.vmem [shape: f32[16,768], index: 0, kind: input, shape index: {}]   ;;  %s385_s1 = inlined_call_operand.vmem [shape: f32[1,768], index: 1, kind: input, shape index: {}]   ;;  %s386_s2 = inlined_call_operand.vmem [shape: f32[1,768], index: 2, kind: input, shape index: {}]   ;;  %s387_s3 = inlined_call_operand.vmem [shape: bf16[16,768], index: 3, kind: output, shape index: {}]  }
   0x1   :  { %v14_v0 = vld [vmem:[%s384_s0] sm:$0xff]  ;;  %v15_v1 = vld [vmem:[%s384_s0 + $0x8] sm:$0xff]  ;;  %v16_v2 = vld [vmem:[%s384_s0 + $0x10] sm:$0xff] }
   0x2   :  { %v17_v3 = vld [vmem:[%s384_s0 + $0x18] sm:$0xff]  ;;  %v26_v4 = vadd.f32 %v15_v1, %v14_v0  ;;  %v20_v5 = vld [vmem:[%s384_s0 + $0x30] sm:$0xff]  ;;  %v22_v7 = vld [vmem:[%s384_s0 + $0x40] sm:$0xff] }
   0x3   :  { %v21_v6 = vld [vmem:[%s384_s0 + $0x38] sm:$0xff]  ;;  %v18_v10 = vld [vmem:[%s384_s0 + $0x20] sm:$0xff]  ;;  %v23_v11 = vld [vmem:[%s384_s0 + $0x48] sm:$0xff] }
   0x4   :  { %v27_v8 = vadd.f32 %v26_v4, %v16_v2  ;;  %v33_v9 = vadd.f32 %v21_v6, %v20_v5  ;;  %v19_v14 = vld [vmem:[%s384_s0 + $0x28] sm:$0xff]  ;;  %v24_v15 = vld [vmem:[%s384_s0 + $0x50] sm:$0xff]  ;;  %v25_v18 = vld [vmem:[%s384_s0 + $0x58] sm:$0xff] }
   0x6   :  { %v28_v12 = vadd.f32 %v27_v8, %v17_v3  ;;  %v34_v13 = vadd.f32 %v33_v9, %v22_v7 }
   0x8   :  { %v29_v16 = vadd.f32 %v28_v12, %v18_v10  ;;  %v35_v17 = vadd.f32 %v34_v13, %v23_v11 }
   0xa   :  { %v30_v19 = vadd.f32 %v29_v16, %v19_v14  ;;  %v36_v20 = vadd.f32 %v35_v17, %v24_v15 }
   0xc   :  { %31 = vadd.xlane.f32.xlu0 %v30_v19  ;;  %v37_v21 = vadd.f32 %v36_v20, %v25_v18 }
  0x10   :  { %38 = vadd.xlane.f32.xlu0 %v37_v21 }
  0x95   :  { %v32_v22 = vpop.xlane.xlu0 %31 }
  0x96   :  { %v41_v23 = vmul.f32 0.0013020834, %v32_v22 }
  0x98   :  { %v305_v24 = vsub.f32 %v14_v0, %v41_v23  ;;  %v307_v25 = vsub.f32 %v15_v1, %v41_v23  ;;  %v309_v26 = vsub.f32 %v16_v2, %v41_v23  ;;  %v311_v28 = vsub.f32 %v17_v3, %v41_v23 }
  0x99   :  { %v39_v27 = vpop.xlane.xlu0 %38  ;;  %v317_v32 = vsub.f32 %v18_v10, %v41_v23  ;;  %v48_v38 = vsub.f32 %v19_v14, %v41_v23  ;;  %v102_v3 = vshrl.u32 %v101_v63, 7 }
  0x9a   :  { %v42_v29 = vmul.f32 0.0013020834, %v39_v27  ;;  %v55_v30 = vmul.f32 %v305_v24, %v305_v24  ;;  %v56_v31 = vmul.f32 %v307_v25, %v307_v25  ;;  %v57_v33 = vmul.f32 %v309_v26, %v309_v26 }
  0x9b   :  { %v58_v39 = vmul.f32 %v311_v28, %v311_v28  ;;  %v59_v44 = vmul.f32 %v317_v32, %v317_v32  ;;  %v60_v49 = vmul.f32 %v48_v38, %v48_v38  ;;  %v103_v4 = vsub.s32 0, %v102_v3 }
  0x9c   :  { %v67_v34 = vadd.f32 %v56_v31, %v55_v30  ;;  %v321_v35 = vsub.f32 %v20_v5, %v42_v29  ;;  %v323_v36 = vsub.f32 %v21_v6, %v42_v29  ;;  %v325_v37 = vsub.f32 %v22_v7, %v42_v29  ;;  %v99_v6 = vld [vmem:[%s385_s1] sm:$0x3f] }
  0x9d   :  { %v329_v41 = vsub.f32 %v23_v11, %v42_v29  ;;  %v337_v46 = vsub.f32 %v24_v15, %v42_v29  ;;  %v341_v51 = vsub.f32 %v25_v18, %v42_v29  ;;  %v107_v5 = vsub.s32 1, %v102_v3  ;;  %v143_v11 = vld [vmem:[%s386_s2] sm:$0x3f] }
  0x9e   :  { %v68_v40 = vadd.f32 %v67_v34, %v57_v33  ;;  %v61_v42 = vmul.f32 %v321_v35, %v321_v35  ;;  %v62_v43 = vmul.f32 %v323_v36, %v323_v36  ;;  %v63_v47 = vmul.f32 %v325_v37, %v325_v37 }
  0x9f   :  { %v64_v52 = vmul.f32 %v329_v41, %v329_v41  ;;  %v65_v55 = vmul.f32 %v337_v46, %v337_v46  ;;  %v66_v57 = vmul.f32 %v341_v51, %v341_v51  ;;  %v111_v7 = vsub.s32 2, %v102_v3 }
  0xa0   :  { %v69_v45 = vadd.f32 %v68_v40, %v58_v39  ;;  %v74_v48 = vadd.f32 %v62_v43, %v61_v42  ;;  %v115_v8 = vsub.s32 3, %v102_v3  ;;  %v119_v9 = vsub.s32 4, %v102_v3 }
  0xa1   :  { %v123_v10 = vsub.s32 5, %v102_v3  ;;  %v104_v12 = vrot.slane %v99_v6, %v103_v4  ;;  %v108_v13 = vrot.slane %v99_v6, %v107_v5  ;;  %v112_v14 = vrot.slane %v99_v6, %v111_v7 }
  0xa2   :  { %v70_v50 = vadd.f32 %v69_v45, %v59_v44  ;;  %v75_v53 = vadd.f32 %v74_v48, %v63_v47  ;;  %v116_v15 = vrot.slane %v99_v6, %v115_v8  ;;  %v120_v16 = vrot.slane %v99_v6, %v119_v9 }
  0xa3   :  { %v124_v17 = vrot.slane %v99_v6, %v123_v10  ;;  %v148_v19 = vrot.slane %v143_v11, %v103_v4  ;;  %v152_v20 = vrot.slane %v143_v11, %v107_v5  ;;  %v156_v21 = vrot.slane %v143_v11, %v111_v7 }
  0xa4   :  { %v71_v54 = vadd.f32 %v70_v50, %v60_v49  ;;  %v76_v56 = vadd.f32 %v75_v53, %v64_v52  ;;  %v160_v22 = vrot.slane %v143_v11, %v115_v8  ;;  %v164_v31 = vrot.slane %v143_v11, %v119_v9 }
  0xa5   :  { %v168_v33 = vrot.slane %v143_v11, %v123_v10 }
  0xa6   :  { %72 = vadd.xlane.f32.xlu1 %v71_v54  ;;  %v77_v58 = vadd.f32 %v76_v56, %v65_v55 }
  0xa8   :  { %v78_v59 = vadd.f32 %v77_v58, %v66_v57 }
  0xaa   :  { %79 = vadd.xlane.f32.xlu1 %v78_v59 }
 0x12f   :  { %v73_v60 = vpop.xlane.xlu1 %72 }
 0x130   :  { %v81_v61 = vmul.f32 0.0013020834, %v73_v60 }
 0x132   :  { %v83_v62 = vadd.f32 1e-12, %v81_v61 }
 0x133   :  { %v80_v0 = vpop.xlane.xlu1 %79 }
 0x134   :  { %245 = vrsqrt.f32 %v83_v62  ;;  %v82_v1 = vmul.f32 0.0013020834, %v80_v0 }
 0x136   :  { %v84_v2 = vadd.f32 1e-12, %v82_v1 }
 0x138   :  { %247 = vrsqrt.f32 %v84_v2 }
 0x141   :  { %v246_v18 = vpop.eup %245 }
 0x142   :  { %v87_v23 = vmul.f32 %v246_v18, %v305_v24  ;;  %v88_v27 = vmul.f32 %v246_v18, %v307_v25  ;;  %v89_v29 = vmul.f32 %v246_v18, %v309_v26  ;;  %v90_v30 = vmul.f32 %v246_v18, %v311_v28 }
 0x143   :  { %v91_v34 = vmul.f32 %v246_v18, %v317_v32  ;;  %v92_v39 = vmul.f32 %v246_v18, %v48_v38 }
 0x144   :  { %v131_v40 = vmul.f32 %v104_v12, %v87_v23  ;;  %v132_v42 = vmul.f32 %v108_v13, %v88_v27  ;;  %v133_v43 = vmul.f32 %v112_v14, %v89_v29  ;;  %v134_v44 = vmul.f32 %v116_v15, %v90_v30 }
 0x145   :  { %v248_v45 = vpop.eup %247  ;;  %v135_v47 = vmul.f32 %v120_v16, %v91_v34  ;;  %v136_v48 = vmul.f32 %v124_v17, %v92_v39 }
 0x146   :  { %v175_v49 = vadd.f32 %v148_v19, %v131_v40  ;;  %v176_v24 = vadd.f32 %v152_v20, %v132_v42  ;;  %v177_v50 = vadd.f32 %v156_v21, %v133_v43  ;;  %v178_v25 = vadd.f32 %v160_v22, %v134_v44 }
 0x147   :  { %v179_v52 = vadd.f32 %v164_v31, %v135_v47  ;;  %v180_v26 = vadd.f32 %v168_v33, %v136_v48  ;;  %v93_v28 = vmul.f32 %v248_v45, %v321_v35  ;;  %v94_v53 = vmul.f32 %v248_v45, %v323_v36 }
 0x148   :  { %v239_v54 = vpack.c.bf16 %v176_v24, %v175_v49  ;;  %v240_v32 = vpack.c.bf16 %v178_v25, %v177_v50  ;;  %v95_v38 = vmul.f32 %v248_v45, %v325_v37  ;;  %v96_v55 = vmul.f32 %v248_v45, %v329_v41 }
 0x149   :  { %v241_v56 = vpack.c.bf16 %v180_v26, %v179_v52  ;;  %v97_v57 = vmul.f32 %v248_v45, %v337_v46  ;;  %v98_v58 = vmul.f32 %v248_v45, %v341_v51  ;;  %v137_v59 = vmul.f32 %v104_v12, %v93_v28 }
 0x14a   :  { %223 = vst [vmem:[%s387_s3] sm:$0xff] %v239_v54  ;;  %224 = vst [vmem:[%s387_s3 + $0x8] sm:$0xff] %v240_v32  ;;  %v138_v35 = vmul.f32 %v108_v13, %v94_v53  ;;  %v139_v36 = vmul.f32 %v112_v14, %v95_v38  ;;  %v140_v60 = vmul.f32 %v116_v15, %v96_v55 }
 0x14b   :  { %225 = vst [vmem:[%s387_s3 + $0x10] sm:$0xff] %v241_v56  ;;  %v141_v37 = vmul.f32 %v120_v16, %v97_v57  ;;  %v142_v41 = vmul.f32 %v124_v17, %v98_v58  ;;  %v181_v46 = vadd.f32 %v148_v19, %v137_v59 }
 0x14c   :  { %v182_v51 = vadd.f32 %v152_v20, %v138_v35  ;;  %v183_v61 = vadd.f32 %v156_v21, %v139_v36  ;;  %v184_v62 = vadd.f32 %v160_v22, %v140_v60 }
 0x14d   :  { %v185_v63 = vadd.f32 %v164_v31, %v141_v37  ;;  %v186_v0 = vadd.f32 %v168_v33, %v142_v41 }
 0x14e   :  { %v242_v1 = vpack.c.bf16 %v182_v51, %v181_v46  ;;  %v243_v2 = vpack.c.bf16 %v184_v62, %v183_v61 }
 0x14f   :  { %v244_v3 = vpack.c.bf16 %v186_v0, %v185_v63 }
 0x150   :  { %226 = vst [vmem:[%s387_s3 + $0x18] sm:$0xff] %v242_v1  ;;  %227 = vst [vmem:[%s387_s3 + $0x20] sm:$0xff] %v243_v2 }
 0x151   :  { %228 = vst [vmem:[%s387_s3 + $0x28] sm:$0xff] %v244_v3 }

// kernel: bert_classifier_forward.13
= control target key start
LH: loop header
LB: loop body
LE: loop exit
PB: predicated region body
PF: predicated region fallthrough
CT: control target
= control target key end

     0   :  { %8 = vsyncpa [#allocation3], 0  ;;  %s1828_s0 = inlined_call_operand.vmem [shape: bf16[16,768], index: 0, kind: input, shape index: {}]   ;;  %s1829_s1 = inlined_call_operand.hbm [shape: bf16[768,2304], index: 1, kind: input, shape index: {}]   ;;  %s1830_s2 = inlined_call_operand.vmem [shape: f32[1,2304], index: 2, kind: input, shape index: {}]   ;;  %s1831_s3 = inlined_call_operand.vmem [shape: bf16[16,2304], index: 3, kind: output, shape index: {}]  }
   0x1   :  { %10 = vsyncpa [#allocation3 + $0x1], 0  ;;  %s1600_s12 = smov 0   ;;  %s1602_s13 = smov 0  }
   0x2   :  { %s1604_s14 = smov 0   ;;  %s1606_s15 = smov 0  }
   0x3   :  { %s1608_s16 = smov 0   ;;  %s1610_s17 = smov 0  }
   0x4 LB: > { %s1160_s18 = sadd.s32 4294967295, %s1574_s17   ;;  %s28_s19 = sadd.s32 1, %s1570_s16  ;;  %s1574_s17 = sphi %s1610_s17, %s16_s17   ;;  %s1570_s16 = sphi %s1608_s16, %s1840_s16   ;;  %s1566_s15 = sphi %s1606_s15, %s1839_s15   ;;  %s1562_s14 = sphi %s1604_s14, %s1838_s14   ;;  %s1558_s13 = sphi %s1602_s13, %s1837_s13   ;;  %s1554_s12 = sphi %s1600_s12, %s1836_s12  }
   0x5   : > { %p30_p0 = scmp.ge.s32.totalorder %s28_s19, 9  ;;  %s61_s20 = sadd.s32 1, %s1562_s14 }
   0x6   : > { %p68_p1 = scmp.ne.s32.totalorder %s1562_s14, %s1558_s13  ;;  %p69_p2 = scmp.eq.s32.totalorder %s1574_s17, 0 }
   0x7   : > { %s1842_s19 = smov (%p30_p0, %s28_s19), 0  ;;  %p74_p4 = scmp.ne.s32.totalorder %s1558_s13, %s1554_s12 }
   0x8   : > { %p1636_p3 = por %p69_p2, %p68_p1  ;;  %s58_s22 = ssub.s32 %s1570_s16, %s1842_s19 }
   0x9   : > { %p75_p5 = scmp.eq.s32.totalorder %s1160_s18, 0  ;;  %p59_p6 = scmp.eq.s32.totalorder %s58_s22, 0 }
   0xa   : > { %p126_p7 = scmp.eq.s32.totalorder %s1160_s18, 8  ;;  %p1291_p10 = scmp.lt.s32.totalorder %s1574_s17, 9 }
   0xb   : > { %p1643_p8 = por %p75_p5, %p74_p4  ;;  %s162_s26 = sand.u32 1, %s1562_s14  }
   0xc   : > { %s1648_s24 = scalar_select %p59_p6, %s1562_s14, %s61_s20  }
   0xd   : > { %p1650_p9 = por %p126_p7, %p68_p1  ;;  %s1279_s27 = sshll.u32 %s1570_s16, 7 }
   0xe   : > { %s1283_s28 = smul.u32 768, %s162_s26  ;;  %s172_s4 = scalar_lea.hbm %s1829_s1, %s1279_s27 }
   0xf   : > { %p1662_p11 = pnand %p1291_p10, %p1636_p3  ;;  %p1167_p12 = scmp.ge.s32.totalorder %s1574_s17, 1 }
  0x10   : > { %s166_s6 = scalar_lea.vmem [#allocation2], %s1283_s28  ;;  %s163_s8 = scalar_lea.sflag [#allocation3], %s162_s26 }
  0x11   : > { %s173_s7 = sshll.u32 %s166_s6, 4  ;;  %p1498_p13 = pneg %p1662_p11  ;;  %s174_s7 = int_to_ptr.vmem [resolvable:$true] %s173_s7 }
  0x12   : > { %s1509_s9 = scalar_lea.vmem %s174_s7, 12288  ;;  %s1576_s10 = smov [#allocation2]  }
  0x13   : > { %p1510_p0 = scmp.ne.s32.totalorder %s174_s7, %s1509_s9  ;;  %s1514_s11 = sshll.u32 %s1576_s10, 4  ;;  %s1515_s11 = int_to_ptr.vmem [resolvable:$false] %s1514_s11 }
  0x14   : > { %s1516_s12 = scalar_lea.vmem %s1515_s11, 24576  ;;  %p1517_p3 = scmp.lt.s32.totalorder %s174_s7, %s1515_s11 }
  0x15   : > { %p1512_p1 = pnand %p1510_p0, %p1498_p13  ;;  %p1518_p4 = scmp.lt.s32.totalorder %s1516_s12, %s1509_s9 }
  0x17   : > { %p1513_p2 = pneg %p1512_p1  ;;  %p1519_p5 = por %p1518_p4, %p1517_p3 }
  0x19   : > { %p1520_p6 = pnand %p1519_p5, %p1513_p2 }
  0x1b   : > { %1523 = shalt.err (!%p1520_p6)
}
  0x1c   : > { %s1577_s18 = smov 1152   ;;  %s1578_s20 = smov 128  }
  0x1d   : > { %s1579_s21 = smov 8   ;;  %p189_p7 = scmp.lt.s32.totalorder %s1574_s17, 10 }
  0x1e   : > { %1290 = dma.hbm_to_vmem [thread:$0]  (!%p1662_p11), %s172_s4, 12288, %s174_s7, %s163_s8, %s1577_s18, %s1578_s20, %s1579_s21  }
  0x1f   : > { %p190_p10 = pnand %p1167_p12, %p189_p7 }
  0x20   : > { %s1675_s22 = sand.u32 (!%p190_p10), 1, %s1558_s13  }
  0x21   : > { %193 = sbr.rel (%p190_p10) target bundleno = 380 (0x17c), region = 32  ;;  %s196_s27 = scalar_lea.sflag (!%p190_p10), [#allocation3], %s1675_s22 }
  0x22   : > { %s1284_s26 = smul.u32 (!%p190_p10), 768, %s1675_s22 }
  0x24   : > { %s1679_s28 = scalar_lea.vmem (!%p190_p10), [#allocation2], %s1284_s26 }
  0x26   : > { %1549 = dma.done.wait (%p1643_p8), %s196_s27, 12288  }
  0x27   : > { %1551 = vsyncadd (%p1643_p8), %s196_s27, 4294955008  ;;  %v1343_v0 = vld [vmem:[%s1679_s28 + $0x74] ss:$8 sps:$4 sm:$0xff]   ;;  %v1345_v1 = vld [vmem:[%s1679_s28 + $0x70] ss:$8 sps:$4 sm:$0xff]   ;;  %s1169_s18 = sshll.u32 %s1566_s15, 1 }
  0x28   : > { %870 = vmatprep.subr.bf16.mxu0 %v1343_v0  ;;  %v1346_v2 = vld [vmem:[%s1679_s28 + $0x174] ss:$8 sps:$4 sm:$0xff]   ;;  %v1348_v3 = vld [vmem:[%s1679_s28 + $0x170] ss:$8 sps:$4 sm:$0xff]   ;;  %v1349_v4 = vld [vmem:[%s1679_s28 + $0x64] ss:$8 sps:$4 sm:$0xff]  }
  0x29   : > { %871 = vmatpush1.bf16.msra.mxu0 %v1345_v1  ;;  %v1351_v5 = vld [vmem:[%s1679_s28 + $0x60] ss:$8 sps:$4 sm:$0xff]   ;;  %913 = vmatprep.subr.bf16.mxu1 %v1346_v2  ;;  %v1352_v6 = vld [vmem:[%s1679_s28 + $0x164] ss:$8 sps:$4 sm:$0xff]   ;;  %v1355_v8 = vld [vmem:[%s1679_s28 + $0x54] ss:$8 sps:$4 sm:$0xff]  }
  0x2a   : > { %914 = vmatpush1.bf16.msra.mxu1 %v1348_v3  ;;  %872 = vmatprep.subr.bf16.mxu0 %v1349_v4  ;;  %v1354_v7 = vld [vmem:[%s1679_s28 + $0x160] ss:$8 sps:$4 sm:$0xff]   ;;  %v1357_v9 = vld [vmem:[%s1679_s28 + $0x50] ss:$8 sps:$4 sm:$0xff]   ;;  %v1358_v10 = vld [vmem:[%s1679_s28 + $0x154] ss:$8 sps:$4 sm:$0xff]  }
  0x2b   : > { %915 = vmatprep.subr.bf16.mxu1 %v1352_v6  ;;  %v1361_v11 = vld [vmem:[%s1679_s28 + $0x44] ss:$8 sps:$4 sm:$0xff]   ;;  %v1360_v12 = vld [vmem:[%s1679_s28 + $0x150] ss:$8 sps:$4 sm:$0xff]   ;;  %v1363_v14 = vld [vmem:[%s1679_s28 + $0x40] ss:$8 sps:$4 sm:$0xff]  }
  0x2c   : > { %v1364_v13 = vld [vmem:[%s1679_s28 + $0x144] ss:$8 sps:$4 sm:$0xff]   ;;  %v1367_v15 = vld [vmem:[%s1679_s28 + $0x34] ss:$8 sps:$4 sm:$0xff]   ;;  %v1366_v16 = vld [vmem:[%s1679_s28 + $0x140] ss:$8 sps:$4 sm:$0xff]  }
  0x2d   : > { %873 = vmatpush1.bf16.msra.mxu0 %v1351_v5  ;;  %v1370_v17 = vld [vmem:[%s1679_s28 + $0x134] ss:$8 sps:$4 sm:$0xff]   ;;  %v1369_v18 = vld [vmem:[%s1679_s28 + $0x30] ss:$8 sps:$4 sm:$0xff]   ;;  %v1373_v19 = vld [vmem:[%s1679_s28 + $0x24] ss:$8 sps:$4 sm:$0xff]  }
  0x2e   : > { %874 = vmatprep.subr.bf16.mxu0 %v1355_v8  ;;  %916 = vmatpush1.bf16.msra.mxu1 %v1354_v7  ;;  %v1372_v20 = vld [vmem:[%s1679_s28 + $0x130] ss:$8 sps:$4 sm:$0xff]   ;;  %v1376_v21 = vld [vmem:[%s1679_s28 + $0x124] ss:$8 sps:$4 sm:$0xff]   ;;  %v1375_v22 = vld [vmem:[%s1679_s28 + $0x20] ss:$8 sps:$4 sm:$0xff]  }
  0x2f   : > { %917 = vmatprep.subr.bf16.mxu1 %v1358_v10  ;;  %v1379_v23 = vld [vmem:[%s1679_s28 + $0x14] ss:$8 sps:$4 sm:$0xff]   ;;  %v1378_v24 = vld [vmem:[%s1679_s28 + $0x120] ss:$8 sps:$4 sm:$0xff]   ;;  %v1381_v26 = vld [vmem:[%s1679_s28 + $0x10] ss:$8 sps:$4 sm:$0xff]  }
  0x30   : > { %v1382_v25 = vld [vmem:[%s1679_s28 + $0x114] ss:$8 sps:$4 sm:$0xff]   ;;  %v1385_v27 = vld [vmem:[%s1679_s28 + $0x4] ss:$8 sps:$4 sm:$0xff]   ;;  %v1384_v28 = vld [vmem:[%s1679_s28 + $0x110] ss:$8 sps:$4 sm:$0xff]  }
  0x31   : > { %875 = vmatpush1.bf16.msra.mxu0 %v1357_v9  ;;  %v1388_v29 = vld [vmem:[%s1679_s28 + $0x104] ss:$8 sps:$4 sm:$0xff]   ;;  %v1387_v30 = vld [vmem:[%s1679_s28] ss:$8 sps:$4 sm:$0xff]   ;;  %v1391_v31 = vld [vmem:[%s1679_s28 + $0xf4] ss:$8 sps:$4 sm:$0xff]  }
  0x32   : > { %876 = vmatprep.subr.bf16.mxu0 %v1361_v11  ;;  %918 = vmatpush1.bf16.msra.mxu1 %v1360_v12  ;;  %v1390_v32 = vld [vmem:[%s1679_s28 + $0x100] ss:$8 sps:$4 sm:$0xff]   ;;  %v1394_v33 = vld [vmem:[%s1679_s28 + $0x1f4] ss:$8 sps:$4 sm:$0xff]   ;;  %v1393_v34 = vld [vmem:[%s1679_s28 + $0xf0] ss:$8 sps:$4 sm:$0xff]  }
  0x33   : > { %919 = vmatprep.subr.bf16.mxu1 %v1364_v13  ;;  %v1397_v35 = vld [vmem:[%s1679_s28 + $0xe4] ss:$8 sps:$4 sm:$0xff]   ;;  %v1396_v36 = vld [vmem:[%s1679_s28 + $0x1f0] ss:$8 sps:$4 sm:$0xff]   ;;  %v1399_v38 = vld [vmem:[%s1679_s28 + $0xe0] ss:$8 sps:$4 sm:$0xff]  }
  0x34   : > { %v1400_v37 = vld [vmem:[%s1679_s28 + $0x1e4] ss:$8 sps:$4 sm:$0xff]   ;;  %v1403_v39 = vld [vmem:[%s1679_s28 + $0xd4] ss:$8 sps:$4 sm:$0xff]   ;;  %v1402_v40 = vld [vmem:[%s1679_s28 + $0x1e0] ss:$8 sps:$4 sm:$0xff]  }
  0x35   : > { %877 = vmatpush1.bf16.msra.mxu0 %v1363_v14  ;;  %v1406_v41 = vld [vmem:[%s1679_s28 + $0x1d4] ss:$8 sps:$4 sm:$0xff]   ;;  %v1405_v42 = vld [vmem:[%s1679_s28 + $0xd0] ss:$8 sps:$4 sm:$0xff]   ;;  %v1409_v43 = vld [vmem:[%s1679_s28 + $0xc4] ss:$8 sps:$4 sm:$0xff]  }
  0x36   : > { %878 = vmatprep.subr.bf16.mxu0 %v1367_v15  ;;  %920 = vmatpush1.bf16.msra.mxu1 %v1366_v16  ;;  %v1408_v44 = vld [vmem:[%s1679_s28 + $0x1d0] ss:$8 sps:$4 sm:$0xff]   ;;  %v1412_v45 = vld [vmem:[%s1679_s28 + $0x1c4] ss:$8 sps:$4 sm:$0xff]   ;;  %v1411_v46 = vld [vmem:[%s1679_s28 + $0xc0] ss:$8 sps:$4 sm:$0xff]  }
  0x37   : > { %921 = vmatprep.subr.bf16.mxu1 %v1370_v17  ;;  %v1440_v47 = vld [vmem:[%s1828_s0 + $0x4] ss:$24 sps:$4 sm:$0xff]   ;;  %v1414_v49 = vld [vmem:[%s1679_s28 + $0x1c0] ss:$8 sps:$4 sm:$0xff]   ;;  %v1417_v52 = vld [vmem:[%s1679_s28 + $0xb0] ss:$8 sps:$4 sm:$0xff]  }
  0x38   : > { %v1415_v48 = vld [vmem:[%s1679_s28 + $0xb4] ss:$8 sps:$4 sm:$0xff]   ;;  %902 = vmatprep.mubr.bf16.mxu0 %v1440_v47  ;;  %v1447_v51 = vld [vmem:[%s1828_s0 + $0xc] ss:$24 sps:$4 sm:$0xff]   ;;  %v1420_v54 = vld [vmem:[%s1679_s28 + $0x1b0] ss:$8 sps:$4 sm:$0xff]  }
  0x39   : > { %879 = vmatpush1.bf16.msra.mxu0 %v1369_v18  ;;  %v1418_v50 = vld [vmem:[%s1679_s28 + $0x1b4] ss:$8 sps:$4 sm:$0xff]   ;;  %v1421_v53 = vld [vmem:[%s1679_s28 + $0xa4] ss:$8 sps:$4 sm:$0xff]   ;;  %945 = vmatprep.mubr.bf16.mxu1 %v1447_v51  ;;  %v1423_v56 = vld [vmem:[%s1679_s28 + $0xa0] ss:$8 sps:$4 sm:$0xff]  }
  0x3a   : > { %880 = vmatprep.subr.bf16.mxu0 %v1373_v19  ;;  %922 = vmatpush1.bf16.msra.mxu1 %v1372_v20  ;;  %v1424_v55 = vld [vmem:[%s1679_s28 + $0x1a4] ss:$8 sps:$4 sm:$0xff]   ;;  %v1427_v57 = vld [vmem:[%s1679_s28 + $0x94] ss:$8 sps:$4 sm:$0xff]   ;;  %v1426_v58 = vld [vmem:[%s1679_s28 + $0x1a0] ss:$8 sps:$4 sm:$0xff]  }
  0x3b   : > { %923 = vmatprep.subr.bf16.mxu1 %v1376_v21  ;;  %v1430_v59 = vld [vmem:[%s1679_s28 + $0x194] ss:$8 sps:$4 sm:$0xff]   ;;  %v1429_v60 = vld [vmem:[%s1679_s28 + $0x90] ss:$8 sps:$4 sm:$0xff]   ;;  %v1433_v61 = vld [vmem:[%s1679_s28 + $0x84] ss:$8 sps:$4 sm:$0xff]  }
  0x3c   : > { %v1432_v62 = vld [vmem:[%s1679_s28 + $0x190] ss:$8 sps:$4 sm:$0xff]   ;;  %v1436_v63 = vld [vmem:[%s1679_s28 + $0x184] ss:$8 sps:$4 sm:$0xff]   ;;  %v1435_v0 = vld [vmem:[%s1679_s28 + $0x80] ss:$8 sps:$4 sm:$0xff]  }
  0x3d   : > { %881 = vmatpush1.bf16.msra.mxu0 %v1375_v22  ;;  %v1444_v1 = vld [vmem:[%s1679_s28 + $0x274] ss:$8 sps:$4 sm:$0xff]   ;;  %v1441_v2 = vld [vmem:[%s1679_s28 + $0x180] ss:$8 sps:$4 sm:$0xff]   ;;  %v1442_v4 = vld [vmem:[%s1679_s28 + $0x270] ss:$8 sps:$4 sm:$0xff]  }
  0x3e   : > { %882 = vmatprep.subr.bf16.mxu0 %v1379_v23  ;;  %924 = vmatpush1.bf16.msra.mxu1 %v1378_v24  ;;  %v1438_v3 = vld [vmem:[%s1828_s0] ss:$24 sps:$4 sm:$0xff]   ;;  %v1450_v6 = vld [vmem:[%s1679_s28 + $0x264] ss:$8 sps:$4 sm:$0xff]   ;;  %v1453_v9 = vld [vmem:[%s1679_s28 + $0x254] ss:$8 sps:$4 sm:$0xff]  }
  0x3f   : > { %925 = vmatprep.subr.bf16.mxu1 %v1382_v25  ;;  %v1445_v5 = vld [vmem:[%s1828_s0 + $0x8] ss:$24 sps:$4 sm:$0xff]   ;;  %v1495_v8 = vld [vmem:[%s1828_s0 + $0x14] ss:$24 sps:$4 sm:$0xff]   ;;  %v1451_v10 = vld [vmem:[%s1679_s28 + $0x250] ss:$8 sps:$4 sm:$0xff]  }
  0x40   : > { %v1448_v7 = vld [vmem:[%s1679_s28 + $0x260] ss:$8 sps:$4 sm:$0xff]   ;;  %v1456_v11 = vld [vmem:[%s1679_s28 + $0x244] ss:$8 sps:$4 sm:$0xff]   ;;  %v1459_v13 = vld [vmem:[%s1679_s28 + $0x234] ss:$8 sps:$4 sm:$0xff]  }
  0x41   : > { %883 = vmatpush1.bf16.msra.mxu0 %v1381_v26  ;;  %v1454_v12 = vld [vmem:[%s1679_s28 + $0x240] ss:$8 sps:$4 sm:$0xff]   ;;  %v1457_v14 = vld [vmem:[%s1679_s28 + $0x230] ss:$8 sps:$4 sm:$0xff]   ;;  %v1462_v15 = vld [vmem:[%s1679_s28 + $0x224] ss:$8 sps:$4 sm:$0xff]  }
  0x42   : > { %884 = vmatprep.subr.bf16.mxu0 %v1385_v27  ;;  %926 = vmatpush1.bf16.msra.mxu1 %v1384_v28  ;;  %v1460_v16 = vld [vmem:[%s1679_s28 + $0x220] ss:$8 sps:$4 sm:$0xff]   ;;  %v1465_v17 = vld [vmem:[%s1679_s28 + $0x214] ss:$8 sps:$4 sm:$0xff]   ;;  %v1463_v18 = vld [vmem:[%s1679_s28 + $0x210] ss:$8 sps:$4 sm:$0xff]  }
  0x43   : > { %927 = vmatprep.subr.bf16.mxu1 %v1388_v29  ;;  %v1468_v19 = vld [vmem:[%s1679_s28 + $0x204] ss:$8 sps:$4 sm:$0xff]   ;;  %v1466_v20 = vld [vmem:[%s1679_s28 + $0x200] ss:$8 sps:$4 sm:$0xff]   ;;  %v1471_v21 = vld [vmem:[%s1679_s28 + $0x2f4] ss:$8 sps:$4 sm:$0xff]  }
  0x44   : > { %v1469_v22 = vld [vmem:[%s1679_s28 + $0x2f0] ss:$8 sps:$4 sm:$0xff]   ;;  %v1474_v23 = vld [vmem:[%s1679_s28 + $0x2e4] ss:$8 sps:$4 sm:$0xff]   ;;  %v1472_v24 = vld [vmem:[%s1679_s28 + $0x2e0] ss:$8 sps:$4 sm:$0xff]  }
  0x45   : > { %885 = vmatpush1.bf16.msra.mxu0 %v1387_v30  ;;  %v1477_v25 = vld [vmem:[%s1679_s28 + $0x2d4] ss:$8 sps:$4 sm:$0xff]   ;;  %v1475_v26 = vld [vmem:[%s1679_s28 + $0x2d0] ss:$8 sps:$4 sm:$0xff]   ;;  %v1480_v27 = vld [vmem:[%s1679_s28 + $0x2c4] ss:$8 sps:$4 sm:$0xff]  }
  0x46   : > { %886 = vmatprep.subr.bf16.mxu0 %v1391_v31  ;;  %928 = vmatpush1.bf16.msra.mxu1 %v1390_v32  ;;  %v1478_v28 = vld [vmem:[%s1679_s28 + $0x2c0] ss:$8 sps:$4 sm:$0xff]   ;;  %v1483_v29 = vld [vmem:[%s1679_s28 + $0x2b4] ss:$8 sps:$4 sm:$0xff]   ;;  %v1481_v30 = vld [vmem:[%s1679_s28 + $0x2b0] ss:$8 sps:$4 sm:$0xff]  }
  0x47   : > { %929 = vmatprep.subr.bf16.mxu1 %v1394_v33  ;;  %v1486_v31 = vld [vmem:[%s1679_s28 + $0x2a4] ss:$8 sps:$4 sm:$0xff]   ;;  %v1484_v32 = vld [vmem:[%s1679_s28 + $0x2a0] ss:$8 sps:$4 sm:$0xff]   ;;  %v1489_v33 = vld [vmem:[%s1679_s28 + $0x294] ss:$8 sps:$4 sm:$0xff]  }
  0x48   : > { %p240_p8 = scmp.lt.s32.totalorder %s1169_s18, 17  ;;  %s1168_s27 = sshll.u32 %s1675_s22, 4 }
  0x49   : > { %887 = vmatpush2.bf16.msra.mxu0 %v1393_v34  ;;  %v1487_v34 = vld [vmem:[%s1679_s28 + $0x290] ss:$8 sps:$4 sm:$0xff]   ;;  %s1282_s22 = sshll.u32 (%p1650_p9), %s1566_s15, 3 }
  0x4a   : > { %888 = vmatprep.subr.bf16.mxu0 %v1397_v35  ;;  %930 = vmatpush2.bf16.msra.mxu1 %v1396_v36  ;;  %v1492_v35 = vld [vmem:[%s1679_s28 + $0x284] ss:$8 sps:$4 sm:$0xff]   ;;  %v1490_v36 = vld [vmem:[%s1679_s28 + $0x280] ss:$8 sps:$4 sm:$0xff]   ;;  %s1844_s18 = smov (!%p240_p8, %s1169_s18), 17  ;;  %s230_s28 = scalar_lea.vmem [#allocation4], %s1168_s27 }
  0x4b   : > { %931 = vmatprep.subr.bf16.mxu1 %v1400_v37  ;;  %v1493_v37 = vld [vmem:[%s1828_s0 + $0x10] ss:$24 sps:$4 sm:$0xff]   ;;  %s242_s26 = scalar_lea.vmem %s1830_s2, %s1844_s18  ;;  %s1025_s30 = scalar_lea.vmem (%p1650_p9), %s1831_s3, %s1282_s22 }
  0x4d   : > { %889 = vmatpush2.bf16.msra.mxu0 %v1399_v38  ;;  %v350_v38 = vlaneseq }
  0x4e   : > { %890 = vmatprep.subr.bf16.mxu0 %v1403_v39  ;;  %932 = vmatpush2.bf16.msra.mxu1 %v1402_v40 }
  0x4f   : > { %933 = vmatprep.subr.bf16.mxu1 %v1406_v41  ;;  %v351_v39 = vshrl.u32 %v350_v38, 7 }
  0x51   : > { %891 = vmatpush2.bf16.msra.mxu0 %v1405_v42  ;;  %v352_v41 = vsub.s32 0, %v351_v39  ;;  %v356_v42 = vsub.s32 1, %v351_v39 }
  0x52   : > { %892 = vmatprep.subr.bf16.mxu0 %v1409_v43  ;;  %934 = vmatpush2.bf16.msra.mxu1 %v1408_v44  ;;  %v348_v43 = vld [vmem:[%s242_s26] sm:$0x3] }
  0x53   : > { %935 = vmatprep.subr.bf16.mxu1 %v1412_v45  ;;  %v357_v47 = vrot.slane %v348_v43, %v356_v42 }
  0x55   : > { %893 = vmatpush2.bf16.msra.mxu0 %v1411_v46  ;;  %v353_v46 = vrot.slane %v348_v43, %v352_v41 }
  0x56   : > { %894 = vmatprep.subr.bf16.mxu0 %v1415_v48  ;;  %936 = vmatpush2.bf16.msra.mxu1 %v1414_v49 }
  0x57   : > { %937 = vmatprep.subr.bf16.mxu1 %v1418_v50 }
  0x59   : > { %895 = vmatpush2.bf16.msra.mxu0 %v1417_v52 }
  0x5a   : > { %896 = vmatprep.subr.bf16.mxu0 %v1421_v53  ;;  %938 = vmatpush2.bf16.msra.mxu1 %v1420_v54 }
  0x5b   : > { %939 = vmatprep.subr.bf16.mxu1 %v1424_v55 }
  0x5d   : > { %897 = vmatpush2.bf16.msra.mxu0 %v1423_v56 }
  0x5e   : > { %898 = vmatprep.subr.bf16.mxu0 %v1427_v57  ;;  %940 = vmatpush2.bf16.msra.mxu1 %v1426_v58 }
  0x5f   : > { %941 = vmatprep.subr.bf16.mxu1 %v1430_v59 }
  0x61   : > { %899 = vmatpush2.bf16.msra.mxu0 %v1429_v60 }
  0x62   : > { %900 = vmatprep.subr.bf16.mxu0 %v1433_v61  ;;  %942 = vmatpush2.bf16.msra.mxu1 %v1432_v62 }
  0x63   : > { %943 = vmatprep.subr.bf16.mxu1 %v1436_v63 }
  0x65   : > { %901 = vmatpush2.bf16.msra.mxu0 %v1435_v0 }
  0x66   : > { %956 = vmatprep.subr.bf16.mxu0 %v1444_v1  ;;  %944 = vmatpush2.bf16.msra.mxu1 %v1441_v2 }
  0x68   : > { %903 = vmatmul.mubr.bf16.vlgmr.msra.gmra.mxu0 %v1438_v3 }
  0x69   : > { %957 = vmatpush1.bf16.msra.mxu0 %v1442_v4  ;;  %946 = vmatmul.mubr.bf16.vlgmr.msra.gmra.mxu1 %v1445_v5 }
  0x6a   : > { %958 = vmatprep.subr.bf16.mxu0 %v1450_v6  ;;  %988 = vmatprep.mubr.bf16.mxu0 %v1495_v8 }
  0x6d   : > { %959 = vmatpush1.bf16.msra.mxu0 %v1448_v7 }
  0x6e   : > { %960 = vmatprep.subr.bf16.mxu0 %v1453_v9 }
  0x71   : > { %961 = vmatpush1.bf16.msra.mxu0 %v1451_v10 }
  0x72   : > { %962 = vmatprep.subr.bf16.mxu0 %v1456_v11 }
  0x75   : > { %963 = vmatpush1.bf16.msra.mxu0 %v1454_v12 }
  0x76   : > { %964 = vmatprep.subr.bf16.mxu0 %v1459_v13 }
  0x79   : > { %965 = vmatpush1.bf16.msra.mxu0 %v1457_v14 }
  0x7a   : > { %966 = vmatprep.subr.bf16.mxu0 %v1462_v15 }
  0x7d   : > { %967 = vmatpush1.bf16.msra.mxu0 %v1460_v16 }
  0x7e   : > { %968 = vmatprep.subr.bf16.mxu0 %v1465_v17 }
  0x81   : > { %969 = vmatpush1.bf16.msra.mxu0 %v1463_v18 }
  0x82   : > { %970 = vmatprep.subr.bf16.mxu0 %v1468_v19 }
  0x85   : > { %971 = vmatpush1.bf16.msra.mxu0 %v1466_v20 }
  0x86   : > { %972 = vmatprep.subr.bf16.mxu0 %v1471_v21 }
  0x89   : > { %973 = vmatpush2.bf16.msra.mxu0 %v1469_v22 }
  0x8a   : > { %974 = vmatprep.subr.bf16.mxu0 %v1474_v23 }
  0x8d   : > { %975 = vmatpush2.bf16.msra.mxu0 %v1472_v24 }
  0x8e   : > { %976 = vmatprep.subr.bf16.mxu0 %v1477_v25 }
  0x91   : > { %977 = vmatpush2.bf16.msra.mxu0 %v1475_v26 }
  0x92   : > { %978 = vmatprep.subr.bf16.mxu0 %v1480_v27 }
  0x95   : > { %979 = vmatpush2.bf16.msra.mxu0 %v1478_v28 }
  0x96   : > { %980 = vmatprep.subr.bf16.mxu0 %v1483_v29 }
  0x99   : > { %981 = vmatpush2.bf16.msra.mxu0 %v1481_v30 }
  0x9a   : > { %982 = vmatprep.subr.bf16.mxu0 %v1486_v31 }
  0x9d   : > { %983 = vmatpush2.bf16.msra.mxu0 %v1484_v32 }
  0x9e   : > { %984 = vmatprep.subr.bf16.mxu0 %v1489_v33 }
  0xa1   : > { %985 = vmatpush2.bf16.msra.mxu0 %v1487_v34 }
  0xa2   : > { %986 = vmatprep.subr.bf16.mxu0 %v1492_v35 }
  0xa5   : > { %987 = vmatpush2.bf16.msra.mxu0 %v1490_v36 }
  0xa8   : > { %989 = vmatmul.mubr.bf16.vlgmr.msra.gmra.mxu0 %v1493_v37 }
 0x128   : > { %v904_v40 = vpop.f32.mrf.mxu0 }
 0x129   : > { %v947_v45 = vpop.f32.mrf.mxu1  ;;  %v905_v50 = vadd.f32 %v904_v40, %v353_v46 }
 0x12a   : > { %v906_v44 = vpop.f32.mrf.mxu0 }
 0x12b   : > { %v949_v49 = vpop.f32.mrf.mxu1  ;;  %v907_v51 = vadd.f32 %v906_v44, %v357_v47  ;;  %v948_v55 = vadd.f32 %v947_v45, %v905_v50 }
 0x12c   : > { %v908_v48 = vpop.f32.mrf.mxu0 }
 0x12d   : > { %v951_v53 = vpop.f32.mrf.mxu1  ;;  %v909_v56 = vadd.f32 %v908_v48, %v353_v46  ;;  %v950_v57 = vadd.f32 %v949_v49, %v907_v51 }
 0x12e   : > { %v910_v52 = vpop.f32.mrf.mxu0 }
 0x12f   : > { %v911_v58 = vadd.f32 %v910_v52, %v357_v47  ;;  %v953_v59 = vpop.f32.mrf.mxu1  ;;  %v952_v0 = vadd.f32 %v951_v53, %v909_v56 }
 0x131   : > { %v954_v1 = vadd.f32 %v953_v59, %v911_v58 }
 0x168   : > { %v990_v54 = vpop.f32.mrf.mxu0 }
 0x169   : > { %v991_v61 = vadd.f32 %v990_v54, %v948_v55 }
 0x16a   : > { %v992_v60 = vpop.f32.mrf.mxu0 }
 0x16b   : > { %v993_v62 = vadd.f32 %v992_v60, %v950_v57 }
 0x16c   : > { %v994_v63 = vpop.f32.mrf.mxu0 }
 0x16d   : > { %v1280_v2 = vpack.c.bf16 %v993_v62, %v991_v61  ;;  %v995_v4 = vadd.f32 %v994_v63, %v952_v0 }
 0x16e   : > { %v996_v3 = vpop.f32.mrf.mxu0 }
 0x16f   : > { %1011 = vst [vmem:[%s230_s28] sm:$0xff] %v1280_v2  ;;  %v997_v5 = vadd.f32 %v996_v3, %v954_v1  ;;  %1019 = sbr.rel (!%p1650_p9) target bundleno = 380 (0x17c), region = 40 }
 0x171   : > { %v1281_v6 = vpack.c.bf16 %v997_v5, %v995_v4 }
 0x173   : > { %1012 = vst [vmem:[%s230_s28 + $0x8] sm:$0xff] %v1281_v6 }
 0x176   : > { %v1056_v7 = vld [vmem:[%s230_s28] sm:$0xff] }
 0x177   : > { %1057 = vst [vmem:[%s1025_s30] sm:$0xff] %v1056_v7 }
 0x17a   : > { %v1058_v8 = vld [vmem:[%s230_s28 + $0x8] sm:$0xff] }
 0x17b   : > { %1059 = vst [vmem:[%s1025_s30 + $0x48] sm:$0xff] %v1058_v8 }
 0x17c PF: > { %s16_s17 = sadd.s32 1, %s1574_s17   ;;  %s1836_s12 = smov %s1558_s13 }
 0x17d   : > { %p13_p11 = scmp.ge.s32.totalorder %s16_s17, 11   ;;  %s1837_s13 = smov %s1562_s14 }
 0x17e   : > { %s1838_s14 = smov %s1648_s24  ;;  %s1839_s15 = smov %s1570_s16 }
 0x17f   : > { %s1840_s16 = smov %s1842_s19  ;;  %15 = sbr.rel (!%p13_p11) target bundleno = 4 (0x4), region = 116 }
 0x184   :  { %1075 = vsyncpa [#allocation3], 1 }
 0x185   :  { %1077 = vsyncpa [#allocation3 + $0x1], 1 }

// kernel: bert_classifier_forward.14
= control target key start
LH: loop header
LB: loop body
LE: loop exit
PB: predicated region body
PF: predicated region fallthrough
CT: control target
= control target key end

     0   :  { %v1552_v0 = vmov 0.0   ;;  %vm1553_vm0 = vmmov 0   ;;  %vm62_vm1 = vcmask 64512   ;;  %vm78_vm2 = vcmask 1043456   ;;  %s1935_s0 = inlined_call_operand.vmem [shape: bf16[2,8,2304], index: 0, kind: input, shape index: {}]   ;;  %s1936_s1 = inlined_call_operand.vmem [shape: f32[2,1,8], index: 1, kind: input, shape index: {}]   ;;  %s1937_s2 = inlined_call_operand.vmem [shape: bf16[2,8,768], index: 2, kind: output, shape index: {}]  }
   0x1   :  { %1358 = vmatprep.subr.bf16.mxu0 %v1552_v0  ;;  %v14_v1 = vld [vmem:[%s1935_s0 + $0x18] sm:$0xf]  ;;  %1360 = vmatprep.mubr.msk.bf16.mxu0 %vm1553_vm0, %v1552_v0  ;;  %v13_v2 = vld [vmem:[%s1935_s0] sm:$0xf]  ;;  %v15_v15 = vld [vmem:[%s1935_s0 + $0x30] sm:$0xf] }
   0x2   :  { %1359 = vmatpush3.bf16.xpose.msra.mxu0 %v14_v1  ;;  %1364 = vmatprep.subr.bf16.mxu1 %v1552_v0  ;;  %v1587_v3 = vld [vmem:[%s1936_s1] ss:$0 sm:$0xff]  ;;  %v80_v16 = vsel %vm78_vm2, %v15_v15, 0  ;;  %v125_v21 = vld [vmem:[%s1935_s0 + $0x1c] sm:$0xf] }
   0x3   :  { %1366 = vmatprep.mubr.msk.bf16.mxu1 %vm1553_vm0, %v1552_v0  ;;  %1376 = vmatprep.subr.bf16.mxu0 %v1552_v0  ;;  %v124_v22 = vld [vmem:[%s1935_s0 + $0x4] sm:$0xf]  ;;  %v228_v23 = vld [vmem:[%s1935_s0 + $0x20] sm:$0xf]  ;;  %v227_v24 = vld [vmem:[%s1935_s0 + $0x8] sm:$0xf] }
   0x4   :  { %1365 = vmatpush3.bf16.msra.mxu1 %v80_v16  ;;  %v331_v25 = vld [vmem:[%s1935_s0 + $0x24] sm:$0xf]  ;;  %v330_v26 = vld [vmem:[%s1935_s0 + $0xc] sm:$0xf]  ;;  %v434_v27 = vld [vmem:[%s1935_s0 + $0x28] sm:$0xf] }
   0x5   :  { %1370 = vmatprep.subr.bf16.mxu1 %v1552_v0  ;;  %v433_v28 = vld [vmem:[%s1935_s0 + $0x10] sm:$0xf]  ;;  %v537_v29 = vld [vmem:[%s1935_s0 + $0x2c] sm:$0xf]  ;;  %v536_v30 = vld [vmem:[%s1935_s0 + $0x14] sm:$0xf] }
   0x6   :  { %v1280_v31 = vld [vmem:[%s1935_s0 + $0x60] sm:$0xf]  ;;  %v1279_v32 = vld [vmem:[%s1935_s0 + $0x48] sm:$0xf]  ;;  %v1286_v33 = vld [vmem:[%s1935_s0 + $0x64] sm:$0xf] }
   0x7   :  { %v1285_v34 = vld [vmem:[%s1935_s0 + $0x4c] sm:$0xf]  ;;  %v1291_v35 = vld [vmem:[%s1935_s0 + $0x68] sm:$0xf]  ;;  %v1290_v36 = vld [vmem:[%s1935_s0 + $0x50] sm:$0xf] }
   0x8   :  { %v1296_v37 = vld [vmem:[%s1935_s0 + $0x6c] sm:$0xf]  ;;  %v1295_v38 = vld [vmem:[%s1935_s0 + $0x54] sm:$0xf]  ;;  %v1301_v39 = vld [vmem:[%s1935_s0 + $0x70] sm:$0xf] }
   0x9   :  { %1361 = vmatmul.mubr.bf16.vlgmr.msra.gmra.mxu0 %v13_v2  ;;  %v1300_v40 = vld [vmem:[%s1935_s0 + $0x58] sm:$0xf]  ;;  %v1306_v41 = vld [vmem:[%s1935_s0 + $0x74] sm:$0xf]  ;;  %v1305_v42 = vld [vmem:[%s1935_s0 + $0x5c] sm:$0xf] }
   0xa   :  { %1378 = vmatprep.mubr.msk.bf16.mxu0 %vm1553_vm0, %v1552_v0  ;;  %v1282_v16 = vld [vmem:[%s1936_s1 + $0x1] ss:$0 sm:$0xff] }
  0xc9   :  { %v56_v4 = vpop.f32.mrf.mxu0 }
  0xca   :  { %v57_v5 = vadd.f32 %v1587_v3, %v56_v4 }
  0xcb   :  { %v1362_v6 = vpop.f32.mrf.mxu0 }
  0xcc   :  { %v63_v7 = vsel %vm62_vm1, %v57_v5, -inf }
  0xcd   :  { %64 = vmax.xlane.f32.xlu0 %v63_v7  ;;  %v59_v8 = vpop.f32.mrf.mxu0 }
  0xcf   :  { %v1363_v9 = vpop.f32.mrf.mxu0 }
 0x156   :  { %v65_v10 = vpop.xlane.xlu0 %64 }
 0x157   :  { %v66_v11 = vsub.f32 %v57_v5, %v65_v10 }
 0x159   :  { %v67_v12 = vmul.f32 1.442695, %v66_v11 }
 0x15b   :  { %1504 = vpow2.f32 %v67_v12 }
 0x168   :  { %v1505_v13 = vpop.eup %1504 }
 0x169   :  { %v69_v14 = vsel %vm62_vm1, %v1505_v13, 0.0 }
 0x16a   :  { %70 = vadd.xlane.f32.xlu0 %v69_v14 }
 0x1f3   :  { %v71_v17 = vpop.xlane.xlu0 %70 }
 0x1f4   :  { %1506 = vrcp.f32 %v71_v17 }
 0x201   :  { %v1507_v18 = vpop.eup %1506 }
 0x202   :  { %v73_v19 = vmul.f32 %v1507_v18, %v1505_v13 }
 0x204   :  { %v74_v20 = vpack.c.bf16 %v73_v19, %v73_v19 }
 0x206   :  { %1367 = vmatmul.mubr.msk.bf16.vlgmr.msra.gmra.mxu1 %vm62_vm1, %v74_v20 }
 0x207   :  { %1371 = vmatpush3.bf16.xpose.msra.mxu1 %v125_v21  ;;  %1372 = vmatprep.mubr.msk.bf16.mxu1 %vm1553_vm0, %v1552_v0 }
 0x208   :  { %1382 = vmatprep.subr.bf16.mxu1 %v1552_v0 }
 0x20e   :  { %1373 = vmatmul.mubr.bf16.vlgmr.msra.gmra.mxu1 %v124_v22 }
 0x20f   :  { %1383 = vmatpush3.bf16.xpose.msra.mxu1 %v228_v23  ;;  %1384 = vmatprep.mubr.msk.bf16.mxu1 %vm1553_vm0, %v1552_v0 }
 0x210   :  { %1394 = vmatprep.subr.bf16.mxu1 %v1552_v0 }
 0x216   :  { %1385 = vmatmul.mubr.bf16.vlgmr.msra.gmra.mxu1 %v227_v24 }
 0x217   :  { %1395 = vmatpush3.bf16.xpose.msra.mxu1 %v331_v25  ;;  %1396 = vmatprep.mubr.msk.bf16.mxu1 %vm1553_vm0, %v1552_v0 }
 0x218   :  { %1406 = vmatprep.subr.bf16.mxu1 %v1552_v0 }
 0x21e   :  { %1397 = vmatmul.mubr.bf16.vlgmr.msra.gmra.mxu1 %v330_v26 }
 0x21f   :  { %1407 = vmatpush3.bf16.xpose.msra.mxu1 %v434_v27  ;;  %1408 = vmatprep.mubr.msk.bf16.mxu1 %vm1553_vm0, %v1552_v0 }
 0x220   :  { %1418 = vmatprep.subr.bf16.mxu1 %v1552_v0 }
 0x226   :  { %1409 = vmatmul.mubr.bf16.vlgmr.msra.gmra.mxu1 %v433_v28 }
 0x227   :  { %1419 = vmatpush3.bf16.xpose.msra.mxu1 %v537_v29  ;;  %1420 = vmatprep.mubr.msk.bf16.mxu1 %vm1553_vm0, %v1552_v0 }
 0x228   :  { %1430 = vmatprep.subr.bf16.mxu1 %v1552_v0 }
 0x22e   :  { %1421 = vmatmul.mubr.bf16.vlgmr.msra.gmra.mxu1 %v536_v30 }
 0x22f   :  { %1431 = vmatpush3.bf16.xpose.msra.mxu1 %v1280_v31  ;;  %1432 = vmatprep.mubr.msk.bf16.mxu1 %vm1553_vm0, %v1552_v0 }
 0x230   :  { %1442 = vmatprep.subr.bf16.mxu1 %v1552_v0 }
 0x236   :  { %1433 = vmatmul.mubr.bf16.vlgmr.msra.gmra.mxu1 %v1279_v32 }
 0x237   :  { %1443 = vmatpush3.bf16.xpose.msra.mxu1 %v1286_v33  ;;  %1444 = vmatprep.mubr.msk.bf16.mxu1 %vm1553_vm0, %v1552_v0 }
 0x238   :  { %1454 = vmatprep.subr.bf16.mxu1 %v1552_v0 }
 0x23e   :  { %1445 = vmatmul.mubr.bf16.vlgmr.msra.gmra.mxu1 %v1285_v34 }
 0x23f   :  { %1455 = vmatpush3.bf16.xpose.msra.mxu1 %v1291_v35  ;;  %1456 = vmatprep.mubr.msk.bf16.mxu1 %vm1553_vm0, %v1552_v0 }
 0x240   :  { %1466 = vmatprep.subr.bf16.mxu1 %v1552_v0 }
 0x246   :  { %1457 = vmatmul.mubr.bf16.vlgmr.msra.gmra.mxu1 %v1290_v36 }
 0x247   :  { %1467 = vmatpush3.bf16.xpose.msra.mxu1 %v1296_v37  ;;  %1468 = vmatprep.mubr.msk.bf16.mxu1 %vm1553_vm0, %v1552_v0 }
 0x248   :  { %1478 = vmatprep.subr.bf16.mxu1 %v1552_v0 }
 0x24e   :  { %1469 = vmatmul.mubr.bf16.vlgmr.msra.gmra.mxu1 %v1295_v38 }
 0x24f   :  { %1479 = vmatpush3.bf16.xpose.msra.mxu1 %v1301_v39  ;;  %1480 = vmatprep.mubr.msk.bf16.mxu1 %vm1553_vm0, %v1552_v0 }
 0x250   :  { %1490 = vmatprep.subr.bf16.mxu1 %v1552_v0 }
 0x256   :  { %1481 = vmatmul.mubr.bf16.vlgmr.msra.gmra.mxu1 %v1300_v40 }
 0x257   :  { %1491 = vmatpush3.bf16.xpose.msra.mxu1 %v1306_v41  ;;  %1492 = vmatprep.mubr.msk.bf16.mxu1 %vm1553_vm0, %v1552_v0 }
 0x25e   :  { %1493 = vmatmul.mubr.bf16.vlgmr.msra.gmra.mxu1 %v1305_v42 }
 0x2c6   :  { %v116_v43 = vpop.f32.mrf.mxu1 }
 0x2c7   :  { %v122_v44 = vpack.c.bf16 %v116_v43, %v116_v43 }
 0x2c8   :  { %v1368_v45 = vpop.f32.mrf.mxu1 }
 0x2c9   :  { %123 = vst [vmem:[%s1937_s2] sm:$0xf] %v122_v44 }
 0x2ca   :  { %v119_v46 = vpop.f32.mrf.mxu1 }
 0x2cc   :  { %v1369_v47 = vpop.f32.mrf.mxu1 }
 0x2ce   :  { %v161_v48 = vpop.f32.mrf.mxu1 }
 0x2cf   :  { %v1700_v49 = vadd.f32 %v1587_v3, %v161_v48 }
 0x2d0   :  { %v1374_v50 = vpop.f32.mrf.mxu1 }
 0x2d1   :  { %v167_v51 = vsel %vm62_vm1, %v1700_v49, -inf }
 0x2d2   :  { %168 = vmax.xlane.f32.xlu1 %v167_v51  ;;  %v164_v52 = vpop.f32.mrf.mxu1 }
 0x2d4   :  { %v1375_v53 = vpop.f32.mrf.mxu1 }
 0x2d6   :  { %v264_v54 = vpop.f32.mrf.mxu1 }
 0x2d7   :  { %v1705_v55 = vadd.f32 %v1587_v3, %v264_v54 }
 0x2d8   :  { %v1386_v56 = vpop.f32.mrf.mxu1 }
 0x2d9   :  { %v270_v57 = vsel %vm62_vm1, %v1705_v55, -inf }
 0x2da   :  { %271 = vmax.xlane.f32.xlu1 %v270_v57  ;;  %v267_v58 = vpop.f32.mrf.mxu1 }
 0x2dc   :  { %v1387_v59 = vpop.f32.mrf.mxu1 }
 0x2de   :  { %v367_v60 = vpop.f32.mrf.mxu1 }
 0x2df   :  { %v1710_v61 = vadd.f32 %v1587_v3, %v367_v60 }
 0x2e0   :  { %v1398_v62 = vpop.f32.mrf.mxu1 }
 0x2e1   :  { %v373_v63 = vsel %vm62_vm1, %v1710_v61, -inf }
 0x2e2   :  { %374 = vmax.xlane.f32.xlu0 %v373_v63  ;;  %v370_v1 = vpop.f32.mrf.mxu1 }
 0x2e4   :  { %v1399_v2 = vpop.f32.mrf.mxu1 }
 0x2e6   :  { %v470_v4 = vpop.f32.mrf.mxu1 }
 0x2e7   :  { %v1715_v5 = vadd.f32 %v1587_v3, %v470_v4 }
 0x2e8   :  { %v1410_v6 = vpop.f32.mrf.mxu1 }
 0x2e9   :  { %v476_v7 = vsel %vm62_vm1, %v1715_v5, -inf }
 0x2ea   :  { %477 = vmax.xlane.f32.xlu1 %v476_v7  ;;  %v473_v8 = vpop.f32.mrf.mxu1 }
 0x2ec   :  { %v1411_v9 = vpop.f32.mrf.mxu1 }
 0x2ee   :  { %v573_v10 = vpop.f32.mrf.mxu1 }
 0x2ef   :  { %v1720_v11 = vadd.f32 %v1587_v3, %v573_v10 }
 0x2f0   :  { %v1422_v12 = vpop.f32.mrf.mxu1 }
 0x2f1   :  { %v579_v13 = vsel %vm62_vm1, %v1720_v11, -inf }
 0x2f2   :  { %580 = vmax.xlane.f32.xlu0 %v579_v13  ;;  %v576_v14 = vpop.f32.mrf.mxu1 }
 0x2f4   :  { %v1423_v15 = vpop.f32.mrf.mxu1 }
 0x2f6   :  { %v685_v17 = vpop.f32.mrf.mxu1 }
 0x2f7   :  { %v1727_v18 = vadd.f32 %v1282_v16, %v685_v17 }
 0x2f8   :  { %v1434_v19 = vpop.f32.mrf.mxu1 }
 0x2f9   :  { %v691_v20 = vsel %vm62_vm1, %v1727_v18, -inf }
 0x2fa   :  { %692 = vmax.xlane.f32.xlu1 %v691_v20  ;;  %v688_v3 = vpop.f32.mrf.mxu1 }
 0x2fc   :  { %v1435_v21 = vpop.f32.mrf.mxu1 }
 0x2fe   :  { %v789_v22 = vpop.f32.mrf.mxu1 }
 0x2ff   :  { %v1731_v23 = vadd.f32 %v1282_v16, %v789_v22 }
 0x300   :  { %v1446_v24 = vpop.f32.mrf.mxu1 }
 0x301   :  { %v795_v25 = vsel %vm62_vm1, %v1731_v23, -inf }
 0x302   :  { %796 = vmax.xlane.f32.xlu0 %v795_v25  ;;  %v792_v26 = vpop.f32.mrf.mxu1 }
 0x304   :  { %v1447_v27 = vpop.f32.mrf.mxu1 }
 0x306   :  { %v892_v28 = vpop.f32.mrf.mxu1 }
 0x307   :  { %v1735_v29 = vadd.f32 %v1282_v16, %v892_v28 }
 0x308   :  { %v1458_v30 = vpop.f32.mrf.mxu1 }
 0x309   :  { %v898_v31 = vsel %vm62_vm1, %v1735_v29, -inf }
 0x30a   :  { %899 = vmax.xlane.f32.xlu1 %v898_v31  ;;  %v895_v32 = vpop.f32.mrf.mxu1 }
 0x30c   :  { %v1459_v33 = vpop.f32.mrf.mxu1 }
 0x30e   :  { %v995_v34 = vpop.f32.mrf.mxu1 }
 0x30f   :  { %v1739_v35 = vadd.f32 %v1282_v16, %v995_v34 }
 0x310   :  { %v1470_v36 = vpop.f32.mrf.mxu1 }
 0x311   :  { %v1001_v37 = vsel %vm62_vm1, %v1739_v35, -inf }
 0x312   :  { %1002 = vmax.xlane.f32.xlu0 %v1001_v37  ;;  %v998_v38 = vpop.f32.mrf.mxu1 }
 0x314   :  { %v1471_v39 = vpop.f32.mrf.mxu1 }
 0x316   :  { %v1098_v40 = vpop.f32.mrf.mxu1 }
 0x317   :  { %v1743_v41 = vadd.f32 %v1282_v16, %v1098_v40 }
 0x318   :  { %v1482_v42 = vpop.f32.mrf.mxu1 }
 0x319   :  { %v1104_v43 = vsel %vm62_vm1, %v1743_v41, -inf }
 0x31a   :  { %1105 = vmax.xlane.f32.xlu1 %v1104_v43  ;;  %v1101_v44 = vpop.f32.mrf.mxu1 }
 0x31c   :  { %v1483_v45 = vpop.f32.mrf.mxu1 }
 0x31e   :  { %v1201_v46 = vpop.f32.mrf.mxu1 }
 0x31f   :  { %v1747_v47 = vadd.f32 %v1282_v16, %v1201_v46 }
 0x320   :  { %v1494_v48 = vpop.f32.mrf.mxu1 }
 0x321   :  { %v1207_v50 = vsel %vm62_vm1, %v1747_v47, -inf }
 0x322   :  { %1208 = vmax.xlane.f32.xlu0 %v1207_v50  ;;  %v1204_v51 = vpop.f32.mrf.mxu1  ;;  %v229_v50 = vld [vmem:[%s1935_s0 + $0x38] sm:$0xf] }
 0x324   :  { %v1495_v52 = vpop.f32.mrf.mxu1 }
 0x35b   :  { %v169_v53 = vpop.xlane.xlu1 %168 }
 0x35c   :  { %v170_v54 = vsub.f32 %v1700_v49, %v169_v53 }
 0x35e   :  { %v171_v56 = vmul.f32 1.442695, %v170_v54  ;;  %v286_v54 = vsel %vm78_vm2, %v229_v50, 0 }
 0x360   :  { %1508 = vpow2.f32 %v171_v56 }
 0x363   :  { %v272_v57 = vpop.xlane.xlu1 %271 }
 0x364   :  { %v273_v58 = vsub.f32 %v1705_v55, %v272_v57  ;;  %v332_v57 = vld [vmem:[%s1935_s0 + $0x3c] sm:$0xf] }
 0x366   :  { %v274_v59 = vmul.f32 1.442695, %v273_v58 }
 0x368   :  { %1510 = vpow2.f32 %v274_v59 }
 0x36b   :  { %v375_v60 = vpop.xlane.xlu0 %374 }
 0x36c   :  { %v376_v62 = vsub.f32 %v1710_v61, %v375_v60 }
 0x36d   :  { %v1754_v63 = vpop.eup %1508 }
 0x36e   :  { %v377_v1 = vmul.f32 1.442695, %v376_v62  ;;  %v173_v2 = vsel %vm62_vm1, %v1754_v63, 0.0  ;;  %v389_v62 = vsel %vm78_vm2, %v332_v57, 0 }
 0x36f   :  { %174 = vadd.xlane.f32.xlu1 %v173_v2 }
 0x370   :  { %1512 = vpow2.f32 %v377_v1  ;;  %v435_v1 = vld [vmem:[%s1935_s0 + $0x40] sm:$0xf] }
 0x373   :  { %v478_v4 = vpop.xlane.xlu1 %477 }
 0x374   :  { %v479_v49 = vsub.f32 %v1715_v5, %v478_v4  ;;  %v126_v5 = vld [vmem:[%s1935_s0 + $0x34] sm:$0xf] }
 0x375   :  { %v1759_v6 = vpop.eup %1510  ;;  %v183_v13 = vsel %vm78_vm2, %v126_v5, 0  ;;  %v1281_v5 = vld [vmem:[%s1935_s0 + $0x78] sm:$0xf] }
 0x376   :  { %v480_v7 = vmul.f32 1.442695, %v479_v49  ;;  %v276_v55 = vsel %vm62_vm1, %v1759_v6, 0.0  ;;  %1377 = vmatpush3.bf16.msra.mxu0 %v183_v13 }
 0x377   :  { %277 = vadd.xlane.f32.xlu0 %v276_v55  ;;  %1388 = vmatprep.subr.bf16.mxu0 %v1552_v0  ;;  %v538_v55 = vld [vmem:[%s1935_s0 + $0x44] sm:$0xf] }
 0x378   :  { %1514 = vpow2.f32 %v480_v7 }
 0x37b   :  { %v581_v61 = vpop.xlane.xlu0 %580 }
 0x37c   :  { %v582_v8 = vsub.f32 %v1720_v11, %v581_v61 }
 0x37d   :  { %v1764_v9 = vpop.eup %1512 }
 0x37e   :  { %v583_v10 = vmul.f32 1.442695, %v582_v8  ;;  %v379_v12 = vsel %vm62_vm1, %v1764_v9, 0.0 }
 0x37f   :  { %380 = vadd.xlane.f32.xlu1 %v379_v12 }
 0x380   :  { %1516 = vpow2.f32 %v583_v10  ;;  %v595_v10 = vsel %vm78_vm2, %v538_v55, 0 }
 0x383   :  { %v693_v14 = vpop.xlane.xlu1 %692 }
 0x384   :  { %v694_v15 = vsub.f32 %v1727_v18, %v693_v14 }
 0x385   :  { %v1774_v11 = vpop.eup %1514 }
 0x386   :  { %v695_v16 = vmul.f32 1.442695, %v694_v15  ;;  %v482_v17 = vsel %vm62_vm1, %v1774_v11, 0.0 }
 0x387   :  { %483 = vadd.xlane.f32.xlu0 %v482_v17  ;;  %v1287_v17 = vld [vmem:[%s1935_s0 + $0x7c] sm:$0xf] }
 0x388   :  { %1518 = vpow2.f32 %v695_v16 }
 0x38b   :  { %v797_v19 = vpop.xlane.xlu0 %796 }
 0x38c   :  { %v798_v20 = vsub.f32 %v1731_v23, %v797_v19 }
 0x38d   :  { %v1779_v3 = vpop.eup %1516 }
 0x38e   :  { %v799_v21 = vmul.f32 1.442695, %v798_v20  ;;  %v585_v22 = vsel %vm62_vm1, %v1779_v3, 0.0 }
 0x38f   :  { %586 = vadd.xlane.f32.xlu1 %v585_v22 }
 0x390   :  { %1520 = vpow2.f32 %v799_v21  ;;  %v811_v21 = vsel %vm78_vm2, %v1287_v17, 0 }
 0x393   :  { %v900_v18 = vpop.xlane.xlu1 %899 }
 0x394   :  { %v901_v24 = vsub.f32 %v1735_v29, %v900_v18  ;;  %v1292_v18 = vld [vmem:[%s1935_s0 + $0x80] sm:$0xf] }
 0x395   :  { %v1784_v25 = vpop.eup %1518 }
 0x396   :  { %v902_v26 = vmul.f32 1.442695, %v901_v24  ;;  %v697_v27 = vsel %vm62_vm1, %v1784_v25, 0.0 }
 0x397   :  { %698 = vadd.xlane.f32.xlu0 %v697_v27  ;;  %v914_v27 = vsel %vm78_vm2, %v1292_v18, 0 }
 0x398   :  { %1522 = vpow2.f32 %v902_v26 }
 0x39b   :  { %v1003_v23 = vpop.xlane.xlu0 %1002 }
 0x39c   :  { %v1004_v28 = vsub.f32 %v1739_v35, %v1003_v23 }
 0x39d   :  { %v1789_v30 = vpop.eup %1520 }
 0x39e   :  { %v1005_v31 = vmul.f32 1.442695, %v1004_v28  ;;  %v801_v32 = vsel %vm62_vm1, %v1789_v30, 0.0  ;;  %v1297_v28 = vld [vmem:[%s1935_s0 + $0x84] sm:$0xf] }
 0x39f   :  { %802 = vadd.xlane.f32.xlu1 %v801_v32 }
 0x3a0   :  { %1524 = vpow2.f32 %v1005_v31 }
 0x3a3   :  { %v1106_v29 = vpop.xlane.xlu1 %1105 }
 0x3a4   :  { %v1107_v33 = vsub.f32 %v1743_v41, %v1106_v29  ;;  %v1017_v29 = vsel %vm78_vm2, %v1297_v28, 0 }
 0x3a5   :  { %v1794_v34 = vpop.eup %1522 }
 0x3a6   :  { %v1108_v36 = vmul.f32 1.442695, %v1107_v33  ;;  %v904_v37 = vsel %vm62_vm1, %v1794_v34, 0.0 }
 0x3a7   :  { %905 = vadd.xlane.f32.xlu0 %v904_v37 }
 0x3a8   :  { %1526 = vpow2.f32 %v1108_v36  ;;  %v1302_v36 = vld [vmem:[%s1935_s0 + $0x88] sm:$0xf] }
 0x3ab   :  { %v1209_v35 = vpop.xlane.xlu0 %1208 }
 0x3ac   :  { %v1210_v38 = vsub.f32 %v1747_v47, %v1209_v35 }
 0x3ad   :  { %v1799_v39 = vpop.eup %1524 }
 0x3ae   :  { %v1211_v40 = vmul.f32 1.442695, %v1210_v38  ;;  %v1007_v42 = vsel %vm62_vm1, %v1799_v39, 0.0  ;;  %v1120_v38 = vsel %vm78_vm2, %v1302_v36, 0 }
 0x3af   :  { %1008 = vadd.xlane.f32.xlu1 %v1007_v42  ;;  %v1307_v42 = vld [vmem:[%s1935_s0 + $0x8c] sm:$0xf] }
 0x3b0   :  { %1528 = vpow2.f32 %v1211_v40 }
 0x3b5   :  { %v1803_v41 = vpop.eup %1526 }
 0x3b6   :  { %v1110_v43 = vsel %vm62_vm1, %v1803_v41, 0.0 }
 0x3b7   :  { %1111 = vadd.xlane.f32.xlu0 %v1110_v43 }
 0x3bd   :  { %v1807_v44 = vpop.eup %1528 }
 0x3be   :  { %v1213_v45 = vsel %vm62_vm1, %v1807_v44, 0.0 }
 0x3bf   :  { %1214 = vadd.xlane.f32.xlu1 %v1213_v45  ;;  %v1223_v45 = vsel %vm78_vm2, %v1307_v42, 0 }
 0x3f8   :  { %v175_v46 = vpop.xlane.xlu1 %174 }
 0x3f9   :  { %1530 = vrcp.f32 %v175_v46 }
 0x400   :  { %v278_v47 = vpop.xlane.xlu0 %277 }
 0x401   :  { %1532 = vrcp.f32 %v278_v47 }
 0x406   :  { %v1531_v48 = vpop.eup %1530 }
 0x407   :  { %v177_v51 = vmul.f32 %v1531_v48, %v1754_v63 }
 0x408   :  { %v381_v52 = vpop.xlane.xlu1 %380 }
 0x409   :  { %1534 = vrcp.f32 %v381_v52  ;;  %v178_v53 = vpack.c.bf16 %v177_v51, %v177_v51 }
 0x40b   :  { %1379 = vmatmul.mubr.msk.bf16.vlgmr.msra.gmra.mxu0 %vm62_vm1, %v178_v53 }
 0x40c   :  { %1389 = vmatpush3.bf16.msra.mxu0 %v286_v54  ;;  %1390 = vmatprep.mubr.msk.bf16.mxu0 %vm1553_vm0, %v1552_v0 }
 0x40d   :  { %1400 = vmatprep.subr.bf16.mxu0 %v1552_v0 }
 0x40e   :  { %v1533_v56 = vpop.eup %1532 }
 0x40f   :  { %v280_v58 = vmul.f32 %v1533_v56, %v1759_v6  ;;  %v492_v6 = vsel %vm78_vm2, %v435_v1, 0 }
 0x410   :  { %v484_v59 = vpop.xlane.xlu0 %483 }
 0x411   :  { %1536 = vrcp.f32 %v484_v59  ;;  %v281_v60 = vpack.c.bf16 %v280_v58, %v280_v58 }
 0x413   :  { %1391 = vmatmul.mubr.msk.bf16.vlgmr.msra.gmra.mxu0 %vm62_vm1, %v281_v60 }
 0x414   :  { %1401 = vmatpush3.bf16.msra.mxu0 %v389_v62  ;;  %1402 = vmatprep.mubr.msk.bf16.mxu0 %vm1553_vm0, %v1552_v0 }
 0x415   :  { %1412 = vmatprep.subr.bf16.mxu0 %v1552_v0 }
 0x416   :  { %v1535_v63 = vpop.eup %1534 }
 0x417   :  { %v383_v2 = vmul.f32 %v1535_v63, %v1764_v9 }
 0x418   :  { %v587_v4 = vpop.xlane.xlu1 %586 }
 0x419   :  { %1538 = vrcp.f32 %v587_v4  ;;  %v384_v49 = vpack.c.bf16 %v383_v2, %v383_v2 }
 0x41b   :  { %1403 = vmatmul.mubr.msk.bf16.vlgmr.msra.gmra.mxu0 %vm62_vm1, %v384_v49 }
 0x41c   :  { %1413 = vmatpush3.bf16.msra.mxu0 %v492_v6  ;;  %1414 = vmatprep.mubr.msk.bf16.mxu0 %vm1553_vm0, %v1552_v0 }
 0x41d   :  { %1424 = vmatprep.subr.bf16.mxu0 %v1552_v0 }
 0x41e   :  { %v1537_v7 = vpop.eup %1536 }
 0x41f   :  { %v486_v61 = vmul.f32 %v1537_v7, %v1774_v11  ;;  %v707_v11 = vsel %vm78_vm2, %v1281_v5, 0 }
 0x420   :  { %v699_v8 = vpop.xlane.xlu0 %698 }
 0x421   :  { %1540 = vrcp.f32 %v699_v8  ;;  %v487_v9 = vpack.c.bf16 %v486_v61, %v486_v61 }
 0x423   :  { %1415 = vmatmul.mubr.msk.bf16.vlgmr.msra.gmra.mxu0 %vm62_vm1, %v487_v9 }
 0x424   :  { %1425 = vmatpush3.bf16.msra.mxu0 %v595_v10  ;;  %1426 = vmatprep.mubr.msk.bf16.mxu0 %vm1553_vm0, %v1552_v0 }
 0x425   :  { %1436 = vmatprep.subr.bf16.mxu0 %v1552_v0 }
 0x426   :  { %v1539_v12 = vpop.eup %1538 }
 0x427   :  { %v589_v13 = vmul.f32 %v1539_v12, %v1779_v3 }
 0x428   :  { %v803_v14 = vpop.xlane.xlu1 %802 }
 0x429   :  { %1542 = vrcp.f32 %v803_v14  ;;  %v590_v15 = vpack.c.bf16 %v589_v13, %v589_v13 }
 0x42b   :  { %1427 = vmatmul.mubr.msk.bf16.vlgmr.msra.gmra.mxu0 %vm62_vm1, %v590_v15 }
 0x42c   :  { %1437 = vmatpush3.bf16.msra.mxu0 %v707_v11  ;;  %1438 = vmatprep.mubr.msk.bf16.mxu0 %vm1553_vm0, %v1552_v0 }
 0x42d   :  { %1448 = vmatprep.subr.bf16.mxu0 %v1552_v0 }
 0x42e   :  { %v1541_v16 = vpop.eup %1540 }
 0x42f   :  { %v701_v19 = vmul.f32 %v1541_v16, %v1784_v25 }
 0x430   :  { %v906_v20 = vpop.xlane.xlu0 %905 }
 0x431   :  { %1544 = vrcp.f32 %v906_v20  ;;  %v702_v3 = vpack.c.bf16 %v701_v19, %v701_v19 }
 0x433   :  { %1439 = vmatmul.mubr.msk.bf16.vlgmr.msra.gmra.mxu0 %vm62_vm1, %v702_v3 }
 0x434   :  { %1449 = vmatpush3.bf16.msra.mxu0 %v811_v21  ;;  %1450 = vmatprep.mubr.msk.bf16.mxu0 %vm1553_vm0, %v1552_v0 }
 0x435   :  { %1460 = vmatprep.subr.bf16.mxu0 %v1552_v0 }
 0x436   :  { %v1543_v22 = vpop.eup %1542 }
 0x437   :  { %v805_v24 = vmul.f32 %v1543_v22, %v1789_v30 }
 0x438   :  { %v1009_v25 = vpop.xlane.xlu1 %1008 }
 0x439   :  { %1546 = vrcp.f32 %v1009_v25  ;;  %v806_v26 = vpack.c.bf16 %v805_v24, %v805_v24 }
 0x43b   :  { %1451 = vmatmul.mubr.msk.bf16.vlgmr.msra.gmra.mxu0 %vm62_vm1, %v806_v26 }
 0x43c   :  { %1461 = vmatpush3.bf16.msra.mxu0 %v914_v27  ;;  %1462 = vmatprep.mubr.msk.bf16.mxu0 %vm1553_vm0, %v1552_v0 }
 0x43d   :  { %1472 = vmatprep.subr.bf16.mxu0 %v1552_v0 }
 0x43e   :  { %v1545_v23 = vpop.eup %1544 }
 0x43f   :  { %v908_v30 = vmul.f32 %v1545_v23, %v1794_v34 }
 0x440   :  { %v1112_v31 = vpop.xlane.xlu0 %1111 }
 0x441   :  { %1548 = vrcp.f32 %v1112_v31  ;;  %v909_v32 = vpack.c.bf16 %v908_v30, %v908_v30 }
 0x443   :  { %1463 = vmatmul.mubr.msk.bf16.vlgmr.msra.gmra.mxu0 %vm62_vm1, %v909_v32 }
 0x444   :  { %1473 = vmatpush3.bf16.msra.mxu0 %v1017_v29  ;;  %1474 = vmatprep.mubr.msk.bf16.mxu0 %vm1553_vm0, %v1552_v0 }
 0x445   :  { %1484 = vmatprep.subr.bf16.mxu0 %v1552_v0 }
 0x446   :  { %v1547_v33 = vpop.eup %1546 }
 0x447   :  { %v1011_v34 = vmul.f32 %v1547_v33, %v1799_v39 }
 0x448   :  { %v1215_v37 = vpop.xlane.xlu1 %1214 }
 0x449   :  { %1550 = vrcp.f32 %v1215_v37  ;;  %v1012_v35 = vpack.c.bf16 %v1011_v34, %v1011_v34 }
 0x44b   :  { %1475 = vmatmul.mubr.msk.bf16.vlgmr.msra.gmra.mxu0 %vm62_vm1, %v1012_v35 }
 0x44c   :  { %1485 = vmatpush3.bf16.msra.mxu0 %v1120_v38  ;;  %1486 = vmatprep.mubr.msk.bf16.mxu0 %vm1553_vm0, %v1552_v0 }
 0x44d   :  { %1496 = vmatprep.subr.bf16.mxu0 %v1552_v0 }
 0x44e   :  { %v1549_v40 = vpop.eup %1548 }
 0x44f   :  { %v1114_v39 = vmul.f32 %v1549_v40, %v1803_v41 }
 0x451   :  { %v1115_v43 = vpack.c.bf16 %v1114_v39, %v1114_v39 }
 0x453   :  { %1487 = vmatmul.mubr.msk.bf16.vlgmr.msra.gmra.mxu0 %vm62_vm1, %v1115_v43 }
 0x454   :  { %1497 = vmatpush3.bf16.msra.mxu0 %v1223_v45  ;;  %1498 = vmatprep.mubr.msk.bf16.mxu0 %vm1553_vm0, %v1552_v0 }
 0x456   :  { %v1551_v46 = vpop.eup %1550 }
 0x457   :  { %v1217_v47 = vmul.f32 %v1551_v46, %v1807_v44 }
 0x459   :  { %v1218_v48 = vpack.c.bf16 %v1217_v47, %v1217_v47 }
 0x45b   :  { %1499 = vmatmul.mubr.msk.bf16.vlgmr.msra.gmra.mxu0 %vm62_vm1, %v1218_v48 }
 0x4cb   :  { %v219_v50 = vpop.f32.mrf.mxu0 }
 0x4cc   :  { %v225_v51 = vpack.c.bf16 %v219_v50, %v219_v50 }
 0x4cd   :  { %v1380_v52 = vpop.f32.mrf.mxu0 }
 0x4ce   :  { %226 = vst [vmem:[%s1937_s2 + $0x4] sm:$0xf] %v225_v51 }
 0x4cf   :  { %v222_v41 = vpop.f32.mrf.mxu0 }
 0x4d1   :  { %v1381_v53 = vpop.f32.mrf.mxu0 }
 0x4d3   :  { %v322_v54 = vpop.f32.mrf.mxu0 }
 0x4d4   :  { %v328_v56 = vpack.c.bf16 %v322_v54, %v322_v54 }
 0x4d5   :  { %v1392_v57 = vpop.f32.mrf.mxu0 }
 0x4d6   :  { %329 = vst [vmem:[%s1937_s2 + $0x8] sm:$0xf] %v328_v56 }
 0x4d7   :  { %v325_v0 = vpop.f32.mrf.mxu0 }
 0x4d9   :  { %v1393_v44 = vpop.f32.mrf.mxu0 }
 0x4db   :  { %v425_v58 = vpop.f32.mrf.mxu0 }
 0x4dc   :  { %v431_v59 = vpack.c.bf16 %v425_v58, %v425_v58 }
 0x4dd   :  { %v1404_v60 = vpop.f32.mrf.mxu0 }
 0x4de   :  { %432 = vst [vmem:[%s1937_s2 + $0xc] sm:$0xf] %v431_v59 }
 0x4df   :  { %v428_v62 = vpop.f32.mrf.mxu0 }
 0x4e1   :  { %v1405_v63 = vpop.f32.mrf.mxu0 }
 0x4e3   :  { %v528_v1 = vpop.f32.mrf.mxu0 }
 0x4e4   :  { %v534_v2 = vpack.c.bf16 %v528_v1, %v528_v1 }
 0x4e5   :  { %v1416_v4 = vpop.f32.mrf.mxu0 }
 0x4e6   :  { %535 = vst [vmem:[%s1937_s2 + $0x10] sm:$0xf] %v534_v2 }
 0x4e7   :  { %v531_v49 = vpop.f32.mrf.mxu0 }
 0x4e9   :  { %v1417_v6 = vpop.f32.mrf.mxu0 }
 0x4eb   :  { %v631_v7 = vpop.f32.mrf.mxu0 }
 0x4ec   :  { %v637_v55 = vpack.c.bf16 %v631_v7, %v631_v7 }
 0x4ed   :  { %v1428_v61 = vpop.f32.mrf.mxu0 }
 0x4ee   :  { %638 = vst [vmem:[%s1937_s2 + $0x14] sm:$0xf] %v637_v55 }
 0x4ef   :  { %v634_v8 = vpop.f32.mrf.mxu0 }
 0x4f1   :  { %v1429_v9 = vpop.f32.mrf.mxu0 }
 0x4f3   :  { %v743_v10 = vpop.f32.mrf.mxu0 }
 0x4f4   :  { %v749_v12 = vpack.c.bf16 %v743_v10, %v743_v10 }
 0x4f5   :  { %v1440_v5 = vpop.f32.mrf.mxu0 }
 0x4f6   :  { %1284 = vst [vmem:[%s1937_s2 + $0x18] sm:$0xf] %v749_v12 }
 0x4f7   :  { %v746_v13 = vpop.f32.mrf.mxu0 }
 0x4f9   :  { %v1441_v14 = vpop.f32.mrf.mxu0 }
 0x4fb   :  { %v847_v15 = vpop.f32.mrf.mxu0 }
 0x4fc   :  { %v853_v11 = vpack.c.bf16 %v847_v15, %v847_v15 }
 0x4fd   :  { %v1452_v16 = vpop.f32.mrf.mxu0 }
 0x4fe   :  { %1289 = vst [vmem:[%s1937_s2 + $0x1c] sm:$0xf] %v853_v11 }
 0x4ff   :  { %v850_v17 = vpop.f32.mrf.mxu0 }
 0x501   :  { %v1453_v19 = vpop.f32.mrf.mxu0 }
 0x503   :  { %v950_v20 = vpop.f32.mrf.mxu0 }
 0x504   :  { %v956_v3 = vpack.c.bf16 %v950_v20, %v950_v20 }
 0x505   :  { %v1464_v21 = vpop.f32.mrf.mxu0 }
 0x506   :  { %1294 = vst [vmem:[%s1937_s2 + $0x20] sm:$0xf] %v956_v3 }
 0x507   :  { %v953_v22 = vpop.f32.mrf.mxu0 }
 0x509   :  { %v1465_v18 = vpop.f32.mrf.mxu0 }
 0x50b   :  { %v1053_v24 = vpop.f32.mrf.mxu0 }
 0x50c   :  { %v1059_v25 = vpack.c.bf16 %v1053_v24, %v1053_v24 }
 0x50d   :  { %v1476_v26 = vpop.f32.mrf.mxu0 }
 0x50e   :  { %1299 = vst [vmem:[%s1937_s2 + $0x24] sm:$0xf] %v1059_v25 }
 0x50f   :  { %v1056_v27 = vpop.f32.mrf.mxu0 }
 0x511   :  { %v1477_v23 = vpop.f32.mrf.mxu0 }
 0x513   :  { %v1156_v28 = vpop.f32.mrf.mxu0 }
 0x514   :  { %v1162_v30 = vpack.c.bf16 %v1156_v28, %v1156_v28 }
 0x515   :  { %v1488_v31 = vpop.f32.mrf.mxu0 }
 0x516   :  { %1304 = vst [vmem:[%s1937_s2 + $0x28] sm:$0xf] %v1162_v30 }
 0x517   :  { %v1159_v32 = vpop.f32.mrf.mxu0 }
 0x519   :  { %v1489_v29 = vpop.f32.mrf.mxu0 }
 0x51b   :  { %v1259_v33 = vpop.f32.mrf.mxu0 }
 0x51c   :  { %v1265_v36 = vpack.c.bf16 %v1259_v33, %v1259_v33 }
 0x51d   :  { %v1500_v34 = vpop.f32.mrf.mxu0 }
 0x51e   :  { %1309 = vst [vmem:[%s1937_s2 + $0x2c] sm:$0xf] %v1265_v36 }
 0x51f   :  { %v1262_v37 = vpop.f32.mrf.mxu0 }
 0x521   :  { %v1501_v35 = vpop.f32.mrf.mxu0 }

// kernel: bert_classifier_forward.15
= control target key start
LH: loop header
LB: loop body
LE: loop exit
PB: predicated region body
PF: predicated region fallthrough
CT: control target
= control target key end

     0   :  { %s4264_s1 = inlined_call_operand.vmem [shape: bf16[768,768], index: 1, kind: input, shape index: {}]   ;;  %s4265_s0 = inlined_call_operand.vmem [shape: bf16[16,768], index: 0, kind: input, shape index: {}]   ;;  %s4266_s2 = inlined_call_operand.vmem [shape: f32[1,768], index: 2, kind: input, shape index: {}]   ;;  %s4267_s3 = inlined_call_operand.vmem [shape: bf16[16,768], index: 3, kind: input, shape index: {}]   ;;  %s4268_s4 = inlined_call_operand.vmem [shape: f32[1,768], index: 4, kind: input, shape index: {}]   ;;  %s4269_s5 = inlined_call_operand.vmem [shape: f32[1,768], index: 5, kind: input, shape index: {}]   ;;  %s4270_s6 = inlined_call_operand.vmem [shape: bf16[16,768], index: 6, kind: output, shape index: {}]  }
   0x1   :  { %v2749_v0 = vld [vmem:[%s4264_s1 + $0x154] ss:$24 sps:$4 sm:$0xff]   ;;  %v2751_v1 = vld [vmem:[%s4264_s1 + $0x150] ss:$24 sps:$4 sm:$0xff]   ;;  %v2755_v4 = vld [vmem:[%s4264_s1 + $0x124] ss:$24 sps:$4 sm:$0xff]  }
   0x2   :  { %1819 = vmatprep.subr.bf16.mxu0 %v2749_v0  ;;  %v2752_v2 = vld [vmem:[%s4264_s1 + $0x454] ss:$24 sps:$4 sm:$0xff]   ;;  %v2754_v3 = vld [vmem:[%s4264_s1 + $0x450] ss:$24 sps:$4 sm:$0xff]   ;;  %v2757_v5 = vld [vmem:[%s4264_s1 + $0x120] ss:$24 sps:$4 sm:$0xff]  }
   0x3   :  { %1820 = vmatpush1.bf16.msra.mxu0 %v2751_v1  ;;  %1862 = vmatprep.subr.bf16.mxu1 %v2752_v2  ;;  %v2758_v6 = vld [vmem:[%s4264_s1 + $0x424] ss:$24 sps:$4 sm:$0xff]   ;;  %v2760_v7 = vld [vmem:[%s4264_s1 + $0x420] ss:$24 sps:$4 sm:$0xff]   ;;  %v2761_v8 = vld [vmem:[%s4264_s1 + $0xf4] ss:$24 sps:$4 sm:$0xff]  }
   0x4   :  { %1863 = vmatpush1.bf16.msra.mxu1 %v2754_v3  ;;  %1821 = vmatprep.subr.bf16.mxu0 %v2755_v4  ;;  %v2763_v9 = vld [vmem:[%s4264_s1 + $0xf0] ss:$24 sps:$4 sm:$0xff]   ;;  %v2764_v10 = vld [vmem:[%s4264_s1 + $0x3f4] ss:$24 sps:$4 sm:$0xff]   ;;  %v2767_v11 = vld [vmem:[%s4264_s1 + $0xc4] ss:$24 sps:$4 sm:$0xff]  }
   0x5   :  { %1864 = vmatprep.subr.bf16.mxu1 %v2758_v6  ;;  %v2766_v12 = vld [vmem:[%s4264_s1 + $0x3f0] ss:$24 sps:$4 sm:$0xff]   ;;  %v2770_v13 = vld [vmem:[%s4264_s1 + $0x3c4] ss:$24 sps:$4 sm:$0xff]   ;;  %v2769_v14 = vld [vmem:[%s4264_s1 + $0xc0] ss:$24 sps:$4 sm:$0xff]  }
   0x6   :  { %v2773_v15 = vld [vmem:[%s4264_s1 + $0x94] ss:$24 sps:$4 sm:$0xff]   ;;  %v2772_v16 = vld [vmem:[%s4264_s1 + $0x3c0] ss:$24 sps:$4 sm:$0xff]   ;;  %v2775_v18 = vld [vmem:[%s4264_s1 + $0x90] ss:$24 sps:$4 sm:$0xff]  }
   0x7   :  { %1822 = vmatpush1.bf16.msra.mxu0 %v2757_v5  ;;  %v2776_v17 = vld [vmem:[%s4264_s1 + $0x394] ss:$24 sps:$4 sm:$0xff]   ;;  %v2779_v19 = vld [vmem:[%s4264_s1 + $0x64] ss:$24 sps:$4 sm:$0xff]   ;;  %v2778_v20 = vld [vmem:[%s4264_s1 + $0x390] ss:$24 sps:$4 sm:$0xff]  }
   0x8   :  { %1823 = vmatprep.subr.bf16.mxu0 %v2761_v8  ;;  %1865 = vmatpush1.bf16.msra.mxu1 %v2760_v7  ;;  %v2782_v21 = vld [vmem:[%s4264_s1 + $0x364] ss:$24 sps:$4 sm:$0xff]   ;;  %v2781_v22 = vld [vmem:[%s4264_s1 + $0x60] ss:$24 sps:$4 sm:$0xff]   ;;  %v2785_v23 = vld [vmem:[%s4264_s1 + $0x34] ss:$24 sps:$4 sm:$0xff]  }
   0x9   :  { %1866 = vmatprep.subr.bf16.mxu1 %v2764_v10  ;;  %v2784_v24 = vld [vmem:[%s4264_s1 + $0x360] ss:$24 sps:$4 sm:$0xff]   ;;  %v2788_v25 = vld [vmem:[%s4264_s1 + $0x334] ss:$24 sps:$4 sm:$0xff]   ;;  %v2787_v26 = vld [vmem:[%s4264_s1 + $0x30] ss:$24 sps:$4 sm:$0xff]  }
   0xa   :  { %v2791_v27 = vld [vmem:[%s4264_s1 + $0x4] ss:$24 sps:$4 sm:$0xff]   ;;  %v2790_v28 = vld [vmem:[%s4264_s1 + $0x330] ss:$24 sps:$4 sm:$0xff]   ;;  %v2793_v30 = vld [vmem:[%s4264_s1] ss:$24 sps:$4 sm:$0xff]  }
   0xb   :  { %1824 = vmatpush1.bf16.msra.mxu0 %v2763_v9  ;;  %v2794_v29 = vld [vmem:[%s4264_s1 + $0x304] ss:$24 sps:$4 sm:$0xff]   ;;  %v2797_v31 = vld [vmem:[%s4264_s1 + $0x2d4] ss:$24 sps:$4 sm:$0xff]   ;;  %v2796_v32 = vld [vmem:[%s4264_s1 + $0x300] ss:$24 sps:$4 sm:$0xff]  }
   0xc   :  { %1825 = vmatprep.subr.bf16.mxu0 %v2767_v11  ;;  %1867 = vmatpush1.bf16.msra.mxu1 %v2766_v12  ;;  %v2800_v33 = vld [vmem:[%s4264_s1 + $0x5d4] ss:$24 sps:$4 sm:$0xff]   ;;  %v2799_v34 = vld [vmem:[%s4264_s1 + $0x2d0] ss:$24 sps:$4 sm:$0xff]   ;;  %v2803_v35 = vld [vmem:[%s4264_s1 + $0x2a4] ss:$24 sps:$4 sm:$0xff]  }
   0xd   :  { %1868 = vmatprep.subr.bf16.mxu1 %v2770_v13  ;;  %v2802_v36 = vld [vmem:[%s4264_s1 + $0x5d0] ss:$24 sps:$4 sm:$0xff]   ;;  %v2806_v37 = vld [vmem:[%s4264_s1 + $0x5a4] ss:$24 sps:$4 sm:$0xff]   ;;  %v2805_v38 = vld [vmem:[%s4264_s1 + $0x2a0] ss:$24 sps:$4 sm:$0xff]  }
   0xe   :  { %v2809_v39 = vld [vmem:[%s4264_s1 + $0x274] ss:$24 sps:$4 sm:$0xff]   ;;  %v2808_v40 = vld [vmem:[%s4264_s1 + $0x5a0] ss:$24 sps:$4 sm:$0xff]   ;;  %v2811_v42 = vld [vmem:[%s4264_s1 + $0x270] ss:$24 sps:$4 sm:$0xff]  }
   0xf   :  { %1826 = vmatpush1.bf16.msra.mxu0 %v2769_v14  ;;  %v2812_v41 = vld [vmem:[%s4264_s1 + $0x574] ss:$24 sps:$4 sm:$0xff]   ;;  %v2815_v43 = vld [vmem:[%s4264_s1 + $0x244] ss:$24 sps:$4 sm:$0xff]   ;;  %v2814_v44 = vld [vmem:[%s4264_s1 + $0x570] ss:$24 sps:$4 sm:$0xff]  }
  0x10   :  { %1827 = vmatprep.subr.bf16.mxu0 %v2773_v15  ;;  %1869 = vmatpush1.bf16.msra.mxu1 %v2772_v16  ;;  %v2818_v45 = vld [vmem:[%s4264_s1 + $0x544] ss:$24 sps:$4 sm:$0xff]   ;;  %v2817_v46 = vld [vmem:[%s4264_s1 + $0x240] ss:$24 sps:$4 sm:$0xff]   ;;  %v2821_v48 = vld [vmem:[%s4264_s1 + $0x214] ss:$24 sps:$4 sm:$0xff]  }
  0x11   :  { %1870 = vmatprep.subr.bf16.mxu1 %v2776_v17  ;;  %v2844_v47 = vld [vmem:[%s4265_s0 + $0x4] ss:$24 sps:$4 sm:$0xff]   ;;  %v2820_v49 = vld [vmem:[%s4264_s1 + $0x540] ss:$24 sps:$4 sm:$0xff]   ;;  %v2824_v50 = vld [vmem:[%s4264_s1 + $0x514] ss:$24 sps:$4 sm:$0xff]  }
  0x12   :  { %1851 = vmatprep.mubr.bf16.mxu0 %v2844_v47  ;;  %v3389_v51 = vld [vmem:[%s4265_s0 + $0xc] ss:$24 sps:$4 sm:$0xff]   ;;  %v2823_v52 = vld [vmem:[%s4264_s1 + $0x210] ss:$24 sps:$4 sm:$0xff]   ;;  %v2829_v56 = vld [vmem:[%s4264_s1 + $0x1e0] ss:$24 sps:$4 sm:$0xff]  }
  0x13   :  { %1828 = vmatpush1.bf16.msra.mxu0 %v2775_v18  ;;  %v2827_v53 = vld [vmem:[%s4264_s1 + $0x1e4] ss:$24 sps:$4 sm:$0xff]   ;;  %1894 = vmatprep.mubr.bf16.mxu1 %v3389_v51  ;;  %v2826_v54 = vld [vmem:[%s4264_s1 + $0x510] ss:$24 sps:$4 sm:$0xff]   ;;  %v2833_v57 = vld [vmem:[%s4264_s1 + $0x1b4] ss:$24 sps:$4 sm:$0xff]  }
  0x14   :  { %1829 = vmatprep.subr.bf16.mxu0 %v2779_v19  ;;  %1871 = vmatpush1.bf16.msra.mxu1 %v2778_v20  ;;  %v2830_v55 = vld [vmem:[%s4264_s1 + $0x4e4] ss:$24 sps:$4 sm:$0xff]   ;;  %v2832_v58 = vld [vmem:[%s4264_s1 + $0x4e0] ss:$24 sps:$4 sm:$0xff]   ;;  %v2836_v59 = vld [vmem:[%s4264_s1 + $0x4b4] ss:$24 sps:$4 sm:$0xff]  }
  0x15   :  { %1872 = vmatprep.subr.bf16.mxu1 %v2782_v21  ;;  %v2835_v60 = vld [vmem:[%s4264_s1 + $0x1b0] ss:$24 sps:$4 sm:$0xff]   ;;  %v2839_v61 = vld [vmem:[%s4264_s1 + $0x184] ss:$24 sps:$4 sm:$0xff]   ;;  %v2841_v0 = vld [vmem:[%s4264_s1 + $0x180] ss:$24 sps:$4 sm:$0xff]  }
  0x16   :  { %v2838_v62 = vld [vmem:[%s4264_s1 + $0x4b0] ss:$24 sps:$4 sm:$0xff]   ;;  %v2842_v63 = vld [vmem:[%s4264_s1 + $0x484] ss:$24 sps:$4 sm:$0xff]   ;;  %v2850_v1 = vld [vmem:[%s4264_s1 + $0x754] ss:$24 sps:$4 sm:$0xff]  }
  0x17   :  { %1830 = vmatpush1.bf16.msra.mxu0 %v2781_v22  ;;  %v2846_v2 = vld [vmem:[%s4264_s1 + $0x480] ss:$24 sps:$4 sm:$0xff]   ;;  %v2856_v4 = vld [vmem:[%s4264_s1 + $0x15c] ss:$24 sps:$4 sm:$0xff]   ;;  %v2848_v5 = vld [vmem:[%s4264_s1 + $0x750] ss:$24 sps:$4 sm:$0xff]  }
  0x18   :  { %1831 = vmatprep.subr.bf16.mxu0 %v2785_v23  ;;  %1873 = vmatpush1.bf16.msra.mxu1 %v2784_v24  ;;  %v3440_v3 = vld [vmem:[%s4265_s0] ss:$24 sps:$4 sm:$0xff]   ;;  %v2859_v7 = vld [vmem:[%s4264_s1 + $0x724] ss:$24 sps:$4 sm:$0xff]   ;;  %v2865_v11 = vld [vmem:[%s4264_s1 + $0x6f4] ss:$24 sps:$4 sm:$0xff]  }
  0x19   :  { %1874 = vmatprep.subr.bf16.mxu1 %v2788_v25  ;;  %v3451_v6 = vld [vmem:[%s4265_s0 + $0x8] ss:$24 sps:$4 sm:$0xff]   ;;  %v2854_v8 = vld [vmem:[%s4264_s1 + $0x158] ss:$24 sps:$4 sm:$0xff]   ;;  %v2862_v9 = vld [vmem:[%s4264_s1 + $0x12c] ss:$24 sps:$4 sm:$0xff]  }
  0x1a   :  { %v2857_v10 = vld [vmem:[%s4264_s1 + $0x720] ss:$24 sps:$4 sm:$0xff]   ;;  %v2868_v13 = vld [vmem:[%s4264_s1 + $0xfc] ss:$24 sps:$4 sm:$0xff]   ;;  %v2863_v14 = vld [vmem:[%s4264_s1 + $0x6f0] ss:$24 sps:$4 sm:$0xff]  }
  0x1b   :  { %1832 = vmatpush1.bf16.msra.mxu0 %v2787_v26  ;;  %v2860_v12 = vld [vmem:[%s4264_s1 + $0x128] ss:$24 sps:$4 sm:$0xff]   ;;  %v2871_v15 = vld [vmem:[%s4264_s1 + $0x6c4] ss:$24 sps:$4 sm:$0xff]   ;;  %v2866_v16 = vld [vmem:[%s4264_s1 + $0xf8] ss:$24 sps:$4 sm:$0xff]  }
  0x1c   :  { %1833 = vmatprep.subr.bf16.mxu0 %v2791_v27  ;;  %1875 = vmatpush1.bf16.msra.mxu1 %v2790_v28  ;;  %v2874_v17 = vld [vmem:[%s4264_s1 + $0xcc] ss:$24 sps:$4 sm:$0xff]   ;;  %v2869_v18 = vld [vmem:[%s4264_s1 + $0x6c0] ss:$24 sps:$4 sm:$0xff]   ;;  %v2880_v21 = vld [vmem:[%s4264_s1 + $0x9c] ss:$24 sps:$4 sm:$0xff]  }
  0x1d   :  { %1876 = vmatprep.subr.bf16.mxu1 %v2794_v29  ;;  %v2877_v19 = vld [vmem:[%s4264_s1 + $0x694] ss:$24 sps:$4 sm:$0xff]   ;;  %v2872_v20 = vld [vmem:[%s4264_s1 + $0xc8] ss:$24 sps:$4 sm:$0xff]   ;;  %v2883_v23 = vld [vmem:[%s4264_s1 + $0x664] ss:$24 sps:$4 sm:$0xff]  }
  0x1e   :  { %v2875_v22 = vld [vmem:[%s4264_s1 + $0x690] ss:$24 sps:$4 sm:$0xff]   ;;  %v2886_v25 = vld [vmem:[%s4264_s1 + $0x6c] ss:$24 sps:$4 sm:$0xff]   ;;  %v2881_v26 = vld [vmem:[%s4264_s1 + $0x660] ss:$24 sps:$4 sm:$0xff]  }
  0x1f   :  { %1834 = vmatpush1.bf16.msra.mxu0 %v2793_v30  ;;  %v2878_v24 = vld [vmem:[%s4264_s1 + $0x98] ss:$24 sps:$4 sm:$0xff]   ;;  %v2889_v27 = vld [vmem:[%s4264_s1 + $0x634] ss:$24 sps:$4 sm:$0xff]   ;;  %v2884_v28 = vld [vmem:[%s4264_s1 + $0x68] ss:$24 sps:$4 sm:$0xff]  }
  0x20   :  { %1835 = vmatprep.subr.bf16.mxu0 %v2797_v31  ;;  %1877 = vmatpush1.bf16.msra.mxu1 %v2796_v32  ;;  %v2892_v29 = vld [vmem:[%s4264_s1 + $0x3c] ss:$24 sps:$4 sm:$0xff]   ;;  %v2887_v30 = vld [vmem:[%s4264_s1 + $0x630] ss:$24 sps:$4 sm:$0xff]  }
  0x21   :  { %1878 = vmatprep.subr.bf16.mxu1 %v2800_v33  ;;  %v2890_v31 = vld [vmem:[%s4264_s1 + $0x38] ss:$24 sps:$4 sm:$0xff]   ;;  %v2895_v32 = vld [vmem:[%s4264_s1 + $0x604] ss:$24 sps:$4 sm:$0xff]   ;;  %v3536_v33 = vld [vmem:[%s4265_s0 + $0x14] ss:$24 sps:$4 sm:$0xff]  }
  0x23   :  { %1836 = vmatpush2.bf16.msra.mxu0 %v2799_v34  ;;  %v2898_v34 = vld [vmem:[%s4264_s1 + $0xc] ss:$24 sps:$4 sm:$0xff]  }
  0x24   :  { %1837 = vmatprep.subr.bf16.mxu0 %v2803_v35  ;;  %1879 = vmatpush2.bf16.msra.mxu1 %v2802_v36  ;;  %v2893_v35 = vld [vmem:[%s4264_s1 + $0x600] ss:$24 sps:$4 sm:$0xff]   ;;  %v2901_v36 = vld [vmem:[%s4264_s1 + $0x8d4] ss:$24 sps:$4 sm:$0xff]  }
  0x25   :  { %1880 = vmatprep.subr.bf16.mxu1 %v2806_v37  ;;  %v2896_v37 = vld [vmem:[%s4264_s1 + $0x8] ss:$24 sps:$4 sm:$0xff]  }
  0x27   :  { %1838 = vmatpush2.bf16.msra.mxu0 %v2805_v38  ;;  %v2904_v38 = vld [vmem:[%s4264_s1 + $0x2dc] ss:$24 sps:$4 sm:$0xff]  }
  0x28   :  { %1839 = vmatprep.subr.bf16.mxu0 %v2809_v39  ;;  %1881 = vmatpush2.bf16.msra.mxu1 %v2808_v40  ;;  %v2899_v39 = vld [vmem:[%s4264_s1 + $0x8d0] ss:$24 sps:$4 sm:$0xff]   ;;  %v2907_v40 = vld [vmem:[%s4264_s1 + $0x8a4] ss:$24 sps:$4 sm:$0xff]  }
  0x29   :  { %1882 = vmatprep.subr.bf16.mxu1 %v2812_v41  ;;  %v2902_v41 = vld [vmem:[%s4264_s1 + $0x2d8] ss:$24 sps:$4 sm:$0xff]  }
  0x2b   :  { %1840 = vmatpush2.bf16.msra.mxu0 %v2811_v42  ;;  %v2910_v42 = vld [vmem:[%s4264_s1 + $0x2ac] ss:$24 sps:$4 sm:$0xff]  }
  0x2c   :  { %1841 = vmatprep.subr.bf16.mxu0 %v2815_v43  ;;  %1883 = vmatpush2.bf16.msra.mxu1 %v2814_v44  ;;  %v2905_v43 = vld [vmem:[%s4264_s1 + $0x8a0] ss:$24 sps:$4 sm:$0xff]   ;;  %v2913_v44 = vld [vmem:[%s4264_s1 + $0x874] ss:$24 sps:$4 sm:$0xff]  }
  0x2d   :  { %1884 = vmatprep.subr.bf16.mxu1 %v2818_v45  ;;  %v2908_v45 = vld [vmem:[%s4264_s1 + $0x2a8] ss:$24 sps:$4 sm:$0xff]  }
  0x2f   :  { %1842 = vmatpush2.bf16.msra.mxu0 %v2817_v46  ;;  %v2916_v46 = vld [vmem:[%s4264_s1 + $0x27c] ss:$24 sps:$4 sm:$0xff]  }
  0x30   :  { %1843 = vmatprep.subr.bf16.mxu0 %v2821_v48  ;;  %1885 = vmatpush2.bf16.msra.mxu1 %v2820_v49  ;;  %v2919_v48 = vld [vmem:[%s4264_s1 + $0x844] ss:$24 sps:$4 sm:$0xff]   ;;  %v2914_v49 = vld [vmem:[%s4264_s1 + $0x278] ss:$24 sps:$4 sm:$0xff]  }
  0x31   :  { %1886 = vmatprep.subr.bf16.mxu1 %v2824_v50  ;;  %v2922_v50 = vld [vmem:[%s4264_s1 + $0x24c] ss:$24 sps:$4 sm:$0xff]  }
  0x33   :  { %1844 = vmatpush2.bf16.msra.mxu0 %v2823_v52  ;;  %v2917_v52 = vld [vmem:[%s4264_s1 + $0x840] ss:$24 sps:$4 sm:$0xff]  }
  0x34   :  { %1845 = vmatprep.subr.bf16.mxu0 %v2827_v53  ;;  %1887 = vmatpush2.bf16.msra.mxu1 %v2826_v54  ;;  %v2925_v53 = vld [vmem:[%s4264_s1 + $0x814] ss:$24 sps:$4 sm:$0xff]   ;;  %v2920_v54 = vld [vmem:[%s4264_s1 + $0x248] ss:$24 sps:$4 sm:$0xff]  }
  0x35   :  { %1888 = vmatprep.subr.bf16.mxu1 %v2830_v55  ;;  %v2928_v55 = vld [vmem:[%s4264_s1 + $0x21c] ss:$24 sps:$4 sm:$0xff]  }
  0x37   :  { %1846 = vmatpush2.bf16.msra.mxu0 %v2829_v56  ;;  %v2923_v56 = vld [vmem:[%s4264_s1 + $0x810] ss:$24 sps:$4 sm:$0xff]  }
  0x38   :  { %1847 = vmatprep.subr.bf16.mxu0 %v2833_v57  ;;  %1889 = vmatpush2.bf16.msra.mxu1 %v2832_v58  ;;  %v2931_v57 = vld [vmem:[%s4264_s1 + $0x7e4] ss:$24 sps:$4 sm:$0xff]   ;;  %v2926_v58 = vld [vmem:[%s4264_s1 + $0x218] ss:$24 sps:$4 sm:$0xff]  }
  0x39   :  { %1890 = vmatprep.subr.bf16.mxu1 %v2836_v59  ;;  %v2934_v59 = vld [vmem:[%s4264_s1 + $0x1ec] ss:$24 sps:$4 sm:$0xff]  }
  0x3b   :  { %1848 = vmatpush2.bf16.msra.mxu0 %v2835_v60  ;;  %v2929_v60 = vld [vmem:[%s4264_s1 + $0x7e0] ss:$24 sps:$4 sm:$0xff]  }
  0x3c   :  { %1849 = vmatprep.subr.bf16.mxu0 %v2839_v61  ;;  %1891 = vmatpush2.bf16.msra.mxu1 %v2838_v62  ;;  %v2937_v61 = vld [vmem:[%s4264_s1 + $0x7b4] ss:$24 sps:$4 sm:$0xff]   ;;  %v2932_v62 = vld [vmem:[%s4264_s1 + $0x1e8] ss:$24 sps:$4 sm:$0xff]  }
  0x3d   :  { %1892 = vmatprep.subr.bf16.mxu1 %v2842_v63  ;;  %v2940_v63 = vld [vmem:[%s4264_s1 + $0x1bc] ss:$24 sps:$4 sm:$0xff]  }
  0x3f   :  { %1850 = vmatpush2.bf16.msra.mxu0 %v2841_v0  ;;  %v2935_v0 = vld [vmem:[%s4264_s1 + $0x7b0] ss:$24 sps:$4 sm:$0xff]  }
  0x40   :  { %1905 = vmatprep.subr.bf16.mxu0 %v2850_v1  ;;  %1893 = vmatpush2.bf16.msra.mxu1 %v2846_v2  ;;  %v2943_v1 = vld [vmem:[%s4264_s1 + $0x784] ss:$24 sps:$4 sm:$0xff]   ;;  %v2938_v2 = vld [vmem:[%s4264_s1 + $0x1b8] ss:$24 sps:$4 sm:$0xff]  }
  0x41   :  { %1948 = vmatprep.subr.bf16.mxu1 %v2856_v4  ;;  %v2946_v4 = vld [vmem:[%s4264_s1 + $0x18c] ss:$24 sps:$4 sm:$0xff]  }
  0x42   :  { %1852 = vmatmul.mubr.bf16.vlgmr.msra.gmra.mxu0 %v3440_v3 }
  0x43   :  { %1906 = vmatpush1.bf16.msra.mxu0 %v2848_v5  ;;  %1895 = vmatmul.mubr.bf16.vlgmr.msra.gmra.mxu1 %v3451_v6  ;;  %v2941_v5 = vld [vmem:[%s4264_s1 + $0x780] ss:$24 sps:$4 sm:$0xff]  }
  0x44   :  { %1907 = vmatprep.subr.bf16.mxu0 %v2859_v7  ;;  %1949 = vmatpush1.bf16.msra.mxu1 %v2854_v8  ;;  %v2952_v7 = vld [vmem:[%s4264_s1 + $0x45c] ss:$24 sps:$4 sm:$0xff]   ;;  %v2944_v8 = vld [vmem:[%s4264_s1 + $0x188] ss:$24 sps:$4 sm:$0xff]  }
  0x45   :  { %1980 = vmatprep.mubr.bf16.mxu1 %v2844_v47  ;;  %1950 = vmatprep.subr.bf16.mxu1 %v2862_v9  ;;  %v2911_v47 = vld [vmem:[%s4264_s1 + $0x870] ss:$24 sps:$4 sm:$0xff]  }
  0x46   :  { %1937 = vmatprep.mubr.bf16.mxu0 %v3536_v33  ;;  %v3650_v9 = vld [vmem:[%s4265_s0 + $0x10] ss:$24 sps:$4 sm:$0xff]  }
  0x47   :  { %1908 = vmatpush1.bf16.msra.mxu0 %v2857_v10  ;;  %v2955_v10 = vld [vmem:[%s4264_s1 + $0x75c] ss:$24 sps:$4 sm:$0xff]  }
  0x48   :  { %1909 = vmatprep.subr.bf16.mxu0 %v2865_v11  ;;  %1951 = vmatpush1.bf16.msra.mxu1 %v2860_v12  ;;  %v2950_v11 = vld [vmem:[%s4264_s1 + $0x458] ss:$24 sps:$4 sm:$0xff]   ;;  %v2958_v12 = vld [vmem:[%s4264_s1 + $0x42c] ss:$24 sps:$4 sm:$0xff]  }
  0x49   :  { %1952 = vmatprep.subr.bf16.mxu1 %v2868_v13  ;;  %v2953_v13 = vld [vmem:[%s4264_s1 + $0x758] ss:$24 sps:$4 sm:$0xff]  }
  0x4b   :  { %1910 = vmatpush1.bf16.msra.mxu0 %v2863_v14  ;;  %v2961_v14 = vld [vmem:[%s4264_s1 + $0x72c] ss:$24 sps:$4 sm:$0xff]  }
  0x4c   :  { %1911 = vmatprep.subr.bf16.mxu0 %v2871_v15  ;;  %1953 = vmatpush1.bf16.msra.mxu1 %v2866_v16  ;;  %v2956_v15 = vld [vmem:[%s4264_s1 + $0x428] ss:$24 sps:$4 sm:$0xff]   ;;  %v2964_v16 = vld [vmem:[%s4264_s1 + $0x3fc] ss:$24 sps:$4 sm:$0xff]  }
  0x4d   :  { %1954 = vmatprep.subr.bf16.mxu1 %v2874_v17  ;;  %v2959_v17 = vld [vmem:[%s4264_s1 + $0x728] ss:$24 sps:$4 sm:$0xff]  }
  0x4f   :  { %1912 = vmatpush1.bf16.msra.mxu0 %v2869_v18  ;;  %v2967_v18 = vld [vmem:[%s4264_s1 + $0x6fc] ss:$24 sps:$4 sm:$0xff]  }
  0x50   :  { %1913 = vmatprep.subr.bf16.mxu0 %v2877_v19  ;;  %1955 = vmatpush1.bf16.msra.mxu1 %v2872_v20  ;;  %v2965_v19 = vld [vmem:[%s4264_s1 + $0x6f8] ss:$24 sps:$4 sm:$0xff]   ;;  %v2973_v20 = vld [vmem:[%s4264_s1 + $0x6cc] ss:$24 sps:$4 sm:$0xff]  }
  0x51   :  { %1956 = vmatprep.subr.bf16.mxu1 %v2880_v21  ;;  %v2968_v21 = vld [vmem:[%s4264_s1 + $0x3c8] ss:$24 sps:$4 sm:$0xff]  }
  0x53   :  { %1914 = vmatpush1.bf16.msra.mxu0 %v2875_v22  ;;  %v2976_v22 = vld [vmem:[%s4264_s1 + $0x39c] ss:$24 sps:$4 sm:$0xff]  }
  0x54   :  { %1915 = vmatprep.subr.bf16.mxu0 %v2883_v23  ;;  %1957 = vmatpush1.bf16.msra.mxu1 %v2878_v24  ;;  %v2971_v23 = vld [vmem:[%s4264_s1 + $0x6c8] ss:$24 sps:$4 sm:$0xff]   ;;  %v2979_v24 = vld [vmem:[%s4264_s1 + $0x69c] ss:$24 sps:$4 sm:$0xff]  }
  0x55   :  { %1958 = vmatprep.subr.bf16.mxu1 %v2886_v25  ;;  %v2974_v25 = vld [vmem:[%s4264_s1 + $0x398] ss:$24 sps:$4 sm:$0xff]  }
  0x57   :  { %1916 = vmatpush1.bf16.msra.mxu0 %v2881_v26  ;;  %v2982_v26 = vld [vmem:[%s4264_s1 + $0x36c] ss:$24 sps:$4 sm:$0xff]  }
  0x58   :  { %1917 = vmatprep.subr.bf16.mxu0 %v2889_v27  ;;  %1959 = vmatpush1.bf16.msra.mxu1 %v2884_v28  ;;  %v2977_v27 = vld [vmem:[%s4264_s1 + $0x698] ss:$24 sps:$4 sm:$0xff]   ;;  %v2985_v28 = vld [vmem:[%s4264_s1 + $0x66c] ss:$24 sps:$4 sm:$0xff]  }
  0x59   :  { %1960 = vmatprep.subr.bf16.mxu1 %v2892_v29  ;;  %v2980_v29 = vld [vmem:[%s4264_s1 + $0x368] ss:$24 sps:$4 sm:$0xff]  }
  0x5b   :  { %1918 = vmatpush1.bf16.msra.mxu0 %v2887_v30  ;;  %v2988_v30 = vld [vmem:[%s4264_s1 + $0x33c] ss:$24 sps:$4 sm:$0xff]  }
  0x5c   :  { %1919 = vmatprep.subr.bf16.mxu0 %v2895_v32  ;;  %1961 = vmatpush1.bf16.msra.mxu1 %v2890_v31  ;;  %v2983_v31 = vld [vmem:[%s4264_s1 + $0x668] ss:$24 sps:$4 sm:$0xff]   ;;  %v2991_v32 = vld [vmem:[%s4264_s1 + $0x63c] ss:$24 sps:$4 sm:$0xff]  }
  0x5d   :  { %1962 = vmatprep.subr.bf16.mxu1 %v2898_v34  ;;  %v2986_v34 = vld [vmem:[%s4264_s1 + $0x338] ss:$24 sps:$4 sm:$0xff]  }
  0x5f   :  { %1920 = vmatpush1.bf16.msra.mxu0 %v2893_v35  ;;  %v2994_v35 = vld [vmem:[%s4264_s1 + $0x30c] ss:$24 sps:$4 sm:$0xff]  }
  0x60   :  { %1921 = vmatprep.subr.bf16.mxu0 %v2901_v36  ;;  %1963 = vmatpush1.bf16.msra.mxu1 %v2896_v37  ;;  %v2989_v36 = vld [vmem:[%s4264_s1 + $0x638] ss:$24 sps:$4 sm:$0xff]   ;;  %v2997_v37 = vld [vmem:[%s4264_s1 + $0x60c] ss:$24 sps:$4 sm:$0xff]  }
  0x61   :  { %1964 = vmatprep.subr.bf16.mxu1 %v2904_v38  ;;  %v2992_v38 = vld [vmem:[%s4264_s1 + $0x308] ss:$24 sps:$4 sm:$0xff]  }
  0x63   :  { %1922 = vmatpush2.bf16.msra.mxu0 %v2899_v39  ;;  %v3000_v39 = vld [vmem:[%s4264_s1 + $0x5dc] ss:$24 sps:$4 sm:$0xff]  }
  0x64   :  { %1923 = vmatprep.subr.bf16.mxu0 %v2907_v40  ;;  %1965 = vmatpush2.bf16.msra.mxu1 %v2902_v41  ;;  %v2995_v40 = vld [vmem:[%s4264_s1 + $0x608] ss:$24 sps:$4 sm:$0xff]   ;;  %v3003_v41 = vld [vmem:[%s4264_s1 + $0x8dc] ss:$24 sps:$4 sm:$0xff]  }
  0x65   :  { %1966 = vmatprep.subr.bf16.mxu1 %v2910_v42  ;;  %v2998_v42 = vld [vmem:[%s4264_s1 + $0x5d8] ss:$24 sps:$4 sm:$0xff]  }
  0x67   :  { %1924 = vmatpush2.bf16.msra.mxu0 %v2905_v43  ;;  %v3006_v43 = vld [vmem:[%s4264_s1 + $0x5ac] ss:$24 sps:$4 sm:$0xff]  }
  0x68   :  { %1925 = vmatprep.subr.bf16.mxu0 %v2913_v44  ;;  %1967 = vmatpush2.bf16.msra.mxu1 %v2908_v45  ;;  %v3001_v44 = vld [vmem:[%s4264_s1 + $0x8d8] ss:$24 sps:$4 sm:$0xff]   ;;  %v3009_v45 = vld [vmem:[%s4264_s1 + $0x8ac] ss:$24 sps:$4 sm:$0xff]  }
  0x69   :  { %1968 = vmatprep.subr.bf16.mxu1 %v2916_v46  ;;  %v3004_v46 = vld [vmem:[%s4264_s1 + $0x5a8] ss:$24 sps:$4 sm:$0xff]  }
  0x6b   :  { %1926 = vmatpush2.bf16.msra.mxu0 %v2911_v47  ;;  %v3012_v47 = vld [vmem:[%s4264_s1 + $0x57c] ss:$24 sps:$4 sm:$0xff]  }
  0x6c   :  { %1927 = vmatprep.subr.bf16.mxu0 %v2919_v48  ;;  %1969 = vmatpush2.bf16.msra.mxu1 %v2914_v49  ;;  %v3007_v48 = vld [vmem:[%s4264_s1 + $0x8a8] ss:$24 sps:$4 sm:$0xff]   ;;  %v3015_v49 = vld [vmem:[%s4264_s1 + $0x87c] ss:$24 sps:$4 sm:$0xff]  }
  0x6d   :  { %1970 = vmatprep.subr.bf16.mxu1 %v2922_v50  ;;  %v3010_v50 = vld [vmem:[%s4264_s1 + $0x578] ss:$24 sps:$4 sm:$0xff]  }
  0x6f   :  { %1928 = vmatpush2.bf16.msra.mxu0 %v2917_v52  ;;  %v3018_v52 = vld [vmem:[%s4264_s1 + $0x54c] ss:$24 sps:$4 sm:$0xff]  }
  0x70   :  { %1929 = vmatprep.subr.bf16.mxu0 %v2925_v53  ;;  %1971 = vmatpush2.bf16.msra.mxu1 %v2920_v54  ;;  %v3013_v53 = vld [vmem:[%s4264_s1 + $0x878] ss:$24 sps:$4 sm:$0xff]   ;;  %v3021_v54 = vld [vmem:[%s4264_s1 + $0x84c] ss:$24 sps:$4 sm:$0xff]  }
  0x71   :  { %1972 = vmatprep.subr.bf16.mxu1 %v2928_v55  ;;  %v3016_v55 = vld [vmem:[%s4264_s1 + $0x548] ss:$24 sps:$4 sm:$0xff]  }
  0x73   :  { %1930 = vmatpush2.bf16.msra.mxu0 %v2923_v56  ;;  %v3024_v56 = vld [vmem:[%s4264_s1 + $0x51c] ss:$24 sps:$4 sm:$0xff]  }
  0x74   :  { %1931 = vmatprep.subr.bf16.mxu0 %v2931_v57  ;;  %1973 = vmatpush2.bf16.msra.mxu1 %v2926_v58  ;;  %v3019_v57 = vld [vmem:[%s4264_s1 + $0x848] ss:$24 sps:$4 sm:$0xff]   ;;  %v3027_v58 = vld [vmem:[%s4264_s1 + $0x81c] ss:$24 sps:$4 sm:$0xff]  }
  0x75   :  { %1974 = vmatprep.subr.bf16.mxu1 %v2934_v59  ;;  %v3022_v59 = vld [vmem:[%s4264_s1 + $0x518] ss:$24 sps:$4 sm:$0xff]  }
  0x77   :  { %1932 = vmatpush2.bf16.msra.mxu0 %v2929_v60  ;;  %v3030_v60 = vld [vmem:[%s4264_s1 + $0x4ec] ss:$24 sps:$4 sm:$0xff]  }
  0x78   :  { %1933 = vmatprep.subr.bf16.mxu0 %v2937_v61  ;;  %1975 = vmatpush2.bf16.msra.mxu1 %v2932_v62  ;;  %v3025_v61 = vld [vmem:[%s4264_s1 + $0x818] ss:$24 sps:$4 sm:$0xff]   ;;  %v3033_v62 = vld [vmem:[%s4264_s1 + $0x7ec] ss:$24 sps:$4 sm:$0xff]  }
  0x79   :  { %1976 = vmatprep.subr.bf16.mxu1 %v2940_v63  ;;  %v3028_v63 = vld [vmem:[%s4264_s1 + $0x4e8] ss:$24 sps:$4 sm:$0xff]  }
  0x7b   :  { %1934 = vmatpush2.bf16.msra.mxu0 %v2935_v0  ;;  %v3036_v0 = vld [vmem:[%s4264_s1 + $0x4bc] ss:$24 sps:$4 sm:$0xff]  }
  0x7c   :  { %1935 = vmatprep.subr.bf16.mxu0 %v2943_v1  ;;  %1977 = vmatpush2.bf16.msra.mxu1 %v2938_v2  ;;  %v3031_v1 = vld [vmem:[%s4264_s1 + $0x7e8] ss:$24 sps:$4 sm:$0xff]   ;;  %v3039_v2 = vld [vmem:[%s4264_s1 + $0x7bc] ss:$24 sps:$4 sm:$0xff]  }
  0x7d   :  { %1978 = vmatprep.subr.bf16.mxu1 %v2946_v4  ;;  %v3034_v4 = vld [vmem:[%s4264_s1 + $0x4b8] ss:$24 sps:$4 sm:$0xff]  }
  0x7f   :  { %1936 = vmatpush2.bf16.msra.mxu0 %v2941_v5  ;;  %v3042_v5 = vld [vmem:[%s4264_s1 + $0x48c] ss:$24 sps:$4 sm:$0xff]  }
  0x80   :  { %1991 = vmatprep.subr.bf16.mxu0 %v2952_v7  ;;  %1979 = vmatpush2.bf16.msra.mxu1 %v2944_v8  ;;  %v3037_v7 = vld [vmem:[%s4264_s1 + $0x7b8] ss:$24 sps:$4 sm:$0xff]   ;;  %v3045_v8 = vld [vmem:[%s4264_s1 + $0x78c] ss:$24 sps:$4 sm:$0xff]  }
  0x81   :  { %2034 = vmatprep.subr.bf16.mxu1 %v2955_v10  ;;  %v3040_v10 = vld [vmem:[%s4264_s1 + $0x488] ss:$24 sps:$4 sm:$0xff]  }
  0x82   :  { %1938 = vmatmul.mubr.bf16.vlgmr.msra.gmra.mxu0 %v3650_v9 }
  0x83   :  { %1992 = vmatpush1.bf16.msra.mxu0 %v2950_v11  ;;  %2023 = vmatprep.mubr.bf16.mxu0 %v3389_v51  ;;  %v2962_v51 = vld [vmem:[%s4264_s1 + $0x3f8] ss:$24 sps:$4 sm:$0xff]   ;;  %v3048_v11 = vld [vmem:[%s4264_s1 + $0x164] ss:$24 sps:$4 sm:$0xff]  }
  0x84   :  { %1981 = vmatmul.mubr.bf16.vlgmr.msra.gmra.mxu1 %v3440_v3  ;;  %1993 = vmatprep.subr.bf16.mxu0 %v2958_v12  ;;  %v2970_v3 = vld [vmem:[%s4264_s1 + $0x3cc] ss:$24 sps:$4 sm:$0xff]   ;;  %v3043_v12 = vld [vmem:[%s4264_s1 + $0x788] ss:$24 sps:$4 sm:$0xff]  }
  0x85   :  { %2035 = vmatpush1.bf16.msra.mxu1 %v2953_v13  ;;  %2066 = vmatprep.mubr.bf16.mxu1 %v3536_v33  ;;  %v3051_v13 = vld [vmem:[%s4264_s1 + $0x464] ss:$24 sps:$4 sm:$0xff]  }
  0x86   :  { %2036 = vmatprep.subr.bf16.mxu1 %v2961_v14  ;;  %v3046_v14 = vld [vmem:[%s4264_s1 + $0x160] ss:$24 sps:$4 sm:$0xff]  }
  0x87   :  { %1994 = vmatpush1.bf16.msra.mxu0 %v2956_v15  ;;  %v3054_v15 = vld [vmem:[%s4264_s1 + $0x134] ss:$24 sps:$4 sm:$0xff]  }
  0x88   :  { %1995 = vmatprep.subr.bf16.mxu0 %v2964_v16  ;;  %v3049_v16 = vld [vmem:[%s4264_s1 + $0x460] ss:$24 sps:$4 sm:$0xff]  }
  0x89   :  { %2037 = vmatpush1.bf16.msra.mxu1 %v2959_v17  ;;  %v3057_v17 = vld [vmem:[%s4264_s1 + $0x434] ss:$24 sps:$4 sm:$0xff]  }
  0x8a   :  { %2038 = vmatprep.subr.bf16.mxu1 %v2967_v18  ;;  %v3052_v18 = vld [vmem:[%s4264_s1 + $0x130] ss:$24 sps:$4 sm:$0xff]  }
  0x8b   :  { %1996 = vmatpush1.bf16.msra.mxu0 %v2962_v51  ;;  %v3194_v51 = vld [vmem:[%s4265_s0 + $0x4] ss:$24 sps:$4 sm:$0xff]  }
  0x8c   :  { %1997 = vmatprep.subr.bf16.mxu0 %v2970_v3  ;;  %v3055_v3 = vld [vmem:[%s4264_s1 + $0x430] ss:$24 sps:$4 sm:$0xff]  }
  0x8d   :  { %2039 = vmatpush1.bf16.msra.mxu1 %v2965_v19  ;;  %v3195_v19 = vld [vmem:[%s4265_s0 + $0xc] ss:$24 sps:$4 sm:$0xff]  }
  0x8e   :  { %2040 = vmatprep.subr.bf16.mxu1 %v2973_v20  ;;  %v3063_v20 = vld [vmem:[%s4264_s1 + $0x404] ss:$24 sps:$4 sm:$0xff]  }
  0x8f   :  { %1998 = vmatpush1.bf16.msra.mxu0 %v2968_v21  ;;  %v3058_v21 = vld [vmem:[%s4264_s1 + $0x100] ss:$24 sps:$4 sm:$0xff]  }
  0x90   :  { %1999 = vmatprep.subr.bf16.mxu0 %v2976_v22  ;;  %v3066_v22 = vld [vmem:[%s4264_s1 + $0xd4] ss:$24 sps:$4 sm:$0xff]  }
  0x91   :  { %2041 = vmatpush1.bf16.msra.mxu1 %v2971_v23  ;;  %v3061_v23 = vld [vmem:[%s4264_s1 + $0x400] ss:$24 sps:$4 sm:$0xff]  }
  0x92   :  { %2042 = vmatprep.subr.bf16.mxu1 %v2979_v24  ;;  %v3069_v24 = vld [vmem:[%s4264_s1 + $0x3d4] ss:$24 sps:$4 sm:$0xff]  }
  0x93   :  { %2000 = vmatpush1.bf16.msra.mxu0 %v2974_v25  ;;  %v3064_v25 = vld [vmem:[%s4264_s1 + $0xd0] ss:$24 sps:$4 sm:$0xff]  }
  0x94   :  { %2001 = vmatprep.subr.bf16.mxu0 %v2982_v26  ;;  %v3072_v26 = vld [vmem:[%s4264_s1 + $0xa4] ss:$24 sps:$4 sm:$0xff]  }
  0x95   :  { %2043 = vmatpush1.bf16.msra.mxu1 %v2977_v27  ;;  %v3067_v27 = vld [vmem:[%s4264_s1 + $0x3d0] ss:$24 sps:$4 sm:$0xff]  }
  0x96   :  { %2044 = vmatprep.subr.bf16.mxu1 %v2985_v28  ;;  %v3075_v28 = vld [vmem:[%s4264_s1 + $0x3a4] ss:$24 sps:$4 sm:$0xff]  }
  0x97   :  { %2002 = vmatpush1.bf16.msra.mxu0 %v2980_v29  ;;  %v3070_v29 = vld [vmem:[%s4264_s1 + $0xa0] ss:$24 sps:$4 sm:$0xff]  }
  0x98   :  { %2003 = vmatprep.subr.bf16.mxu0 %v2988_v30  ;;  %v3078_v30 = vld [vmem:[%s4264_s1 + $0x74] ss:$24 sps:$4 sm:$0xff]  }
  0x99   :  { %2045 = vmatpush1.bf16.msra.mxu1 %v2983_v31  ;;  %v3073_v31 = vld [vmem:[%s4264_s1 + $0x3a0] ss:$24 sps:$4 sm:$0xff]  }
  0x9a   :  { %2046 = vmatprep.subr.bf16.mxu1 %v2991_v32  ;;  %v3081_v32 = vld [vmem:[%s4264_s1 + $0x374] ss:$24 sps:$4 sm:$0xff]  }
  0x9b   :  { %2004 = vmatpush1.bf16.msra.mxu0 %v2986_v34  ;;  %v3076_v34 = vld [vmem:[%s4264_s1 + $0x70] ss:$24 sps:$4 sm:$0xff]  }
  0x9c   :  { %2005 = vmatprep.subr.bf16.mxu0 %v2994_v35  ;;  %v3084_v35 = vld [vmem:[%s4264_s1 + $0x44] ss:$24 sps:$4 sm:$0xff]  }
  0x9d   :  { %2047 = vmatpush1.bf16.msra.mxu1 %v2989_v36  ;;  %v3079_v36 = vld [vmem:[%s4264_s1 + $0x370] ss:$24 sps:$4 sm:$0xff]  }
  0x9e   :  { %2048 = vmatprep.subr.bf16.mxu1 %v2997_v37  ;;  %v3087_v37 = vld [vmem:[%s4264_s1 + $0x344] ss:$24 sps:$4 sm:$0xff]  }
  0x9f   :  { %2006 = vmatpush1.bf16.msra.mxu0 %v2992_v38  ;;  %v3082_v38 = vld [vmem:[%s4264_s1 + $0x40] ss:$24 sps:$4 sm:$0xff]  }
  0xa0   :  { %2007 = vmatprep.subr.bf16.mxu0 %v3000_v39  ;;  %v3090_v39 = vld [vmem:[%s4264_s1 + $0x14] ss:$24 sps:$4 sm:$0xff]  }
  0xa1   :  { %2049 = vmatpush1.bf16.msra.mxu1 %v2995_v40  ;;  %v3085_v40 = vld [vmem:[%s4264_s1 + $0x340] ss:$24 sps:$4 sm:$0xff]  }
  0xa2   :  { %2050 = vmatprep.subr.bf16.mxu1 %v3003_v41  ;;  %v3093_v41 = vld [vmem:[%s4264_s1 + $0x314] ss:$24 sps:$4 sm:$0xff]  }
  0xa3   :  { %2008 = vmatpush2.bf16.msra.mxu0 %v2998_v42  ;;  %v3088_v42 = vld [vmem:[%s4264_s1 + $0x10] ss:$24 sps:$4 sm:$0xff]  }
  0xa4   :  { %2009 = vmatprep.subr.bf16.mxu0 %v3006_v43  ;;  %v3096_v43 = vld [vmem:[%s4264_s1 + $0x2e4] ss:$24 sps:$4 sm:$0xff]  }
  0xa5   :  { %2051 = vmatpush2.bf16.msra.mxu1 %v3001_v44  ;;  %v3091_v44 = vld [vmem:[%s4264_s1 + $0x310] ss:$24 sps:$4 sm:$0xff]  }
  0xa6   :  { %2052 = vmatprep.subr.bf16.mxu1 %v3009_v45  ;;  %v3099_v45 = vld [vmem:[%s4264_s1 + $0x5e4] ss:$24 sps:$4 sm:$0xff]  }
  0xa7   :  { %2010 = vmatpush2.bf16.msra.mxu0 %v3004_v46  ;;  %v3094_v46 = vld [vmem:[%s4264_s1 + $0x2e0] ss:$24 sps:$4 sm:$0xff]  }
  0xa8   :  { %2011 = vmatprep.subr.bf16.mxu0 %v3012_v47  ;;  %v3102_v47 = vld [vmem:[%s4264_s1 + $0x2b4] ss:$24 sps:$4 sm:$0xff]  }
  0xa9   :  { %2053 = vmatpush2.bf16.msra.mxu1 %v3007_v48  ;;  %v3097_v48 = vld [vmem:[%s4264_s1 + $0x5e0] ss:$24 sps:$4 sm:$0xff]  }
  0xaa   :  { %2054 = vmatprep.subr.bf16.mxu1 %v3015_v49  ;;  %v3105_v49 = vld [vmem:[%s4264_s1 + $0x5b4] ss:$24 sps:$4 sm:$0xff]  }
  0xab   :  { %2012 = vmatpush2.bf16.msra.mxu0 %v3010_v50  ;;  %v3100_v50 = vld [vmem:[%s4264_s1 + $0x2b0] ss:$24 sps:$4 sm:$0xff]  }
  0xac   :  { %2013 = vmatprep.subr.bf16.mxu0 %v3018_v52  ;;  %v3108_v52 = vld [vmem:[%s4264_s1 + $0x284] ss:$24 sps:$4 sm:$0xff]  }
  0xad   :  { %2055 = vmatpush2.bf16.msra.mxu1 %v3013_v53  ;;  %v3103_v53 = vld [vmem:[%s4264_s1 + $0x5b0] ss:$24 sps:$4 sm:$0xff]  }
  0xae   :  { %2056 = vmatprep.subr.bf16.mxu1 %v3021_v54  ;;  %v3111_v54 = vld [vmem:[%s4264_s1 + $0x584] ss:$24 sps:$4 sm:$0xff]  }
  0xaf   :  { %2014 = vmatpush2.bf16.msra.mxu0 %v3016_v55  ;;  %v3106_v55 = vld [vmem:[%s4264_s1 + $0x280] ss:$24 sps:$4 sm:$0xff]  }
  0xb0   :  { %2015 = vmatprep.subr.bf16.mxu0 %v3024_v56  ;;  %v3114_v56 = vld [vmem:[%s4264_s1 + $0x254] ss:$24 sps:$4 sm:$0xff]  }
  0xb1   :  { %2057 = vmatpush2.bf16.msra.mxu1 %v3019_v57  ;;  %v3109_v57 = vld [vmem:[%s4264_s1 + $0x580] ss:$24 sps:$4 sm:$0xff]  }
  0xb2   :  { %2058 = vmatprep.subr.bf16.mxu1 %v3027_v58  ;;  %v3117_v58 = vld [vmem:[%s4264_s1 + $0x554] ss:$24 sps:$4 sm:$0xff]  }
  0xb3   :  { %2016 = vmatpush2.bf16.msra.mxu0 %v3022_v59  ;;  %v3112_v59 = vld [vmem:[%s4264_s1 + $0x250] ss:$24 sps:$4 sm:$0xff]  }
  0xb4   :  { %2017 = vmatprep.subr.bf16.mxu0 %v3030_v60  ;;  %v3120_v60 = vld [vmem:[%s4264_s1 + $0x224] ss:$24 sps:$4 sm:$0xff]  }
  0xb5   :  { %2059 = vmatpush2.bf16.msra.mxu1 %v3025_v61  ;;  %v3115_v61 = vld [vmem:[%s4264_s1 + $0x550] ss:$24 sps:$4 sm:$0xff]  }
  0xb6   :  { %2060 = vmatprep.subr.bf16.mxu1 %v3033_v62  ;;  %v3123_v62 = vld [vmem:[%s4264_s1 + $0x524] ss:$24 sps:$4 sm:$0xff]  }
  0xb7   :  { %2018 = vmatpush2.bf16.msra.mxu0 %v3028_v63  ;;  %v3118_v63 = vld [vmem:[%s4264_s1 + $0x220] ss:$24 sps:$4 sm:$0xff]  }
  0xb8   :  { %2019 = vmatprep.subr.bf16.mxu0 %v3036_v0  ;;  %v3126_v0 = vld [vmem:[%s4264_s1 + $0x1f4] ss:$24 sps:$4 sm:$0xff]  }
  0xb9   :  { %2061 = vmatpush2.bf16.msra.mxu1 %v3031_v1  ;;  %v3121_v1 = vld [vmem:[%s4264_s1 + $0x520] ss:$24 sps:$4 sm:$0xff]  }
  0xba   :  { %2062 = vmatprep.subr.bf16.mxu1 %v3039_v2  ;;  %v3129_v2 = vld [vmem:[%s4264_s1 + $0x4f4] ss:$24 sps:$4 sm:$0xff]  }
  0xbb   :  { %2020 = vmatpush2.bf16.msra.mxu0 %v3034_v4  ;;  %v3124_v4 = vld [vmem:[%s4264_s1 + $0x1f0] ss:$24 sps:$4 sm:$0xff]  }
  0xbc   :  { %2021 = vmatprep.subr.bf16.mxu0 %v3042_v5  ;;  %v3132_v5 = vld [vmem:[%s4264_s1 + $0x1c4] ss:$24 sps:$4 sm:$0xff]  }
  0xbd   :  { %2063 = vmatpush2.bf16.msra.mxu1 %v3037_v7  ;;  %v3127_v7 = vld [vmem:[%s4264_s1 + $0x4f0] ss:$24 sps:$4 sm:$0xff]  }
  0xbe   :  { %2064 = vmatprep.subr.bf16.mxu1 %v3045_v8  ;;  %v3135_v8 = vld [vmem:[%s4264_s1 + $0x4c4] ss:$24 sps:$4 sm:$0xff]  }
  0xbf   :  { %2022 = vmatpush2.bf16.msra.mxu0 %v3040_v10  ;;  %v3130_v10 = vld [vmem:[%s4264_s1 + $0x1c0] ss:$24 sps:$4 sm:$0xff]  }
  0xc0   :  { %2077 = vmatprep.subr.bf16.mxu0 %v3048_v11  ;;  %v3138_v11 = vld [vmem:[%s4264_s1 + $0x194] ss:$24 sps:$4 sm:$0xff]  }
  0xc1   :  { %2065 = vmatpush2.bf16.msra.mxu1 %v3043_v12  ;;  %v3133_v12 = vld [vmem:[%s4264_s1 + $0x4c0] ss:$24 sps:$4 sm:$0xff]  }
  0xc2   :  { %2024 = vmatmul.mubr.bf16.vlgmr.msra.gmra.mxu0 %v3451_v6  ;;  %2120 = vmatprep.subr.bf16.mxu1 %v3051_v13  ;;  %v3060_v6 = vld [vmem:[%s4264_s1 + $0x104] ss:$24 sps:$4 sm:$0xff]   ;;  %v3141_v13 = vld [vmem:[%s4264_s1 + $0x494] ss:$24 sps:$4 sm:$0xff]  }
  0xc3   :  { %2078 = vmatpush1.bf16.msra.mxu0 %v3046_v14  ;;  %2109 = vmatprep.mubr.bf16.mxu0 %v3194_v51  ;;  %v3136_v14 = vld [vmem:[%s4264_s1 + $0x190] ss:$24 sps:$4 sm:$0xff]   ;;  %v3196_v51 = vld [vmem:[%s4265_s0] ss:$24 sps:$4 sm:$0xff]  }
  0xc4   :  { %2067 = vmatmul.mubr.bf16.vlgmr.msra.gmra.mxu1 %v3650_v9  ;;  %2079 = vmatprep.subr.bf16.mxu0 %v3054_v15  ;;  %v3144_v15 = vld [vmem:[%s4264_s1 + $0x764] ss:$24 sps:$4 sm:$0xff]  }
  0xc5   :  { %2121 = vmatpush1.bf16.msra.mxu1 %v3049_v16  ;;  %2152 = vmatprep.mubr.bf16.mxu1 %v3195_v19  ;;  %v3139_v16 = vld [vmem:[%s4264_s1 + $0x490] ss:$24 sps:$4 sm:$0xff]   ;;  %v3150_v19 = vld [vmem:[%s4264_s1 + $0x704] ss:$24 sps:$4 sm:$0xff]  }
  0xc6   :  { %2122 = vmatprep.subr.bf16.mxu1 %v3057_v17  ;;  %v3142_v17 = vld [vmem:[%s4264_s1 + $0x760] ss:$24 sps:$4 sm:$0xff]  }
  0xc7   :  { %2080 = vmatpush1.bf16.msra.mxu0 %v3052_v18  ;;  %v3147_v18 = vld [vmem:[%s4264_s1 + $0x734] ss:$24 sps:$4 sm:$0xff]  }
  0xc8   :  { %2081 = vmatprep.subr.bf16.mxu0 %v3060_v6  ;;  %v3145_v6 = vld [vmem:[%s4264_s1 + $0x730] ss:$24 sps:$4 sm:$0xff]  }
  0xc9   :  { %2123 = vmatpush1.bf16.msra.mxu1 %v3055_v3  ;;  %v3197_v3 = vld [vmem:[%s4265_s0 + $0x8] ss:$24 sps:$4 sm:$0xff]  }
  0xca   :  { %2124 = vmatprep.subr.bf16.mxu1 %v3063_v20  ;;  %v3148_v20 = vld [vmem:[%s4264_s1 + $0x700] ss:$24 sps:$4 sm:$0xff]  }
  0xcb   :  { %2082 = vmatpush1.bf16.msra.mxu0 %v3058_v21  ;;  %v3151_v21 = vld [vmem:[%s4264_s1 + $0x6d0] ss:$24 sps:$4 sm:$0xff]  }
  0xcc   :  { %2083 = vmatprep.subr.bf16.mxu0 %v3066_v22  ;;  %v3156_v22 = vld [vmem:[%s4264_s1 + $0x6a4] ss:$24 sps:$4 sm:$0xff]  }
  0xcd   :  { %2125 = vmatpush1.bf16.msra.mxu1 %v3061_v23  ;;  %v3154_v23 = vld [vmem:[%s4264_s1 + $0x6a0] ss:$24 sps:$4 sm:$0xff]  }
  0xce   :  { %2126 = vmatprep.subr.bf16.mxu1 %v3069_v24  ;;  %v3159_v24 = vld [vmem:[%s4264_s1 + $0x674] ss:$24 sps:$4 sm:$0xff]  }
  0xcf   :  { %2084 = vmatpush1.bf16.msra.mxu0 %v3064_v25  ;;  %v3157_v25 = vld [vmem:[%s4264_s1 + $0x670] ss:$24 sps:$4 sm:$0xff]  }
  0xd0   :  { %2085 = vmatprep.subr.bf16.mxu0 %v3072_v26  ;;  %v3162_v26 = vld [vmem:[%s4264_s1 + $0x644] ss:$24 sps:$4 sm:$0xff]  }
  0xd1   :  { %2127 = vmatpush1.bf16.msra.mxu1 %v3067_v27  ;;  %v3160_v27 = vld [vmem:[%s4264_s1 + $0x640] ss:$24 sps:$4 sm:$0xff]  }
  0xd2   :  { %2128 = vmatprep.subr.bf16.mxu1 %v3075_v28  ;;  %v3165_v28 = vld [vmem:[%s4264_s1 + $0x614] ss:$24 sps:$4 sm:$0xff]  }
  0xd3   :  { %2086 = vmatpush1.bf16.msra.mxu0 %v3070_v29  ;;  %v3163_v29 = vld [vmem:[%s4264_s1 + $0x610] ss:$24 sps:$4 sm:$0xff]  }
  0xd4   :  { %2087 = vmatprep.subr.bf16.mxu0 %v3078_v30  ;;  %v3168_v30 = vld [vmem:[%s4264_s1 + $0x8e4] ss:$24 sps:$4 sm:$0xff]  }
  0xd5   :  { %2129 = vmatpush1.bf16.msra.mxu1 %v3073_v31  ;;  %v3166_v31 = vld [vmem:[%s4264_s1 + $0x8e0] ss:$24 sps:$4 sm:$0xff]  }
  0xd6   :  { %2130 = vmatprep.subr.bf16.mxu1 %v3081_v32  ;;  %v3171_v32 = vld [vmem:[%s4264_s1 + $0x8b4] ss:$24 sps:$4 sm:$0xff]  }
  0xd7   :  { %2088 = vmatpush1.bf16.msra.mxu0 %v3076_v34  ;;  %v3169_v34 = vld [vmem:[%s4264_s1 + $0x8b0] ss:$24 sps:$4 sm:$0xff]  }
  0xd8   :  { %2089 = vmatprep.subr.bf16.mxu0 %v3084_v35  ;;  %v3174_v35 = vld [vmem:[%s4264_s1 + $0x884] ss:$24 sps:$4 sm:$0xff]  }
  0xd9   :  { %2131 = vmatpush1.bf16.msra.mxu1 %v3079_v36  ;;  %v3172_v36 = vld [vmem:[%s4264_s1 + $0x880] ss:$24 sps:$4 sm:$0xff]  }
  0xda   :  { %2132 = vmatprep.subr.bf16.mxu1 %v3087_v37  ;;  %v3177_v37 = vld [vmem:[%s4264_s1 + $0x854] ss:$24 sps:$4 sm:$0xff]  }
  0xdb   :  { %2090 = vmatpush1.bf16.msra.mxu0 %v3082_v38  ;;  %v3175_v38 = vld [vmem:[%s4264_s1 + $0x850] ss:$24 sps:$4 sm:$0xff]  }
  0xdc   :  { %2091 = vmatprep.subr.bf16.mxu0 %v3090_v39  ;;  %v3180_v39 = vld [vmem:[%s4264_s1 + $0x824] ss:$24 sps:$4 sm:$0xff]  }
  0xdd   :  { %2133 = vmatpush1.bf16.msra.mxu1 %v3085_v40  ;;  %v3178_v40 = vld [vmem:[%s4264_s1 + $0x820] ss:$24 sps:$4 sm:$0xff]  }
  0xde   :  { %2134 = vmatprep.subr.bf16.mxu1 %v3093_v41  ;;  %v3183_v41 = vld [vmem:[%s4264_s1 + $0x7f4] ss:$24 sps:$4 sm:$0xff]  }
  0xdf   :  { %2092 = vmatpush1.bf16.msra.mxu0 %v3088_v42  ;;  %v3181_v42 = vld [vmem:[%s4264_s1 + $0x7f0] ss:$24 sps:$4 sm:$0xff]  }
  0xe0   :  { %2093 = vmatprep.subr.bf16.mxu0 %v3096_v43  ;;  %v3186_v43 = vld [vmem:[%s4264_s1 + $0x7c4] ss:$24 sps:$4 sm:$0xff]  }
  0xe1   :  { %2135 = vmatpush1.bf16.msra.mxu1 %v3091_v44  ;;  %v3184_v44 = vld [vmem:[%s4264_s1 + $0x7c0] ss:$24 sps:$4 sm:$0xff]  }
  0xe2   :  { %2136 = vmatprep.subr.bf16.mxu1 %v3099_v45  ;;  %v3189_v45 = vld [vmem:[%s4264_s1 + $0x794] ss:$24 sps:$4 sm:$0xff]  }
  0xe3   :  { %2094 = vmatpush2.bf16.msra.mxu0 %v3094_v46  ;;  %v3187_v46 = vld [vmem:[%s4264_s1 + $0x790] ss:$24 sps:$4 sm:$0xff]  }
  0xe4   :  { %2095 = vmatprep.subr.bf16.mxu0 %v3102_v47 }
  0xe5   :  { %2137 = vmatpush2.bf16.msra.mxu1 %v3097_v48 }
  0xe6   :  { %2138 = vmatprep.subr.bf16.mxu1 %v3105_v49 }
  0xe7   :  { %2096 = vmatpush2.bf16.msra.mxu0 %v3100_v50 }
  0xe8   :  { %2097 = vmatprep.subr.bf16.mxu0 %v3108_v52 }
  0xe9   :  { %2139 = vmatpush2.bf16.msra.mxu1 %v3103_v53 }
  0xea   :  { %2140 = vmatprep.subr.bf16.mxu1 %v3111_v54 }
  0xeb   :  { %2098 = vmatpush2.bf16.msra.mxu0 %v3106_v55 }
  0xec   :  { %2099 = vmatprep.subr.bf16.mxu0 %v3114_v56 }
  0xed   :  { %2141 = vmatpush2.bf16.msra.mxu1 %v3109_v57 }
  0xee   :  { %2142 = vmatprep.subr.bf16.mxu1 %v3117_v58 }
  0xef   :  { %2100 = vmatpush2.bf16.msra.mxu0 %v3112_v59 }
  0xf0   :  { %2101 = vmatprep.subr.bf16.mxu0 %v3120_v60  ;;  %v319_v60 = vlaneseq }
  0xf1   :  { %2143 = vmatpush2.bf16.msra.mxu1 %v3115_v61 }
  0xf2   :  { %2144 = vmatprep.subr.bf16.mxu1 %v3123_v62 }
  0xf3   :  { %2102 = vmatpush2.bf16.msra.mxu0 %v3118_v63  ;;  %v320_v63 = vshrl.u32 %v319_v60, 7 }
  0xf4   :  { %2103 = vmatprep.subr.bf16.mxu0 %v3126_v0 }
  0xf5   :  { %2145 = vmatpush2.bf16.msra.mxu1 %v3121_v1 }
  0xf6   :  { %2146 = vmatprep.subr.bf16.mxu1 %v3129_v2  ;;  %v4153_v2 = vsub.s32 1, %v320_v63 }
  0xf7   :  { %2104 = vmatpush2.bf16.msra.mxu0 %v3124_v4  ;;  %v4155_v4 = vsub.s32 2, %v320_v63 }
  0xf8   :  { %2105 = vmatprep.subr.bf16.mxu0 %v3132_v5  ;;  %v317_v5 = vld [vmem:[%s4266_s2] sm:$0x3f] }
  0xf9   :  { %2147 = vmatpush2.bf16.msra.mxu1 %v3127_v7  ;;  %v4160_v7 = vsub.s32 0, %v320_v63 }
  0xfa   :  { %2148 = vmatprep.subr.bf16.mxu1 %v3135_v8 }
  0xfb   :  { %2106 = vmatpush2.bf16.msra.mxu0 %v3130_v10 }
  0xfc   :  { %2107 = vmatprep.subr.bf16.mxu0 %v3138_v11  ;;  %v326_v11 = vrot.slane %v317_v5, %v4153_v2 }
  0xfd   :  { %2149 = vmatpush2.bf16.msra.mxu1 %v3133_v12  ;;  %v330_v12 = vrot.slane %v317_v5, %v4155_v4 }
  0xfe   :  { %2150 = vmatprep.subr.bf16.mxu1 %v3141_v13  ;;  %v4164_v13 = vsub.s32 3, %v320_v63 }
  0xff   :  { %2108 = vmatpush2.bf16.msra.mxu0 %v3136_v14  ;;  %v322_v14 = vrot.slane %v317_v5, %v4160_v7 }
 0x100   :  { %2163 = vmatprep.subr.bf16.mxu0 %v3144_v15 }
 0x101   :  { %2151 = vmatpush2.bf16.msra.mxu1 %v3139_v16 }
 0x102   :  { %2110 = vmatmul.mubr.bf16.vlgmr.msra.gmra.mxu0 %v3196_v51  ;;  %v1853_v47 = vpop.f32.mrf.mxu0  ;;  %v334_v51 = vrot.slane %v317_v5, %v4164_v13 }
 0x103   :  { %2164 = vmatpush1.bf16.msra.mxu0 %v3142_v17  ;;  %2195 = vmatprep.mubr.bf16.mxu0 %v3536_v33  ;;  %v3153_v33 = vld [vmem:[%s4264_s1 + $0x6d4] ss:$24 sps:$4 sm:$0xff]   ;;  %v1896_v48 = vpop.f32.mrf.mxu1 }
 0x104   :  { %2153 = vmatmul.mubr.bf16.vlgmr.msra.gmra.mxu1 %v3197_v3  ;;  %2165 = vmatprep.subr.bf16.mxu0 %v3147_v18  ;;  %v1855_v49 = vpop.f32.mrf.mxu0 }
 0x105   :  { %v1898_v50 = vpop.f32.mrf.mxu1  ;;  %v1856_v17 = vadd.f32 %v1855_v49, %v326_v11 }
 0x106   :  { %v1857_v52 = vpop.f32.mrf.mxu0 }
 0x107   :  { %2166 = vmatpush1.bf16.msra.mxu0 %v3145_v6  ;;  %v4149_v53 = vpop.f32.mrf.mxu1  ;;  %v1854_v6 = vadd.f32 %v1853_v47, %v322_v14 }
 0x108   :  { %2167 = vmatprep.subr.bf16.mxu0 %v3150_v19  ;;  %v1859_v54 = vpop.f32.mrf.mxu0 }
 0x109   :  { %v1902_v55 = vpop.f32.mrf.mxu1 }
 0x10b   :  { %2168 = vmatpush1.bf16.msra.mxu0 %v3148_v20  ;;  %v1899_v20 = vadd.f32 %v1898_v50, %v1856_v17 }
 0x10c   :  { %2169 = vmatprep.subr.bf16.mxu0 %v3153_v33  ;;  %v1860_v33 = vadd.f32 %v1859_v54, %v326_v11 }
 0x10f   :  { %2170 = vmatpush1.bf16.msra.mxu0 %v3151_v21  ;;  %v2206_v21 = vld [vmem:[%s4267_s3] sm:$0xff] }
 0x110   :  { %2171 = vmatprep.subr.bf16.mxu0 %v3156_v22 }
 0x113   :  { %2172 = vmatpush1.bf16.msra.mxu0 %v3154_v23 }
 0x114   :  { %2173 = vmatprep.subr.bf16.mxu0 %v3159_v24  ;;  %v2207_v24 = vld [vmem:[%s4267_s3 + $0x8] sm:$0xff] }
 0x115   :  { %v2215_v54 = vunpack.c.h.bf16 %v2207_v24 }
 0x117   :  { %2174 = vmatpush1.bf16.msra.mxu0 %v3157_v25 }
 0x118   :  { %2175 = vmatprep.subr.bf16.mxu0 %v3162_v26  ;;  %v1897_v26 = vadd.f32 %v1896_v48, %v1854_v6 }
 0x11b   :  { %2176 = vmatpush1.bf16.msra.mxu0 %v3160_v27  ;;  %v4174_v27 = vsub.s32 4, %v320_v63 }
 0x11c   :  { %2177 = vmatprep.subr.bf16.mxu0 %v3165_v28  ;;  %v1858_v28 = vadd.f32 %v1857_v52, %v322_v14 }
 0x11d   :  { %v338_v48 = vrot.slane %v317_v5, %v4174_v27 }
 0x11e   :  { %v1901_v49 = vadd.f32 %v4149_v53, %v1858_v28 }
 0x11f   :  { %2178 = vmatpush1.bf16.msra.mxu0 %v3163_v29 }
 0x120   :  { %2179 = vmatprep.subr.bf16.mxu0 %v3168_v30  ;;  %v2213_v30 = vunpack.c.h.bf16 %v2206_v21 }
 0x123   :  { %2180 = vmatpush2.bf16.msra.mxu0 %v3166_v31  ;;  %v2209_v31 = vld [vmem:[%s4267_s3 + $0x18] sm:$0xff] }
 0x124   :  { %2181 = vmatprep.subr.bf16.mxu0 %v3171_v32  ;;  %v2219_v47 = vunpack.c.h.bf16 %v2209_v31 }
 0x127   :  { %2182 = vmatpush2.bf16.msra.mxu0 %v3169_v34 }
 0x128   :  { %2183 = vmatprep.subr.bf16.mxu0 %v3174_v35 }
 0x12b   :  { %2184 = vmatpush2.bf16.msra.mxu0 %v3172_v36  ;;  %v2212_v36 = vunpack.c.l.bf16 %v2206_v21 }
 0x12c   :  { %2185 = vmatprep.subr.bf16.mxu0 %v3177_v37  ;;  %v2214_v37 = vunpack.c.l.bf16 %v2207_v24 }
 0x12f   :  { %2186 = vmatpush2.bf16.msra.mxu0 %v3175_v38  ;;  %v4179_v38 = vsub.s32 5, %v320_v63 }
 0x130   :  { %2187 = vmatprep.subr.bf16.mxu0 %v3180_v39  ;;  %v1903_v39 = vadd.f32 %v1902_v55, %v1860_v33 }
 0x133   :  { %2188 = vmatpush2.bf16.msra.mxu0 %v3178_v40 }
 0x134   :  { %2189 = vmatprep.subr.bf16.mxu0 %v3183_v41 }
 0x137   :  { %2190 = vmatpush2.bf16.msra.mxu0 %v3181_v42 }
 0x138   :  { %2191 = vmatprep.subr.bf16.mxu0 %v3186_v43  ;;  %v2210_v43 = vld [vmem:[%s4267_s3 + $0x20] sm:$0xff] }
 0x13b   :  { %2192 = vmatpush2.bf16.msra.mxu0 %v3184_v44 }
 0x13c   :  { %2193 = vmatprep.subr.bf16.mxu0 %v3189_v45 }
 0x13f   :  { %2194 = vmatpush2.bf16.msra.mxu0 %v3187_v46  ;;  %v2218_v46 = vunpack.c.l.bf16 %v2209_v31 }
 0x142   :  { %2196 = vmatmul.mubr.bf16.vlgmr.msra.gmra.mxu0 %v3650_v9  ;;  %v1939_v56 = vpop.f32.mrf.mxu0 }
 0x143   :  { %v1940_v35 = vadd.f32 %v1939_v56, %v1897_v26 }
 0x144   :  { %v1982_v57 = vpop.f32.mrf.mxu1  ;;  %v1941_v58 = vpop.f32.mrf.mxu0 }
 0x145   :  { %v1983_v18 = vadd.f32 %v1982_v57, %v330_v12  ;;  %v1942_v29 = vadd.f32 %v1941_v58, %v1899_v20  ;;  %v2224_v55 = vadd.f32 %v2212_v36, %v1940_v35  ;;  %v2220_v57 = vunpack.c.l.bf16 %v2210_v43  ;;  %v2211_v20 = vld [vmem:[%s4267_s3 + $0x28] sm:$0xff] }
 0x146   :  { %v1984_v59 = vpop.f32.mrf.mxu1  ;;  %v4151_v61 = vpop.f32.mrf.mxu0  ;;  %v342_v58 = vrot.slane %v317_v5, %v4179_v38 }
 0x147   :  { %v1985_v22 = vadd.f32 %v1984_v59, %v334_v51  ;;  %v4186_v50 = vadd.f32 %v2213_v30, %v1942_v29  ;;  %v1944_v59 = vadd.f32 %v4151_v61, %v1901_v49  ;;  %v2222_v30 = vunpack.c.l.bf16 %v2211_v20 }
 0x148   :  { %v1986_v62 = vpop.f32.mrf.mxu1  ;;  %v1945_v0 = vpop.f32.mrf.mxu0 }
 0x149   :  { %v1987_v32 = vadd.f32 %v1986_v62, %v330_v12  ;;  %v1946_v52 = vadd.f32 %v1945_v0, %v1903_v39  ;;  %v2236_v53 = vadd.f32 %v4186_v50, %v2224_v55  ;;  %v2208_v0 = vld [vmem:[%s4267_s3 + $0x10] sm:$0xff]  ;;  %v2223_v39 = vunpack.c.h.bf16 %v2211_v20 }
 0x14a   :  { %v1988_v9 = vpop.f32.mrf.mxu1 }
 0x14b   :  { %v1989_v56 = vadd.f32 %v1988_v9, %v334_v51  ;;  %v2231_v12 = vadd.f32 %v2219_v47, %v1946_v52  ;;  %v2221_v9 = vunpack.c.h.bf16 %v2210_v43 }
 0x182   :  { %v2025_v1 = vpop.f32.mrf.mxu0 }
 0x183   :  { %v2026_v23 = vadd.f32 %v2025_v1, %v1983_v18 }
 0x184   :  { %v2027_v8 = vpop.f32.mrf.mxu0  ;;  %v2068_v10 = vpop.f32.mrf.mxu1 }
 0x185   :  { %v2028_v40 = vadd.f32 %v2027_v8, %v1985_v22  ;;  %v2069_v41 = vadd.f32 %v2068_v10, %v2026_v23 }
 0x186   :  { %v2029_v15 = vpop.f32.mrf.mxu0  ;;  %v2070_v16 = vpop.f32.mrf.mxu1 }
 0x187   :  { %v2030_v42 = vadd.f32 %v2029_v15, %v1987_v32  ;;  %v2226_v60 = vadd.f32 %v2214_v37, %v2069_v41  ;;  %v2071_v62 = vadd.f32 %v2070_v16, %v2028_v40  ;;  %v2230_v15 = vadd.f32 %v2218_v46, %v1944_v59 }
 0x188   :  { %v2031_v3 = vpop.f32.mrf.mxu0  ;;  %v2072_v19 = vpop.f32.mrf.mxu1 }
 0x189   :  { %v2073_v63 = vadd.f32 %v2072_v19, %v2030_v42  ;;  %v2032_v10 = vadd.f32 %v2031_v3, %v1989_v56  ;;  %v2237_v5 = vadd.f32 %v2236_v53, %v2226_v60  ;;  %v2227_v17 = vadd.f32 %v2215_v54, %v2071_v62 }
 0x18a   :  { %v2074_v34 = vpop.f32.mrf.mxu1  ;;  %v2216_v3 = vunpack.c.l.bf16 %v2208_v0  ;;  %v2243_v33 = vadd.f32 %v2231_v12, %v2230_v15 }
 0x18b   :  { %v2232_v61 = vadd.f32 %v2220_v57, %v2073_v63  ;;  %v2075_v51 = vadd.f32 %v2074_v34, %v2032_v10  ;;  %v2238_v31 = vadd.f32 %v2237_v5, %v2227_v17 }
 0x18d   :  { %v2244_v26 = vadd.f32 %v2243_v33, %v2232_v61  ;;  %v2233_v32 = vadd.f32 %v2221_v9, %v2075_v51 }
 0x1c2   :  { %v2111_v25 = vpop.f32.mrf.mxu0 }
 0x1c3   :  { %v2112_v11 = vadd.f32 %v2111_v25, %v338_v48  ;;  %v2217_v25 = vunpack.c.h.bf16 %v2208_v0 }
 0x1c4   :  { %v2113_v44 = vpop.f32.mrf.mxu0  ;;  %v2154_v45 = vpop.f32.mrf.mxu1 }
 0x1c5   :  { %v2114_v14 = vadd.f32 %v2113_v44, %v342_v58  ;;  %v2155_v6 = vadd.f32 %v2154_v45, %v2112_v11  ;;  %v2245_v45 = vadd.f32 %v2244_v26, %v2233_v32 }
 0x1c6   :  { %v2115_v1 = vpop.f32.mrf.mxu0  ;;  %v2156_v8 = vpop.f32.mrf.mxu1 }
 0x1c7   :  { %v2116_v19 = vadd.f32 %v2115_v1, %v338_v48  ;;  %v2157_v22 = vadd.f32 %v2156_v8, %v2114_v14 }
 0x1c8   :  { %v2117_v18 = vpop.f32.mrf.mxu0  ;;  %v2158_v16 = vpop.f32.mrf.mxu1 }
 0x1c9   :  { %v2118_v23 = vadd.f32 %v2117_v18, %v342_v58  ;;  %v2159_v34 = vadd.f32 %v2158_v16, %v2116_v19 }
 0x1ca   :  { %v2160_v28 = vpop.f32.mrf.mxu1 }
 0x1cb   :  { %v2161_v40 = vadd.f32 %v2160_v28, %v2118_v23 }
 0x202   :  { %v2197_v21 = vpop.f32.mrf.mxu0 }
 0x203   :  { %v2198_v24 = vadd.f32 %v2197_v21, %v2155_v6 }
 0x204   :  { %v2199_v29 = vpop.f32.mrf.mxu0 }
 0x205   :  { %v2228_v35 = vadd.f32 %v2216_v3, %v2198_v24  ;;  %v2200_v36 = vadd.f32 %v2199_v29, %v2157_v22 }
 0x206   :  { %v2201_v37 = vpop.f32.mrf.mxu0 }
 0x207   :  { %v2202_v41 = vadd.f32 %v2201_v37, %v2159_v34  ;;  %v2229_v42 = vadd.f32 %v2217_v25, %v2200_v36  ;;  %v2239_v43 = vadd.f32 %v2238_v31, %v2228_v35  ;;  %v2309_v37 = vld [vmem:[%s4268_s4] sm:$0x3f] }
 0x208   :  { %v2203_v44 = vpop.f32.mrf.mxu0 }
 0x209   :  { %v2234_v46 = vadd.f32 %v2222_v30, %v2202_v41  ;;  %v2204_v47 = vadd.f32 %v2203_v44, %v2161_v40  ;;  %v2240_v48 = vadd.f32 %v2239_v43, %v2229_v42  ;;  %v2314_v40 = vrot.slane %v2309_v37, %v4160_v7 }
 0x20a   :  { %v2322_v44 = vrot.slane %v2309_v37, %v4155_v4 }
 0x20b   :  { %v2235_v49 = vadd.f32 %v2223_v39, %v2204_v47  ;;  %2241 = vadd.xlane.f32.xlu0 %v2240_v48  ;;  %v2246_v52 = vadd.f32 %v2245_v45, %v2234_v46  ;;  %v2353_v39 = vld [vmem:[%s4269_s5] sm:$0x3f]  ;;  %v2326_v45 = vrot.slane %v2309_v37, %v4164_v13 }
 0x20c   :  { %v2358_v41 = vrot.slane %v2353_v39, %v4160_v7  ;;  %v2362_v43 = vrot.slane %v2353_v39, %v4153_v2  ;;  %v2366_v47 = vrot.slane %v2353_v39, %v4155_v4  ;;  %v2370_v48 = vrot.slane %v2353_v39, %v4164_v13 }
 0x20d   :  { %v2247_v54 = vadd.f32 %v2246_v52, %v2235_v49  ;;  %v2334_v52 = vrot.slane %v2309_v37, %v4179_v38 }
 0x20f   :  { %2248 = vadd.xlane.f32.xlu0 %v2247_v54 }
 0x294   :  { %v2242_v56 = vpop.xlane.xlu0 %2241 }
 0x295   :  { %v2251_v57 = vmul.f32 0.0013020834, %v2242_v56 }
 0x297   :  { %v2253_v58 = vsub.f32 %v2224_v55, %v2251_v57  ;;  %v2254_v59 = vsub.f32 %v4186_v50, %v2251_v57  ;;  %v2255_v62 = vsub.f32 %v2226_v60, %v2251_v57  ;;  %v2256_v1 = vsub.f32 %v2227_v17, %v2251_v57 }
 0x298   :  { %v2249_v63 = vpop.xlane.xlu0 %2248  ;;  %v2257_v53 = vsub.f32 %v2228_v35, %v2251_v57  ;;  %v2258_v16 = vsub.f32 %v2229_v42, %v2251_v57  ;;  %v2318_v42 = vrot.slane %v2309_v37, %v4153_v2  ;;  %v2378_v2 = vrot.slane %v2353_v39, %v4179_v38 }
 0x299   :  { %v2252_v8 = vmul.f32 0.0013020834, %v2249_v63  ;;  %v2265_v10 = vmul.f32 %v2253_v58, %v2253_v58  ;;  %v2266_v11 = vmul.f32 %v2254_v59, %v2254_v59  ;;  %v2267_v0 = vmul.f32 %v2255_v62, %v2255_v62 }
 0x29a   :  { %v2268_v51 = vmul.f32 %v2256_v1, %v2256_v1  ;;  %v2269_v17 = vmul.f32 %v2257_v53, %v2257_v53  ;;  %v2374_v63 = vrot.slane %v2353_v39, %v4174_v27 }
 0x29b   :  { %v2277_v9 = vadd.f32 %v2266_v11, %v2265_v10  ;;  %v4198_v14 = vsub.f32 %v2230_v15, %v2252_v8  ;;  %v4200_v5 = vsub.f32 %v2231_v12, %v2252_v8  ;;  %v4202_v18 = vsub.f32 %v2232_v61, %v2252_v8 }
 0x29c   :  { %v4204_v6 = vsub.f32 %v2233_v32, %v2252_v8  ;;  %v4210_v3 = vsub.f32 %v2234_v46, %v2252_v8  ;;  %v2270_v61 = vmul.f32 %v2258_v16, %v2258_v16  ;;  %v4214_v33 = vsub.f32 %v2235_v49, %v2252_v8 }
 0x29d   :  { %v2278_v55 = vadd.f32 %v2277_v9, %v2267_v0  ;;  %v2271_v50 = vmul.f32 %v4198_v14, %v4198_v14  ;;  %v2272_v60 = vmul.f32 %v4200_v5, %v4200_v5  ;;  %v2273_v12 = vmul.f32 %v4202_v18, %v4202_v18 }
 0x29e   :  { %v2274_v21 = vmul.f32 %v4204_v6, %v4204_v6  ;;  %v2275_v24 = vmul.f32 %v4210_v3, %v4210_v3  ;;  %v2276_v26 = vmul.f32 %v4214_v33, %v4214_v33  ;;  %v2330_v49 = vrot.slane %v2309_v37, %v4174_v27 }
 0x29f   :  { %v2279_v19 = vadd.f32 %v2278_v55, %v2268_v51  ;;  %v2284_v15 = vadd.f32 %v2272_v60, %v2271_v50 }
 0x2a1   :  { %v2280_v20 = vadd.f32 %v2279_v19, %v2269_v17  ;;  %v2285_v22 = vadd.f32 %v2284_v15, %v2273_v12 }
 0x2a3   :  { %v2281_v23 = vadd.f32 %v2280_v20, %v2270_v61  ;;  %v2286_v25 = vadd.f32 %v2285_v22, %v2274_v21 }
 0x2a5   :  { %2282 = vadd.xlane.f32.xlu1 %v2281_v23  ;;  %v2287_v28 = vadd.f32 %v2286_v25, %v2275_v24 }
 0x2a7   :  { %v2288_v29 = vadd.f32 %v2287_v28, %v2276_v26 }
 0x2a9   :  { %2289 = vadd.xlane.f32.xlu1 %v2288_v29 }
 0x32e   :  { %v2283_v30 = vpop.xlane.xlu1 %2282 }
 0x32f   :  { %v2291_v31 = vmul.f32 0.0013020834, %v2283_v30 }
 0x331   :  { %v2293_v32 = vadd.f32 1e-12, %v2291_v31 }
 0x332   :  { %v2290_v34 = vpop.xlane.xlu1 %2289 }
 0x333   :  { %3190 = vrsqrt.f32 %v2293_v32  ;;  %v2292_v35 = vmul.f32 0.0013020834, %v2290_v34 }
 0x335   :  { %v2294_v36 = vadd.f32 1e-12, %v2292_v35 }
 0x337   :  { %3192 = vrsqrt.f32 %v2294_v36 }
 0x340   :  { %v3191_v46 = vpop.eup %3190 }
 0x341   :  { %v2297_v54 = vmul.f32 %v3191_v46, %v2253_v58  ;;  %v2298_v56 = vmul.f32 %v3191_v46, %v2254_v59  ;;  %v2299_v7 = vmul.f32 %v3191_v46, %v2255_v62  ;;  %v2300_v57 = vmul.f32 %v3191_v46, %v2256_v1 }
 0x342   :  { %v2301_v8 = vmul.f32 %v3191_v46, %v2257_v53  ;;  %v2302_v10 = vmul.f32 %v3191_v46, %v2258_v16 }
 0x343   :  { %v2341_v11 = vmul.f32 %v2314_v40, %v2297_v54  ;;  %v2342_v0 = vmul.f32 %v2318_v42, %v2298_v56  ;;  %v2343_v9 = vmul.f32 %v2322_v44, %v2299_v7  ;;  %v2344_v4 = vmul.f32 %v2326_v45, %v2300_v57 }
 0x344   :  { %v3193_v51 = vpop.eup %3192  ;;  %v2345_v13 = vmul.f32 %v2330_v49, %v2301_v8  ;;  %v2346_v55 = vmul.f32 %v2334_v52, %v2302_v10 }
 0x345   :  { %v2385_v50 = vadd.f32 %v2358_v41, %v2341_v11  ;;  %v2386_v60 = vadd.f32 %v2362_v43, %v2342_v0  ;;  %v2387_v17 = vadd.f32 %v2366_v47, %v2343_v9  ;;  %v2388_v58 = vadd.f32 %v2370_v48, %v2344_v4 }
 0x346   :  { %v2389_v59 = vadd.f32 %v2374_v63, %v2345_v13  ;;  %v2390_v62 = vadd.f32 %v2378_v2, %v2346_v55  ;;  %v2303_v1 = vmul.f32 %v3193_v51, %v4198_v14  ;;  %v2304_v27 = vmul.f32 %v3193_v51, %v4200_v5 }
 0x347   :  { %v2743_v38 = vpack.c.bf16 %v2386_v60, %v2385_v50  ;;  %v2744_v53 = vpack.c.bf16 %v2388_v58, %v2387_v17  ;;  %v2305_v16 = vmul.f32 %v3193_v51, %v4202_v18  ;;  %v2306_v19 = vmul.f32 %v3193_v51, %v4204_v6 }
 0x348   :  { %v2745_v12 = vpack.c.bf16 %v2390_v62, %v2389_v59  ;;  %v2307_v15 = vmul.f32 %v3193_v51, %v4210_v3  ;;  %v2308_v61 = vmul.f32 %v3193_v51, %v4214_v33  ;;  %v2347_v20 = vmul.f32 %v2314_v40, %v2303_v1 }
 0x349   :  { %2433 = vst [vmem:[%s4270_s6] sm:$0xff] %v2743_v38  ;;  %2434 = vst [vmem:[%s4270_s6 + $0x8] sm:$0xff] %v2744_v53  ;;  %v2348_v14 = vmul.f32 %v2318_v42, %v2304_v27  ;;  %v2349_v5 = vmul.f32 %v2322_v44, %v2305_v16  ;;  %v2350_v21 = vmul.f32 %v2326_v45, %v2306_v19 }
 0x34a   :  { %2435 = vst [vmem:[%s4270_s6 + $0x10] sm:$0xff] %v2745_v12  ;;  %v2351_v18 = vmul.f32 %v2330_v49, %v2307_v15  ;;  %v2352_v6 = vmul.f32 %v2334_v52, %v2308_v61  ;;  %v2391_v3 = vadd.f32 %v2358_v41, %v2347_v20 }
 0x34b   :  { %v2392_v33 = vadd.f32 %v2362_v43, %v2348_v14  ;;  %v2393_v22 = vadd.f32 %v2366_v47, %v2349_v5  ;;  %v2394_v23 = vadd.f32 %v2370_v48, %v2350_v21 }
 0x34c   :  { %v2395_v24 = vadd.f32 %v2374_v63, %v2351_v18  ;;  %v2396_v25 = vadd.f32 %v2378_v2, %v2352_v6 }
 0x34d   :  { %v2746_v26 = vpack.c.bf16 %v2392_v33, %v2391_v3  ;;  %v2747_v28 = vpack.c.bf16 %v2394_v23, %v2393_v22 }
 0x34e   :  { %v2748_v29 = vpack.c.bf16 %v2396_v25, %v2395_v24 }
 0x34f   :  { %2436 = vst [vmem:[%s4270_s6 + $0x18] sm:$0xff] %v2746_v26  ;;  %2437 = vst [vmem:[%s4270_s6 + $0x20] sm:$0xff] %v2747_v28 }
 0x350   :  { %2438 = vst [vmem:[%s4270_s6 + $0x28] sm:$0xff] %v2748_v29 }

// kernel: bert_classifier_forward.16
= control target key start
LH: loop header
LB: loop body
LE: loop exit
PB: predicated region body
PF: predicated region fallthrough
CT: control target
= control target key end

     0   :  { %s1973_s12 = smov 0   ;;  %s1975_s13 = smov 0   ;;  %s2365_s0 = inlined_call_operand.vmem [shape: bf16[16,768], index: 0, kind: input, shape index: {}]   ;;  %s2366_s1 = inlined_call_operand.vmem [shape: bf16[768,1536], index: 1, kind: input, shape index: {}]   ;;  %s2367_s2 = inlined_call_operand.vmem [shape: f32[1,1536], index: 2, kind: input, shape index: {}]   ;;  %s2368_s3 = inlined_call_operand.vmem [shape: bf16[16,1536], index: 3, kind: output, shape index: {}]  }
   0x1   :  { %s1977_s14 = smov 0   ;;  %s1979_s15 = smov 0  }
   0x2   :  { %s1981_s16 = smov 0  }
   0x3 LB: > { %s25_s17 = sadd.s32 1, %s1947_s15  ;;  %s1587_s18 = sadd.s32 4294967295, %s1951_s16   ;;  %s1951_s16 = sphi %s1981_s16, %s13_s16   ;;  %s1947_s15 = sphi %s1979_s15, %s2373_s15   ;;  %s1943_s14 = sphi %s1977_s14, %s2372_s14   ;;  %s1939_s13 = sphi %s1975_s13, %s2371_s13   ;;  %s1935_s12 = sphi %s1973_s12, %s2370_s12  }
   0x4   : > { %p27_p0 = scmp.ge.s32.totalorder %s25_s17, 6  ;;  %p65_p1 = scmp.ne.s32.totalorder %s1939_s13, %s1935_s12 }
   0x5   : > { %p66_p2 = scmp.eq.s32.totalorder %s1951_s16, 0  ;;  %p123_p4 = scmp.eq.s32.totalorder %s1587_s18, 5 }
   0x6   : > { %s2375_s17 = smov (%p27_p0, %s25_s17), 0  ;;  %s58_s20 = sadd.s32 1, %s1939_s13 }
   0x7   : > { %p67_p3 = por %p66_p2, %p65_p1  ;;  %s55_s19 = ssub.s32 %s1947_s15, %s2375_s17 }
   0x8   : > { %p56_p5 = scmp.eq.s32.totalorder %s55_s19, 0  ;;  %p2008_p6 = por %p123_p4, %p65_p1 }
   0x9   : > { %p1591_p7 = scmp.ge.s32.totalorder %s1951_s16, 6 }
   0xa   : > { %s2013_s22 = scalar_select %p56_p5, %s1939_s13, %s58_s20  }
   0xb   : > { %155 = sbr.rel (%p1591_p7) target bundleno = 68 (0x44), region = 20 }
  0x10   : > { %158 = sbr.rel (!%p67_p3) target bundleno = 68 (0x44), region = 24  ;;  %s160_s23 = sand.u32 (%p67_p3), 1, %s1939_s13  }
  0x11   : > { %s1706_s24 = sshll.u32 (%p67_p3), %s1947_s15, 3  ;;  %s1710_s25 = smul.u32 (%p67_p3), 768, %s160_s23 }
  0x12   : > { %s2021_s28 = scalar_lea.vmem (%p67_p3), %s2366_s1, %s1706_s24 }
  0x13   : > { %v384_v0 = vld [vmem:[%s2021_s28] sm:$0xff] (%p67_p3)  ;;  %v386_v1 = vld [vmem:[%s2021_s28 + $0x30] sm:$0xff] (%p67_p3)  ;;  %s2029_s29 = scalar_lea.vmem (%p67_p3), [#allocation2], %s1710_s25 }
  0x14   : > { %v388_v2 = vld [vmem:[%s2021_s28 + $0x60] sm:$0xff] (%p67_p3)  ;;  %v390_v3 = vld [vmem:[%s2021_s28 + $0x90] sm:$0xff] (%p67_p3)  ;;  %385 = vst [vmem:[%s2029_s29] sm:$0xff] (%p67_p3), %v384_v0  ;;  %387 = vst [vmem:[%s2029_s29 + $0x8] sm:$0xff] (%p67_p3), %v386_v1 }
  0x15   : > { %v392_v4 = vld [vmem:[%s2021_s28 + $0xc0] sm:$0xff]  ;;  %v394_v5 = vld [vmem:[%s2021_s28 + $0xf0] sm:$0xff]  ;;  %389 = vst [vmem:[%s2029_s29 + $0x10] sm:$0xff] %v388_v2  ;;  %391 = vst [vmem:[%s2029_s29 + $0x18] sm:$0xff] %v390_v3 }
  0x16   : > { %393 = vst [vmem:[%s2029_s29 + $0x20] sm:$0xff] %v392_v4  ;;  %395 = vst [vmem:[%s2029_s29 + $0x28] sm:$0xff] %v394_v5  ;;  %v396_v6 = vld [vmem:[%s2021_s28 + $0x120] sm:$0xff]  ;;  %v398_v7 = vld [vmem:[%s2021_s28 + $0x150] sm:$0xff] }
  0x17   : > { %v400_v8 = vld [vmem:[%s2021_s28 + $0x180] sm:$0xff]  ;;  %397 = vst [vmem:[%s2029_s29 + $0x30] sm:$0xff] %v396_v6  ;;  %399 = vst [vmem:[%s2029_s29 + $0x38] sm:$0xff] %v398_v7  ;;  %v402_v9 = vld [vmem:[%s2021_s28 + $0x1b0] sm:$0xff] }
  0x18   : > { %401 = vst [vmem:[%s2029_s29 + $0x40] sm:$0xff] %v400_v8  ;;  %v404_v10 = vld [vmem:[%s2021_s28 + $0x1e0] sm:$0xff]  ;;  %v406_v11 = vld [vmem:[%s2021_s28 + $0x210] sm:$0xff]  ;;  %403 = vst [vmem:[%s2029_s29 + $0x48] sm:$0xff] %v402_v9 }
  0x19   : > { %405 = vst [vmem:[%s2029_s29 + $0x50] sm:$0xff] %v404_v10  ;;  %407 = vst [vmem:[%s2029_s29 + $0x58] sm:$0xff] %v406_v11  ;;  %v408_v12 = vld [vmem:[%s2021_s28 + $0x240] sm:$0xff]  ;;  %v410_v13 = vld [vmem:[%s2021_s28 + $0x270] sm:$0xff] }
  0x1a   : > { %v412_v14 = vld [vmem:[%s2021_s28 + $0x2a0] sm:$0xff]  ;;  %409 = vst [vmem:[%s2029_s29 + $0x60] sm:$0xff] %v408_v12  ;;  %411 = vst [vmem:[%s2029_s29 + $0x68] sm:$0xff] %v410_v13  ;;  %v414_v15 = vld [vmem:[%s2021_s28 + $0x2d0] sm:$0xff] }
  0x1b   : > { %413 = vst [vmem:[%s2029_s29 + $0x70] sm:$0xff] %v412_v14  ;;  %v416_v16 = vld [vmem:[%s2021_s28 + $0x300] sm:$0xff]  ;;  %v418_v17 = vld [vmem:[%s2021_s28 + $0x330] sm:$0xff]  ;;  %415 = vst [vmem:[%s2029_s29 + $0x78] sm:$0xff] %v414_v15 }
  0x1c   : > { %417 = vst [vmem:[%s2029_s29 + $0x80] sm:$0xff] %v416_v16  ;;  %419 = vst [vmem:[%s2029_s29 + $0x88] sm:$0xff] %v418_v17  ;;  %v420_v18 = vld [vmem:[%s2021_s28 + $0x360] sm:$0xff]  ;;  %v422_v19 = vld [vmem:[%s2021_s28 + $0x390] sm:$0xff] }
  0x1d   : > { %v424_v20 = vld [vmem:[%s2021_s28 + $0x3c0] sm:$0xff]  ;;  %421 = vst [vmem:[%s2029_s29 + $0x90] sm:$0xff] %v420_v18  ;;  %423 = vst [vmem:[%s2029_s29 + $0x98] sm:$0xff] %v422_v19  ;;  %v426_v21 = vld [vmem:[%s2021_s28 + $0x3f0] sm:$0xff] }
  0x1e   : > { %425 = vst [vmem:[%s2029_s29 + $0xa0] sm:$0xff] %v424_v20  ;;  %v428_v22 = vld [vmem:[%s2021_s28 + $0x420] sm:$0xff]  ;;  %v430_v23 = vld [vmem:[%s2021_s28 + $0x450] sm:$0xff]  ;;  %427 = vst [vmem:[%s2029_s29 + $0xa8] sm:$0xff] %v426_v21 }
  0x1f   : > { %429 = vst [vmem:[%s2029_s29 + $0xb0] sm:$0xff] %v428_v22  ;;  %431 = vst [vmem:[%s2029_s29 + $0xb8] sm:$0xff] %v430_v23  ;;  %v432_v24 = vld [vmem:[%s2021_s28 + $0x480] sm:$0xff]  ;;  %v434_v25 = vld [vmem:[%s2021_s28 + $0x4b0] sm:$0xff] }
  0x20   : > { %v436_v26 = vld [vmem:[%s2021_s28 + $0x4e0] sm:$0xff]  ;;  %433 = vst [vmem:[%s2029_s29 + $0xc0] sm:$0xff] %v432_v24  ;;  %435 = vst [vmem:[%s2029_s29 + $0xc8] sm:$0xff] %v434_v25  ;;  %v438_v27 = vld [vmem:[%s2021_s28 + $0x510] sm:$0xff] }
  0x21   : > { %437 = vst [vmem:[%s2029_s29 + $0xd0] sm:$0xff] %v436_v26  ;;  %v440_v28 = vld [vmem:[%s2021_s28 + $0x540] sm:$0xff]  ;;  %v442_v29 = vld [vmem:[%s2021_s28 + $0x570] sm:$0xff]  ;;  %439 = vst [vmem:[%s2029_s29 + $0xd8] sm:$0xff] %v438_v27 }
  0x22   : > { %441 = vst [vmem:[%s2029_s29 + $0xe0] sm:$0xff] %v440_v28  ;;  %443 = vst [vmem:[%s2029_s29 + $0xe8] sm:$0xff] %v442_v29  ;;  %v444_v30 = vld [vmem:[%s2021_s28 + $0x5a0] sm:$0xff]  ;;  %v446_v31 = vld [vmem:[%s2021_s28 + $0x5d0] sm:$0xff] }
  0x23   : > { %v448_v32 = vld [vmem:[%s2021_s28 + $0x600] sm:$0xff]  ;;  %445 = vst [vmem:[%s2029_s29 + $0xf0] sm:$0xff] %v444_v30  ;;  %447 = vst [vmem:[%s2029_s29 + $0xf8] sm:$0xff] %v446_v31  ;;  %v450_v33 = vld [vmem:[%s2021_s28 + $0x630] sm:$0xff] }
  0x24   : > { %449 = vst [vmem:[%s2029_s29 + $0x100] sm:$0xff] %v448_v32  ;;  %v452_v34 = vld [vmem:[%s2021_s28 + $0x660] sm:$0xff]  ;;  %v454_v35 = vld [vmem:[%s2021_s28 + $0x690] sm:$0xff]  ;;  %451 = vst [vmem:[%s2029_s29 + $0x108] sm:$0xff] %v450_v33 }
  0x25   : > { %453 = vst [vmem:[%s2029_s29 + $0x110] sm:$0xff] %v452_v34  ;;  %455 = vst [vmem:[%s2029_s29 + $0x118] sm:$0xff] %v454_v35  ;;  %v456_v36 = vld [vmem:[%s2021_s28 + $0x6c0] sm:$0xff]  ;;  %v458_v37 = vld [vmem:[%s2021_s28 + $0x6f0] sm:$0xff] }
  0x26   : > { %v460_v38 = vld [vmem:[%s2021_s28 + $0x720] sm:$0xff]  ;;  %457 = vst [vmem:[%s2029_s29 + $0x120] sm:$0xff] %v456_v36  ;;  %459 = vst [vmem:[%s2029_s29 + $0x128] sm:$0xff] %v458_v37  ;;  %v462_v39 = vld [vmem:[%s2021_s28 + $0x750] sm:$0xff] }
  0x27   : > { %461 = vst [vmem:[%s2029_s29 + $0x130] sm:$0xff] %v460_v38  ;;  %v464_v40 = vld [vmem:[%s2021_s28 + $0x780] sm:$0xff]  ;;  %v466_v41 = vld [vmem:[%s2021_s28 + $0x7b0] sm:$0xff]  ;;  %463 = vst [vmem:[%s2029_s29 + $0x138] sm:$0xff] %v462_v39 }
  0x28   : > { %465 = vst [vmem:[%s2029_s29 + $0x140] sm:$0xff] %v464_v40  ;;  %467 = vst [vmem:[%s2029_s29 + $0x148] sm:$0xff] %v466_v41  ;;  %v468_v42 = vld [vmem:[%s2021_s28 + $0x7e0] sm:$0xff]  ;;  %v470_v43 = vld [vmem:[%s2021_s28 + $0x810] sm:$0xff] }
  0x29   : > { %v472_v44 = vld [vmem:[%s2021_s28 + $0x840] sm:$0xff]  ;;  %469 = vst [vmem:[%s2029_s29 + $0x150] sm:$0xff] %v468_v42  ;;  %471 = vst [vmem:[%s2029_s29 + $0x158] sm:$0xff] %v470_v43  ;;  %v474_v45 = vld [vmem:[%s2021_s28 + $0x870] sm:$0xff] }
  0x2a   : > { %473 = vst [vmem:[%s2029_s29 + $0x160] sm:$0xff] %v472_v44  ;;  %v476_v46 = vld [vmem:[%s2021_s28 + $0x8a0] sm:$0xff]  ;;  %v478_v47 = vld [vmem:[%s2021_s28 + $0x8d0] sm:$0xff]  ;;  %475 = vst [vmem:[%s2029_s29 + $0x168] sm:$0xff] %v474_v45 }
  0x2b   : > { %477 = vst [vmem:[%s2029_s29 + $0x170] sm:$0xff] %v476_v46  ;;  %479 = vst [vmem:[%s2029_s29 + $0x178] sm:$0xff] %v478_v47  ;;  %v480_v48 = vld [vmem:[%s2021_s28 + $0x900] sm:$0xff]  ;;  %v482_v49 = vld [vmem:[%s2021_s28 + $0x930] sm:$0xff] }
  0x2c   : > { %v484_v50 = vld [vmem:[%s2021_s28 + $0x960] sm:$0xff]  ;;  %481 = vst [vmem:[%s2029_s29 + $0x180] sm:$0xff] %v480_v48  ;;  %483 = vst [vmem:[%s2029_s29 + $0x188] sm:$0xff] %v482_v49  ;;  %v486_v51 = vld [vmem:[%s2021_s28 + $0x990] sm:$0xff] }
  0x2d   : > { %485 = vst [vmem:[%s2029_s29 + $0x190] sm:$0xff] %v484_v50  ;;  %v488_v52 = vld [vmem:[%s2021_s28 + $0x9c0] sm:$0xff]  ;;  %v490_v53 = vld [vmem:[%s2021_s28 + $0x9f0] sm:$0xff]  ;;  %487 = vst [vmem:[%s2029_s29 + $0x198] sm:$0xff] %v486_v51 }
  0x2e   : > { %489 = vst [vmem:[%s2029_s29 + $0x1a0] sm:$0xff] %v488_v52  ;;  %491 = vst [vmem:[%s2029_s29 + $0x1a8] sm:$0xff] %v490_v53  ;;  %v492_v54 = vld [vmem:[%s2021_s28 + $0xa20] sm:$0xff]  ;;  %v494_v55 = vld [vmem:[%s2021_s28 + $0xa50] sm:$0xff] }
  0x2f   : > { %v496_v56 = vld [vmem:[%s2021_s28 + $0xa80] sm:$0xff]  ;;  %493 = vst [vmem:[%s2029_s29 + $0x1b0] sm:$0xff] %v492_v54  ;;  %495 = vst [vmem:[%s2029_s29 + $0x1b8] sm:$0xff] %v494_v55  ;;  %v498_v57 = vld [vmem:[%s2021_s28 + $0xab0] sm:$0xff] }
  0x30   : > { %497 = vst [vmem:[%s2029_s29 + $0x1c0] sm:$0xff] %v496_v56  ;;  %v500_v58 = vld [vmem:[%s2021_s28 + $0xae0] sm:$0xff]  ;;  %v502_v59 = vld [vmem:[%s2021_s28 + $0xb10] sm:$0xff]  ;;  %499 = vst [vmem:[%s2029_s29 + $0x1c8] sm:$0xff] %v498_v57 }
  0x31   : > { %501 = vst [vmem:[%s2029_s29 + $0x1d0] sm:$0xff] %v500_v58  ;;  %503 = vst [vmem:[%s2029_s29 + $0x1d8] sm:$0xff] %v502_v59  ;;  %v504_v60 = vld [vmem:[%s2021_s28 + $0xb40] sm:$0xff]  ;;  %v506_v61 = vld [vmem:[%s2021_s28 + $0xb70] sm:$0xff] }
  0x32   : > { %v508_v62 = vld [vmem:[%s2021_s28 + $0xba0] sm:$0xff]  ;;  %505 = vst [vmem:[%s2029_s29 + $0x1e0] sm:$0xff] %v504_v60  ;;  %507 = vst [vmem:[%s2029_s29 + $0x1e8] sm:$0xff] %v506_v61  ;;  %v510_v63 = vld [vmem:[%s2021_s28 + $0xbd0] sm:$0xff] }
  0x33   : > { %509 = vst [vmem:[%s2029_s29 + $0x1f0] sm:$0xff] %v508_v62  ;;  %v512_v0 = vld [vmem:[%s2021_s28 + $0xc00] sm:$0xff]  ;;  %v514_v1 = vld [vmem:[%s2021_s28 + $0xc30] sm:$0xff]  ;;  %511 = vst [vmem:[%s2029_s29 + $0x1f8] sm:$0xff] %v510_v63 }
  0x34   : > { %513 = vst [vmem:[%s2029_s29 + $0x200] sm:$0xff] %v512_v0  ;;  %515 = vst [vmem:[%s2029_s29 + $0x208] sm:$0xff] %v514_v1  ;;  %v516_v2 = vld [vmem:[%s2021_s28 + $0xc60] sm:$0xff]  ;;  %v518_v3 = vld [vmem:[%s2021_s28 + $0xc90] sm:$0xff] }
  0x35   : > { %v520_v4 = vld [vmem:[%s2021_s28 + $0xcc0] sm:$0xff]  ;;  %517 = vst [vmem:[%s2029_s29 + $0x210] sm:$0xff] %v516_v2  ;;  %519 = vst [vmem:[%s2029_s29 + $0x218] sm:$0xff] %v518_v3  ;;  %v522_v5 = vld [vmem:[%s2021_s28 + $0xcf0] sm:$0xff] }
  0x36   : > { %521 = vst [vmem:[%s2029_s29 + $0x220] sm:$0xff] %v520_v4  ;;  %v524_v6 = vld [vmem:[%s2021_s28 + $0xd20] sm:$0xff]  ;;  %v526_v7 = vld [vmem:[%s2021_s28 + $0xd50] sm:$0xff]  ;;  %523 = vst [vmem:[%s2029_s29 + $0x228] sm:$0xff] %v522_v5 }
  0x37   : > { %525 = vst [vmem:[%s2029_s29 + $0x230] sm:$0xff] %v524_v6  ;;  %527 = vst [vmem:[%s2029_s29 + $0x238] sm:$0xff] %v526_v7  ;;  %v528_v8 = vld [vmem:[%s2021_s28 + $0xd80] sm:$0xff]  ;;  %v530_v9 = vld [vmem:[%s2021_s28 + $0xdb0] sm:$0xff] }
  0x38   : > { %v532_v10 = vld [vmem:[%s2021_s28 + $0xde0] sm:$0xff]  ;;  %529 = vst [vmem:[%s2029_s29 + $0x240] sm:$0xff] %v528_v8  ;;  %531 = vst [vmem:[%s2029_s29 + $0x248] sm:$0xff] %v530_v9  ;;  %v534_v11 = vld [vmem:[%s2021_s28 + $0xe10] sm:$0xff] }
  0x39   : > { %533 = vst [vmem:[%s2029_s29 + $0x250] sm:$0xff] %v532_v10  ;;  %v536_v12 = vld [vmem:[%s2021_s28 + $0xe40] sm:$0xff]  ;;  %v538_v13 = vld [vmem:[%s2021_s28 + $0xe70] sm:$0xff]  ;;  %535 = vst [vmem:[%s2029_s29 + $0x258] sm:$0xff] %v534_v11 }
  0x3a   : > { %537 = vst [vmem:[%s2029_s29 + $0x260] sm:$0xff] %v536_v12  ;;  %539 = vst [vmem:[%s2029_s29 + $0x268] sm:$0xff] %v538_v13  ;;  %v540_v14 = vld [vmem:[%s2021_s28 + $0xea0] sm:$0xff]  ;;  %v542_v15 = vld [vmem:[%s2021_s28 + $0xed0] sm:$0xff] }
  0x3b   : > { %v544_v16 = vld [vmem:[%s2021_s28 + $0xf00] sm:$0xff]  ;;  %541 = vst [vmem:[%s2029_s29 + $0x270] sm:$0xff] %v540_v14  ;;  %543 = vst [vmem:[%s2029_s29 + $0x278] sm:$0xff] %v542_v15  ;;  %v546_v17 = vld [vmem:[%s2021_s28 + $0xf30] sm:$0xff] }
  0x3c   : > { %545 = vst [vmem:[%s2029_s29 + $0x280] sm:$0xff] %v544_v16  ;;  %v548_v18 = vld [vmem:[%s2021_s28 + $0xf60] sm:$0xff]  ;;  %v550_v19 = vld [vmem:[%s2021_s28 + $0xf90] sm:$0xff]  ;;  %547 = vst [vmem:[%s2029_s29 + $0x288] sm:$0xff] %v546_v17 }
  0x3d   : > { %549 = vst [vmem:[%s2029_s29 + $0x290] sm:$0xff] %v548_v18  ;;  %551 = vst [vmem:[%s2029_s29 + $0x298] sm:$0xff] %v550_v19  ;;  %v552_v20 = vld [vmem:[%s2021_s28 + $0xfc0] sm:$0xff]  ;;  %v554_v21 = vld [vmem:[%s2021_s28 + $0xff0] sm:$0xff] }
  0x3e   : > { %v556_v22 = vld [vmem:[%s2021_s28 + $0x1020] sm:$0xff]  ;;  %553 = vst [vmem:[%s2029_s29 + $0x2a0] sm:$0xff] %v552_v20  ;;  %555 = vst [vmem:[%s2029_s29 + $0x2a8] sm:$0xff] %v554_v21  ;;  %v558_v23 = vld [vmem:[%s2021_s28 + $0x1050] sm:$0xff] }
  0x3f   : > { %557 = vst [vmem:[%s2029_s29 + $0x2b0] sm:$0xff] %v556_v22  ;;  %v560_v24 = vld [vmem:[%s2021_s28 + $0x1080] sm:$0xff]  ;;  %v562_v25 = vld [vmem:[%s2021_s28 + $0x10b0] sm:$0xff]  ;;  %559 = vst [vmem:[%s2029_s29 + $0x2b8] sm:$0xff] %v558_v23 }
  0x40   : > { %561 = vst [vmem:[%s2029_s29 + $0x2c0] sm:$0xff] %v560_v24  ;;  %563 = vst [vmem:[%s2029_s29 + $0x2c8] sm:$0xff] %v562_v25  ;;  %v564_v26 = vld [vmem:[%s2021_s28 + $0x10e0] sm:$0xff]  ;;  %v566_v27 = vld [vmem:[%s2021_s28 + $0x1110] sm:$0xff] }
  0x41   : > { %v568_v28 = vld [vmem:[%s2021_s28 + $0x1140] sm:$0xff]  ;;  %565 = vst [vmem:[%s2029_s29 + $0x2d0] sm:$0xff] %v564_v26  ;;  %567 = vst [vmem:[%s2029_s29 + $0x2d8] sm:$0xff] %v566_v27  ;;  %v570_v29 = vld [vmem:[%s2021_s28 + $0x1170] sm:$0xff] }
  0x42   : > { %569 = vst [vmem:[%s2029_s29 + $0x2e0] sm:$0xff] %v568_v28  ;;  %v572_v30 = vld [vmem:[%s2021_s28 + $0x11a0] sm:$0xff]  ;;  %v574_v31 = vld [vmem:[%s2021_s28 + $0x11d0] sm:$0xff]  ;;  %571 = vst [vmem:[%s2029_s29 + $0x2e8] sm:$0xff] %v570_v29 }
  0x43   : > { %573 = vst [vmem:[%s2029_s29 + $0x2f0] sm:$0xff] %v572_v30  ;;  %575 = vst [vmem:[%s2029_s29 + $0x2f8] sm:$0xff] %v574_v31 }
  0x44 PF: > { %p1594_p8 = scmp.ge.s32.totalorder %s1951_s16, 1  ;;  %p588_p9 = scmp.lt.s32.totalorder %s1951_s16, 7 }
  0x46   : > { %p589_p10 = pnand %p1594_p8, %p588_p9 }
  0x47   : > { %s595_s30 = sand.u32 (!%p589_p10), 1, %s1935_s12   ;;  %s1596_s26 = sshll.u32 (!%p589_p10), %s1943_s14, 1 }
  0x48   : > { %592 = sbr.rel (%p589_p10) target bundleno = 449 (0x1c1), region = 66  ;;  %p636_p11 = scmp.lt.s32.totalorder (!%p589_p10), %s1596_s26, 11 }
  0x49   : > { %s1711_s4 = smul.u32 (!%p589_p10), 768, %s595_s30 }
  0x4b   : > { %s2228_s9 = scalar_lea.vmem (!%p589_p10), [#allocation2], %s1711_s4  ;;  %s1595_s4 = sshll.u32 (!%p589_p10), %s595_s30, 4 }
  0x4c   : > { %s626_s5 = scalar_lea.vmem (!%p589_p10), [#allocation3], %s1595_s4 }
  0x4d   : > { %v1849_v32 = vld [vmem:[%s2365_s0 + $0x4] ss:$24 sps:$4 sm:$0xff]   ;;  %v1754_v35 = vld [vmem:[%s2228_s9 + $0x70] ss:$8 sps:$4 sm:$0xff]   ;;  %v1760_v39 = vld [vmem:[%s2228_s9 + $0x60] ss:$8 sps:$4 sm:$0xff]  }
  0x4e   : > { %v1856_v33 = vld [vmem:[%s2365_s0 + $0xc] ss:$24 sps:$4 sm:$0xff]   ;;  %1298 = vmatprep.mubr.bf16.mxu0 %v1849_v32  ;;  %v1752_v34 = vld [vmem:[%s2228_s9 + $0x74] ss:$8 sps:$4 sm:$0xff]   ;;  %v1757_v37 = vld [vmem:[%s2228_s9 + $0x170] ss:$8 sps:$4 sm:$0xff]  }
  0x4f   : > { %1341 = vmatprep.mubr.bf16.mxu1 %v1856_v33  ;;  %1266 = vmatprep.subr.bf16.mxu0 %v1752_v34  ;;  %v1755_v36 = vld [vmem:[%s2228_s9 + $0x174] ss:$8 sps:$4 sm:$0xff]   ;;  %v1758_v38 = vld [vmem:[%s2228_s9 + $0x64] ss:$8 sps:$4 sm:$0xff]   ;;  %v1763_v41 = vld [vmem:[%s2228_s9 + $0x160] ss:$8 sps:$4 sm:$0xff]  }
  0x50   : > { %1267 = vmatpush1.bf16.msra.mxu0 %v1754_v35  ;;  %1309 = vmatprep.subr.bf16.mxu1 %v1755_v36  ;;  %v1761_v40 = vld [vmem:[%s2228_s9 + $0x164] ss:$8 sps:$4 sm:$0xff]   ;;  %v1764_v42 = vld [vmem:[%s2228_s9 + $0x54] ss:$8 sps:$4 sm:$0xff]   ;;  %v1766_v43 = vld [vmem:[%s2228_s9 + $0x50] ss:$8 sps:$4 sm:$0xff]  }
  0x51   : > { %1310 = vmatpush1.bf16.msra.mxu1 %v1757_v37  ;;  %1268 = vmatprep.subr.bf16.mxu0 %v1758_v38  ;;  %v1767_v44 = vld [vmem:[%s2228_s9 + $0x154] ss:$8 sps:$4 sm:$0xff]   ;;  %v1770_v45 = vld [vmem:[%s2228_s9 + $0x44] ss:$8 sps:$4 sm:$0xff]   ;;  %v1769_v46 = vld [vmem:[%s2228_s9 + $0x150] ss:$8 sps:$4 sm:$0xff]  }
  0x52   : > { %1311 = vmatprep.subr.bf16.mxu1 %v1761_v40  ;;  %v1773_v47 = vld [vmem:[%s2228_s9 + $0x144] ss:$8 sps:$4 sm:$0xff]   ;;  %v1772_v48 = vld [vmem:[%s2228_s9 + $0x40] ss:$8 sps:$4 sm:$0xff]   ;;  %v1776_v49 = vld [vmem:[%s2228_s9 + $0x34] ss:$8 sps:$4 sm:$0xff]  }
  0x53   : > { %v1775_v50 = vld [vmem:[%s2228_s9 + $0x140] ss:$8 sps:$4 sm:$0xff]   ;;  %v1779_v51 = vld [vmem:[%s2228_s9 + $0x134] ss:$8 sps:$4 sm:$0xff]   ;;  %v1778_v52 = vld [vmem:[%s2228_s9 + $0x30] ss:$8 sps:$4 sm:$0xff]  }
  0x54   : > { %1269 = vmatpush1.bf16.msra.mxu0 %v1760_v39  ;;  %v1782_v53 = vld [vmem:[%s2228_s9 + $0x24] ss:$8 sps:$4 sm:$0xff]   ;;  %v1781_v54 = vld [vmem:[%s2228_s9 + $0x130] ss:$8 sps:$4 sm:$0xff]   ;;  %v1784_v56 = vld [vmem:[%s2228_s9 + $0x20] ss:$8 sps:$4 sm:$0xff]  }
  0x55   : > { %1270 = vmatprep.subr.bf16.mxu0 %v1764_v42  ;;  %1312 = vmatpush1.bf16.msra.mxu1 %v1763_v41  ;;  %v1785_v55 = vld [vmem:[%s2228_s9 + $0x124] ss:$8 sps:$4 sm:$0xff]   ;;  %v1788_v57 = vld [vmem:[%s2228_s9 + $0x14] ss:$8 sps:$4 sm:$0xff]   ;;  %v1787_v58 = vld [vmem:[%s2228_s9 + $0x120] ss:$8 sps:$4 sm:$0xff]  }
  0x56   : > { %1313 = vmatprep.subr.bf16.mxu1 %v1767_v44  ;;  %v1791_v59 = vld [vmem:[%s2228_s9 + $0x114] ss:$8 sps:$4 sm:$0xff]   ;;  %v1790_v60 = vld [vmem:[%s2228_s9 + $0x10] ss:$8 sps:$4 sm:$0xff]   ;;  %v1794_v61 = vld [vmem:[%s2228_s9 + $0x4] ss:$8 sps:$4 sm:$0xff]  }
  0x57   : > { %v1793_v62 = vld [vmem:[%s2228_s9 + $0x110] ss:$8 sps:$4 sm:$0xff]   ;;  %v1797_v63 = vld [vmem:[%s2228_s9 + $0x104] ss:$8 sps:$4 sm:$0xff]   ;;  %v1796_v0 = vld [vmem:[%s2228_s9] ss:$8 sps:$4 sm:$0xff]  }
  0x58   : > { %1271 = vmatpush1.bf16.msra.mxu0 %v1766_v43  ;;  %v1800_v1 = vld [vmem:[%s2228_s9 + $0xf4] ss:$8 sps:$4 sm:$0xff]   ;;  %v1799_v2 = vld [vmem:[%s2228_s9 + $0x100] ss:$8 sps:$4 sm:$0xff]   ;;  %v1802_v4 = vld [vmem:[%s2228_s9 + $0xf0] ss:$8 sps:$4 sm:$0xff]  }
  0x59   : > { %1272 = vmatprep.subr.bf16.mxu0 %v1770_v45  ;;  %1314 = vmatpush1.bf16.msra.mxu1 %v1769_v46  ;;  %v1803_v3 = vld [vmem:[%s2228_s9 + $0x1f4] ss:$8 sps:$4 sm:$0xff]   ;;  %v1806_v5 = vld [vmem:[%s2228_s9 + $0xe4] ss:$8 sps:$4 sm:$0xff]   ;;  %v1805_v6 = vld [vmem:[%s2228_s9 + $0x1f0] ss:$8 sps:$4 sm:$0xff]  }
  0x5a   : > { %1315 = vmatprep.subr.bf16.mxu1 %v1773_v47  ;;  %v1809_v7 = vld [vmem:[%s2228_s9 + $0x1e4] ss:$8 sps:$4 sm:$0xff]   ;;  %v1808_v8 = vld [vmem:[%s2228_s9 + $0xe0] ss:$8 sps:$4 sm:$0xff]   ;;  %v1812_v9 = vld [vmem:[%s2228_s9 + $0xd4] ss:$8 sps:$4 sm:$0xff]  }
  0x5b   : > { %v1811_v10 = vld [vmem:[%s2228_s9 + $0x1e0] ss:$8 sps:$4 sm:$0xff]   ;;  %v1815_v11 = vld [vmem:[%s2228_s9 + $0x1d4] ss:$8 sps:$4 sm:$0xff]   ;;  %v1814_v12 = vld [vmem:[%s2228_s9 + $0xd0] ss:$8 sps:$4 sm:$0xff]  }
  0x5c   : > { %1273 = vmatpush1.bf16.msra.mxu0 %v1772_v48  ;;  %v1818_v13 = vld [vmem:[%s2228_s9 + $0xc4] ss:$8 sps:$4 sm:$0xff]   ;;  %v1817_v14 = vld [vmem:[%s2228_s9 + $0x1d0] ss:$8 sps:$4 sm:$0xff]   ;;  %v1820_v16 = vld [vmem:[%s2228_s9 + $0xc0] ss:$8 sps:$4 sm:$0xff]  }
  0x5d   : > { %1274 = vmatprep.subr.bf16.mxu0 %v1776_v49  ;;  %1316 = vmatpush1.bf16.msra.mxu1 %v1775_v50  ;;  %v1821_v15 = vld [vmem:[%s2228_s9 + $0x1c4] ss:$8 sps:$4 sm:$0xff]   ;;  %v1824_v17 = vld [vmem:[%s2228_s9 + $0xb4] ss:$8 sps:$4 sm:$0xff]   ;;  %v1823_v18 = vld [vmem:[%s2228_s9 + $0x1c0] ss:$8 sps:$4 sm:$0xff]  }
  0x5e   : > { %1317 = vmatprep.subr.bf16.mxu1 %v1779_v51  ;;  %v1827_v19 = vld [vmem:[%s2228_s9 + $0x1b4] ss:$8 sps:$4 sm:$0xff]   ;;  %v1826_v20 = vld [vmem:[%s2228_s9 + $0xb0] ss:$8 sps:$4 sm:$0xff]   ;;  %v1830_v21 = vld [vmem:[%s2228_s9 + $0xa4] ss:$8 sps:$4 sm:$0xff]  }
  0x5f   : > { %v1829_v22 = vld [vmem:[%s2228_s9 + $0x1b0] ss:$8 sps:$4 sm:$0xff]   ;;  %v1833_v23 = vld [vmem:[%s2228_s9 + $0x1a4] ss:$8 sps:$4 sm:$0xff]   ;;  %v1832_v24 = vld [vmem:[%s2228_s9 + $0xa0] ss:$8 sps:$4 sm:$0xff]  }
  0x60   : > { %1275 = vmatpush1.bf16.msra.mxu0 %v1778_v52  ;;  %v1836_v25 = vld [vmem:[%s2228_s9 + $0x94] ss:$8 sps:$4 sm:$0xff]   ;;  %v1835_v26 = vld [vmem:[%s2228_s9 + $0x1a0] ss:$8 sps:$4 sm:$0xff]   ;;  %v1838_v28 = vld [vmem:[%s2228_s9 + $0x90] ss:$8 sps:$4 sm:$0xff]  }
  0x61   : > { %1276 = vmatprep.subr.bf16.mxu0 %v1782_v53  ;;  %1318 = vmatpush1.bf16.msra.mxu1 %v1781_v54  ;;  %v1839_v27 = vld [vmem:[%s2228_s9 + $0x194] ss:$8 sps:$4 sm:$0xff]   ;;  %v1842_v29 = vld [vmem:[%s2228_s9 + $0x84] ss:$8 sps:$4 sm:$0xff]   ;;  %v1841_v30 = vld [vmem:[%s2228_s9 + $0x190] ss:$8 sps:$4 sm:$0xff]  }
  0x62   : > { %1319 = vmatprep.subr.bf16.mxu1 %v1785_v55  ;;  %v1845_v31 = vld [vmem:[%s2228_s9 + $0x184] ss:$8 sps:$4 sm:$0xff]   ;;  %v1844_v32 = vld [vmem:[%s2228_s9 + $0x80] ss:$8 sps:$4 sm:$0xff]   ;;  %v1853_v33 = vld [vmem:[%s2228_s9 + $0x274] ss:$8 sps:$4 sm:$0xff]  }
  0x63   : > { %v1850_v34 = vld [vmem:[%s2228_s9 + $0x180] ss:$8 sps:$4 sm:$0xff]   ;;  %v1851_v36 = vld [vmem:[%s2228_s9 + $0x270] ss:$8 sps:$4 sm:$0xff]   ;;  %v1904_v37 = vld [vmem:[%s2365_s0 + $0x14] ss:$24 sps:$4 sm:$0xff]  }
  0x64   : > { %1277 = vmatpush1.bf16.msra.mxu0 %v1784_v56  ;;  %v1847_v35 = vld [vmem:[%s2365_s0] ss:$24 sps:$4 sm:$0xff]   ;;  %v1859_v39 = vld [vmem:[%s2228_s9 + $0x264] ss:$8 sps:$4 sm:$0xff]   ;;  %v1862_v41 = vld [vmem:[%s2228_s9 + $0x254] ss:$8 sps:$4 sm:$0xff]  }
  0x65   : > { %1278 = vmatprep.subr.bf16.mxu0 %v1788_v57  ;;  %1320 = vmatpush1.bf16.msra.mxu1 %v1787_v58  ;;  %v1854_v38 = vld [vmem:[%s2365_s0 + $0x8] ss:$24 sps:$4 sm:$0xff]   ;;  %v1860_v42 = vld [vmem:[%s2228_s9 + $0x250] ss:$8 sps:$4 sm:$0xff]   ;;  %v1865_v43 = vld [vmem:[%s2228_s9 + $0x244] ss:$8 sps:$4 sm:$0xff]  }
  0x66   : > { %1321 = vmatprep.subr.bf16.mxu1 %v1791_v59  ;;  %v1857_v40 = vld [vmem:[%s2228_s9 + $0x260] ss:$8 sps:$4 sm:$0xff]   ;;  %v1868_v45 = vld [vmem:[%s2228_s9 + $0x234] ss:$8 sps:$4 sm:$0xff]   ;;  %v1866_v46 = vld [vmem:[%s2228_s9 + $0x230] ss:$8 sps:$4 sm:$0xff]  }
  0x67   : > { %v1863_v44 = vld [vmem:[%s2228_s9 + $0x240] ss:$8 sps:$4 sm:$0xff]   ;;  %v1871_v47 = vld [vmem:[%s2228_s9 + $0x224] ss:$8 sps:$4 sm:$0xff]   ;;  %v1874_v49 = vld [vmem:[%s2228_s9 + $0x214] ss:$8 sps:$4 sm:$0xff]  }
  0x68   : > { %1279 = vmatpush1.bf16.msra.mxu0 %v1790_v60  ;;  %v1869_v48 = vld [vmem:[%s2228_s9 + $0x220] ss:$8 sps:$4 sm:$0xff]   ;;  %v1872_v50 = vld [vmem:[%s2228_s9 + $0x210] ss:$8 sps:$4 sm:$0xff]   ;;  %v1877_v51 = vld [vmem:[%s2228_s9 + $0x204] ss:$8 sps:$4 sm:$0xff]  }
  0x69   : > { %1280 = vmatprep.subr.bf16.mxu0 %v1794_v61  ;;  %1322 = vmatpush1.bf16.msra.mxu1 %v1793_v62  ;;  %v1875_v52 = vld [vmem:[%s2228_s9 + $0x200] ss:$8 sps:$4 sm:$0xff]   ;;  %v1880_v53 = vld [vmem:[%s2228_s9 + $0x2f4] ss:$8 sps:$4 sm:$0xff]   ;;  %v1878_v54 = vld [vmem:[%s2228_s9 + $0x2f0] ss:$8 sps:$4 sm:$0xff]  }
  0x6a   : > { %1323 = vmatprep.subr.bf16.mxu1 %v1797_v63  ;;  %v1883_v55 = vld [vmem:[%s2228_s9 + $0x2e4] ss:$8 sps:$4 sm:$0xff]   ;;  %v1881_v56 = vld [vmem:[%s2228_s9 + $0x2e0] ss:$8 sps:$4 sm:$0xff]   ;;  %v1886_v57 = vld [vmem:[%s2228_s9 + $0x2d4] ss:$8 sps:$4 sm:$0xff]  }
  0x6b   : > { %v1884_v58 = vld [vmem:[%s2228_s9 + $0x2d0] ss:$8 sps:$4 sm:$0xff]   ;;  %v1889_v59 = vld [vmem:[%s2228_s9 + $0x2c4] ss:$8 sps:$4 sm:$0xff]   ;;  %v1887_v60 = vld [vmem:[%s2228_s9 + $0x2c0] ss:$8 sps:$4 sm:$0xff]  }
  0x6c   : > { %1281 = vmatpush1.bf16.msra.mxu0 %v1796_v0  ;;  %v1892_v61 = vld [vmem:[%s2228_s9 + $0x2b4] ss:$8 sps:$4 sm:$0xff]   ;;  %v1890_v62 = vld [vmem:[%s2228_s9 + $0x2b0] ss:$8 sps:$4 sm:$0xff]   ;;  %v1895_v63 = vld [vmem:[%s2228_s9 + $0x2a4] ss:$8 sps:$4 sm:$0xff]  }
  0x6d   : > { %1282 = vmatprep.subr.bf16.mxu0 %v1800_v1  ;;  %1324 = vmatpush1.bf16.msra.mxu1 %v1799_v2  ;;  %v1893_v0 = vld [vmem:[%s2228_s9 + $0x2a0] ss:$8 sps:$4 sm:$0xff]   ;;  %v1898_v1 = vld [vmem:[%s2228_s9 + $0x294] ss:$8 sps:$4 sm:$0xff]   ;;  %v1896_v2 = vld [vmem:[%s2228_s9 + $0x290] ss:$8 sps:$4 sm:$0xff]  }
  0x6e   : > { %1325 = vmatprep.subr.bf16.mxu1 %v1803_v3  ;;  %v1901_v3 = vld [vmem:[%s2228_s9 + $0x284] ss:$8 sps:$4 sm:$0xff]   ;;  %s2377_s26 = smov (!%p636_p11, %s1596_s26), 11  ;;  %s1709_s12 = sshll.u32 (%p2008_p6), %s1943_s14, 3 }
  0x6f   : > { %s638_s29 = scalar_lea.vmem %s2367_s2, %s2377_s26  ;;  %s1457_s7 = scalar_lea.vmem (%p2008_p6), %s2368_s3, %s1709_s12 }
  0x70   : > { %1283 = vmatpush2.bf16.msra.mxu0 %v1802_v4  ;;  %v1899_v4 = vld [vmem:[%s2228_s9 + $0x280] ss:$8 sps:$4 sm:$0xff]  }
  0x71   : > { %1284 = vmatprep.subr.bf16.mxu0 %v1806_v5  ;;  %1326 = vmatpush2.bf16.msra.mxu1 %v1805_v6  ;;  %v1902_v5 = vld [vmem:[%s2365_s0 + $0x10] ss:$24 sps:$4 sm:$0xff]   ;;  %v746_v6 = vlaneseq }
  0x72   : > { %1327 = vmatprep.subr.bf16.mxu1 %v1809_v7 }
  0x73   : > { %v747_v7 = vshrl.u32 %v746_v6, 7 }
  0x74   : > { %1285 = vmatpush2.bf16.msra.mxu0 %v1808_v8 }
  0x75   : > { %1286 = vmatprep.subr.bf16.mxu0 %v1812_v9  ;;  %1328 = vmatpush2.bf16.msra.mxu1 %v1811_v10  ;;  %v748_v9 = vsub.s32 0, %v747_v7  ;;  %v744_v10 = vld [vmem:[%s638_s29] sm:$0x3] }
  0x76   : > { %1329 = vmatprep.subr.bf16.mxu1 %v1815_v11  ;;  %v752_v11 = vsub.s32 1, %v747_v7 }
  0x78   : > { %1287 = vmatpush2.bf16.msra.mxu0 %v1814_v12 }
  0x79   : > { %1288 = vmatprep.subr.bf16.mxu0 %v1818_v13  ;;  %1330 = vmatpush2.bf16.msra.mxu1 %v1817_v14  ;;  %v749_v14 = vrot.slane %v744_v10, %v748_v9 }
  0x7a   : > { %1331 = vmatprep.subr.bf16.mxu1 %v1821_v15  ;;  %v753_v15 = vrot.slane %v744_v10, %v752_v11 }
  0x7c   : > { %1289 = vmatpush2.bf16.msra.mxu0 %v1820_v16 }
  0x7d   : > { %1290 = vmatprep.subr.bf16.mxu0 %v1824_v17  ;;  %1332 = vmatpush2.bf16.msra.mxu1 %v1823_v18 }
  0x7e   : > { %1333 = vmatprep.subr.bf16.mxu1 %v1827_v19 }
  0x80   : > { %1291 = vmatpush2.bf16.msra.mxu0 %v1826_v20 }
  0x81   : > { %1292 = vmatprep.subr.bf16.mxu0 %v1830_v21  ;;  %1334 = vmatpush2.bf16.msra.mxu1 %v1829_v22 }
  0x82   : > { %1335 = vmatprep.subr.bf16.mxu1 %v1833_v23 }
  0x84   : > { %1293 = vmatpush2.bf16.msra.mxu0 %v1832_v24 }
  0x85   : > { %1294 = vmatprep.subr.bf16.mxu0 %v1836_v25  ;;  %1336 = vmatpush2.bf16.msra.mxu1 %v1835_v26 }
  0x86   : > { %1337 = vmatprep.subr.bf16.mxu1 %v1839_v27 }
  0x88   : > { %1295 = vmatpush2.bf16.msra.mxu0 %v1838_v28 }
  0x89   : > { %1296 = vmatprep.subr.bf16.mxu0 %v1842_v29  ;;  %1338 = vmatpush2.bf16.msra.mxu1 %v1841_v30 }
  0x8a   : > { %1339 = vmatprep.subr.bf16.mxu1 %v1845_v31 }
  0x8c   : > { %1297 = vmatpush2.bf16.msra.mxu0 %v1844_v32 }
  0x8d   : > { %1352 = vmatprep.subr.bf16.mxu0 %v1853_v33  ;;  %1340 = vmatpush2.bf16.msra.mxu1 %v1850_v34 }
  0x8f   : > { %1299 = vmatmul.mubr.bf16.vlgmr.msra.gmra.mxu0 %v1847_v35 }
  0x90   : > { %1353 = vmatpush1.bf16.msra.mxu0 %v1851_v36  ;;  %1384 = vmatprep.mubr.bf16.mxu0 %v1904_v37 }
  0x91   : > { %1342 = vmatmul.mubr.bf16.vlgmr.msra.gmra.mxu1 %v1854_v38  ;;  %1354 = vmatprep.subr.bf16.mxu0 %v1859_v39 }
  0x94   : > { %1355 = vmatpush1.bf16.msra.mxu0 %v1857_v40 }
  0x95   : > { %1356 = vmatprep.subr.bf16.mxu0 %v1862_v41 }
  0x98   : > { %1357 = vmatpush1.bf16.msra.mxu0 %v1860_v42 }
  0x99   : > { %1358 = vmatprep.subr.bf16.mxu0 %v1865_v43 }
  0x9c   : > { %1359 = vmatpush1.bf16.msra.mxu0 %v1863_v44 }
  0x9d   : > { %1360 = vmatprep.subr.bf16.mxu0 %v1868_v45 }
  0xa0   : > { %1361 = vmatpush1.bf16.msra.mxu0 %v1866_v46 }
  0xa1   : > { %1362 = vmatprep.subr.bf16.mxu0 %v1871_v47 }
  0xa4   : > { %1363 = vmatpush1.bf16.msra.mxu0 %v1869_v48 }
  0xa5   : > { %1364 = vmatprep.subr.bf16.mxu0 %v1874_v49 }
  0xa8   : > { %1365 = vmatpush1.bf16.msra.mxu0 %v1872_v50 }
  0xa9   : > { %1366 = vmatprep.subr.bf16.mxu0 %v1877_v51 }
  0xac   : > { %1367 = vmatpush1.bf16.msra.mxu0 %v1875_v52 }
  0xad   : > { %1368 = vmatprep.subr.bf16.mxu0 %v1880_v53 }
  0xb0   : > { %1369 = vmatpush2.bf16.msra.mxu0 %v1878_v54 }
  0xb1   : > { %1370 = vmatprep.subr.bf16.mxu0 %v1883_v55 }
  0xb4   : > { %1371 = vmatpush2.bf16.msra.mxu0 %v1881_v56 }
  0xb5   : > { %1372 = vmatprep.subr.bf16.mxu0 %v1886_v57 }
  0xb8   : > { %1373 = vmatpush2.bf16.msra.mxu0 %v1884_v58 }
  0xb9   : > { %1374 = vmatprep.subr.bf16.mxu0 %v1889_v59 }
  0xbc   : > { %1375 = vmatpush2.bf16.msra.mxu0 %v1887_v60 }
  0xbd   : > { %1376 = vmatprep.subr.bf16.mxu0 %v1892_v61 }
  0xc0   : > { %1377 = vmatpush2.bf16.msra.mxu0 %v1890_v62 }
  0xc1   : > { %1378 = vmatprep.subr.bf16.mxu0 %v1895_v63 }
  0xc4   : > { %1379 = vmatpush2.bf16.msra.mxu0 %v1893_v0 }
  0xc5   : > { %1380 = vmatprep.subr.bf16.mxu0 %v1898_v1 }
  0xc8   : > { %1381 = vmatpush2.bf16.msra.mxu0 %v1896_v2 }
  0xc9   : > { %1382 = vmatprep.subr.bf16.mxu0 %v1901_v3 }
  0xcc   : > { %1383 = vmatpush2.bf16.msra.mxu0 %v1899_v4 }
  0xcf   : > { %1385 = vmatmul.mubr.bf16.vlgmr.msra.gmra.mxu0 %v1902_v5 }
 0x14f   : > { %v1300_v8 = vpop.f32.mrf.mxu0 }
 0x150   : > { %v1301_v18 = vadd.f32 %v1300_v8, %v749_v14 }
 0x151   : > { %v1302_v12 = vpop.f32.mrf.mxu0  ;;  %v1343_v13 = vpop.f32.mrf.mxu1 }
 0x152   : > { %v1303_v19 = vadd.f32 %v1302_v12, %v753_v15  ;;  %v1344_v22 = vadd.f32 %v1343_v13, %v1301_v18 }
 0x153   : > { %v1304_v16 = vpop.f32.mrf.mxu0  ;;  %v1345_v17 = vpop.f32.mrf.mxu1 }
 0x154   : > { %v1305_v23 = vadd.f32 %v1304_v16, %v749_v14  ;;  %v1346_v25 = vadd.f32 %v1345_v17, %v1303_v19 }
 0x155   : > { %v1306_v20 = vpop.f32.mrf.mxu0  ;;  %v1347_v21 = vpop.f32.mrf.mxu1 }
 0x156   : > { %v1307_v26 = vadd.f32 %v1306_v20, %v753_v15  ;;  %v1348_v30 = vadd.f32 %v1347_v21, %v1305_v23 }
 0x157   : > { %v1349_v28 = vpop.f32.mrf.mxu1 }
 0x158   : > { %v1350_v34 = vadd.f32 %v1349_v28, %v1307_v26 }
 0x18f   : > { %v1386_v24 = vpop.f32.mrf.mxu0 }
 0x190   : > { %v1387_v27 = vadd.f32 %v1386_v24, %v1344_v22 }
 0x191   : > { %v1388_v29 = vpop.f32.mrf.mxu0 }
 0x192   : > { %v1395_v31 = vmul.f32 %v1387_v27, %v1387_v27  ;;  %v1389_v32 = vadd.f32 %v1388_v29, %v1346_v25 }
 0x193   : > { %v1390_v33 = vpop.f32.mrf.mxu0 }
 0x194   : > { %v1399_v35 = vmul.f32 %v1395_v31, %v1387_v27  ;;  %v1396_v36 = vmul.f32 %v1389_v32, %v1389_v32  ;;  %v1391_v37 = vadd.f32 %v1390_v33, %v1348_v30 }
 0x195   : > { %v1392_v38 = vpop.f32.mrf.mxu0 }
 0x196   : > { %v1403_v39 = vmul.f32 0.044715, %v1399_v35  ;;  %v1400_v40 = vmul.f32 %v1396_v36, %v1389_v32  ;;  %v1397_v41 = vmul.f32 %v1391_v37, %v1391_v37  ;;  %v1393_v42 = vadd.f32 %v1392_v38, %v1350_v34 }
 0x198   : > { %v1407_v43 = vadd.f32 %v1403_v39, %v1387_v27  ;;  %v1404_v44 = vmul.f32 0.044715, %v1400_v40  ;;  %v1401_v45 = vmul.f32 %v1397_v41, %v1391_v37  ;;  %v1398_v46 = vmul.f32 %v1393_v42, %v1393_v42 }
 0x19a   : > { %v1411_v47 = vmul.f32 0.7978846, %v1407_v43  ;;  %v1408_v48 = vadd.f32 %v1404_v44, %v1389_v32  ;;  %v1405_v49 = vmul.f32 0.044715, %v1401_v45  ;;  %v1402_v50 = vmul.f32 %v1398_v46, %v1393_v42 }
 0x19c   : > { %1905 = vtanh.f32 %v1411_v47  ;;  %v1412_v51 = vmul.f32 0.7978846, %v1408_v48  ;;  %v1409_v52 = vadd.f32 %v1405_v49, %v1391_v37  ;;  %v1406_v53 = vmul.f32 0.044715, %v1402_v50 }
 0x19e   : > { %1907 = vtanh.f32 %v1412_v51  ;;  %v1413_v54 = vmul.f32 0.7978846, %v1409_v52  ;;  %v1410_v55 = vadd.f32 %v1406_v53, %v1393_v42 }
 0x1a0   : > { %1909 = vtanh.f32 %v1413_v54  ;;  %v1414_v56 = vmul.f32 0.7978846, %v1410_v55 }
 0x1a2   : > { %1911 = vtanh.f32 %v1414_v56 }
 0x1a9   : > { %v1906_v57 = vpop.eup %1905 }
 0x1aa   : > { %v1419_v58 = vadd.f32 1.0, %v1906_v57 }
 0x1ab   : > { %v1908_v59 = vpop.eup %1907 }
 0x1ac   : > { %v1423_v60 = vmul.f32 0.5, %v1419_v58  ;;  %v1420_v61 = vadd.f32 1.0, %v1908_v59 }
 0x1ad   : > { %v1910_v62 = vpop.eup %1909 }
 0x1ae   : > { %v1424_v63 = vmul.f32 0.5, %v1420_v61  ;;  %v1421_v0 = vadd.f32 1.0, %v1910_v62  ;;  %v1427_v2 = vmul.f32 %v1423_v60, %v1387_v27 }
 0x1af   : > { %v1912_v1 = vpop.eup %1911 }
 0x1b0   : > { %v1428_v3 = vmul.f32 %v1424_v63, %v1389_v32  ;;  %v1425_v4 = vmul.f32 0.5, %v1421_v0  ;;  %v1422_v5 = vadd.f32 1.0, %v1912_v1 }
 0x1b2   : > { %v1707_v6 = vpack.c.bf16 %v1428_v3, %v1427_v2  ;;  %v1426_v7 = vmul.f32 0.5, %v1422_v5  ;;  %v1429_v8 = vmul.f32 %v1425_v4, %v1391_v37 }
 0x1b4   : > { %1443 = vst [vmem:[%s626_s5] sm:$0xff] %v1707_v6  ;;  %v1430_v9 = vmul.f32 %v1426_v7, %v1393_v42  ;;  %1451 = sbr.rel (!%p2008_p6) target bundleno = 449 (0x1c1), region = 74 }
 0x1b6   : > { %v1708_v10 = vpack.c.bf16 %v1430_v9, %v1429_v8 }
 0x1b8   : > { %1444 = vst [vmem:[%s626_s5 + $0x8] sm:$0xff] %v1708_v10 }
 0x1bb   : > { %v1488_v11 = vld [vmem:[%s626_s5] sm:$0xff] }
 0x1bc   : > { %1489 = vst [vmem:[%s1457_s7] sm:$0xff] %v1488_v11 }
 0x1bf   : > { %v1490_v12 = vld [vmem:[%s626_s5 + $0x8] sm:$0xff] }
 0x1c0   : > { %1491 = vst [vmem:[%s1457_s7 + $0x30] sm:$0xff] %v1490_v12 }
 0x1c1 PF: > { %s13_s16 = sadd.s32 1, %s1951_s16   ;;  %s2370_s12 = smov %s1939_s13 }
 0x1c2   : > { %p10_p12 = scmp.ge.s32.totalorder %s13_s16, 8   ;;  %s2371_s13 = smov %s2013_s22 }
 0x1c3   : > { %s2372_s14 = smov %s1947_s15  ;;  %s2373_s15 = smov %s2375_s17 }
 0x1c4   :  { %12 = sbr.rel (!%p10_p12) target bundleno = 3 (0x3), region = 149 }

// kernel: bert_classifier_forward.18
= control target key start
LH: loop header
LB: loop body
LE: loop exit
PB: predicated region body
PF: predicated region fallthrough
CT: control target
= control target key end

     0   :  { %s1929_s12 = smov 0   ;;  %s1931_s13 = smov 0   ;;  %s2321_s0 = inlined_call_operand.vmem [shape: bf16[16,768], index: 0, kind: input, shape index: {}]   ;;  %s2322_s1 = inlined_call_operand.vmem [shape: bf16[768,2304], index: 1, kind: input, shape index: {}]   ;;  %s2323_s2 = inlined_call_operand.vmem [shape: f32[1,2304], index: 2, kind: input, shape index: {}]   ;;  %s2324_s3 = inlined_call_operand.vmem [shape: bf16[16,2304], index: 3, kind: output, shape index: {}]  }
   0x1   :  { %s1933_s14 = smov 0   ;;  %s1935_s15 = smov 0  }
   0x2   :  { %s1937_s16 = smov 0  }
   0x3 LB: > { %s25_s17 = sadd.s32 1, %s1903_s15  ;;  %s1551_s18 = sadd.s32 4294967295, %s1907_s16   ;;  %s1907_s16 = sphi %s1937_s16, %s13_s16   ;;  %s1903_s15 = sphi %s1935_s15, %s2329_s15   ;;  %s1899_s14 = sphi %s1933_s14, %s2328_s14   ;;  %s1895_s13 = sphi %s1931_s13, %s2327_s13   ;;  %s1891_s12 = sphi %s1929_s12, %s2326_s12  }
   0x4   : > { %p27_p0 = scmp.ge.s32.totalorder %s25_s17, 9  ;;  %p65_p1 = scmp.ne.s32.totalorder %s1895_s13, %s1891_s12 }
   0x5   : > { %p66_p2 = scmp.eq.s32.totalorder %s1907_s16, 0  ;;  %p123_p4 = scmp.eq.s32.totalorder %s1551_s18, 8 }
   0x6   : > { %s2331_s17 = smov (%p27_p0, %s25_s17), 0  ;;  %s58_s20 = sadd.s32 1, %s1895_s13 }
   0x7   : > { %p67_p3 = por %p66_p2, %p65_p1  ;;  %s55_s19 = ssub.s32 %s1903_s15, %s2331_s17 }
   0x8   : > { %p56_p5 = scmp.eq.s32.totalorder %s55_s19, 0  ;;  %p1964_p6 = por %p123_p4, %p65_p1 }
   0x9   : > { %p1555_p7 = scmp.ge.s32.totalorder %s1907_s16, 9 }
   0xa   : > { %s1969_s22 = scalar_select %p56_p5, %s1895_s13, %s58_s20  }
   0xb   : > { %155 = sbr.rel (%p1555_p7) target bundleno = 69 (0x45), region = 20 }
  0x10   : > { %158 = sbr.rel (!%p67_p3) target bundleno = 69 (0x45), region = 24  ;;  %s160_s23 = sand.u32 (%p67_p3), 1, %s1895_s13  }
  0x11   : > { %s1670_s24 = sshll.u32 (%p67_p3), %s1903_s15, 3  ;;  %s1674_s25 = smul.u32 (%p67_p3), 768, %s160_s23 }
  0x12   : > { %s1977_s28 = scalar_lea.vmem (%p67_p3), %s2322_s1, %s1670_s24 }
  0x13   : > { %v384_v0 = vld [vmem:[%s1977_s28] sm:$0xff] (%p67_p3)  ;;  %v386_v1 = vld [vmem:[%s1977_s28 + $0x48] sm:$0xff] (%p67_p3)  ;;  %v388_v2 = vld [vmem:[%s1977_s28 + $0x90] sm:$0xff] (%p67_p3)  ;;  %s1985_s29 = scalar_lea.vmem (%p67_p3), [#allocation2], %s1674_s25 }
  0x14   : > { %v390_v3 = vld [vmem:[%s1977_s28 + $0xd8] sm:$0xff] (%p67_p3)  ;;  %v392_v4 = vld [vmem:[%s1977_s28 + $0x120] sm:$0xff] (%p67_p3)  ;;  %v394_v5 = vld [vmem:[%s1977_s28 + $0x168] sm:$0xff] (%p67_p3)  ;;  %385 = vst [vmem:[%s1985_s29] sm:$0xff] (%p67_p3), %v384_v0 }
  0x15   : > { %387 = vst [vmem:[%s1985_s29 + $0x8] sm:$0xff] %v386_v1  ;;  %389 = vst [vmem:[%s1985_s29 + $0x10] sm:$0xff] %v388_v2  ;;  %v396_v6 = vld [vmem:[%s1977_s28 + $0x1b0] sm:$0xff]  ;;  %v398_v7 = vld [vmem:[%s1977_s28 + $0x1f8] sm:$0xff] }
  0x16   : > { %391 = vst [vmem:[%s1985_s29 + $0x18] sm:$0xff] %v390_v3  ;;  %393 = vst [vmem:[%s1985_s29 + $0x20] sm:$0xff] %v392_v4  ;;  %v400_v8 = vld [vmem:[%s1977_s28 + $0x240] sm:$0xff]  ;;  %v402_v9 = vld [vmem:[%s1977_s28 + $0x288] sm:$0xff] }
  0x17   : > { %395 = vst [vmem:[%s1985_s29 + $0x28] sm:$0xff] %v394_v5  ;;  %397 = vst [vmem:[%s1985_s29 + $0x30] sm:$0xff] %v396_v6  ;;  %v404_v10 = vld [vmem:[%s1977_s28 + $0x2d0] sm:$0xff]  ;;  %v406_v11 = vld [vmem:[%s1977_s28 + $0x318] sm:$0xff] }
  0x18   : > { %399 = vst [vmem:[%s1985_s29 + $0x38] sm:$0xff] %v398_v7  ;;  %401 = vst [vmem:[%s1985_s29 + $0x40] sm:$0xff] %v400_v8  ;;  %v408_v12 = vld [vmem:[%s1977_s28 + $0x360] sm:$0xff]  ;;  %v410_v13 = vld [vmem:[%s1977_s28 + $0x3a8] sm:$0xff] }
  0x19   : > { %403 = vst [vmem:[%s1985_s29 + $0x48] sm:$0xff] %v402_v9  ;;  %405 = vst [vmem:[%s1985_s29 + $0x50] sm:$0xff] %v404_v10  ;;  %v412_v14 = vld [vmem:[%s1977_s28 + $0x3f0] sm:$0xff]  ;;  %v414_v15 = vld [vmem:[%s1977_s28 + $0x438] sm:$0xff] }
  0x1a   : > { %407 = vst [vmem:[%s1985_s29 + $0x58] sm:$0xff] %v406_v11  ;;  %409 = vst [vmem:[%s1985_s29 + $0x60] sm:$0xff] %v408_v12  ;;  %v416_v16 = vld [vmem:[%s1977_s28 + $0x480] sm:$0xff]  ;;  %v418_v17 = vld [vmem:[%s1977_s28 + $0x4c8] sm:$0xff] }
  0x1b   : > { %411 = vst [vmem:[%s1985_s29 + $0x68] sm:$0xff] %v410_v13  ;;  %413 = vst [vmem:[%s1985_s29 + $0x70] sm:$0xff] %v412_v14  ;;  %v420_v18 = vld [vmem:[%s1977_s28 + $0x510] sm:$0xff]  ;;  %v422_v19 = vld [vmem:[%s1977_s28 + $0x558] sm:$0xff] }
  0x1c   : > { %415 = vst [vmem:[%s1985_s29 + $0x78] sm:$0xff] %v414_v15  ;;  %417 = vst [vmem:[%s1985_s29 + $0x80] sm:$0xff] %v416_v16  ;;  %v424_v20 = vld [vmem:[%s1977_s28 + $0x5a0] sm:$0xff]  ;;  %v426_v21 = vld [vmem:[%s1977_s28 + $0x5e8] sm:$0xff] }
  0x1d   : > { %419 = vst [vmem:[%s1985_s29 + $0x88] sm:$0xff] %v418_v17  ;;  %421 = vst [vmem:[%s1985_s29 + $0x90] sm:$0xff] %v420_v18  ;;  %v428_v22 = vld [vmem:[%s1977_s28 + $0x630] sm:$0xff]  ;;  %v430_v23 = vld [vmem:[%s1977_s28 + $0x678] sm:$0xff] }
  0x1e   : > { %423 = vst [vmem:[%s1985_s29 + $0x98] sm:$0xff] %v422_v19  ;;  %425 = vst [vmem:[%s1985_s29 + $0xa0] sm:$0xff] %v424_v20  ;;  %v432_v24 = vld [vmem:[%s1977_s28 + $0x6c0] sm:$0xff]  ;;  %v434_v25 = vld [vmem:[%s1977_s28 + $0x708] sm:$0xff] }
  0x1f   : > { %427 = vst [vmem:[%s1985_s29 + $0xa8] sm:$0xff] %v426_v21  ;;  %429 = vst [vmem:[%s1985_s29 + $0xb0] sm:$0xff] %v428_v22  ;;  %v436_v26 = vld [vmem:[%s1977_s28 + $0x750] sm:$0xff]  ;;  %v438_v27 = vld [vmem:[%s1977_s28 + $0x798] sm:$0xff] }
  0x20   : > { %431 = vst [vmem:[%s1985_s29 + $0xb8] sm:$0xff] %v430_v23  ;;  %433 = vst [vmem:[%s1985_s29 + $0xc0] sm:$0xff] %v432_v24  ;;  %v440_v28 = vld [vmem:[%s1977_s28 + $0x7e0] sm:$0xff]  ;;  %v442_v29 = vld [vmem:[%s1977_s28 + $0x828] sm:$0xff] }
  0x21   : > { %435 = vst [vmem:[%s1985_s29 + $0xc8] sm:$0xff] %v434_v25  ;;  %437 = vst [vmem:[%s1985_s29 + $0xd0] sm:$0xff] %v436_v26  ;;  %v444_v30 = vld [vmem:[%s1977_s28 + $0x870] sm:$0xff]  ;;  %v446_v31 = vld [vmem:[%s1977_s28 + $0x8b8] sm:$0xff] }
  0x22   : > { %439 = vst [vmem:[%s1985_s29 + $0xd8] sm:$0xff] %v438_v27  ;;  %441 = vst [vmem:[%s1985_s29 + $0xe0] sm:$0xff] %v440_v28  ;;  %v448_v32 = vld [vmem:[%s1977_s28 + $0x900] sm:$0xff]  ;;  %v450_v33 = vld [vmem:[%s1977_s28 + $0x948] sm:$0xff] }
  0x23   : > { %443 = vst [vmem:[%s1985_s29 + $0xe8] sm:$0xff] %v442_v29  ;;  %445 = vst [vmem:[%s1985_s29 + $0xf0] sm:$0xff] %v444_v30  ;;  %v452_v34 = vld [vmem:[%s1977_s28 + $0x990] sm:$0xff]  ;;  %v454_v35 = vld [vmem:[%s1977_s28 + $0x9d8] sm:$0xff] }
  0x24   : > { %447 = vst [vmem:[%s1985_s29 + $0xf8] sm:$0xff] %v446_v31  ;;  %449 = vst [vmem:[%s1985_s29 + $0x100] sm:$0xff] %v448_v32  ;;  %v456_v36 = vld [vmem:[%s1977_s28 + $0xa20] sm:$0xff]  ;;  %v458_v37 = vld [vmem:[%s1977_s28 + $0xa68] sm:$0xff] }
  0x25   : > { %451 = vst [vmem:[%s1985_s29 + $0x108] sm:$0xff] %v450_v33  ;;  %453 = vst [vmem:[%s1985_s29 + $0x110] sm:$0xff] %v452_v34  ;;  %v460_v38 = vld [vmem:[%s1977_s28 + $0xab0] sm:$0xff]  ;;  %v462_v39 = vld [vmem:[%s1977_s28 + $0xaf8] sm:$0xff] }
  0x26   : > { %455 = vst [vmem:[%s1985_s29 + $0x118] sm:$0xff] %v454_v35  ;;  %457 = vst [vmem:[%s1985_s29 + $0x120] sm:$0xff] %v456_v36  ;;  %v464_v40 = vld [vmem:[%s1977_s28 + $0xb40] sm:$0xff]  ;;  %v466_v41 = vld [vmem:[%s1977_s28 + $0xb88] sm:$0xff] }
  0x27   : > { %459 = vst [vmem:[%s1985_s29 + $0x128] sm:$0xff] %v458_v37  ;;  %461 = vst [vmem:[%s1985_s29 + $0x130] sm:$0xff] %v460_v38  ;;  %v468_v42 = vld [vmem:[%s1977_s28 + $0xbd0] sm:$0xff]  ;;  %v470_v43 = vld [vmem:[%s1977_s28 + $0xc18] sm:$0xff] }
  0x28   : > { %463 = vst [vmem:[%s1985_s29 + $0x138] sm:$0xff] %v462_v39  ;;  %465 = vst [vmem:[%s1985_s29 + $0x140] sm:$0xff] %v464_v40  ;;  %v472_v44 = vld [vmem:[%s1977_s28 + $0xc60] sm:$0xff]  ;;  %v474_v45 = vld [vmem:[%s1977_s28 + $0xca8] sm:$0xff] }
  0x29   : > { %467 = vst [vmem:[%s1985_s29 + $0x148] sm:$0xff] %v466_v41  ;;  %469 = vst [vmem:[%s1985_s29 + $0x150] sm:$0xff] %v468_v42  ;;  %v476_v46 = vld [vmem:[%s1977_s28 + $0xcf0] sm:$0xff]  ;;  %v478_v47 = vld [vmem:[%s1977_s28 + $0xd38] sm:$0xff] }
  0x2a   : > { %471 = vst [vmem:[%s1985_s29 + $0x158] sm:$0xff] %v470_v43  ;;  %473 = vst [vmem:[%s1985_s29 + $0x160] sm:$0xff] %v472_v44  ;;  %v480_v48 = vld [vmem:[%s1977_s28 + $0xd80] sm:$0xff]  ;;  %v482_v49 = vld [vmem:[%s1977_s28 + $0xdc8] sm:$0xff] }
  0x2b   : > { %475 = vst [vmem:[%s1985_s29 + $0x168] sm:$0xff] %v474_v45  ;;  %477 = vst [vmem:[%s1985_s29 + $0x170] sm:$0xff] %v476_v46  ;;  %v484_v50 = vld [vmem:[%s1977_s28 + $0xe10] sm:$0xff]  ;;  %v486_v51 = vld [vmem:[%s1977_s28 + $0xe58] sm:$0xff] }
  0x2c   : > { %479 = vst [vmem:[%s1985_s29 + $0x178] sm:$0xff] %v478_v47  ;;  %481 = vst [vmem:[%s1985_s29 + $0x180] sm:$0xff] %v480_v48  ;;  %v488_v52 = vld [vmem:[%s1977_s28 + $0xea0] sm:$0xff]  ;;  %v490_v53 = vld [vmem:[%s1977_s28 + $0xee8] sm:$0xff] }
  0x2d   : > { %483 = vst [vmem:[%s1985_s29 + $0x188] sm:$0xff] %v482_v49  ;;  %485 = vst [vmem:[%s1985_s29 + $0x190] sm:$0xff] %v484_v50  ;;  %v492_v54 = vld [vmem:[%s1977_s28 + $0xf30] sm:$0xff]  ;;  %v494_v55 = vld [vmem:[%s1977_s28 + $0xf78] sm:$0xff] }
  0x2e   : > { %487 = vst [vmem:[%s1985_s29 + $0x198] sm:$0xff] %v486_v51  ;;  %489 = vst [vmem:[%s1985_s29 + $0x1a0] sm:$0xff] %v488_v52  ;;  %v496_v56 = vld [vmem:[%s1977_s28 + $0xfc0] sm:$0xff]  ;;  %v498_v57 = vld [vmem:[%s1977_s28 + $0x1008] sm:$0xff] }
  0x2f   : > { %491 = vst [vmem:[%s1985_s29 + $0x1a8] sm:$0xff] %v490_v53  ;;  %493 = vst [vmem:[%s1985_s29 + $0x1b0] sm:$0xff] %v492_v54  ;;  %v500_v58 = vld [vmem:[%s1977_s28 + $0x1050] sm:$0xff]  ;;  %v502_v59 = vld [vmem:[%s1977_s28 + $0x1098] sm:$0xff] }
  0x30   : > { %495 = vst [vmem:[%s1985_s29 + $0x1b8] sm:$0xff] %v494_v55  ;;  %497 = vst [vmem:[%s1985_s29 + $0x1c0] sm:$0xff] %v496_v56  ;;  %v504_v60 = vld [vmem:[%s1977_s28 + $0x10e0] sm:$0xff]  ;;  %v506_v61 = vld [vmem:[%s1977_s28 + $0x1128] sm:$0xff] }
  0x31   : > { %499 = vst [vmem:[%s1985_s29 + $0x1c8] sm:$0xff] %v498_v57  ;;  %501 = vst [vmem:[%s1985_s29 + $0x1d0] sm:$0xff] %v500_v58  ;;  %v508_v62 = vld [vmem:[%s1977_s28 + $0x1170] sm:$0xff]  ;;  %v510_v63 = vld [vmem:[%s1977_s28 + $0x11b8] sm:$0xff] }
  0x32   : > { %503 = vst [vmem:[%s1985_s29 + $0x1d8] sm:$0xff] %v502_v59  ;;  %505 = vst [vmem:[%s1985_s29 + $0x1e0] sm:$0xff] %v504_v60  ;;  %v512_v0 = vld [vmem:[%s1977_s28 + $0x1200] sm:$0xff]  ;;  %v514_v1 = vld [vmem:[%s1977_s28 + $0x1248] sm:$0xff] }
  0x33   : > { %507 = vst [vmem:[%s1985_s29 + $0x1e8] sm:$0xff] %v506_v61  ;;  %509 = vst [vmem:[%s1985_s29 + $0x1f0] sm:$0xff] %v508_v62  ;;  %v516_v2 = vld [vmem:[%s1977_s28 + $0x1290] sm:$0xff]  ;;  %v518_v3 = vld [vmem:[%s1977_s28 + $0x12d8] sm:$0xff] }
  0x34   : > { %511 = vst [vmem:[%s1985_s29 + $0x1f8] sm:$0xff] %v510_v63  ;;  %513 = vst [vmem:[%s1985_s29 + $0x200] sm:$0xff] %v512_v0  ;;  %v520_v4 = vld [vmem:[%s1977_s28 + $0x1320] sm:$0xff]  ;;  %v522_v5 = vld [vmem:[%s1977_s28 + $0x1368] sm:$0xff] }
  0x35   : > { %515 = vst [vmem:[%s1985_s29 + $0x208] sm:$0xff] %v514_v1  ;;  %517 = vst [vmem:[%s1985_s29 + $0x210] sm:$0xff] %v516_v2  ;;  %v524_v6 = vld [vmem:[%s1977_s28 + $0x13b0] sm:$0xff]  ;;  %v526_v7 = vld [vmem:[%s1977_s28 + $0x13f8] sm:$0xff] }
  0x36   : > { %519 = vst [vmem:[%s1985_s29 + $0x218] sm:$0xff] %v518_v3  ;;  %521 = vst [vmem:[%s1985_s29 + $0x220] sm:$0xff] %v520_v4  ;;  %v528_v8 = vld [vmem:[%s1977_s28 + $0x1440] sm:$0xff]  ;;  %v530_v9 = vld [vmem:[%s1977_s28 + $0x1488] sm:$0xff] }
  0x37   : > { %523 = vst [vmem:[%s1985_s29 + $0x228] sm:$0xff] %v522_v5  ;;  %525 = vst [vmem:[%s1985_s29 + $0x230] sm:$0xff] %v524_v6  ;;  %v532_v10 = vld [vmem:[%s1977_s28 + $0x14d0] sm:$0xff]  ;;  %v534_v11 = vld [vmem:[%s1977_s28 + $0x1518] sm:$0xff] }
  0x38   : > { %527 = vst [vmem:[%s1985_s29 + $0x238] sm:$0xff] %v526_v7  ;;  %529 = vst [vmem:[%s1985_s29 + $0x240] sm:$0xff] %v528_v8  ;;  %v536_v12 = vld [vmem:[%s1977_s28 + $0x1560] sm:$0xff]  ;;  %v538_v13 = vld [vmem:[%s1977_s28 + $0x15a8] sm:$0xff] }
  0x39   : > { %531 = vst [vmem:[%s1985_s29 + $0x248] sm:$0xff] %v530_v9  ;;  %533 = vst [vmem:[%s1985_s29 + $0x250] sm:$0xff] %v532_v10  ;;  %v540_v14 = vld [vmem:[%s1977_s28 + $0x15f0] sm:$0xff]  ;;  %v542_v15 = vld [vmem:[%s1977_s28 + $0x1638] sm:$0xff] }
  0x3a   : > { %535 = vst [vmem:[%s1985_s29 + $0x258] sm:$0xff] %v534_v11  ;;  %537 = vst [vmem:[%s1985_s29 + $0x260] sm:$0xff] %v536_v12  ;;  %v544_v16 = vld [vmem:[%s1977_s28 + $0x1680] sm:$0xff]  ;;  %v546_v17 = vld [vmem:[%s1977_s28 + $0x16c8] sm:$0xff] }
  0x3b   : > { %539 = vst [vmem:[%s1985_s29 + $0x268] sm:$0xff] %v538_v13  ;;  %541 = vst [vmem:[%s1985_s29 + $0x270] sm:$0xff] %v540_v14  ;;  %v548_v18 = vld [vmem:[%s1977_s28 + $0x1710] sm:$0xff]  ;;  %v550_v19 = vld [vmem:[%s1977_s28 + $0x1758] sm:$0xff] }
  0x3c   : > { %543 = vst [vmem:[%s1985_s29 + $0x278] sm:$0xff] %v542_v15  ;;  %545 = vst [vmem:[%s1985_s29 + $0x280] sm:$0xff] %v544_v16  ;;  %v552_v20 = vld [vmem:[%s1977_s28 + $0x17a0] sm:$0xff]  ;;  %v554_v21 = vld [vmem:[%s1977_s28 + $0x17e8] sm:$0xff] }
  0x3d   : > { %547 = vst [vmem:[%s1985_s29 + $0x288] sm:$0xff] %v546_v17  ;;  %549 = vst [vmem:[%s1985_s29 + $0x290] sm:$0xff] %v548_v18  ;;  %v556_v22 = vld [vmem:[%s1977_s28 + $0x1830] sm:$0xff]  ;;  %v558_v23 = vld [vmem:[%s1977_s28 + $0x1878] sm:$0xff] }
  0x3e   : > { %551 = vst [vmem:[%s1985_s29 + $0x298] sm:$0xff] %v550_v19  ;;  %553 = vst [vmem:[%s1985_s29 + $0x2a0] sm:$0xff] %v552_v20  ;;  %v560_v24 = vld [vmem:[%s1977_s28 + $0x18c0] sm:$0xff]  ;;  %v562_v25 = vld [vmem:[%s1977_s28 + $0x1908] sm:$0xff] }
  0x3f   : > { %555 = vst [vmem:[%s1985_s29 + $0x2a8] sm:$0xff] %v554_v21  ;;  %557 = vst [vmem:[%s1985_s29 + $0x2b0] sm:$0xff] %v556_v22  ;;  %v564_v26 = vld [vmem:[%s1977_s28 + $0x1950] sm:$0xff]  ;;  %v566_v27 = vld [vmem:[%s1977_s28 + $0x1998] sm:$0xff] }
  0x40   : > { %559 = vst [vmem:[%s1985_s29 + $0x2b8] sm:$0xff] %v558_v23  ;;  %561 = vst [vmem:[%s1985_s29 + $0x2c0] sm:$0xff] %v560_v24  ;;  %v568_v28 = vld [vmem:[%s1977_s28 + $0x19e0] sm:$0xff]  ;;  %v570_v29 = vld [vmem:[%s1977_s28 + $0x1a28] sm:$0xff] }
  0x41   : > { %563 = vst [vmem:[%s1985_s29 + $0x2c8] sm:$0xff] %v562_v25  ;;  %565 = vst [vmem:[%s1985_s29 + $0x2d0] sm:$0xff] %v564_v26  ;;  %v572_v30 = vld [vmem:[%s1977_s28 + $0x1a70] sm:$0xff]  ;;  %v574_v31 = vld [vmem:[%s1977_s28 + $0x1ab8] sm:$0xff] }
  0x42   : > { %567 = vst [vmem:[%s1985_s29 + $0x2d8] sm:$0xff] %v566_v27  ;;  %569 = vst [vmem:[%s1985_s29 + $0x2e0] sm:$0xff] %v568_v28 }
  0x43   : > { %571 = vst [vmem:[%s1985_s29 + $0x2e8] sm:$0xff] %v570_v29  ;;  %573 = vst [vmem:[%s1985_s29 + $0x2f0] sm:$0xff] %v572_v30 }
  0x44   : > { %575 = vst [vmem:[%s1985_s29 + $0x2f8] sm:$0xff] %v574_v31 }
  0x45 PF: > { %p1558_p8 = scmp.ge.s32.totalorder %s1907_s16, 1  ;;  %p588_p9 = scmp.lt.s32.totalorder %s1907_s16, 10 }
  0x47   : > { %p589_p10 = pnand %p1558_p8, %p588_p9 }
  0x48   : > { %s595_s30 = sand.u32 (!%p589_p10), 1, %s1891_s12   ;;  %s1560_s26 = sshll.u32 (!%p589_p10), %s1899_s14, 1 }
  0x49   : > { %592 = sbr.rel (%p589_p10) target bundleno = 420 (0x1a4), region = 66  ;;  %p636_p11 = scmp.lt.s32.totalorder (!%p589_p10), %s1560_s26, 17 }
  0x4a   : > { %s1675_s4 = smul.u32 (!%p589_p10), 768, %s595_s30 }
  0x4c   : > { %s2184_s9 = scalar_lea.vmem (!%p589_p10), [#allocation2], %s1675_s4  ;;  %s1559_s4 = sshll.u32 (!%p589_p10), %s595_s30, 4 }
  0x4d   : > { %s626_s5 = scalar_lea.vmem (!%p589_p10), [#allocation3], %s1559_s4 }
  0x4e   : > { %v1813_v32 = vld [vmem:[%s2321_s0 + $0x4] ss:$24 sps:$4 sm:$0xff]   ;;  %v1718_v35 = vld [vmem:[%s2184_s9 + $0x70] ss:$8 sps:$4 sm:$0xff]   ;;  %v1724_v39 = vld [vmem:[%s2184_s9 + $0x60] ss:$8 sps:$4 sm:$0xff]  }
  0x4f   : > { %v1820_v33 = vld [vmem:[%s2321_s0 + $0xc] ss:$24 sps:$4 sm:$0xff]   ;;  %1298 = vmatprep.mubr.bf16.mxu0 %v1813_v32  ;;  %v1716_v34 = vld [vmem:[%s2184_s9 + $0x74] ss:$8 sps:$4 sm:$0xff]   ;;  %v1721_v37 = vld [vmem:[%s2184_s9 + $0x170] ss:$8 sps:$4 sm:$0xff]  }
  0x50   : > { %1341 = vmatprep.mubr.bf16.mxu1 %v1820_v33  ;;  %1266 = vmatprep.subr.bf16.mxu0 %v1716_v34  ;;  %v1719_v36 = vld [vmem:[%s2184_s9 + $0x174] ss:$8 sps:$4 sm:$0xff]   ;;  %v1722_v38 = vld [vmem:[%s2184_s9 + $0x64] ss:$8 sps:$4 sm:$0xff]   ;;  %v1727_v41 = vld [vmem:[%s2184_s9 + $0x160] ss:$8 sps:$4 sm:$0xff]  }
  0x51   : > { %1267 = vmatpush1.bf16.msra.mxu0 %v1718_v35  ;;  %1309 = vmatprep.subr.bf16.mxu1 %v1719_v36  ;;  %v1725_v40 = vld [vmem:[%s2184_s9 + $0x164] ss:$8 sps:$4 sm:$0xff]   ;;  %v1728_v42 = vld [vmem:[%s2184_s9 + $0x54] ss:$8 sps:$4 sm:$0xff]   ;;  %v1730_v43 = vld [vmem:[%s2184_s9 + $0x50] ss:$8 sps:$4 sm:$0xff]  }
  0x52   : > { %1310 = vmatpush1.bf16.msra.mxu1 %v1721_v37  ;;  %1268 = vmatprep.subr.bf16.mxu0 %v1722_v38  ;;  %v1731_v44 = vld [vmem:[%s2184_s9 + $0x154] ss:$8 sps:$4 sm:$0xff]   ;;  %v1734_v45 = vld [vmem:[%s2184_s9 + $0x44] ss:$8 sps:$4 sm:$0xff]   ;;  %v1733_v46 = vld [vmem:[%s2184_s9 + $0x150] ss:$8 sps:$4 sm:$0xff]  }
  0x53   : > { %1311 = vmatprep.subr.bf16.mxu1 %v1725_v40  ;;  %v1737_v47 = vld [vmem:[%s2184_s9 + $0x144] ss:$8 sps:$4 sm:$0xff]   ;;  %v1736_v48 = vld [vmem:[%s2184_s9 + $0x40] ss:$8 sps:$4 sm:$0xff]   ;;  %v1740_v49 = vld [vmem:[%s2184_s9 + $0x34] ss:$8 sps:$4 sm:$0xff]  }
  0x54   : > { %v1739_v50 = vld [vmem:[%s2184_s9 + $0x140] ss:$8 sps:$4 sm:$0xff]   ;;  %v1743_v51 = vld [vmem:[%s2184_s9 + $0x134] ss:$8 sps:$4 sm:$0xff]   ;;  %v1742_v52 = vld [vmem:[%s2184_s9 + $0x30] ss:$8 sps:$4 sm:$0xff]  }
  0x55   : > { %1269 = vmatpush1.bf16.msra.mxu0 %v1724_v39  ;;  %v1746_v53 = vld [vmem:[%s2184_s9 + $0x24] ss:$8 sps:$4 sm:$0xff]   ;;  %v1745_v54 = vld [vmem:[%s2184_s9 + $0x130] ss:$8 sps:$4 sm:$0xff]   ;;  %v1748_v56 = vld [vmem:[%s2184_s9 + $0x20] ss:$8 sps:$4 sm:$0xff]  }
  0x56   : > { %1270 = vmatprep.subr.bf16.mxu0 %v1728_v42  ;;  %1312 = vmatpush1.bf16.msra.mxu1 %v1727_v41  ;;  %v1749_v55 = vld [vmem:[%s2184_s9 + $0x124] ss:$8 sps:$4 sm:$0xff]   ;;  %v1752_v57 = vld [vmem:[%s2184_s9 + $0x14] ss:$8 sps:$4 sm:$0xff]   ;;  %v1751_v58 = vld [vmem:[%s2184_s9 + $0x120] ss:$8 sps:$4 sm:$0xff]  }
  0x57   : > { %1313 = vmatprep.subr.bf16.mxu1 %v1731_v44  ;;  %v1755_v59 = vld [vmem:[%s2184_s9 + $0x114] ss:$8 sps:$4 sm:$0xff]   ;;  %v1754_v60 = vld [vmem:[%s2184_s9 + $0x10] ss:$8 sps:$4 sm:$0xff]   ;;  %v1758_v61 = vld [vmem:[%s2184_s9 + $0x4] ss:$8 sps:$4 sm:$0xff]  }
  0x58   : > { %v1757_v62 = vld [vmem:[%s2184_s9 + $0x110] ss:$8 sps:$4 sm:$0xff]   ;;  %v1761_v63 = vld [vmem:[%s2184_s9 + $0x104] ss:$8 sps:$4 sm:$0xff]   ;;  %v1760_v0 = vld [vmem:[%s2184_s9] ss:$8 sps:$4 sm:$0xff]  }
  0x59   : > { %1271 = vmatpush1.bf16.msra.mxu0 %v1730_v43  ;;  %v1764_v1 = vld [vmem:[%s2184_s9 + $0xf4] ss:$8 sps:$4 sm:$0xff]   ;;  %v1763_v2 = vld [vmem:[%s2184_s9 + $0x100] ss:$8 sps:$4 sm:$0xff]   ;;  %v1766_v4 = vld [vmem:[%s2184_s9 + $0xf0] ss:$8 sps:$4 sm:$0xff]  }
  0x5a   : > { %1272 = vmatprep.subr.bf16.mxu0 %v1734_v45  ;;  %1314 = vmatpush1.bf16.msra.mxu1 %v1733_v46  ;;  %v1767_v3 = vld [vmem:[%s2184_s9 + $0x1f4] ss:$8 sps:$4 sm:$0xff]   ;;  %v1770_v5 = vld [vmem:[%s2184_s9 + $0xe4] ss:$8 sps:$4 sm:$0xff]   ;;  %v1769_v6 = vld [vmem:[%s2184_s9 + $0x1f0] ss:$8 sps:$4 sm:$0xff]  }
  0x5b   : > { %1315 = vmatprep.subr.bf16.mxu1 %v1737_v47  ;;  %v1773_v7 = vld [vmem:[%s2184_s9 + $0x1e4] ss:$8 sps:$4 sm:$0xff]   ;;  %v1772_v8 = vld [vmem:[%s2184_s9 + $0xe0] ss:$8 sps:$4 sm:$0xff]   ;;  %v1776_v9 = vld [vmem:[%s2184_s9 + $0xd4] ss:$8 sps:$4 sm:$0xff]  }
  0x5c   : > { %v1775_v10 = vld [vmem:[%s2184_s9 + $0x1e0] ss:$8 sps:$4 sm:$0xff]   ;;  %v1779_v11 = vld [vmem:[%s2184_s9 + $0x1d4] ss:$8 sps:$4 sm:$0xff]   ;;  %v1778_v12 = vld [vmem:[%s2184_s9 + $0xd0] ss:$8 sps:$4 sm:$0xff]  }
  0x5d   : > { %1273 = vmatpush1.bf16.msra.mxu0 %v1736_v48  ;;  %v1782_v13 = vld [vmem:[%s2184_s9 + $0xc4] ss:$8 sps:$4 sm:$0xff]   ;;  %v1781_v14 = vld [vmem:[%s2184_s9 + $0x1d0] ss:$8 sps:$4 sm:$0xff]   ;;  %v1784_v16 = vld [vmem:[%s2184_s9 + $0xc0] ss:$8 sps:$4 sm:$0xff]  }
  0x5e   : > { %1274 = vmatprep.subr.bf16.mxu0 %v1740_v49  ;;  %1316 = vmatpush1.bf16.msra.mxu1 %v1739_v50  ;;  %v1785_v15 = vld [vmem:[%s2184_s9 + $0x1c4] ss:$8 sps:$4 sm:$0xff]   ;;  %v1788_v17 = vld [vmem:[%s2184_s9 + $0xb4] ss:$8 sps:$4 sm:$0xff]   ;;  %v1787_v18 = vld [vmem:[%s2184_s9 + $0x1c0] ss:$8 sps:$4 sm:$0xff]  }
  0x5f   : > { %1317 = vmatprep.subr.bf16.mxu1 %v1743_v51  ;;  %v1791_v19 = vld [vmem:[%s2184_s9 + $0x1b4] ss:$8 sps:$4 sm:$0xff]   ;;  %v1790_v20 = vld [vmem:[%s2184_s9 + $0xb0] ss:$8 sps:$4 sm:$0xff]   ;;  %v1794_v21 = vld [vmem:[%s2184_s9 + $0xa4] ss:$8 sps:$4 sm:$0xff]  }
  0x60   : > { %v1793_v22 = vld [vmem:[%s2184_s9 + $0x1b0] ss:$8 sps:$4 sm:$0xff]   ;;  %v1797_v23 = vld [vmem:[%s2184_s9 + $0x1a4] ss:$8 sps:$4 sm:$0xff]   ;;  %v1796_v24 = vld [vmem:[%s2184_s9 + $0xa0] ss:$8 sps:$4 sm:$0xff]  }
  0x61   : > { %1275 = vmatpush1.bf16.msra.mxu0 %v1742_v52  ;;  %v1800_v25 = vld [vmem:[%s2184_s9 + $0x94] ss:$8 sps:$4 sm:$0xff]   ;;  %v1799_v26 = vld [vmem:[%s2184_s9 + $0x1a0] ss:$8 sps:$4 sm:$0xff]   ;;  %v1802_v28 = vld [vmem:[%s2184_s9 + $0x90] ss:$8 sps:$4 sm:$0xff]  }
  0x62   : > { %1276 = vmatprep.subr.bf16.mxu0 %v1746_v53  ;;  %1318 = vmatpush1.bf16.msra.mxu1 %v1745_v54  ;;  %v1803_v27 = vld [vmem:[%s2184_s9 + $0x194] ss:$8 sps:$4 sm:$0xff]   ;;  %v1806_v29 = vld [vmem:[%s2184_s9 + $0x84] ss:$8 sps:$4 sm:$0xff]   ;;  %v1805_v30 = vld [vmem:[%s2184_s9 + $0x190] ss:$8 sps:$4 sm:$0xff]  }
  0x63   : > { %1319 = vmatprep.subr.bf16.mxu1 %v1749_v55  ;;  %v1809_v31 = vld [vmem:[%s2184_s9 + $0x184] ss:$8 sps:$4 sm:$0xff]   ;;  %v1808_v32 = vld [vmem:[%s2184_s9 + $0x80] ss:$8 sps:$4 sm:$0xff]   ;;  %v1817_v33 = vld [vmem:[%s2184_s9 + $0x274] ss:$8 sps:$4 sm:$0xff]  }
  0x64   : > { %v1814_v34 = vld [vmem:[%s2184_s9 + $0x180] ss:$8 sps:$4 sm:$0xff]   ;;  %v1815_v36 = vld [vmem:[%s2184_s9 + $0x270] ss:$8 sps:$4 sm:$0xff]   ;;  %v1868_v37 = vld [vmem:[%s2321_s0 + $0x14] ss:$24 sps:$4 sm:$0xff]  }
  0x65   : > { %1277 = vmatpush1.bf16.msra.mxu0 %v1748_v56  ;;  %v1811_v35 = vld [vmem:[%s2321_s0] ss:$24 sps:$4 sm:$0xff]   ;;  %v1823_v39 = vld [vmem:[%s2184_s9 + $0x264] ss:$8 sps:$4 sm:$0xff]   ;;  %v1826_v41 = vld [vmem:[%s2184_s9 + $0x254] ss:$8 sps:$4 sm:$0xff]  }
  0x66   : > { %1278 = vmatprep.subr.bf16.mxu0 %v1752_v57  ;;  %1320 = vmatpush1.bf16.msra.mxu1 %v1751_v58  ;;  %v1818_v38 = vld [vmem:[%s2321_s0 + $0x8] ss:$24 sps:$4 sm:$0xff]   ;;  %v1824_v42 = vld [vmem:[%s2184_s9 + $0x250] ss:$8 sps:$4 sm:$0xff]   ;;  %v1829_v43 = vld [vmem:[%s2184_s9 + $0x244] ss:$8 sps:$4 sm:$0xff]  }
  0x67   : > { %1321 = vmatprep.subr.bf16.mxu1 %v1755_v59  ;;  %v1821_v40 = vld [vmem:[%s2184_s9 + $0x260] ss:$8 sps:$4 sm:$0xff]   ;;  %v1832_v45 = vld [vmem:[%s2184_s9 + $0x234] ss:$8 sps:$4 sm:$0xff]   ;;  %v1830_v46 = vld [vmem:[%s2184_s9 + $0x230] ss:$8 sps:$4 sm:$0xff]  }
  0x68   : > { %v1827_v44 = vld [vmem:[%s2184_s9 + $0x240] ss:$8 sps:$4 sm:$0xff]   ;;  %v1835_v47 = vld [vmem:[%s2184_s9 + $0x224] ss:$8 sps:$4 sm:$0xff]   ;;  %v1838_v49 = vld [vmem:[%s2184_s9 + $0x214] ss:$8 sps:$4 sm:$0xff]  }
  0x69   : > { %1279 = vmatpush1.bf16.msra.mxu0 %v1754_v60  ;;  %v1833_v48 = vld [vmem:[%s2184_s9 + $0x220] ss:$8 sps:$4 sm:$0xff]   ;;  %v1836_v50 = vld [vmem:[%s2184_s9 + $0x210] ss:$8 sps:$4 sm:$0xff]   ;;  %v1841_v51 = vld [vmem:[%s2184_s9 + $0x204] ss:$8 sps:$4 sm:$0xff]  }
  0x6a   : > { %1280 = vmatprep.subr.bf16.mxu0 %v1758_v61  ;;  %1322 = vmatpush1.bf16.msra.mxu1 %v1757_v62  ;;  %v1839_v52 = vld [vmem:[%s2184_s9 + $0x200] ss:$8 sps:$4 sm:$0xff]   ;;  %v1844_v53 = vld [vmem:[%s2184_s9 + $0x2f4] ss:$8 sps:$4 sm:$0xff]   ;;  %v1842_v54 = vld [vmem:[%s2184_s9 + $0x2f0] ss:$8 sps:$4 sm:$0xff]  }
  0x6b   : > { %1323 = vmatprep.subr.bf16.mxu1 %v1761_v63  ;;  %v1847_v55 = vld [vmem:[%s2184_s9 + $0x2e4] ss:$8 sps:$4 sm:$0xff]   ;;  %v1845_v56 = vld [vmem:[%s2184_s9 + $0x2e0] ss:$8 sps:$4 sm:$0xff]   ;;  %v1850_v57 = vld [vmem:[%s2184_s9 + $0x2d4] ss:$8 sps:$4 sm:$0xff]  }
  0x6c   : > { %v1848_v58 = vld [vmem:[%s2184_s9 + $0x2d0] ss:$8 sps:$4 sm:$0xff]   ;;  %v1853_v59 = vld [vmem:[%s2184_s9 + $0x2c4] ss:$8 sps:$4 sm:$0xff]   ;;  %v1851_v60 = vld [vmem:[%s2184_s9 + $0x2c0] ss:$8 sps:$4 sm:$0xff]  }
  0x6d   : > { %1281 = vmatpush1.bf16.msra.mxu0 %v1760_v0  ;;  %v1856_v61 = vld [vmem:[%s2184_s9 + $0x2b4] ss:$8 sps:$4 sm:$0xff]   ;;  %v1854_v62 = vld [vmem:[%s2184_s9 + $0x2b0] ss:$8 sps:$4 sm:$0xff]   ;;  %v1859_v63 = vld [vmem:[%s2184_s9 + $0x2a4] ss:$8 sps:$4 sm:$0xff]  }
  0x6e   : > { %1282 = vmatprep.subr.bf16.mxu0 %v1764_v1  ;;  %1324 = vmatpush1.bf16.msra.mxu1 %v1763_v2  ;;  %v1857_v0 = vld [vmem:[%s2184_s9 + $0x2a0] ss:$8 sps:$4 sm:$0xff]   ;;  %v1862_v1 = vld [vmem:[%s2184_s9 + $0x294] ss:$8 sps:$4 sm:$0xff]   ;;  %v1860_v2 = vld [vmem:[%s2184_s9 + $0x290] ss:$8 sps:$4 sm:$0xff]  }
  0x6f   : > { %1325 = vmatprep.subr.bf16.mxu1 %v1767_v3  ;;  %v1865_v3 = vld [vmem:[%s2184_s9 + $0x284] ss:$8 sps:$4 sm:$0xff]   ;;  %s2333_s26 = smov (!%p636_p11, %s1560_s26), 17  ;;  %s1673_s12 = sshll.u32 (%p1964_p6), %s1899_s14, 3 }
  0x70   : > { %s638_s29 = scalar_lea.vmem %s2323_s2, %s2333_s26  ;;  %s1421_s7 = scalar_lea.vmem (%p1964_p6), %s2324_s3, %s1673_s12 }
  0x71   : > { %1283 = vmatpush2.bf16.msra.mxu0 %v1766_v4  ;;  %v1863_v4 = vld [vmem:[%s2184_s9 + $0x280] ss:$8 sps:$4 sm:$0xff]  }
  0x72   : > { %1284 = vmatprep.subr.bf16.mxu0 %v1770_v5  ;;  %1326 = vmatpush2.bf16.msra.mxu1 %v1769_v6  ;;  %v1866_v5 = vld [vmem:[%s2321_s0 + $0x10] ss:$24 sps:$4 sm:$0xff]   ;;  %v746_v6 = vlaneseq }
  0x73   : > { %1327 = vmatprep.subr.bf16.mxu1 %v1773_v7 }
  0x74   : > { %v747_v7 = vshrl.u32 %v746_v6, 7 }
  0x75   : > { %1285 = vmatpush2.bf16.msra.mxu0 %v1772_v8 }
  0x76   : > { %1286 = vmatprep.subr.bf16.mxu0 %v1776_v9  ;;  %1328 = vmatpush2.bf16.msra.mxu1 %v1775_v10  ;;  %v748_v9 = vsub.s32 0, %v747_v7  ;;  %v752_v10 = vsub.s32 1, %v747_v7 }
  0x77   : > { %1329 = vmatprep.subr.bf16.mxu1 %v1779_v11  ;;  %v744_v11 = vld [vmem:[%s638_s29] sm:$0x3] }
  0x79   : > { %1287 = vmatpush2.bf16.msra.mxu0 %v1778_v12 }
  0x7a   : > { %1288 = vmatprep.subr.bf16.mxu0 %v1782_v13  ;;  %1330 = vmatpush2.bf16.msra.mxu1 %v1781_v14  ;;  %v749_v14 = vrot.slane %v744_v11, %v748_v9 }
  0x7b   : > { %1331 = vmatprep.subr.bf16.mxu1 %v1785_v15  ;;  %v753_v15 = vrot.slane %v744_v11, %v752_v10 }
  0x7d   : > { %1289 = vmatpush2.bf16.msra.mxu0 %v1784_v16 }
  0x7e   : > { %1290 = vmatprep.subr.bf16.mxu0 %v1788_v17  ;;  %1332 = vmatpush2.bf16.msra.mxu1 %v1787_v18 }
  0x7f   : > { %1333 = vmatprep.subr.bf16.mxu1 %v1791_v19 }
  0x81   : > { %1291 = vmatpush2.bf16.msra.mxu0 %v1790_v20 }
  0x82   : > { %1292 = vmatprep.subr.bf16.mxu0 %v1794_v21  ;;  %1334 = vmatpush2.bf16.msra.mxu1 %v1793_v22 }
  0x83   : > { %1335 = vmatprep.subr.bf16.mxu1 %v1797_v23 }
  0x85   : > { %1293 = vmatpush2.bf16.msra.mxu0 %v1796_v24 }
  0x86   : > { %1294 = vmatprep.subr.bf16.mxu0 %v1800_v25  ;;  %1336 = vmatpush2.bf16.msra.mxu1 %v1799_v26 }
  0x87   : > { %1337 = vmatprep.subr.bf16.mxu1 %v1803_v27 }
  0x89   : > { %1295 = vmatpush2.bf16.msra.mxu0 %v1802_v28 }
  0x8a   : > { %1296 = vmatprep.subr.bf16.mxu0 %v1806_v29  ;;  %1338 = vmatpush2.bf16.msra.mxu1 %v1805_v30 }
  0x8b   : > { %1339 = vmatprep.subr.bf16.mxu1 %v1809_v31 }
  0x8d   : > { %1297 = vmatpush2.bf16.msra.mxu0 %v1808_v32 }
  0x8e   : > { %1352 = vmatprep.subr.bf16.mxu0 %v1817_v33  ;;  %1340 = vmatpush2.bf16.msra.mxu1 %v1814_v34 }
  0x90   : > { %1299 = vmatmul.mubr.bf16.vlgmr.msra.gmra.mxu0 %v1811_v35 }
  0x91   : > { %1353 = vmatpush1.bf16.msra.mxu0 %v1815_v36  ;;  %1384 = vmatprep.mubr.bf16.mxu0 %v1868_v37 }
  0x92   : > { %1342 = vmatmul.mubr.bf16.vlgmr.msra.gmra.mxu1 %v1818_v38  ;;  %1354 = vmatprep.subr.bf16.mxu0 %v1823_v39 }
  0x95   : > { %1355 = vmatpush1.bf16.msra.mxu0 %v1821_v40 }
  0x96   : > { %1356 = vmatprep.subr.bf16.mxu0 %v1826_v41 }
  0x99   : > { %1357 = vmatpush1.bf16.msra.mxu0 %v1824_v42 }
  0x9a   : > { %1358 = vmatprep.subr.bf16.mxu0 %v1829_v43 }
  0x9d   : > { %1359 = vmatpush1.bf16.msra.mxu0 %v1827_v44 }
  0x9e   : > { %1360 = vmatprep.subr.bf16.mxu0 %v1832_v45 }
  0xa1   : > { %1361 = vmatpush1.bf16.msra.mxu0 %v1830_v46 }
  0xa2   : > { %1362 = vmatprep.subr.bf16.mxu0 %v1835_v47 }
  0xa5   : > { %1363 = vmatpush1.bf16.msra.mxu0 %v1833_v48 }
  0xa6   : > { %1364 = vmatprep.subr.bf16.mxu0 %v1838_v49 }
  0xa9   : > { %1365 = vmatpush1.bf16.msra.mxu0 %v1836_v50 }
  0xaa   : > { %1366 = vmatprep.subr.bf16.mxu0 %v1841_v51 }
  0xad   : > { %1367 = vmatpush1.bf16.msra.mxu0 %v1839_v52 }
  0xae   : > { %1368 = vmatprep.subr.bf16.mxu0 %v1844_v53 }
  0xb1   : > { %1369 = vmatpush2.bf16.msra.mxu0 %v1842_v54 }
  0xb2   : > { %1370 = vmatprep.subr.bf16.mxu0 %v1847_v55 }
  0xb5   : > { %1371 = vmatpush2.bf16.msra.mxu0 %v1845_v56 }
  0xb6   : > { %1372 = vmatprep.subr.bf16.mxu0 %v1850_v57 }
  0xb9   : > { %1373 = vmatpush2.bf16.msra.mxu0 %v1848_v58 }
  0xba   : > { %1374 = vmatprep.subr.bf16.mxu0 %v1853_v59 }
  0xbd   : > { %1375 = vmatpush2.bf16.msra.mxu0 %v1851_v60 }
  0xbe   : > { %1376 = vmatprep.subr.bf16.mxu0 %v1856_v61 }
  0xc1   : > { %1377 = vmatpush2.bf16.msra.mxu0 %v1854_v62 }
  0xc2   : > { %1378 = vmatprep.subr.bf16.mxu0 %v1859_v63 }
  0xc5   : > { %1379 = vmatpush2.bf16.msra.mxu0 %v1857_v0 }
  0xc6   : > { %1380 = vmatprep.subr.bf16.mxu0 %v1862_v1 }
  0xc9   : > { %1381 = vmatpush2.bf16.msra.mxu0 %v1860_v2 }
  0xca   : > { %1382 = vmatprep.subr.bf16.mxu0 %v1865_v3 }
  0xcd   : > { %1383 = vmatpush2.bf16.msra.mxu0 %v1863_v4 }
  0xd0   : > { %1385 = vmatmul.mubr.bf16.vlgmr.msra.gmra.mxu0 %v1866_v5 }
 0x150   : > { %v1300_v8 = vpop.f32.mrf.mxu0 }
 0x151   : > { %v1301_v18 = vadd.f32 %v1300_v8, %v749_v14 }
 0x152   : > { %v1302_v12 = vpop.f32.mrf.mxu0  ;;  %v1343_v13 = vpop.f32.mrf.mxu1 }
 0x153   : > { %v1303_v19 = vadd.f32 %v1302_v12, %v753_v15  ;;  %v1344_v23 = vadd.f32 %v1343_v13, %v1301_v18 }
 0x154   : > { %v1304_v16 = vpop.f32.mrf.mxu0  ;;  %v1345_v17 = vpop.f32.mrf.mxu1 }
 0x155   : > { %v1305_v24 = vadd.f32 %v1304_v16, %v749_v14  ;;  %v1346_v25 = vadd.f32 %v1345_v17, %v1303_v19 }
 0x156   : > { %v1306_v20 = vpop.f32.mrf.mxu0  ;;  %v1347_v21 = vpop.f32.mrf.mxu1 }
 0x157   : > { %v1307_v26 = vadd.f32 %v1306_v20, %v753_v15  ;;  %v1348_v32 = vadd.f32 %v1347_v21, %v1305_v24 }
 0x158   : > { %v1349_v27 = vpop.f32.mrf.mxu1 }
 0x159   : > { %v1350_v33 = vadd.f32 %v1349_v27, %v1307_v26 }
 0x190   : > { %v1386_v22 = vpop.f32.mrf.mxu0 }
 0x191   : > { %v1387_v29 = vadd.f32 %v1386_v22, %v1344_v23 }
 0x192   : > { %v1388_v28 = vpop.f32.mrf.mxu0 }
 0x193   : > { %v1389_v30 = vadd.f32 %v1388_v28, %v1346_v25 }
 0x194   : > { %v1390_v31 = vpop.f32.mrf.mxu0 }
 0x195   : > { %v1671_v34 = vpack.c.bf16 %v1389_v30, %v1387_v29  ;;  %v1391_v36 = vadd.f32 %v1390_v31, %v1348_v32 }
 0x196   : > { %v1392_v35 = vpop.f32.mrf.mxu0 }
 0x197   : > { %1407 = vst [vmem:[%s626_s5] sm:$0xff] %v1671_v34  ;;  %v1393_v37 = vadd.f32 %v1392_v35, %v1350_v33  ;;  %1415 = sbr.rel (!%p1964_p6) target bundleno = 420 (0x1a4), region = 74 }
 0x199   : > { %v1672_v38 = vpack.c.bf16 %v1393_v37, %v1391_v36 }
 0x19b   : > { %1408 = vst [vmem:[%s626_s5 + $0x8] sm:$0xff] %v1672_v38 }
 0x19e   : > { %v1452_v39 = vld [vmem:[%s626_s5] sm:$0xff] }
 0x19f   : > { %1453 = vst [vmem:[%s1421_s7] sm:$0xff] %v1452_v39 }
 0x1a2   : > { %v1454_v40 = vld [vmem:[%s626_s5 + $0x8] sm:$0xff] }
 0x1a3   : > { %1455 = vst [vmem:[%s1421_s7 + $0x48] sm:$0xff] %v1454_v40 }
 0x1a4 PF: > { %s13_s16 = sadd.s32 1, %s1907_s16   ;;  %s2326_s12 = smov %s1895_s13 }
 0x1a5   : > { %p10_p12 = scmp.ge.s32.totalorder %s13_s16, 11   ;;  %s2327_s13 = smov %s1969_s22 }
 0x1a6   : > { %s2328_s14 = smov %s1903_s15  ;;  %s2329_s15 = smov %s2331_s17 }
 0x1a7   :  { %12 = sbr.rel (!%p10_p12) target bundleno = 3 (0x3), region = 149 }

// kernel: bert_classifier_forward.23
= control target key start
LH: loop header
LB: loop body
LE: loop exit
PB: predicated region body
PF: predicated region fallthrough
CT: control target
= control target key end

     0   :  { %v131_v29 = vlaneseq  ;;  %v952_v33 = vmov 1966171168   ;;  %s1166_s0 = inlined_call_operand.vmem [shape: bf16[2,768], index: 0, kind: input, shape index: {}]   ;;  %s1167_s1 = inlined_call_operand.vmem [shape: bf16[768,128], index: 1, kind: input, shape index: {}]   ;;  %s1168_s2 = inlined_call_operand.vmem [shape: f32[1,128], index: 2, kind: input, shape index: {}]   ;;  %s1169_s3 = inlined_call_operand.vmem [shape: bf16[128,128], index: 3, kind: input, shape index: {}]   ;;  %s1170_s4 = inlined_call_operand.vmem [shape: f32[1,128], index: 4, kind: input, shape index: {}]   ;;  %s1171_s5 = inlined_call_operand.hbm [shape: f32[2,128], index: 5, kind: output, shape index: {}]  }
   0x1   :  { %v873_v0 = vld [vmem:[%s1167_s1 + $0x78] sm:$0xff]   ;;  %v877_v4 = vld [vmem:[%s1167_s1 + $0x70] sm:$0xff]   ;;  %v881_v8 = vld [vmem:[%s1167_s1 + $0x68] sm:$0xff]   ;;  %v129_v34 = vunpack.c.l.s4 %v952_v33 }
   0x2   :  { %v874_v1 = vld [vmem:[%s1167_s1 + $0x38] sm:$0xff]   ;;  %774 = vmatprep.subr.bf16.mxu0 %v873_v0  ;;  %v878_v5 = vld [vmem:[%s1167_s1 + $0x30] sm:$0xff]   ;;  %v882_v9 = vld [vmem:[%s1167_s1 + $0x28] sm:$0xff]   ;;  %v132_v35 = vshrl.u32 %v131_v29, 7 }
   0x3   :  { %v875_v2 = vld [vmem:[%s1167_s1 + $0xf8] sm:$0xff]   ;;  %775 = vmatpush3.bf16.msra.mxu0 %v874_v1  ;;  %v879_v6 = vld [vmem:[%s1167_s1 + $0xf0] sm:$0xff]   ;;  %v883_v10 = vld [vmem:[%s1167_s1 + $0xe8] sm:$0xff]   ;;  %v130_v39 = vunpack.c.0.s8 %v129_v34 }
   0x4   :  { %v876_v3 = vld [vmem:[%s1167_s1 + $0xb8] sm:$0xff]   ;;  %796 = vmatprep.subr.bf16.mxu1 %v875_v2  ;;  %776 = vmatprep.subr.bf16.mxu0 %v877_v4  ;;  %v880_v7 = vld [vmem:[%s1167_s1 + $0xb0] sm:$0xff]   ;;  %v884_v11 = vld [vmem:[%s1167_s1 + $0xa8] sm:$0xff]  }
   0x5   :  { %797 = vmatpush3.bf16.msra.mxu1 %v876_v3  ;;  %v885_v12 = vld [vmem:[%s1167_s1 + $0x60] sm:$0xff]   ;;  %v889_v16 = vld [vmem:[%s1167_s1 + $0x58] sm:$0xff]   ;;  %v893_v20 = vld [vmem:[%s1167_s1 + $0x50] sm:$0xff]   ;;  %v133_v40 = vsub.s32 %v130_v39, %v132_v35 }
   0x6   :  { %798 = vmatprep.subr.bf16.mxu1 %v879_v6  ;;  %v886_v13 = vld [vmem:[%s1167_s1 + $0x20] sm:$0xff]   ;;  %v890_v17 = vld [vmem:[%s1167_s1 + $0x18] sm:$0xff]   ;;  %v894_v21 = vld [vmem:[%s1167_s1 + $0x10] sm:$0xff]  }
   0x7   :  { %777 = vmatpush3.bf16.msra.mxu0 %v878_v5  ;;  %v887_v14 = vld [vmem:[%s1167_s1 + $0xe0] sm:$0xff]   ;;  %v891_v18 = vld [vmem:[%s1167_s1 + $0xd8] sm:$0xff]   ;;  %v895_v22 = vld [vmem:[%s1167_s1 + $0xd0] sm:$0xff]  }
   0x8   :  { %778 = vmatprep.subr.bf16.mxu0 %v881_v8  ;;  %v888_v15 = vld [vmem:[%s1167_s1 + $0xa0] sm:$0xff]   ;;  %v892_v19 = vld [vmem:[%s1167_s1 + $0x98] sm:$0xff]   ;;  %v896_v23 = vld [vmem:[%s1167_s1 + $0x90] sm:$0xff]  }
   0x9   :  { %799 = vmatpush3.bf16.msra.mxu1 %v880_v7  ;;  %v897_v24 = vld [vmem:[%s1167_s1 + $0x48] sm:$0xff]   ;;  %v901_v28 = vld [vmem:[%s1167_s1 + $0x40] sm:$0xff]   ;;  %v906_v37 = vld [vmem:[%s1167_s1 + $0x178] sm:$0xff]  }
   0xa   :  { %800 = vmatprep.subr.bf16.mxu1 %v883_v10  ;;  %v898_v25 = vld [vmem:[%s1167_s1 + $0x8] sm:$0xff]   ;;  %v902_v30 = vld [vmem:[%s1167_s1] sm:$0xff]   ;;  %v907_v47 = vld [vmem:[%s1167_s1 + $0x138] sm:$0xff]  }
   0xb   :  { %779 = vmatpush3.bf16.msra.mxu0 %v882_v9  ;;  %v899_v26 = vld [vmem:[%s1167_s1 + $0xc8] sm:$0xff]   ;;  %v903_v31 = vld [vmem:[%s1167_s1 + $0xc0] sm:$0xff]   ;;  %v908_v49 = vld [vmem:[%s1167_s1 + $0x170] sm:$0xff]  }
   0xc   :  { %780 = vmatprep.subr.bf16.mxu0 %v885_v12  ;;  %v900_v27 = vld [vmem:[%s1167_s1 + $0x88] sm:$0xff]   ;;  %v22_v32 = vld [vmem:[%s1166_s0] sm:$0x3f]  ;;  %v909_v52 = vld [vmem:[%s1167_s1 + $0x130] sm:$0xff]  }
   0xd   :  { %801 = vmatpush3.bf16.msra.mxu1 %v884_v11  ;;  %v905_v36 = vld [vmem:[%s1167_s1 + $0x80] sm:$0xff]   ;;  %v127_v38 = vcombine.high %v22_v32, %v22_v32  ;;  %v134_v41 = vrot.slane %v22_v32, %v133_v40  ;;  %v910_v53 = vld [vmem:[%s1167_s1 + $0x168] sm:$0xff]  }
   0xe   :  { %802 = vmatprep.subr.bf16.mxu1 %v887_v14  ;;  %v911_v54 = vld [vmem:[%s1167_s1 + $0x128] sm:$0xff]   ;;  %v912_v55 = vld [vmem:[%s1167_s1 + $0x160] sm:$0xff]  }
   0xf   :  { %781 = vmatpush3.bf16.msra.mxu0 %v886_v13  ;;  %v141_v42 = vrot.slane %v127_v38, %v133_v40  ;;  %v142_v43 = vcombine.high %v134_v41, %v134_v41  ;;  %v150_v44 = vrot.slane %v134_v41, %v133_v40  ;;  %v913_v56 = vld [vmem:[%s1167_s1 + $0x120] sm:$0xff]  }
  0x10   :  { %782 = vmatprep.subr.bf16.mxu0 %v889_v16 }
  0x11   :  { %803 = vmatpush3.bf16.msra.mxu1 %v888_v15  ;;  %v143_v45 = vcombine.high %v141_v42, %v141_v42  ;;  %v164_v46 = vrot.slane %v142_v43, %v133_v40  ;;  %v172_v48 = vcombine.high %v150_v44, %v150_v44 }
  0x12   :  { %804 = vmatprep.subr.bf16.mxu1 %v891_v18 }
  0x13   :  { %783 = vmatpush3.bf16.msra.mxu0 %v890_v17  ;;  %500 = vmatprep.mubr.bf16.mxu0 %v164_v46  ;;  %v173_v50 = vcombine.high %v164_v46, %v164_v46  ;;  %v171_v51 = vrot.slane %v143_v45, %v133_v40 }
  0x14   :  { %784 = vmatprep.subr.bf16.mxu0 %v893_v20 }
  0x15   :  { %805 = vmatpush3.bf16.msra.mxu1 %v892_v19  ;;  %540 = vmatprep.mubr.bf16.mxu1 %v173_v50 }
  0x16   :  { %806 = vmatprep.subr.bf16.mxu1 %v895_v22 }
  0x17   :  { %785 = vmatpush3.bf16.msra.mxu0 %v894_v21 }
  0x18   :  { %786 = vmatprep.subr.bf16.mxu0 %v897_v24 }
  0x19   :  { %807 = vmatpush3.bf16.msra.mxu1 %v896_v23 }
  0x1a   :  { %808 = vmatprep.subr.bf16.mxu1 %v899_v26 }
  0x1b   :  { %787 = vmatpush3.bf16.msra.mxu0 %v898_v25 }
  0x1c   :  { %788 = vmatprep.subr.bf16.mxu0 %v901_v28 }
  0x1d   :  { %809 = vmatpush3.bf16.msra.mxu1 %v900_v27 }
  0x1e   :  { %810 = vmatprep.subr.bf16.mxu1 %v903_v31 }
  0x1f   :  { %789 = vmatpush3.bf16.msra.mxu0 %v902_v30 }
  0x20   :  { %818 = vmatprep.subr.bf16.mxu0 %v906_v37 }
  0x21   :  { %811 = vmatpush3.bf16.msra.mxu1 %v905_v36 }
  0x22   :  { %501 = vmatmul.mubr.bf16.vlgmr.msra.gmra.mxu0 %v150_v44 }
  0x23   :  { %819 = vmatpush3.bf16.msra.mxu0 %v907_v47  ;;  %580 = vmatprep.mubr.bf16.mxu0 %v171_v51 }
  0x24   :  { %541 = vmatmul.mubr.bf16.vlgmr.msra.gmra.mxu1 %v172_v48  ;;  %820 = vmatprep.subr.bf16.mxu0 %v908_v49 }
  0x27   :  { %821 = vmatpush3.bf16.msra.mxu0 %v909_v52 }
  0x28   :  { %822 = vmatprep.subr.bf16.mxu0 %v910_v53 }
  0x2b   :  { %823 = vmatpush3.bf16.msra.mxu0 %v911_v54 }
  0x2c   :  { %10 = vsyncpa [#allocation3], 0  ;;  %824 = vmatprep.subr.bf16.mxu0 %v912_v55  ;;  %v914_v57 = vld [vmem:[%s1167_s1 + $0x158] sm:$0xff]   ;;  %v916_v59 = vld [vmem:[%s1167_s1 + $0x150] sm:$0xff]   ;;  %v157_v1 = vrot.slane %v141_v42, %v133_v40  ;;  %v953_v3 = vmov 0.0   ;;  %vm954_vm0 = vmmov 0  }
  0x2d   :  { %v915_v58 = vld [vmem:[%s1167_s1 + $0x118] sm:$0xff]   ;;  %v917_v60 = vld [vmem:[%s1167_s1 + $0x110] sm:$0xff]   ;;  %v918_v61 = vld [vmem:[%s1167_s1 + $0x148] sm:$0xff]   ;;  %849 = vmatprep.subr.bf16.mxu1 %v953_v3  ;;  %865 = vmatprep.mubr.msk.bf16.mxu1 %vm954_vm0, %v953_v3  ;;  %s955_s7 = smov [#allocation2]  }
  0x2e   :  { %v919_v62 = vld [vmem:[%s1167_s1 + $0x108] sm:$0xff]   ;;  %v920_v63 = vld [vmem:[%s1167_s1 + $0x140] sm:$0xff]   ;;  %v922_v2 = vld [vmem:[%s1169_s3 + $0x38] sm:$0xff]   ;;  %s708_s8 = sshll.u32 %s955_s7, 4  ;;  %s709_s8 = int_to_ptr.vmem [resolvable:$true] %s708_s8 }
  0x2f   :  { %825 = vmatpush3.bf16.msra.mxu0 %v913_v56  ;;  %v921_v0 = vld [vmem:[%s1167_s1 + $0x100] sm:$0xff]   ;;  %850 = vmatpush3.bf16.msra.mxu1 %v922_v2  ;;  %v923_v4 = vld [vmem:[%s1169_s3 + $0x30] sm:$0xff]   ;;  %v924_v5 = vld [vmem:[%s1169_s3 + $0x28] sm:$0xff]   ;;  %p935_p1 = scmp.lt.s32.totalorder %s709_s8, %s709_s8 }
  0x30   :  { %826 = vmatprep.subr.bf16.mxu0 %v914_v57  ;;  %851 = vmatprep.subr.bf16.mxu1 %v953_v3  ;;  %v925_v6 = vld [vmem:[%s1169_s3 + $0x20] sm:$0xff]   ;;  %v926_v7 = vld [vmem:[%s1169_s3 + $0x18] sm:$0xff]   ;;  %v927_v8 = vld [vmem:[%s1169_s3 + $0x10] sm:$0xff]  }
  0x31   :  { %v928_v9 = vld [vmem:[%s1169_s3 + $0x8] sm:$0xff]   ;;  %v929_v10 = vld [vmem:[%s1169_s3] sm:$0xff]  }
  0x32   :  { %v716_v20 = vld [vmem:[%s1168_s2] ss:$0 sm:$0xff]  ;;  %s930_s2 = scalar_lea.vmem %s709_s8, 32 }
  0x33   :  { %827 = vmatpush3.bf16.msra.mxu0 %v915_v58  ;;  %852 = vmatpush3.bf16.msra.mxu1 %v923_v4  ;;  %v765_v32 = vld [vmem:[%s1170_s4] ss:$0 sm:$0xff]  ;;  %p931_p0 = scmp.ne.s32.totalorder %s709_s8, %s930_s2  ;;  %p936_p2 = scmp.lt.s32.totalorder %s930_s2, %s930_s2 }
  0x34   :  { %828 = vmatprep.subr.bf16.mxu0 %v916_v59  ;;  %853 = vmatprep.subr.bf16.mxu1 %v953_v3 }
  0x35   :  { %p937_p3 = por %p936_p2, %p935_p1 }
  0x37   :  { %829 = vmatpush3.bf16.msra.mxu0 %v917_v60  ;;  %854 = vmatpush3.bf16.msra.mxu1 %v924_v5  ;;  %p938_p4 = pnand %p937_p3, %p931_p0 }
  0x38   :  { %830 = vmatprep.subr.bf16.mxu0 %v918_v61  ;;  %855 = vmatprep.subr.bf16.mxu1 %v953_v3 }
  0x3b   :  { %831 = vmatpush3.bf16.msra.mxu0 %v919_v62  ;;  %856 = vmatpush3.bf16.msra.mxu1 %v925_v6 }
  0x3c   :  { %832 = vmatprep.subr.bf16.mxu0 %v920_v63  ;;  %857 = vmatprep.subr.bf16.mxu1 %v953_v3 }
  0x3f   :  { %833 = vmatpush3.bf16.msra.mxu0 %v921_v0  ;;  %858 = vmatpush3.bf16.msra.mxu1 %v926_v7 }
  0x40   :  { %859 = vmatprep.subr.bf16.mxu1 %v953_v3 }
  0x42   :  { %581 = vmatmul.mubr.bf16.vlgmr.msra.gmra.mxu0 %v157_v1 }
  0x43   :  { %860 = vmatpush3.bf16.msra.mxu1 %v927_v8 }
  0x44   :  { %861 = vmatprep.subr.bf16.mxu1 %v953_v3 }
  0x47   :  { %862 = vmatpush3.bf16.msra.mxu1 %v928_v9 }
  0x48   :  { %863 = vmatprep.subr.bf16.mxu1 %v953_v3 }
  0x4b   :  { %864 = vmatpush3.bf16.msra.mxu1 %v929_v10 }
  0xe2   :  { %v790_v11 = vpop.f32.mrf.mxu0 }
  0xe4   :  { %v791_v12 = vpop.f32.mrf.mxu0  ;;  %v812_v13 = vpop.f32.mrf.mxu1 }
  0xe5   :  { %v792_v19 = vadd.f32 %v791_v12, %v790_v11 }
  0xe6   :  { %v793_v14 = vpop.f32.mrf.mxu0  ;;  %v813_v15 = vpop.f32.mrf.mxu1 }
  0xe7   :  { %v503_v21 = vadd.f32 %v792_v19, %v716_v20  ;;  %v814_v22 = vadd.f32 %v813_v15, %v812_v13 }
  0xe8   :  { %v794_v16 = vpop.f32.mrf.mxu0  ;;  %v815_v17 = vpop.f32.mrf.mxu1 }
  0xe9   :  { %v543_v25 = vadd.f32 %v814_v22, %v503_v21 }
  0xea   :  { %v816_v18 = vpop.f32.mrf.mxu1 }
 0x102   :  { %v834_v23 = vpop.f32.mrf.mxu0 }
 0x104   :  { %v835_v24 = vpop.f32.mrf.mxu0 }
 0x105   :  { %v836_v26 = vadd.f32 %v835_v24, %v834_v23 }
 0x106   :  { %v837_v27 = vpop.f32.mrf.mxu0 }
 0x107   :  { %v583_v28 = vadd.f32 %v836_v26, %v543_v25 }
 0x108   :  { %v838_v29 = vpop.f32.mrf.mxu0 }
 0x109   :  { %v588_v30 = vmax.f32 %v583_v28, 0.0 }
 0x10b   :  { %v589_v31 = vpack.c.bf16 %v588_v30, %v588_v30 }
 0x10d   :  { %866 = vmatmul.mubr.bf16.vlgmr.msra.gmra.mxu1 %v589_v31 }
 0x1cd   :  { %v695_v33 = vpop.f32.mrf.mxu1 }
 0x1ce   :  { %v696_v34 = vadd.f32 %v765_v32, %v695_v33 }
 0x1cf   :  { %v867_v35 = vpop.f32.mrf.mxu1 }
 0x1d0   :  { %701 = vst [vmem:[#allocation2] sm:$0x3] %v696_v34 }
 0x1d1   :  { %v698_v36 = vpop.f32.mrf.mxu1 }
 0x1d2   :  { %941 = shalt.err (!%p938_p4)
}
 0x1d3   :  { %711 = dma.vmem_to_hbm [thread:$0]  %s709_s8, 32, %s1171_s5, [#allocation3]   ;;  %v868_v37 = vpop.f32.mrf.mxu1 }
 0x1d4   :  { %950 = dma.done.wait [#allocation3], 32  }
 0x1d5   :  { %951 = vsyncadd [#allocation3], 4294967264 }
 0x1d6   :  { %715 = vsyncpa [#allocation3], 1 }

// kernel: bert_classifier_forward.17
= control target key start
LH: loop header
LB: loop body
LE: loop exit
PB: predicated region body
PF: predicated region fallthrough
CT: control target
= control target key end

     0   :  { %s8223_s1 = inlined_call_operand.vmem [shape: bf16[1536,768], index: 1, kind: input, shape index: {}]   ;;  %s8224_s0 = inlined_call_operand.vmem [shape: bf16[16,1536], index: 0, kind: input, shape index: {}]   ;;  %s8225_s2 = inlined_call_operand.vmem [shape: f32[1,768], index: 2, kind: input, shape index: {}]   ;;  %s8226_s3 = inlined_call_operand.vmem [shape: bf16[16,768], index: 3, kind: input, shape index: {}]   ;;  %s8227_s4 = inlined_call_operand.vmem [shape: f32[1,768], index: 4, kind: input, shape index: {}]   ;;  %s8228_s5 = inlined_call_operand.vmem [shape: f32[1,768], index: 5, kind: input, shape index: {}]   ;;  %s8229_s6 = inlined_call_operand.vmem [shape: bf16[16,768], index: 6, kind: output, shape index: {}]  }
   0x1   :  { %v5194_v0 = vld [vmem:[%s8223_s1 + $0x154] ss:$24 sps:$4 sm:$0xff]   ;;  %v5198_v2 = vld [vmem:[%s8223_s1 + $0x150] ss:$24 sps:$4 sm:$0xff]   ;;  %v5200_v4 = vld [vmem:[%s8223_s1 + $0x124] ss:$24 sps:$4 sm:$0xff]  }
   0x2   :  { %v5196_v1 = vld [vmem:[%s8223_s1 + $0x454] ss:$24 sps:$4 sm:$0xff]   ;;  %3583 = vmatprep.subr.bf16.mxu0 %v5194_v0  ;;  %v5199_v3 = vld [vmem:[%s8223_s1 + $0x450] ss:$24 sps:$4 sm:$0xff]   ;;  %v5202_v5 = vld [vmem:[%s8223_s1 + $0x424] ss:$24 sps:$4 sm:$0xff]  }
   0x3   :  { %3626 = vmatprep.subr.bf16.mxu1 %v5196_v1  ;;  %3584 = vmatpush1.bf16.msra.mxu0 %v5198_v2  ;;  %v5204_v6 = vld [vmem:[%s8223_s1 + $0x120] ss:$24 sps:$4 sm:$0xff]   ;;  %v5206_v8 = vld [vmem:[%s8223_s1 + $0xf4] ss:$24 sps:$4 sm:$0xff]   ;;  %v5210_v10 = vld [vmem:[%s8223_s1 + $0xf0] ss:$24 sps:$4 sm:$0xff]  }
   0x4   :  { %3627 = vmatpush1.bf16.msra.mxu1 %v5199_v3  ;;  %3585 = vmatprep.subr.bf16.mxu0 %v5200_v4  ;;  %v5205_v7 = vld [vmem:[%s8223_s1 + $0x420] ss:$24 sps:$4 sm:$0xff]   ;;  %v5208_v9 = vld [vmem:[%s8223_s1 + $0x3f4] ss:$24 sps:$4 sm:$0xff]   ;;  %v5211_v11 = vld [vmem:[%s8223_s1 + $0x3f0] ss:$24 sps:$4 sm:$0xff]  }
   0x5   :  { %3628 = vmatprep.subr.bf16.mxu1 %v5202_v5  ;;  %v5212_v12 = vld [vmem:[%s8223_s1 + $0xc4] ss:$24 sps:$4 sm:$0xff]   ;;  %v5216_v14 = vld [vmem:[%s8223_s1 + $0xc0] ss:$24 sps:$4 sm:$0xff]   ;;  %v5218_v16 = vld [vmem:[%s8223_s1 + $0x94] ss:$24 sps:$4 sm:$0xff]  }
   0x6   :  { %v5214_v13 = vld [vmem:[%s8223_s1 + $0x3c4] ss:$24 sps:$4 sm:$0xff]   ;;  %v5217_v15 = vld [vmem:[%s8223_s1 + $0x3c0] ss:$24 sps:$4 sm:$0xff]   ;;  %v5220_v17 = vld [vmem:[%s8223_s1 + $0x394] ss:$24 sps:$4 sm:$0xff]  }
   0x7   :  { %3586 = vmatpush1.bf16.msra.mxu0 %v5204_v6  ;;  %v5222_v18 = vld [vmem:[%s8223_s1 + $0x90] ss:$24 sps:$4 sm:$0xff]   ;;  %v5224_v20 = vld [vmem:[%s8223_s1 + $0x64] ss:$24 sps:$4 sm:$0xff]   ;;  %v5228_v22 = vld [vmem:[%s8223_s1 + $0x60] ss:$24 sps:$4 sm:$0xff]  }
   0x8   :  { %3629 = vmatpush1.bf16.msra.mxu1 %v5205_v7  ;;  %3587 = vmatprep.subr.bf16.mxu0 %v5206_v8  ;;  %v5223_v19 = vld [vmem:[%s8223_s1 + $0x390] ss:$24 sps:$4 sm:$0xff]   ;;  %v5226_v21 = vld [vmem:[%s8223_s1 + $0x364] ss:$24 sps:$4 sm:$0xff]   ;;  %v5229_v23 = vld [vmem:[%s8223_s1 + $0x360] ss:$24 sps:$4 sm:$0xff]  }
   0x9   :  { %3630 = vmatprep.subr.bf16.mxu1 %v5208_v9  ;;  %v5230_v24 = vld [vmem:[%s8223_s1 + $0x34] ss:$24 sps:$4 sm:$0xff]   ;;  %v5234_v26 = vld [vmem:[%s8223_s1 + $0x30] ss:$24 sps:$4 sm:$0xff]   ;;  %v5236_v28 = vld [vmem:[%s8223_s1 + $0x4] ss:$24 sps:$4 sm:$0xff]  }
   0xa   :  { %v5232_v25 = vld [vmem:[%s8223_s1 + $0x334] ss:$24 sps:$4 sm:$0xff]   ;;  %v5235_v27 = vld [vmem:[%s8223_s1 + $0x330] ss:$24 sps:$4 sm:$0xff]   ;;  %v5238_v29 = vld [vmem:[%s8223_s1 + $0x304] ss:$24 sps:$4 sm:$0xff]  }
   0xb   :  { %3588 = vmatpush1.bf16.msra.mxu0 %v5210_v10  ;;  %v5240_v30 = vld [vmem:[%s8223_s1] ss:$24 sps:$4 sm:$0xff]   ;;  %v5242_v32 = vld [vmem:[%s8223_s1 + $0x2d4] ss:$24 sps:$4 sm:$0xff]   ;;  %v5246_v34 = vld [vmem:[%s8223_s1 + $0x2d0] ss:$24 sps:$4 sm:$0xff]  }
   0xc   :  { %3631 = vmatpush1.bf16.msra.mxu1 %v5211_v11  ;;  %3589 = vmatprep.subr.bf16.mxu0 %v5212_v12  ;;  %v5241_v31 = vld [vmem:[%s8223_s1 + $0x300] ss:$24 sps:$4 sm:$0xff]   ;;  %v5244_v33 = vld [vmem:[%s8223_s1 + $0x5d4] ss:$24 sps:$4 sm:$0xff]   ;;  %v5247_v35 = vld [vmem:[%s8223_s1 + $0x5d0] ss:$24 sps:$4 sm:$0xff]  }
   0xd   :  { %3632 = vmatprep.subr.bf16.mxu1 %v5214_v13  ;;  %v5248_v36 = vld [vmem:[%s8223_s1 + $0x2a4] ss:$24 sps:$4 sm:$0xff]   ;;  %v5252_v38 = vld [vmem:[%s8223_s1 + $0x2a0] ss:$24 sps:$4 sm:$0xff]   ;;  %v5254_v40 = vld [vmem:[%s8223_s1 + $0x274] ss:$24 sps:$4 sm:$0xff]  }
   0xe   :  { %v5250_v37 = vld [vmem:[%s8223_s1 + $0x5a4] ss:$24 sps:$4 sm:$0xff]   ;;  %v5253_v39 = vld [vmem:[%s8223_s1 + $0x5a0] ss:$24 sps:$4 sm:$0xff]   ;;  %v5256_v41 = vld [vmem:[%s8223_s1 + $0x574] ss:$24 sps:$4 sm:$0xff]  }
   0xf   :  { %3590 = vmatpush1.bf16.msra.mxu0 %v5216_v14  ;;  %v5258_v42 = vld [vmem:[%s8223_s1 + $0x270] ss:$24 sps:$4 sm:$0xff]   ;;  %v5260_v44 = vld [vmem:[%s8223_s1 + $0x244] ss:$24 sps:$4 sm:$0xff]   ;;  %v5264_v46 = vld [vmem:[%s8223_s1 + $0x240] ss:$24 sps:$4 sm:$0xff]  }
  0x10   :  { %3633 = vmatpush1.bf16.msra.mxu1 %v5217_v15  ;;  %3591 = vmatprep.subr.bf16.mxu0 %v5218_v16  ;;  %v5259_v43 = vld [vmem:[%s8223_s1 + $0x570] ss:$24 sps:$4 sm:$0xff]   ;;  %v5262_v45 = vld [vmem:[%s8223_s1 + $0x544] ss:$24 sps:$4 sm:$0xff]   ;;  %v5265_v47 = vld [vmem:[%s8223_s1 + $0x540] ss:$24 sps:$4 sm:$0xff]  }
  0x11   :  { %3634 = vmatprep.subr.bf16.mxu1 %v5220_v17  ;;  %v5290_v48 = vld [vmem:[%s8224_s0 + $0x4] ss:$48 sps:$4 sm:$0xff]   ;;  %v5292_v50 = vld [vmem:[%s8224_s0 + $0xc] ss:$48 sps:$4 sm:$0xff]   ;;  %v5270_v52 = vld [vmem:[%s8223_s1 + $0x210] ss:$24 sps:$4 sm:$0xff]  }
  0x12   :  { %v5266_v49 = vld [vmem:[%s8223_s1 + $0x214] ss:$24 sps:$4 sm:$0xff]   ;;  %3615 = vmatprep.mubr.bf16.mxu0 %v5290_v48  ;;  %3658 = vmatprep.mubr.bf16.mxu1 %v5292_v50  ;;  %v5271_v53 = vld [vmem:[%s8223_s1 + $0x510] ss:$24 sps:$4 sm:$0xff]   ;;  %v5272_v54 = vld [vmem:[%s8223_s1 + $0x1e4] ss:$24 sps:$4 sm:$0xff]  }
  0x13   :  { %3592 = vmatpush1.bf16.msra.mxu0 %v5222_v18  ;;  %v5268_v51 = vld [vmem:[%s8223_s1 + $0x514] ss:$24 sps:$4 sm:$0xff]   ;;  %v5274_v55 = vld [vmem:[%s8223_s1 + $0x4e4] ss:$24 sps:$4 sm:$0xff]   ;;  %v5276_v56 = vld [vmem:[%s8223_s1 + $0x1e0] ss:$24 sps:$4 sm:$0xff]  }
  0x14   :  { %3635 = vmatpush1.bf16.msra.mxu1 %v5223_v19  ;;  %3593 = vmatprep.subr.bf16.mxu0 %v5224_v20  ;;  %v5277_v57 = vld [vmem:[%s8223_s1 + $0x4e0] ss:$24 sps:$4 sm:$0xff]   ;;  %v5278_v58 = vld [vmem:[%s8223_s1 + $0x1b4] ss:$24 sps:$4 sm:$0xff]   ;;  %v5282_v60 = vld [vmem:[%s8223_s1 + $0x1b0] ss:$24 sps:$4 sm:$0xff]  }
  0x15   :  { %3636 = vmatprep.subr.bf16.mxu1 %v5226_v21  ;;  %v5280_v59 = vld [vmem:[%s8223_s1 + $0x4b4] ss:$24 sps:$4 sm:$0xff]   ;;  %v5283_v61 = vld [vmem:[%s8223_s1 + $0x4b0] ss:$24 sps:$4 sm:$0xff]   ;;  %v5284_v62 = vld [vmem:[%s8223_s1 + $0x184] ss:$24 sps:$4 sm:$0xff]  }
  0x16   :  { %v5286_v63 = vld [vmem:[%s8223_s1 + $0x484] ss:$24 sps:$4 sm:$0xff]   ;;  %v5288_v0 = vld [vmem:[%s8223_s1 + $0x180] ss:$24 sps:$4 sm:$0xff]   ;;  %v5298_v2 = vld [vmem:[%s8223_s1 + $0x754] ss:$24 sps:$4 sm:$0xff]  }
  0x17   :  { %3594 = vmatpush1.bf16.msra.mxu0 %v5228_v22  ;;  %v5289_v1 = vld [vmem:[%s8223_s1 + $0x480] ss:$24 sps:$4 sm:$0xff]   ;;  %v5301_v3 = vld [vmem:[%s8223_s1 + $0xa54] ss:$24 sps:$4 sm:$0xff]   ;;  %v5296_v6 = vld [vmem:[%s8223_s1 + $0x750] ss:$24 sps:$4 sm:$0xff]  }
  0x18   :  { %3637 = vmatpush1.bf16.msra.mxu1 %v5229_v23  ;;  %3595 = vmatprep.subr.bf16.mxu0 %v5230_v24  ;;  %v5294_v4 = vld [vmem:[%s8224_s0] ss:$48 sps:$4 sm:$0xff]   ;;  %v5295_v5 = vld [vmem:[%s8224_s0 + $0x8] ss:$48 sps:$4 sm:$0xff]   ;;  %v5304_v8 = vld [vmem:[%s8223_s1 + $0x724] ss:$24 sps:$4 sm:$0xff]  }
  0x19   :  { %3638 = vmatprep.subr.bf16.mxu1 %v5232_v25  ;;  %v5299_v7 = vld [vmem:[%s8223_s1 + $0xa50] ss:$24 sps:$4 sm:$0xff]   ;;  %v5307_v9 = vld [vmem:[%s8223_s1 + $0xa24] ss:$24 sps:$4 sm:$0xff]   ;;  %v5302_v10 = vld [vmem:[%s8223_s1 + $0x720] ss:$24 sps:$4 sm:$0xff]  }
  0x1a   :  { %v5305_v11 = vld [vmem:[%s8223_s1 + $0xa20] ss:$24 sps:$4 sm:$0xff]   ;;  %v5310_v12 = vld [vmem:[%s8223_s1 + $0x6f4] ss:$24 sps:$4 sm:$0xff]   ;;  %v5308_v14 = vld [vmem:[%s8223_s1 + $0x6f0] ss:$24 sps:$4 sm:$0xff]  }
  0x1b   :  { %3596 = vmatpush1.bf16.msra.mxu0 %v5234_v26  ;;  %v5313_v13 = vld [vmem:[%s8223_s1 + $0x9f4] ss:$24 sps:$4 sm:$0xff]   ;;  %v5311_v15 = vld [vmem:[%s8223_s1 + $0x9f0] ss:$24 sps:$4 sm:$0xff]   ;;  %v5316_v16 = vld [vmem:[%s8223_s1 + $0x6c4] ss:$24 sps:$4 sm:$0xff]  }
  0x1c   :  { %3639 = vmatpush1.bf16.msra.mxu1 %v5235_v27  ;;  %3597 = vmatprep.subr.bf16.mxu0 %v5236_v28  ;;  %v5319_v17 = vld [vmem:[%s8223_s1 + $0x9c4] ss:$24 sps:$4 sm:$0xff]   ;;  %v5314_v18 = vld [vmem:[%s8223_s1 + $0x6c0] ss:$24 sps:$4 sm:$0xff]   ;;  %v5322_v20 = vld [vmem:[%s8223_s1 + $0x694] ss:$24 sps:$4 sm:$0xff]  }
  0x1d   :  { %3640 = vmatprep.subr.bf16.mxu1 %v5238_v29  ;;  %v5317_v19 = vld [vmem:[%s8223_s1 + $0x9c0] ss:$24 sps:$4 sm:$0xff]   ;;  %v5325_v21 = vld [vmem:[%s8223_s1 + $0x994] ss:$24 sps:$4 sm:$0xff]   ;;  %v5320_v22 = vld [vmem:[%s8223_s1 + $0x690] ss:$24 sps:$4 sm:$0xff]  }
  0x1e   :  { %v5323_v23 = vld [vmem:[%s8223_s1 + $0x990] ss:$24 sps:$4 sm:$0xff]   ;;  %v5328_v24 = vld [vmem:[%s8223_s1 + $0x664] ss:$24 sps:$4 sm:$0xff]   ;;  %v5326_v26 = vld [vmem:[%s8223_s1 + $0x660] ss:$24 sps:$4 sm:$0xff]  }
  0x1f   :  { %3598 = vmatpush1.bf16.msra.mxu0 %v5240_v30  ;;  %v5331_v25 = vld [vmem:[%s8223_s1 + $0x964] ss:$24 sps:$4 sm:$0xff]   ;;  %v5329_v27 = vld [vmem:[%s8223_s1 + $0x960] ss:$24 sps:$4 sm:$0xff]   ;;  %v5334_v28 = vld [vmem:[%s8223_s1 + $0x634] ss:$24 sps:$4 sm:$0xff]  }
  0x20   :  { %3641 = vmatpush1.bf16.msra.mxu1 %v5241_v31  ;;  %3599 = vmatprep.subr.bf16.mxu0 %v5242_v32  ;;  %v5337_v29 = vld [vmem:[%s8223_s1 + $0x934] ss:$24 sps:$4 sm:$0xff]   ;;  %v5332_v30 = vld [vmem:[%s8223_s1 + $0x630] ss:$24 sps:$4 sm:$0xff]   ;;  %v5340_v32 = vld [vmem:[%s8223_s1 + $0x604] ss:$24 sps:$4 sm:$0xff]  }
  0x21   :  { %3642 = vmatprep.subr.bf16.mxu1 %v5244_v33  ;;  %v5335_v31 = vld [vmem:[%s8223_s1 + $0x930] ss:$24 sps:$4 sm:$0xff]   ;;  %v5343_v33 = vld [vmem:[%s8223_s1 + $0x904] ss:$24 sps:$4 sm:$0xff]  }
  0x22   :  { %v5356_v48 = vld [vmem:[%s8223_s1 + $0x870] ss:$24 sps:$4 sm:$0xff]   ;;  %v5364_v50 = vld [vmem:[%s8223_s1 + $0x844] ss:$24 sps:$4 sm:$0xff]  }
  0x23   :  { %3600 = vmatpush2.bf16.msra.mxu0 %v5246_v34  ;;  %v5394_v34 = vld [vmem:[%s8224_s0 + $0x14] ss:$48 sps:$4 sm:$0xff]  }
  0x24   :  { %3643 = vmatpush2.bf16.msra.mxu1 %v5247_v35  ;;  %3601 = vmatprep.subr.bf16.mxu0 %v5248_v36  ;;  %v5397_v35 = vld [vmem:[%s8224_s0 + $0x1c] ss:$48 sps:$4 sm:$0xff]   ;;  %v5338_v36 = vld [vmem:[%s8223_s1 + $0x600] ss:$24 sps:$4 sm:$0xff]  }
  0x25   :  { %3644 = vmatprep.subr.bf16.mxu1 %v5250_v37  ;;  %v5341_v37 = vld [vmem:[%s8223_s1 + $0x900] ss:$24 sps:$4 sm:$0xff]  }
  0x27   :  { %3602 = vmatpush2.bf16.msra.mxu0 %v5252_v38  ;;  %v5346_v38 = vld [vmem:[%s8223_s1 + $0x8d4] ss:$24 sps:$4 sm:$0xff]  }
  0x28   :  { %3645 = vmatpush2.bf16.msra.mxu1 %v5253_v39  ;;  %3603 = vmatprep.subr.bf16.mxu0 %v5254_v40  ;;  %v5349_v39 = vld [vmem:[%s8223_s1 + $0xbd4] ss:$24 sps:$4 sm:$0xff]   ;;  %v5344_v40 = vld [vmem:[%s8223_s1 + $0x8d0] ss:$24 sps:$4 sm:$0xff]  }
  0x29   :  { %3646 = vmatprep.subr.bf16.mxu1 %v5256_v41  ;;  %v5347_v41 = vld [vmem:[%s8223_s1 + $0xbd0] ss:$24 sps:$4 sm:$0xff]  }
  0x2b   :  { %3604 = vmatpush2.bf16.msra.mxu0 %v5258_v42  ;;  %v5352_v42 = vld [vmem:[%s8223_s1 + $0x8a4] ss:$24 sps:$4 sm:$0xff]  }
  0x2c   :  { %3647 = vmatpush2.bf16.msra.mxu1 %v5259_v43  ;;  %3605 = vmatprep.subr.bf16.mxu0 %v5260_v44  ;;  %v5355_v43 = vld [vmem:[%s8223_s1 + $0xba4] ss:$24 sps:$4 sm:$0xff]   ;;  %v5350_v44 = vld [vmem:[%s8223_s1 + $0x8a0] ss:$24 sps:$4 sm:$0xff]  }
  0x2d   :  { %3648 = vmatprep.subr.bf16.mxu1 %v5262_v45  ;;  %v5353_v45 = vld [vmem:[%s8223_s1 + $0xba0] ss:$24 sps:$4 sm:$0xff]  }
  0x2f   :  { %3606 = vmatpush2.bf16.msra.mxu0 %v5264_v46  ;;  %v5358_v46 = vld [vmem:[%s8223_s1 + $0x874] ss:$24 sps:$4 sm:$0xff]  }
  0x30   :  { %3649 = vmatpush2.bf16.msra.mxu1 %v5265_v47  ;;  %3607 = vmatprep.subr.bf16.mxu0 %v5266_v49  ;;  %v5361_v47 = vld [vmem:[%s8223_s1 + $0xb74] ss:$24 sps:$4 sm:$0xff]   ;;  %v5359_v49 = vld [vmem:[%s8223_s1 + $0xb70] ss:$24 sps:$4 sm:$0xff]  }
  0x31   :  { %3650 = vmatprep.subr.bf16.mxu1 %v5268_v51  ;;  %v5367_v51 = vld [vmem:[%s8223_s1 + $0xb44] ss:$24 sps:$4 sm:$0xff]  }
  0x33   :  { %3608 = vmatpush2.bf16.msra.mxu0 %v5270_v52  ;;  %v5362_v52 = vld [vmem:[%s8223_s1 + $0x840] ss:$24 sps:$4 sm:$0xff]  }
  0x34   :  { %3651 = vmatpush2.bf16.msra.mxu1 %v5271_v53  ;;  %3609 = vmatprep.subr.bf16.mxu0 %v5272_v54  ;;  %v5365_v53 = vld [vmem:[%s8223_s1 + $0xb40] ss:$24 sps:$4 sm:$0xff]   ;;  %v5370_v54 = vld [vmem:[%s8223_s1 + $0x814] ss:$24 sps:$4 sm:$0xff]  }
  0x35   :  { %3652 = vmatprep.subr.bf16.mxu1 %v5274_v55  ;;  %v5373_v55 = vld [vmem:[%s8223_s1 + $0xb14] ss:$24 sps:$4 sm:$0xff]  }
  0x37   :  { %3610 = vmatpush2.bf16.msra.mxu0 %v5276_v56  ;;  %v5368_v56 = vld [vmem:[%s8223_s1 + $0x810] ss:$24 sps:$4 sm:$0xff]  }
  0x38   :  { %3653 = vmatpush2.bf16.msra.mxu1 %v5277_v57  ;;  %3611 = vmatprep.subr.bf16.mxu0 %v5278_v58  ;;  %v5371_v57 = vld [vmem:[%s8223_s1 + $0xb10] ss:$24 sps:$4 sm:$0xff]   ;;  %v5376_v58 = vld [vmem:[%s8223_s1 + $0x7e4] ss:$24 sps:$4 sm:$0xff]  }
  0x39   :  { %3654 = vmatprep.subr.bf16.mxu1 %v5280_v59  ;;  %v5379_v59 = vld [vmem:[%s8223_s1 + $0xae4] ss:$24 sps:$4 sm:$0xff]  }
  0x3b   :  { %3612 = vmatpush2.bf16.msra.mxu0 %v5282_v60  ;;  %v5374_v60 = vld [vmem:[%s8223_s1 + $0x7e0] ss:$24 sps:$4 sm:$0xff]  }
  0x3c   :  { %3655 = vmatpush2.bf16.msra.mxu1 %v5283_v61  ;;  %3613 = vmatprep.subr.bf16.mxu0 %v5284_v62  ;;  %v5377_v61 = vld [vmem:[%s8223_s1 + $0xae0] ss:$24 sps:$4 sm:$0xff]   ;;  %v5382_v62 = vld [vmem:[%s8223_s1 + $0x7b4] ss:$24 sps:$4 sm:$0xff]  }
  0x3d   :  { %3656 = vmatprep.subr.bf16.mxu1 %v5286_v63  ;;  %v5385_v63 = vld [vmem:[%s8223_s1 + $0xab4] ss:$24 sps:$4 sm:$0xff]  }
  0x3f   :  { %3614 = vmatpush2.bf16.msra.mxu0 %v5288_v0  ;;  %v5380_v0 = vld [vmem:[%s8223_s1 + $0x7b0] ss:$24 sps:$4 sm:$0xff]  }
  0x40   :  { %3657 = vmatpush2.bf16.msra.mxu1 %v5289_v1  ;;  %3669 = vmatprep.subr.bf16.mxu0 %v5298_v2  ;;  %v5383_v1 = vld [vmem:[%s8223_s1 + $0xab0] ss:$24 sps:$4 sm:$0xff]   ;;  %v5388_v2 = vld [vmem:[%s8223_s1 + $0x784] ss:$24 sps:$4 sm:$0xff]  }
  0x41   :  { %3712 = vmatprep.subr.bf16.mxu1 %v5301_v3  ;;  %v5391_v3 = vld [vmem:[%s8223_s1 + $0xa84] ss:$24 sps:$4 sm:$0xff]  }
  0x42   :  { %3616 = vmatmul.mubr.bf16.vlgmr.msra.gmra.mxu0 %v5294_v4  ;;  %v5386_v4 = vld [vmem:[%s8223_s1 + $0x780] ss:$24 sps:$4 sm:$0xff]  }
  0x43   :  { %3659 = vmatmul.mubr.bf16.vlgmr.msra.gmra.mxu1 %v5295_v5  ;;  %3670 = vmatpush1.bf16.msra.mxu0 %v5296_v6  ;;  %v5389_v5 = vld [vmem:[%s8223_s1 + $0xa80] ss:$24 sps:$4 sm:$0xff]   ;;  %v5400_v6 = vld [vmem:[%s8223_s1 + $0xd54] ss:$24 sps:$4 sm:$0xff]  }
  0x44   :  { %3713 = vmatpush1.bf16.msra.mxu1 %v5299_v7  ;;  %3671 = vmatprep.subr.bf16.mxu0 %v5304_v8  ;;  %v5403_v7 = vld [vmem:[%s8223_s1 + $0x1054] ss:$24 sps:$4 sm:$0xff]   ;;  %v5392_v8 = vld [vmem:[%s8224_s0 + $0x10] ss:$48 sps:$4 sm:$0xff]  }
  0x45   :  { %3714 = vmatprep.subr.bf16.mxu1 %v5307_v9  ;;  %3701 = vmatprep.mubr.bf16.mxu0 %v5394_v34  ;;  %v5395_v9 = vld [vmem:[%s8224_s0 + $0x18] ss:$48 sps:$4 sm:$0xff]   ;;  %v5436_v34 = vld [vmem:[%s8223_s1 + $0xc34] ss:$24 sps:$4 sm:$0xff]  }
  0x46   :  { %3744 = vmatprep.mubr.bf16.mxu1 %v5397_v35  ;;  %v5439_v35 = vld [vmem:[%s8223_s1 + $0xf34] ss:$24 sps:$4 sm:$0xff]  }
  0x47   :  { %3672 = vmatpush1.bf16.msra.mxu0 %v5302_v10  ;;  %v5398_v10 = vld [vmem:[%s8223_s1 + $0xd50] ss:$24 sps:$4 sm:$0xff]  }
  0x48   :  { %3715 = vmatpush1.bf16.msra.mxu1 %v5305_v11  ;;  %3673 = vmatprep.subr.bf16.mxu0 %v5310_v12  ;;  %v5401_v11 = vld [vmem:[%s8223_s1 + $0x1050] ss:$24 sps:$4 sm:$0xff]   ;;  %v5406_v12 = vld [vmem:[%s8223_s1 + $0xd24] ss:$24 sps:$4 sm:$0xff]  }
  0x49   :  { %3716 = vmatprep.subr.bf16.mxu1 %v5313_v13  ;;  %v5409_v13 = vld [vmem:[%s8223_s1 + $0x1024] ss:$24 sps:$4 sm:$0xff]  }
  0x4b   :  { %3674 = vmatpush1.bf16.msra.mxu0 %v5308_v14  ;;  %v5404_v14 = vld [vmem:[%s8223_s1 + $0xd20] ss:$24 sps:$4 sm:$0xff]  }
  0x4c   :  { %3717 = vmatpush1.bf16.msra.mxu1 %v5311_v15  ;;  %3675 = vmatprep.subr.bf16.mxu0 %v5316_v16  ;;  %v5407_v15 = vld [vmem:[%s8223_s1 + $0x1020] ss:$24 sps:$4 sm:$0xff]   ;;  %v5412_v16 = vld [vmem:[%s8223_s1 + $0xcf4] ss:$24 sps:$4 sm:$0xff]  }
  0x4d   :  { %3718 = vmatprep.subr.bf16.mxu1 %v5319_v17  ;;  %v5415_v17 = vld [vmem:[%s8223_s1 + $0xff4] ss:$24 sps:$4 sm:$0xff]  }
  0x4f   :  { %3676 = vmatpush1.bf16.msra.mxu0 %v5314_v18  ;;  %v5410_v18 = vld [vmem:[%s8223_s1 + $0xcf0] ss:$24 sps:$4 sm:$0xff]  }
  0x50   :  { %3719 = vmatpush1.bf16.msra.mxu1 %v5317_v19  ;;  %3677 = vmatprep.subr.bf16.mxu0 %v5322_v20  ;;  %v5496_v19 = vld [vmem:[%s8224_s0 + $0x24] ss:$48 sps:$4 sm:$0xff]   ;;  %v5413_v20 = vld [vmem:[%s8223_s1 + $0xff0] ss:$24 sps:$4 sm:$0xff]  }
  0x51   :  { %3720 = vmatprep.subr.bf16.mxu1 %v5325_v21  ;;  %v5499_v21 = vld [vmem:[%s8224_s0 + $0x2c] ss:$48 sps:$4 sm:$0xff]  }
  0x53   :  { %3678 = vmatpush1.bf16.msra.mxu0 %v5320_v22  ;;  %v5418_v22 = vld [vmem:[%s8223_s1 + $0xcc4] ss:$24 sps:$4 sm:$0xff]  }
  0x54   :  { %3721 = vmatpush1.bf16.msra.mxu1 %v5323_v23  ;;  %3679 = vmatprep.subr.bf16.mxu0 %v5328_v24  ;;  %v5421_v23 = vld [vmem:[%s8223_s1 + $0xfc4] ss:$24 sps:$4 sm:$0xff]   ;;  %v5416_v24 = vld [vmem:[%s8223_s1 + $0xcc0] ss:$24 sps:$4 sm:$0xff]  }
  0x55   :  { %3722 = vmatprep.subr.bf16.mxu1 %v5331_v25  ;;  %v5419_v25 = vld [vmem:[%s8223_s1 + $0xfc0] ss:$24 sps:$4 sm:$0xff]  }
  0x57   :  { %3680 = vmatpush1.bf16.msra.mxu0 %v5326_v26  ;;  %v5424_v26 = vld [vmem:[%s8223_s1 + $0xc94] ss:$24 sps:$4 sm:$0xff]  }
  0x58   :  { %3723 = vmatpush1.bf16.msra.mxu1 %v5329_v27  ;;  %3681 = vmatprep.subr.bf16.mxu0 %v5334_v28  ;;  %v5427_v27 = vld [vmem:[%s8223_s1 + $0xf94] ss:$24 sps:$4 sm:$0xff]   ;;  %v5422_v28 = vld [vmem:[%s8223_s1 + $0xc90] ss:$24 sps:$4 sm:$0xff]  }
  0x59   :  { %3724 = vmatprep.subr.bf16.mxu1 %v5337_v29  ;;  %v5425_v29 = vld [vmem:[%s8223_s1 + $0xf90] ss:$24 sps:$4 sm:$0xff]  }
  0x5b   :  { %3682 = vmatpush1.bf16.msra.mxu0 %v5332_v30  ;;  %v5430_v30 = vld [vmem:[%s8223_s1 + $0xc64] ss:$24 sps:$4 sm:$0xff]  }
  0x5c   :  { %3725 = vmatpush1.bf16.msra.mxu1 %v5335_v31  ;;  %3683 = vmatprep.subr.bf16.mxu0 %v5340_v32  ;;  %v5433_v31 = vld [vmem:[%s8223_s1 + $0xf64] ss:$24 sps:$4 sm:$0xff]   ;;  %v5428_v32 = vld [vmem:[%s8223_s1 + $0xc60] ss:$24 sps:$4 sm:$0xff]  }
  0x5d   :  { %3726 = vmatprep.subr.bf16.mxu1 %v5343_v33  ;;  %v5431_v33 = vld [vmem:[%s8223_s1 + $0xf60] ss:$24 sps:$4 sm:$0xff]  }
  0x5f   :  { %3684 = vmatpush1.bf16.msra.mxu0 %v5338_v36  ;;  %v5434_v36 = vld [vmem:[%s8223_s1 + $0xc30] ss:$24 sps:$4 sm:$0xff]  }
  0x60   :  { %3727 = vmatpush1.bf16.msra.mxu1 %v5341_v37  ;;  %3685 = vmatprep.subr.bf16.mxu0 %v5346_v38  ;;  %v5437_v37 = vld [vmem:[%s8223_s1 + $0xf30] ss:$24 sps:$4 sm:$0xff]   ;;  %v5442_v38 = vld [vmem:[%s8223_s1 + $0xc04] ss:$24 sps:$4 sm:$0xff]  }
  0x61   :  { %3728 = vmatprep.subr.bf16.mxu1 %v5349_v39  ;;  %v5445_v39 = vld [vmem:[%s8223_s1 + $0xf04] ss:$24 sps:$4 sm:$0xff]  }
  0x63   :  { %3686 = vmatpush2.bf16.msra.mxu0 %v5344_v40  ;;  %v5440_v40 = vld [vmem:[%s8223_s1 + $0xc00] ss:$24 sps:$4 sm:$0xff]  }
  0x64   :  { %3729 = vmatpush2.bf16.msra.mxu1 %v5347_v41  ;;  %3687 = vmatprep.subr.bf16.mxu0 %v5352_v42  ;;  %v5443_v41 = vld [vmem:[%s8223_s1 + $0xf00] ss:$24 sps:$4 sm:$0xff]   ;;  %v5448_v42 = vld [vmem:[%s8223_s1 + $0xed4] ss:$24 sps:$4 sm:$0xff]  }
  0x65   :  { %3730 = vmatprep.subr.bf16.mxu1 %v5355_v43  ;;  %v5451_v43 = vld [vmem:[%s8223_s1 + $0x11d4] ss:$24 sps:$4 sm:$0xff]  }
  0x67   :  { %3688 = vmatpush2.bf16.msra.mxu0 %v5350_v44  ;;  %v5446_v44 = vld [vmem:[%s8223_s1 + $0xed0] ss:$24 sps:$4 sm:$0xff]  }
  0x68   :  { %3731 = vmatpush2.bf16.msra.mxu1 %v5353_v45  ;;  %3689 = vmatprep.subr.bf16.mxu0 %v5358_v46  ;;  %v5449_v45 = vld [vmem:[%s8223_s1 + $0x11d0] ss:$24 sps:$4 sm:$0xff]   ;;  %v5454_v46 = vld [vmem:[%s8223_s1 + $0xea4] ss:$24 sps:$4 sm:$0xff]  }
  0x69   :  { %3732 = vmatprep.subr.bf16.mxu1 %v5361_v47  ;;  %v5457_v47 = vld [vmem:[%s8223_s1 + $0x11a4] ss:$24 sps:$4 sm:$0xff]  }
  0x6b   :  { %3690 = vmatpush2.bf16.msra.mxu0 %v5356_v48  ;;  %v5452_v48 = vld [vmem:[%s8223_s1 + $0xea0] ss:$24 sps:$4 sm:$0xff]  }
  0x6c   :  { %3733 = vmatpush2.bf16.msra.mxu1 %v5359_v49  ;;  %3691 = vmatprep.subr.bf16.mxu0 %v5364_v50  ;;  %v5455_v49 = vld [vmem:[%s8223_s1 + $0x11a0] ss:$24 sps:$4 sm:$0xff]   ;;  %v5460_v50 = vld [vmem:[%s8223_s1 + $0xe74] ss:$24 sps:$4 sm:$0xff]  }
  0x6d   :  { %3734 = vmatprep.subr.bf16.mxu1 %v5367_v51  ;;  %v5463_v51 = vld [vmem:[%s8223_s1 + $0x1174] ss:$24 sps:$4 sm:$0xff]  }
  0x6f   :  { %3692 = vmatpush2.bf16.msra.mxu0 %v5362_v52  ;;  %v5458_v52 = vld [vmem:[%s8223_s1 + $0xe70] ss:$24 sps:$4 sm:$0xff]  }
  0x70   :  { %3735 = vmatpush2.bf16.msra.mxu1 %v5365_v53  ;;  %3693 = vmatprep.subr.bf16.mxu0 %v5370_v54  ;;  %v5461_v53 = vld [vmem:[%s8223_s1 + $0x1170] ss:$24 sps:$4 sm:$0xff]   ;;  %v5466_v54 = vld [vmem:[%s8223_s1 + $0xe44] ss:$24 sps:$4 sm:$0xff]  }
  0x71   :  { %3736 = vmatprep.subr.bf16.mxu1 %v5373_v55  ;;  %v5469_v55 = vld [vmem:[%s8223_s1 + $0x1144] ss:$24 sps:$4 sm:$0xff]  }
  0x73   :  { %3694 = vmatpush2.bf16.msra.mxu0 %v5368_v56  ;;  %v5464_v56 = vld [vmem:[%s8223_s1 + $0xe40] ss:$24 sps:$4 sm:$0xff]  }
  0x74   :  { %3737 = vmatpush2.bf16.msra.mxu1 %v5371_v57  ;;  %3695 = vmatprep.subr.bf16.mxu0 %v5376_v58  ;;  %v5467_v57 = vld [vmem:[%s8223_s1 + $0x1140] ss:$24 sps:$4 sm:$0xff]   ;;  %v5472_v58 = vld [vmem:[%s8223_s1 + $0xe14] ss:$24 sps:$4 sm:$0xff]  }
  0x75   :  { %3738 = vmatprep.subr.bf16.mxu1 %v5379_v59  ;;  %v5475_v59 = vld [vmem:[%s8223_s1 + $0x1114] ss:$24 sps:$4 sm:$0xff]  }
  0x77   :  { %3696 = vmatpush2.bf16.msra.mxu0 %v5374_v60  ;;  %v5470_v60 = vld [vmem:[%s8223_s1 + $0xe10] ss:$24 sps:$4 sm:$0xff]  }
  0x78   :  { %3739 = vmatpush2.bf16.msra.mxu1 %v5377_v61  ;;  %3697 = vmatprep.subr.bf16.mxu0 %v5382_v62  ;;  %v5473_v61 = vld [vmem:[%s8223_s1 + $0x1110] ss:$24 sps:$4 sm:$0xff]   ;;  %v5478_v62 = vld [vmem:[%s8223_s1 + $0xde4] ss:$24 sps:$4 sm:$0xff]  }
  0x79   :  { %3740 = vmatprep.subr.bf16.mxu1 %v5385_v63  ;;  %v5481_v63 = vld [vmem:[%s8223_s1 + $0x10e4] ss:$24 sps:$4 sm:$0xff]  }
  0x7b   :  { %3698 = vmatpush2.bf16.msra.mxu0 %v5380_v0  ;;  %v5476_v0 = vld [vmem:[%s8223_s1 + $0xde0] ss:$24 sps:$4 sm:$0xff]  }
  0x7c   :  { %3741 = vmatpush2.bf16.msra.mxu1 %v5383_v1  ;;  %3699 = vmatprep.subr.bf16.mxu0 %v5388_v2  ;;  %v5479_v1 = vld [vmem:[%s8223_s1 + $0x10e0] ss:$24 sps:$4 sm:$0xff]   ;;  %v5484_v2 = vld [vmem:[%s8223_s1 + $0xdb4] ss:$24 sps:$4 sm:$0xff]  }
  0x7d   :  { %3742 = vmatprep.subr.bf16.mxu1 %v5391_v3  ;;  %v5487_v3 = vld [vmem:[%s8223_s1 + $0x10b4] ss:$24 sps:$4 sm:$0xff]  }
  0x7f   :  { %3700 = vmatpush2.bf16.msra.mxu0 %v5386_v4  ;;  %v5482_v4 = vld [vmem:[%s8223_s1 + $0xdb0] ss:$24 sps:$4 sm:$0xff]  }
  0x80   :  { %3743 = vmatpush2.bf16.msra.mxu1 %v5389_v5  ;;  %3755 = vmatprep.subr.bf16.mxu0 %v5400_v6  ;;  %v5485_v5 = vld [vmem:[%s8223_s1 + $0x10b0] ss:$24 sps:$4 sm:$0xff]   ;;  %v5490_v6 = vld [vmem:[%s8223_s1 + $0xd84] ss:$24 sps:$4 sm:$0xff]  }
  0x81   :  { %3798 = vmatprep.subr.bf16.mxu1 %v5403_v7  ;;  %v5493_v7 = vld [vmem:[%s8223_s1 + $0x1084] ss:$24 sps:$4 sm:$0xff]  }
  0x82   :  { %3702 = vmatmul.mubr.bf16.vlgmr.msra.gmra.mxu0 %v5392_v8  ;;  %v5488_v8 = vld [vmem:[%s8223_s1 + $0xd80] ss:$24 sps:$4 sm:$0xff]  }
  0x83   :  { %3745 = vmatmul.mubr.bf16.vlgmr.msra.gmra.mxu1 %v5395_v9  ;;  %3756 = vmatpush1.bf16.msra.mxu0 %v5398_v10  ;;  %v5491_v9 = vld [vmem:[%s8223_s1 + $0x1080] ss:$24 sps:$4 sm:$0xff]   ;;  %v5502_v10 = vld [vmem:[%s8223_s1 + $0x15c] ss:$24 sps:$4 sm:$0xff]  }
  0x84   :  { %3799 = vmatpush1.bf16.msra.mxu1 %v5401_v11  ;;  %3757 = vmatprep.subr.bf16.mxu0 %v5406_v12  ;;  %v5505_v11 = vld [vmem:[%s8223_s1 + $0x45c] ss:$24 sps:$4 sm:$0xff]   ;;  %v5494_v12 = vld [vmem:[%s8224_s0 + $0x20] ss:$48 sps:$4 sm:$0xff]  }
  0x85   :  { %3800 = vmatprep.subr.bf16.mxu1 %v5409_v13  ;;  %3787 = vmatprep.mubr.bf16.mxu0 %v5496_v19  ;;  %v5497_v13 = vld [vmem:[%s8224_s0 + $0x28] ss:$48 sps:$4 sm:$0xff]  }
  0x86   :  { %3830 = vmatprep.mubr.bf16.mxu1 %v5499_v21  ;;  %v5509_v19 = vld [vmem:[%s8223_s1 + $0x428] ss:$24 sps:$4 sm:$0xff]   ;;  %v5517_v21 = vld [vmem:[%s8223_s1 + $0x3fc] ss:$24 sps:$4 sm:$0xff]  }
  0x87   :  { %3758 = vmatpush1.bf16.msra.mxu0 %v5404_v14  ;;  %v5500_v14 = vld [vmem:[%s8223_s1 + $0x158] ss:$24 sps:$4 sm:$0xff]  }
  0x88   :  { %3801 = vmatpush1.bf16.msra.mxu1 %v5407_v15  ;;  %3759 = vmatprep.subr.bf16.mxu0 %v5412_v16  ;;  %v5503_v15 = vld [vmem:[%s8223_s1 + $0x458] ss:$24 sps:$4 sm:$0xff]   ;;  %v5508_v16 = vld [vmem:[%s8223_s1 + $0x12c] ss:$24 sps:$4 sm:$0xff]  }
  0x89   :  { %3802 = vmatprep.subr.bf16.mxu1 %v5415_v17  ;;  %v5511_v17 = vld [vmem:[%s8223_s1 + $0x42c] ss:$24 sps:$4 sm:$0xff]  }
  0x8b   :  { %3760 = vmatpush1.bf16.msra.mxu0 %v5410_v18  ;;  %v5506_v18 = vld [vmem:[%s8223_s1 + $0x128] ss:$24 sps:$4 sm:$0xff]  }
  0x8c   :  { %3803 = vmatpush1.bf16.msra.mxu1 %v5413_v20  ;;  %3761 = vmatprep.subr.bf16.mxu0 %v5418_v22  ;;  %v5514_v20 = vld [vmem:[%s8223_s1 + $0xfc] ss:$24 sps:$4 sm:$0xff]  }
  0x8d   :  { %3804 = vmatprep.subr.bf16.mxu1 %v5421_v23  ;;  %v6080_v22 = vld [vmem:[%s8224_s0 + $0x4] ss:$48 sps:$4 sm:$0xff]   ;;  %v6081_v23 = vld [vmem:[%s8224_s0 + $0xc] ss:$48 sps:$4 sm:$0xff]  }
  0x8f   :  { %3762 = vmatpush1.bf16.msra.mxu0 %v5416_v24  ;;  %v5512_v24 = vld [vmem:[%s8223_s1 + $0xf8] ss:$24 sps:$4 sm:$0xff]  }
  0x90   :  { %3805 = vmatpush1.bf16.msra.mxu1 %v5419_v25  ;;  %3763 = vmatprep.subr.bf16.mxu0 %v5424_v26  ;;  %v5515_v25 = vld [vmem:[%s8223_s1 + $0x3f8] ss:$24 sps:$4 sm:$0xff]   ;;  %v5520_v26 = vld [vmem:[%s8223_s1 + $0xcc] ss:$24 sps:$4 sm:$0xff]  }
  0x91   :  { %3806 = vmatprep.subr.bf16.mxu1 %v5427_v27  ;;  %v5523_v27 = vld [vmem:[%s8223_s1 + $0x3cc] ss:$24 sps:$4 sm:$0xff]  }
  0x93   :  { %3764 = vmatpush1.bf16.msra.mxu0 %v5422_v28  ;;  %v5518_v28 = vld [vmem:[%s8223_s1 + $0xc8] ss:$24 sps:$4 sm:$0xff]  }
  0x94   :  { %3807 = vmatpush1.bf16.msra.mxu1 %v5425_v29  ;;  %3765 = vmatprep.subr.bf16.mxu0 %v5430_v30  ;;  %v5521_v29 = vld [vmem:[%s8223_s1 + $0x3c8] ss:$24 sps:$4 sm:$0xff]   ;;  %v5526_v30 = vld [vmem:[%s8223_s1 + $0x9c] ss:$24 sps:$4 sm:$0xff]  }
  0x95   :  { %3808 = vmatprep.subr.bf16.mxu1 %v5433_v31  ;;  %v5529_v31 = vld [vmem:[%s8223_s1 + $0x39c] ss:$24 sps:$4 sm:$0xff]  }
  0x97   :  { %3766 = vmatpush1.bf16.msra.mxu0 %v5428_v32  ;;  %v5524_v32 = vld [vmem:[%s8223_s1 + $0x98] ss:$24 sps:$4 sm:$0xff]  }
  0x98   :  { %3809 = vmatpush1.bf16.msra.mxu1 %v5431_v33  ;;  %3767 = vmatprep.subr.bf16.mxu0 %v5436_v34  ;;  %v5527_v33 = vld [vmem:[%s8223_s1 + $0x398] ss:$24 sps:$4 sm:$0xff]   ;;  %v5532_v34 = vld [vmem:[%s8223_s1 + $0x6c] ss:$24 sps:$4 sm:$0xff]  }
  0x99   :  { %3810 = vmatprep.subr.bf16.mxu1 %v5439_v35  ;;  %v5535_v35 = vld [vmem:[%s8223_s1 + $0x36c] ss:$24 sps:$4 sm:$0xff]  }
  0x9b   :  { %3768 = vmatpush1.bf16.msra.mxu0 %v5434_v36  ;;  %v5530_v36 = vld [vmem:[%s8223_s1 + $0x68] ss:$24 sps:$4 sm:$0xff]  }
  0x9c   :  { %3811 = vmatpush1.bf16.msra.mxu1 %v5437_v37  ;;  %3769 = vmatprep.subr.bf16.mxu0 %v5442_v38  ;;  %v5533_v37 = vld [vmem:[%s8223_s1 + $0x368] ss:$24 sps:$4 sm:$0xff]   ;;  %v5538_v38 = vld [vmem:[%s8223_s1 + $0x3c] ss:$24 sps:$4 sm:$0xff]  }
  0x9d   :  { %3812 = vmatprep.subr.bf16.mxu1 %v5445_v39  ;;  %v5541_v39 = vld [vmem:[%s8223_s1 + $0x33c] ss:$24 sps:$4 sm:$0xff]  }
  0x9f   :  { %3770 = vmatpush1.bf16.msra.mxu0 %v5440_v40  ;;  %v5536_v40 = vld [vmem:[%s8223_s1 + $0x38] ss:$24 sps:$4 sm:$0xff]  }
  0xa0   :  { %3813 = vmatpush1.bf16.msra.mxu1 %v5443_v41  ;;  %3771 = vmatprep.subr.bf16.mxu0 %v5448_v42  ;;  %v5539_v41 = vld [vmem:[%s8223_s1 + $0x338] ss:$24 sps:$4 sm:$0xff]   ;;  %v5544_v42 = vld [vmem:[%s8223_s1 + $0xc] ss:$24 sps:$4 sm:$0xff]  }
  0xa1   :  { %3814 = vmatprep.subr.bf16.mxu1 %v5451_v43  ;;  %v5547_v43 = vld [vmem:[%s8223_s1 + $0x30c] ss:$24 sps:$4 sm:$0xff]  }
  0xa3   :  { %3772 = vmatpush2.bf16.msra.mxu0 %v5446_v44  ;;  %v5542_v44 = vld [vmem:[%s8223_s1 + $0x8] ss:$24 sps:$4 sm:$0xff]  }
  0xa4   :  { %3815 = vmatpush2.bf16.msra.mxu1 %v5449_v45  ;;  %3773 = vmatprep.subr.bf16.mxu0 %v5454_v46  ;;  %v5545_v45 = vld [vmem:[%s8223_s1 + $0x308] ss:$24 sps:$4 sm:$0xff]   ;;  %v5550_v46 = vld [vmem:[%s8223_s1 + $0x2dc] ss:$24 sps:$4 sm:$0xff]  }
  0xa5   :  { %3816 = vmatprep.subr.bf16.mxu1 %v5457_v47  ;;  %v5553_v47 = vld [vmem:[%s8223_s1 + $0x5dc] ss:$24 sps:$4 sm:$0xff]  }
  0xa7   :  { %3774 = vmatpush2.bf16.msra.mxu0 %v5452_v48  ;;  %v5548_v48 = vld [vmem:[%s8223_s1 + $0x2d8] ss:$24 sps:$4 sm:$0xff]  }
  0xa8   :  { %3817 = vmatpush2.bf16.msra.mxu1 %v5455_v49  ;;  %3775 = vmatprep.subr.bf16.mxu0 %v5460_v50  ;;  %v5551_v49 = vld [vmem:[%s8223_s1 + $0x5d8] ss:$24 sps:$4 sm:$0xff]   ;;  %v5556_v50 = vld [vmem:[%s8223_s1 + $0x2ac] ss:$24 sps:$4 sm:$0xff]  }
  0xa9   :  { %3818 = vmatprep.subr.bf16.mxu1 %v5463_v51  ;;  %v5559_v51 = vld [vmem:[%s8223_s1 + $0x5ac] ss:$24 sps:$4 sm:$0xff]  }
  0xab   :  { %3776 = vmatpush2.bf16.msra.mxu0 %v5458_v52  ;;  %v5554_v52 = vld [vmem:[%s8223_s1 + $0x2a8] ss:$24 sps:$4 sm:$0xff]  }
  0xac   :  { %3819 = vmatpush2.bf16.msra.mxu1 %v5461_v53  ;;  %3777 = vmatprep.subr.bf16.mxu0 %v5466_v54  ;;  %v5557_v53 = vld [vmem:[%s8223_s1 + $0x5a8] ss:$24 sps:$4 sm:$0xff]   ;;  %v5562_v54 = vld [vmem:[%s8223_s1 + $0x27c] ss:$24 sps:$4 sm:$0xff]  }
  0xad   :  { %3820 = vmatprep.subr.bf16.mxu1 %v5469_v55  ;;  %v5565_v55 = vld [vmem:[%s8223_s1 + $0x57c] ss:$24 sps:$4 sm:$0xff]  }
  0xaf   :  { %3778 = vmatpush2.bf16.msra.mxu0 %v5464_v56  ;;  %v5560_v56 = vld [vmem:[%s8223_s1 + $0x278] ss:$24 sps:$4 sm:$0xff]  }
  0xb0   :  { %3821 = vmatpush2.bf16.msra.mxu1 %v5467_v57  ;;  %3779 = vmatprep.subr.bf16.mxu0 %v5472_v58  ;;  %v5563_v57 = vld [vmem:[%s8223_s1 + $0x578] ss:$24 sps:$4 sm:$0xff]   ;;  %v5568_v58 = vld [vmem:[%s8223_s1 + $0x24c] ss:$24 sps:$4 sm:$0xff]  }
  0xb1   :  { %3822 = vmatprep.subr.bf16.mxu1 %v5475_v59  ;;  %v5571_v59 = vld [vmem:[%s8223_s1 + $0x54c] ss:$24 sps:$4 sm:$0xff]  }
  0xb3   :  { %3780 = vmatpush2.bf16.msra.mxu0 %v5470_v60  ;;  %v5566_v60 = vld [vmem:[%s8223_s1 + $0x248] ss:$24 sps:$4 sm:$0xff]  }
  0xb4   :  { %3823 = vmatpush2.bf16.msra.mxu1 %v5473_v61  ;;  %3781 = vmatprep.subr.bf16.mxu0 %v5478_v62  ;;  %v5569_v61 = vld [vmem:[%s8223_s1 + $0x548] ss:$24 sps:$4 sm:$0xff]   ;;  %v5574_v62 = vld [vmem:[%s8223_s1 + $0x21c] ss:$24 sps:$4 sm:$0xff]  }
  0xb5   :  { %3824 = vmatprep.subr.bf16.mxu1 %v5481_v63  ;;  %v5577_v63 = vld [vmem:[%s8223_s1 + $0x51c] ss:$24 sps:$4 sm:$0xff]  }
  0xb7   :  { %3782 = vmatpush2.bf16.msra.mxu0 %v5476_v0  ;;  %v5572_v0 = vld [vmem:[%s8223_s1 + $0x218] ss:$24 sps:$4 sm:$0xff]  }
  0xb8   :  { %3825 = vmatpush2.bf16.msra.mxu1 %v5479_v1  ;;  %3783 = vmatprep.subr.bf16.mxu0 %v5484_v2  ;;  %v5575_v1 = vld [vmem:[%s8223_s1 + $0x518] ss:$24 sps:$4 sm:$0xff]   ;;  %v5580_v2 = vld [vmem:[%s8223_s1 + $0x1ec] ss:$24 sps:$4 sm:$0xff]  }
  0xb9   :  { %3826 = vmatprep.subr.bf16.mxu1 %v5487_v3  ;;  %v5583_v3 = vld [vmem:[%s8223_s1 + $0x4ec] ss:$24 sps:$4 sm:$0xff]  }
  0xbb   :  { %3784 = vmatpush2.bf16.msra.mxu0 %v5482_v4  ;;  %v5578_v4 = vld [vmem:[%s8223_s1 + $0x1e8] ss:$24 sps:$4 sm:$0xff]  }
  0xbc   :  { %3827 = vmatpush2.bf16.msra.mxu1 %v5485_v5  ;;  %3785 = vmatprep.subr.bf16.mxu0 %v5490_v6  ;;  %v5581_v5 = vld [vmem:[%s8223_s1 + $0x4e8] ss:$24 sps:$4 sm:$0xff]   ;;  %v5586_v6 = vld [vmem:[%s8223_s1 + $0x1bc] ss:$24 sps:$4 sm:$0xff]  }
  0xbd   :  { %3828 = vmatprep.subr.bf16.mxu1 %v5493_v7  ;;  %v5589_v7 = vld [vmem:[%s8223_s1 + $0x4bc] ss:$24 sps:$4 sm:$0xff]  }
  0xbf   :  { %3786 = vmatpush2.bf16.msra.mxu0 %v5488_v8  ;;  %v5584_v8 = vld [vmem:[%s8223_s1 + $0x1b8] ss:$24 sps:$4 sm:$0xff]  }
  0xc0   :  { %3829 = vmatpush2.bf16.msra.mxu1 %v5491_v9  ;;  %3841 = vmatprep.subr.bf16.mxu0 %v5502_v10  ;;  %v5587_v9 = vld [vmem:[%s8223_s1 + $0x4b8] ss:$24 sps:$4 sm:$0xff]   ;;  %v5592_v10 = vld [vmem:[%s8223_s1 + $0x18c] ss:$24 sps:$4 sm:$0xff]  }
  0xc1   :  { %3884 = vmatprep.subr.bf16.mxu1 %v5505_v11  ;;  %v5595_v11 = vld [vmem:[%s8223_s1 + $0x48c] ss:$24 sps:$4 sm:$0xff]  }
  0xc2   :  { %3788 = vmatmul.mubr.bf16.vlgmr.msra.gmra.mxu0 %v5494_v12  ;;  %v5590_v12 = vld [vmem:[%s8223_s1 + $0x188] ss:$24 sps:$4 sm:$0xff]  }
  0xc3   :  { %3831 = vmatmul.mubr.bf16.vlgmr.msra.gmra.mxu1 %v5497_v13  ;;  %3842 = vmatpush1.bf16.msra.mxu0 %v5500_v14  ;;  %v5593_v13 = vld [vmem:[%s8223_s1 + $0x488] ss:$24 sps:$4 sm:$0xff]   ;;  %v5598_v14 = vld [vmem:[%s8223_s1 + $0x75c] ss:$24 sps:$4 sm:$0xff]  }
  0xc4   :  { %3885 = vmatpush1.bf16.msra.mxu1 %v5503_v15  ;;  %3843 = vmatprep.subr.bf16.mxu0 %v5508_v16  ;;  %v5601_v15 = vld [vmem:[%s8223_s1 + $0xa5c] ss:$24 sps:$4 sm:$0xff]   ;;  %v5596_v16 = vld [vmem:[%s8223_s1 + $0x758] ss:$24 sps:$4 sm:$0xff]  }
  0xc5   :  { %3886 = vmatprep.subr.bf16.mxu1 %v5511_v17  ;;  %3873 = vmatprep.mubr.bf16.mxu0 %v6080_v22  ;;  %v5599_v17 = vld [vmem:[%s8223_s1 + $0xa58] ss:$24 sps:$4 sm:$0xff]   ;;  %v5602_v22 = vld [vmem:[%s8223_s1 + $0x728] ss:$24 sps:$4 sm:$0xff]  }
  0xc6   :  { %3916 = vmatprep.mubr.bf16.mxu1 %v6081_v23  ;;  %v5605_v23 = vld [vmem:[%s8223_s1 + $0xa28] ss:$24 sps:$4 sm:$0xff]  }
  0xc7   :  { %3844 = vmatpush1.bf16.msra.mxu0 %v5506_v18  ;;  %v5604_v18 = vld [vmem:[%s8223_s1 + $0x72c] ss:$24 sps:$4 sm:$0xff]  }
  0xc8   :  { %3887 = vmatpush1.bf16.msra.mxu1 %v5509_v19  ;;  %3845 = vmatprep.subr.bf16.mxu0 %v5514_v20  ;;  %v5607_v19 = vld [vmem:[%s8223_s1 + $0xa2c] ss:$24 sps:$4 sm:$0xff]   ;;  %v6082_v20 = vld [vmem:[%s8224_s0] ss:$48 sps:$4 sm:$0xff]  }
  0xc9   :  { %3888 = vmatprep.subr.bf16.mxu1 %v5517_v21  ;;  %v6083_v21 = vld [vmem:[%s8224_s0 + $0x8] ss:$48 sps:$4 sm:$0xff]  }
  0xcb   :  { %3846 = vmatpush1.bf16.msra.mxu0 %v5512_v24  ;;  %v5610_v24 = vld [vmem:[%s8223_s1 + $0x6fc] ss:$24 sps:$4 sm:$0xff]  }
  0xcc   :  { %3889 = vmatpush1.bf16.msra.mxu1 %v5515_v25  ;;  %3847 = vmatprep.subr.bf16.mxu0 %v5520_v26  ;;  %v5613_v25 = vld [vmem:[%s8223_s1 + $0x9fc] ss:$24 sps:$4 sm:$0xff]  }
  0xcd   :  { %3890 = vmatprep.subr.bf16.mxu1 %v5523_v27  ;;  %v6084_v26 = vld [vmem:[%s8224_s0 + $0x14] ss:$48 sps:$4 sm:$0xff]   ;;  %v6085_v27 = vld [vmem:[%s8224_s0 + $0x1c] ss:$48 sps:$4 sm:$0xff]  }
  0xcf   :  { %3848 = vmatpush1.bf16.msra.mxu0 %v5518_v28  ;;  %v5608_v28 = vld [vmem:[%s8223_s1 + $0x6f8] ss:$24 sps:$4 sm:$0xff]  }
  0xd0   :  { %3891 = vmatpush1.bf16.msra.mxu1 %v5521_v29  ;;  %3849 = vmatprep.subr.bf16.mxu0 %v5526_v30  ;;  %v5611_v29 = vld [vmem:[%s8223_s1 + $0x9f8] ss:$24 sps:$4 sm:$0xff]   ;;  %v5616_v30 = vld [vmem:[%s8223_s1 + $0x6cc] ss:$24 sps:$4 sm:$0xff]  }
  0xd1   :  { %3892 = vmatprep.subr.bf16.mxu1 %v5529_v31  ;;  %v5619_v31 = vld [vmem:[%s8223_s1 + $0x9cc] ss:$24 sps:$4 sm:$0xff]  }
  0xd3   :  { %3850 = vmatpush1.bf16.msra.mxu0 %v5524_v32  ;;  %v5614_v32 = vld [vmem:[%s8223_s1 + $0x6c8] ss:$24 sps:$4 sm:$0xff]  }
  0xd4   :  { %3893 = vmatpush1.bf16.msra.mxu1 %v5527_v33  ;;  %3851 = vmatprep.subr.bf16.mxu0 %v5532_v34  ;;  %v5617_v33 = vld [vmem:[%s8223_s1 + $0x9c8] ss:$24 sps:$4 sm:$0xff]   ;;  %v5622_v34 = vld [vmem:[%s8223_s1 + $0x69c] ss:$24 sps:$4 sm:$0xff]  }
  0xd5   :  { %3894 = vmatprep.subr.bf16.mxu1 %v5535_v35  ;;  %v5625_v35 = vld [vmem:[%s8223_s1 + $0x99c] ss:$24 sps:$4 sm:$0xff]  }
  0xd7   :  { %3852 = vmatpush1.bf16.msra.mxu0 %v5530_v36  ;;  %v5620_v36 = vld [vmem:[%s8223_s1 + $0x698] ss:$24 sps:$4 sm:$0xff]  }
  0xd8   :  { %3895 = vmatpush1.bf16.msra.mxu1 %v5533_v37  ;;  %3853 = vmatprep.subr.bf16.mxu0 %v5538_v38  ;;  %v5623_v37 = vld [vmem:[%s8223_s1 + $0x998] ss:$24 sps:$4 sm:$0xff]   ;;  %v5628_v38 = vld [vmem:[%s8223_s1 + $0x66c] ss:$24 sps:$4 sm:$0xff]  }
  0xd9   :  { %3896 = vmatprep.subr.bf16.mxu1 %v5541_v39  ;;  %v5631_v39 = vld [vmem:[%s8223_s1 + $0x96c] ss:$24 sps:$4 sm:$0xff]  }
  0xdb   :  { %3854 = vmatpush1.bf16.msra.mxu0 %v5536_v40  ;;  %v5626_v40 = vld [vmem:[%s8223_s1 + $0x668] ss:$24 sps:$4 sm:$0xff]  }
  0xdc   :  { %3897 = vmatpush1.bf16.msra.mxu1 %v5539_v41  ;;  %3855 = vmatprep.subr.bf16.mxu0 %v5544_v42  ;;  %v5629_v41 = vld [vmem:[%s8223_s1 + $0x968] ss:$24 sps:$4 sm:$0xff]   ;;  %v5634_v42 = vld [vmem:[%s8223_s1 + $0x63c] ss:$24 sps:$4 sm:$0xff]  }
  0xdd   :  { %3898 = vmatprep.subr.bf16.mxu1 %v5547_v43  ;;  %v5637_v43 = vld [vmem:[%s8223_s1 + $0x93c] ss:$24 sps:$4 sm:$0xff]  }
  0xdf   :  { %3856 = vmatpush1.bf16.msra.mxu0 %v5542_v44  ;;  %v5632_v44 = vld [vmem:[%s8223_s1 + $0x638] ss:$24 sps:$4 sm:$0xff]  }
  0xe0   :  { %3899 = vmatpush1.bf16.msra.mxu1 %v5545_v45  ;;  %3857 = vmatprep.subr.bf16.mxu0 %v5550_v46  ;;  %v5635_v45 = vld [vmem:[%s8223_s1 + $0x938] ss:$24 sps:$4 sm:$0xff]   ;;  %v5640_v46 = vld [vmem:[%s8223_s1 + $0x60c] ss:$24 sps:$4 sm:$0xff]  }
  0xe1   :  { %3900 = vmatprep.subr.bf16.mxu1 %v5553_v47  ;;  %v5643_v47 = vld [vmem:[%s8223_s1 + $0x90c] ss:$24 sps:$4 sm:$0xff]  }
  0xe3   :  { %3858 = vmatpush2.bf16.msra.mxu0 %v5548_v48  ;;  %v5638_v48 = vld [vmem:[%s8223_s1 + $0x608] ss:$24 sps:$4 sm:$0xff]  }
  0xe4   :  { %3901 = vmatpush2.bf16.msra.mxu1 %v5551_v49  ;;  %3859 = vmatprep.subr.bf16.mxu0 %v5556_v50  ;;  %v5641_v49 = vld [vmem:[%s8223_s1 + $0x908] ss:$24 sps:$4 sm:$0xff]   ;;  %v5646_v50 = vld [vmem:[%s8223_s1 + $0x8dc] ss:$24 sps:$4 sm:$0xff]  }
  0xe5   :  { %3902 = vmatprep.subr.bf16.mxu1 %v5559_v51  ;;  %v5649_v51 = vld [vmem:[%s8223_s1 + $0xbdc] ss:$24 sps:$4 sm:$0xff]  }
  0xe7   :  { %3860 = vmatpush2.bf16.msra.mxu0 %v5554_v52  ;;  %v5644_v52 = vld [vmem:[%s8223_s1 + $0x8d8] ss:$24 sps:$4 sm:$0xff]  }
  0xe8   :  { %3903 = vmatpush2.bf16.msra.mxu1 %v5557_v53  ;;  %3861 = vmatprep.subr.bf16.mxu0 %v5562_v54  ;;  %v5647_v53 = vld [vmem:[%s8223_s1 + $0xbd8] ss:$24 sps:$4 sm:$0xff]   ;;  %v5652_v54 = vld [vmem:[%s8223_s1 + $0x8ac] ss:$24 sps:$4 sm:$0xff]  }
  0xe9   :  { %3904 = vmatprep.subr.bf16.mxu1 %v5565_v55  ;;  %v5655_v55 = vld [vmem:[%s8223_s1 + $0xbac] ss:$24 sps:$4 sm:$0xff]  }
  0xeb   :  { %3862 = vmatpush2.bf16.msra.mxu0 %v5560_v56  ;;  %v5650_v56 = vld [vmem:[%s8223_s1 + $0x8a8] ss:$24 sps:$4 sm:$0xff]  }
  0xec   :  { %3905 = vmatpush2.bf16.msra.mxu1 %v5563_v57  ;;  %3863 = vmatprep.subr.bf16.mxu0 %v5568_v58  ;;  %v5653_v57 = vld [vmem:[%s8223_s1 + $0xba8] ss:$24 sps:$4 sm:$0xff]   ;;  %v5658_v58 = vld [vmem:[%s8223_s1 + $0x87c] ss:$24 sps:$4 sm:$0xff]  }
  0xed   :  { %3906 = vmatprep.subr.bf16.mxu1 %v5571_v59  ;;  %v5661_v59 = vld [vmem:[%s8223_s1 + $0xb7c] ss:$24 sps:$4 sm:$0xff]  }
  0xef   :  { %3864 = vmatpush2.bf16.msra.mxu0 %v5566_v60  ;;  %v5656_v60 = vld [vmem:[%s8223_s1 + $0x878] ss:$24 sps:$4 sm:$0xff]  }
  0xf0   :  { %3907 = vmatpush2.bf16.msra.mxu1 %v5569_v61  ;;  %3865 = vmatprep.subr.bf16.mxu0 %v5574_v62  ;;  %v5659_v61 = vld [vmem:[%s8223_s1 + $0xb78] ss:$24 sps:$4 sm:$0xff]   ;;  %v5664_v62 = vld [vmem:[%s8223_s1 + $0x84c] ss:$24 sps:$4 sm:$0xff]  }
  0xf1   :  { %3908 = vmatprep.subr.bf16.mxu1 %v5577_v63  ;;  %v5667_v63 = vld [vmem:[%s8223_s1 + $0xb4c] ss:$24 sps:$4 sm:$0xff]  }
  0xf3   :  { %3866 = vmatpush2.bf16.msra.mxu0 %v5572_v0  ;;  %v5662_v0 = vld [vmem:[%s8223_s1 + $0x848] ss:$24 sps:$4 sm:$0xff]  }
  0xf4   :  { %3909 = vmatpush2.bf16.msra.mxu1 %v5575_v1  ;;  %3867 = vmatprep.subr.bf16.mxu0 %v5580_v2  ;;  %v5665_v1 = vld [vmem:[%s8223_s1 + $0xb48] ss:$24 sps:$4 sm:$0xff]   ;;  %v5670_v2 = vld [vmem:[%s8223_s1 + $0x81c] ss:$24 sps:$4 sm:$0xff]  }
  0xf5   :  { %3910 = vmatprep.subr.bf16.mxu1 %v5583_v3  ;;  %v5673_v3 = vld [vmem:[%s8223_s1 + $0xb1c] ss:$24 sps:$4 sm:$0xff]  }
  0xf7   :  { %3868 = vmatpush2.bf16.msra.mxu0 %v5578_v4  ;;  %v5668_v4 = vld [vmem:[%s8223_s1 + $0x818] ss:$24 sps:$4 sm:$0xff]  }
  0xf8   :  { %3911 = vmatpush2.bf16.msra.mxu1 %v5581_v5  ;;  %3869 = vmatprep.subr.bf16.mxu0 %v5586_v6  ;;  %v5671_v5 = vld [vmem:[%s8223_s1 + $0xb18] ss:$24 sps:$4 sm:$0xff]   ;;  %v5676_v6 = vld [vmem:[%s8223_s1 + $0x7ec] ss:$24 sps:$4 sm:$0xff]  }
  0xf9   :  { %3912 = vmatprep.subr.bf16.mxu1 %v5589_v7  ;;  %v5679_v7 = vld [vmem:[%s8223_s1 + $0xaec] ss:$24 sps:$4 sm:$0xff]  }
  0xfb   :  { %3870 = vmatpush2.bf16.msra.mxu0 %v5584_v8  ;;  %v5674_v8 = vld [vmem:[%s8223_s1 + $0x7e8] ss:$24 sps:$4 sm:$0xff]  }
  0xfc   :  { %3913 = vmatpush2.bf16.msra.mxu1 %v5587_v9  ;;  %3871 = vmatprep.subr.bf16.mxu0 %v5592_v10  ;;  %v5677_v9 = vld [vmem:[%s8223_s1 + $0xae8] ss:$24 sps:$4 sm:$0xff]   ;;  %v5682_v10 = vld [vmem:[%s8223_s1 + $0x7bc] ss:$24 sps:$4 sm:$0xff]  }
  0xfd   :  { %3914 = vmatprep.subr.bf16.mxu1 %v5595_v11  ;;  %v5685_v11 = vld [vmem:[%s8223_s1 + $0xabc] ss:$24 sps:$4 sm:$0xff]  }
  0xff   :  { %3872 = vmatpush2.bf16.msra.mxu0 %v5590_v12  ;;  %v5680_v12 = vld [vmem:[%s8223_s1 + $0x7b8] ss:$24 sps:$4 sm:$0xff]  }
 0x100   :  { %3915 = vmatpush2.bf16.msra.mxu1 %v5593_v13  ;;  %3927 = vmatprep.subr.bf16.mxu0 %v5598_v14  ;;  %v5683_v13 = vld [vmem:[%s8223_s1 + $0xab8] ss:$24 sps:$4 sm:$0xff]   ;;  %v5688_v14 = vld [vmem:[%s8223_s1 + $0x78c] ss:$24 sps:$4 sm:$0xff]  }
 0x101   :  { %3970 = vmatprep.subr.bf16.mxu1 %v5601_v15  ;;  %v5691_v15 = vld [vmem:[%s8223_s1 + $0xa8c] ss:$24 sps:$4 sm:$0xff]  }
 0x102   :  { %3874 = vmatmul.mubr.bf16.vlgmr.msra.gmra.mxu0 %v6082_v20  ;;  %v5692_v20 = vld [vmem:[%s8223_s1 + $0xd58] ss:$24 sps:$4 sm:$0xff]  }
 0x103   :  { %3917 = vmatmul.mubr.bf16.vlgmr.msra.gmra.mxu1 %v6083_v21  ;;  %3928 = vmatpush1.bf16.msra.mxu0 %v5596_v16  ;;  %v5686_v16 = vld [vmem:[%s8223_s1 + $0x788] ss:$24 sps:$4 sm:$0xff]   ;;  %v5695_v21 = vld [vmem:[%s8223_s1 + $0x1058] ss:$24 sps:$4 sm:$0xff]  }
 0x104   :  { %3971 = vmatpush1.bf16.msra.mxu1 %v5599_v17  ;;  %3929 = vmatprep.subr.bf16.mxu0 %v5604_v18  ;;  %v5689_v17 = vld [vmem:[%s8223_s1 + $0xa88] ss:$24 sps:$4 sm:$0xff]   ;;  %v5694_v18 = vld [vmem:[%s8223_s1 + $0xd5c] ss:$24 sps:$4 sm:$0xff]  }
 0x105   :  { %3972 = vmatprep.subr.bf16.mxu1 %v5607_v19  ;;  %3959 = vmatprep.mubr.bf16.mxu0 %v6084_v26  ;;  %v5697_v19 = vld [vmem:[%s8223_s1 + $0x105c] ss:$24 sps:$4 sm:$0xff]   ;;  %v7174_v26 = vld [vmem:[%s8224_s0 + $0x10] ss:$48 sps:$4 sm:$0xff]  }
 0x106   :  { %4002 = vmatprep.mubr.bf16.mxu1 %v6085_v27  ;;  %v7180_v27 = vld [vmem:[%s8224_s0 + $0x18] ss:$48 sps:$4 sm:$0xff]  }
 0x107   :  { %3930 = vmatpush1.bf16.msra.mxu0 %v5602_v22  ;;  %v5700_v22 = vld [vmem:[%s8223_s1 + $0xd2c] ss:$24 sps:$4 sm:$0xff]  }
 0x108   :  { %3973 = vmatpush1.bf16.msra.mxu1 %v5605_v23  ;;  %3931 = vmatprep.subr.bf16.mxu0 %v5610_v24  ;;  %v5703_v23 = vld [vmem:[%s8223_s1 + $0x102c] ss:$24 sps:$4 sm:$0xff]   ;;  %v5698_v24 = vld [vmem:[%s8223_s1 + $0xd28] ss:$24 sps:$4 sm:$0xff]  }
 0x109   :  { %3974 = vmatprep.subr.bf16.mxu1 %v5613_v25  ;;  %v5701_v25 = vld [vmem:[%s8223_s1 + $0x1028] ss:$24 sps:$4 sm:$0xff]  }
 0x10b   :  { %3932 = vmatpush1.bf16.msra.mxu0 %v5608_v28  ;;  %v5706_v28 = vld [vmem:[%s8223_s1 + $0xcfc] ss:$24 sps:$4 sm:$0xff]  }
 0x10c   :  { %3975 = vmatpush1.bf16.msra.mxu1 %v5611_v29  ;;  %3933 = vmatprep.subr.bf16.mxu0 %v5616_v30  ;;  %v5709_v29 = vld [vmem:[%s8223_s1 + $0xffc] ss:$24 sps:$4 sm:$0xff]   ;;  %v5704_v30 = vld [vmem:[%s8223_s1 + $0xcf8] ss:$24 sps:$4 sm:$0xff]  }
 0x10d   :  { %3976 = vmatprep.subr.bf16.mxu1 %v5619_v31  ;;  %v5707_v31 = vld [vmem:[%s8223_s1 + $0xff8] ss:$24 sps:$4 sm:$0xff]  }
 0x10f   :  { %3934 = vmatpush1.bf16.msra.mxu0 %v5614_v32  ;;  %v7198_v32 = vld [vmem:[%s8224_s0 + $0x24] ss:$48 sps:$4 sm:$0xff]  }
 0x110   :  { %3977 = vmatpush1.bf16.msra.mxu1 %v5617_v33  ;;  %3935 = vmatprep.subr.bf16.mxu0 %v5622_v34  ;;  %v7204_v33 = vld [vmem:[%s8224_s0 + $0x2c] ss:$48 sps:$4 sm:$0xff]  }
 0x111   :  { %3978 = vmatprep.subr.bf16.mxu1 %v5625_v35  ;;  %v5712_v34 = vld [vmem:[%s8223_s1 + $0xccc] ss:$24 sps:$4 sm:$0xff]  }
 0x112   :  { %v5715_v35 = vld [vmem:[%s8223_s1 + $0xfcc] ss:$24 sps:$4 sm:$0xff]  }
 0x113   :  { %3936 = vmatpush1.bf16.msra.mxu0 %v5620_v36  ;;  %v5710_v36 = vld [vmem:[%s8223_s1 + $0xcc8] ss:$24 sps:$4 sm:$0xff]  }
 0x114   :  { %3979 = vmatpush1.bf16.msra.mxu1 %v5623_v37  ;;  %3937 = vmatprep.subr.bf16.mxu0 %v5628_v38  ;;  %v5713_v37 = vld [vmem:[%s8223_s1 + $0xfc8] ss:$24 sps:$4 sm:$0xff]   ;;  %v5718_v38 = vld [vmem:[%s8223_s1 + $0xc9c] ss:$24 sps:$4 sm:$0xff]  }
 0x115   :  { %3980 = vmatprep.subr.bf16.mxu1 %v5631_v39  ;;  %v5721_v39 = vld [vmem:[%s8223_s1 + $0xf9c] ss:$24 sps:$4 sm:$0xff]  }
 0x117   :  { %3938 = vmatpush1.bf16.msra.mxu0 %v5626_v40  ;;  %v5716_v40 = vld [vmem:[%s8223_s1 + $0xc98] ss:$24 sps:$4 sm:$0xff]  }
 0x118   :  { %3981 = vmatpush1.bf16.msra.mxu1 %v5629_v41  ;;  %3939 = vmatprep.subr.bf16.mxu0 %v5634_v42  ;;  %v5719_v41 = vld [vmem:[%s8223_s1 + $0xf98] ss:$24 sps:$4 sm:$0xff]   ;;  %v5724_v42 = vld [vmem:[%s8223_s1 + $0xc6c] ss:$24 sps:$4 sm:$0xff]  }
 0x119   :  { %3982 = vmatprep.subr.bf16.mxu1 %v5637_v43  ;;  %v5727_v43 = vld [vmem:[%s8223_s1 + $0xf6c] ss:$24 sps:$4 sm:$0xff]  }
 0x11b   :  { %3940 = vmatpush1.bf16.msra.mxu0 %v5632_v44  ;;  %v5722_v44 = vld [vmem:[%s8223_s1 + $0xc68] ss:$24 sps:$4 sm:$0xff]  }
 0x11c   :  { %3983 = vmatpush1.bf16.msra.mxu1 %v5635_v45  ;;  %3941 = vmatprep.subr.bf16.mxu0 %v5640_v46  ;;  %v5725_v45 = vld [vmem:[%s8223_s1 + $0xf68] ss:$24 sps:$4 sm:$0xff]   ;;  %v5730_v46 = vld [vmem:[%s8223_s1 + $0xc3c] ss:$24 sps:$4 sm:$0xff]  }
 0x11d   :  { %3984 = vmatprep.subr.bf16.mxu1 %v5643_v47  ;;  %v5733_v47 = vld [vmem:[%s8223_s1 + $0xf3c] ss:$24 sps:$4 sm:$0xff]  }
 0x11f   :  { %3942 = vmatpush1.bf16.msra.mxu0 %v5638_v48  ;;  %v5728_v48 = vld [vmem:[%s8223_s1 + $0xc38] ss:$24 sps:$4 sm:$0xff]  }
 0x120   :  { %3985 = vmatpush1.bf16.msra.mxu1 %v5641_v49  ;;  %3943 = vmatprep.subr.bf16.mxu0 %v5646_v50  ;;  %v5731_v49 = vld [vmem:[%s8223_s1 + $0xf38] ss:$24 sps:$4 sm:$0xff]   ;;  %v5736_v50 = vld [vmem:[%s8223_s1 + $0xc0c] ss:$24 sps:$4 sm:$0xff]  }
 0x121   :  { %3986 = vmatprep.subr.bf16.mxu1 %v5649_v51  ;;  %v5739_v51 = vld [vmem:[%s8223_s1 + $0xf0c] ss:$24 sps:$4 sm:$0xff]  }
 0x123   :  { %3944 = vmatpush2.bf16.msra.mxu0 %v5644_v52  ;;  %v5734_v52 = vld [vmem:[%s8223_s1 + $0xc08] ss:$24 sps:$4 sm:$0xff]  }
 0x124   :  { %3987 = vmatpush2.bf16.msra.mxu1 %v5647_v53  ;;  %3945 = vmatprep.subr.bf16.mxu0 %v5652_v54  ;;  %v5737_v53 = vld [vmem:[%s8223_s1 + $0xf08] ss:$24 sps:$4 sm:$0xff]   ;;  %v5742_v54 = vld [vmem:[%s8223_s1 + $0xedc] ss:$24 sps:$4 sm:$0xff]  }
 0x125   :  { %3988 = vmatprep.subr.bf16.mxu1 %v5655_v55  ;;  %v5745_v55 = vld [vmem:[%s8223_s1 + $0x11dc] ss:$24 sps:$4 sm:$0xff]  }
 0x127   :  { %3946 = vmatpush2.bf16.msra.mxu0 %v5650_v56  ;;  %v5740_v56 = vld [vmem:[%s8223_s1 + $0xed8] ss:$24 sps:$4 sm:$0xff]  }
 0x128   :  { %3989 = vmatpush2.bf16.msra.mxu1 %v5653_v57  ;;  %3947 = vmatprep.subr.bf16.mxu0 %v5658_v58  ;;  %v5743_v57 = vld [vmem:[%s8223_s1 + $0x11d8] ss:$24 sps:$4 sm:$0xff]   ;;  %v5748_v58 = vld [vmem:[%s8223_s1 + $0xeac] ss:$24 sps:$4 sm:$0xff]  }
 0x129   :  { %3990 = vmatprep.subr.bf16.mxu1 %v5661_v59  ;;  %v5751_v59 = vld [vmem:[%s8223_s1 + $0x11ac] ss:$24 sps:$4 sm:$0xff]  }
 0x12b   :  { %3948 = vmatpush2.bf16.msra.mxu0 %v5656_v60  ;;  %v5746_v60 = vld [vmem:[%s8223_s1 + $0xea8] ss:$24 sps:$4 sm:$0xff]  }
 0x12c   :  { %3991 = vmatpush2.bf16.msra.mxu1 %v5659_v61  ;;  %3949 = vmatprep.subr.bf16.mxu0 %v5664_v62  ;;  %v5749_v61 = vld [vmem:[%s8223_s1 + $0x11a8] ss:$24 sps:$4 sm:$0xff]   ;;  %v5754_v62 = vld [vmem:[%s8223_s1 + $0xe7c] ss:$24 sps:$4 sm:$0xff]  }
 0x12d   :  { %3992 = vmatprep.subr.bf16.mxu1 %v5667_v63  ;;  %v5757_v63 = vld [vmem:[%s8223_s1 + $0x117c] ss:$24 sps:$4 sm:$0xff]  }
 0x12f   :  { %3950 = vmatpush2.bf16.msra.mxu0 %v5662_v0  ;;  %v5752_v0 = vld [vmem:[%s8223_s1 + $0xe78] ss:$24 sps:$4 sm:$0xff]  }
 0x130   :  { %3993 = vmatpush2.bf16.msra.mxu1 %v5665_v1  ;;  %3951 = vmatprep.subr.bf16.mxu0 %v5670_v2  ;;  %v5755_v1 = vld [vmem:[%s8223_s1 + $0x1178] ss:$24 sps:$4 sm:$0xff]   ;;  %v5760_v2 = vld [vmem:[%s8223_s1 + $0xe4c] ss:$24 sps:$4 sm:$0xff]  }
 0x131   :  { %3994 = vmatprep.subr.bf16.mxu1 %v5673_v3  ;;  %v5763_v3 = vld [vmem:[%s8223_s1 + $0x114c] ss:$24 sps:$4 sm:$0xff]  }
 0x133   :  { %3952 = vmatpush2.bf16.msra.mxu0 %v5668_v4  ;;  %v5758_v4 = vld [vmem:[%s8223_s1 + $0xe48] ss:$24 sps:$4 sm:$0xff]  }
 0x134   :  { %3995 = vmatpush2.bf16.msra.mxu1 %v5671_v5  ;;  %3953 = vmatprep.subr.bf16.mxu0 %v5676_v6  ;;  %v5761_v5 = vld [vmem:[%s8223_s1 + $0x1148] ss:$24 sps:$4 sm:$0xff]   ;;  %v5766_v6 = vld [vmem:[%s8223_s1 + $0xe1c] ss:$24 sps:$4 sm:$0xff]  }
 0x135   :  { %3996 = vmatprep.subr.bf16.mxu1 %v5679_v7  ;;  %v5769_v7 = vld [vmem:[%s8223_s1 + $0x111c] ss:$24 sps:$4 sm:$0xff]  }
 0x137   :  { %3954 = vmatpush2.bf16.msra.mxu0 %v5674_v8  ;;  %v5764_v8 = vld [vmem:[%s8223_s1 + $0xe18] ss:$24 sps:$4 sm:$0xff]  }
 0x138   :  { %3997 = vmatpush2.bf16.msra.mxu1 %v5677_v9  ;;  %3955 = vmatprep.subr.bf16.mxu0 %v5682_v10  ;;  %v5767_v9 = vld [vmem:[%s8223_s1 + $0x1118] ss:$24 sps:$4 sm:$0xff]   ;;  %v5772_v10 = vld [vmem:[%s8223_s1 + $0xdec] ss:$24 sps:$4 sm:$0xff]  }
 0x139   :  { %3998 = vmatprep.subr.bf16.mxu1 %v5685_v11  ;;  %v5775_v11 = vld [vmem:[%s8223_s1 + $0x10ec] ss:$24 sps:$4 sm:$0xff]  }
 0x13b   :  { %3956 = vmatpush2.bf16.msra.mxu0 %v5680_v12  ;;  %v5770_v12 = vld [vmem:[%s8223_s1 + $0xde8] ss:$24 sps:$4 sm:$0xff]  }
 0x13c   :  { %3999 = vmatpush2.bf16.msra.mxu1 %v5683_v13  ;;  %3957 = vmatprep.subr.bf16.mxu0 %v5688_v14  ;;  %v5773_v13 = vld [vmem:[%s8223_s1 + $0x10e8] ss:$24 sps:$4 sm:$0xff]   ;;  %v5778_v14 = vld [vmem:[%s8223_s1 + $0xdbc] ss:$24 sps:$4 sm:$0xff]  }
 0x13d   :  { %4000 = vmatprep.subr.bf16.mxu1 %v5691_v15  ;;  %v5781_v15 = vld [vmem:[%s8223_s1 + $0x10bc] ss:$24 sps:$4 sm:$0xff]  }
 0x13f   :  { %3958 = vmatpush2.bf16.msra.mxu0 %v5686_v16  ;;  %v5776_v16 = vld [vmem:[%s8223_s1 + $0xdb8] ss:$24 sps:$4 sm:$0xff]  }
 0x140   :  { %4001 = vmatpush2.bf16.msra.mxu1 %v5689_v17  ;;  %4013 = vmatprep.subr.bf16.mxu0 %v5694_v18  ;;  %v5779_v17 = vld [vmem:[%s8223_s1 + $0x10b8] ss:$24 sps:$4 sm:$0xff]   ;;  %v5784_v18 = vld [vmem:[%s8223_s1 + $0xd8c] ss:$24 sps:$4 sm:$0xff]  }
 0x141   :  { %4056 = vmatprep.subr.bf16.mxu1 %v5697_v19  ;;  %v5787_v19 = vld [vmem:[%s8223_s1 + $0x108c] ss:$24 sps:$4 sm:$0xff]  }
 0x142   :  { %3960 = vmatmul.mubr.bf16.vlgmr.msra.gmra.mxu0 %v7174_v26 }
 0x143   :  { %4003 = vmatmul.mubr.bf16.vlgmr.msra.gmra.mxu1 %v7180_v27  ;;  %4014 = vmatpush1.bf16.msra.mxu0 %v5692_v20  ;;  %v5782_v20 = vld [vmem:[%s8223_s1 + $0xd88] ss:$24 sps:$4 sm:$0xff]  }
 0x144   :  { %4057 = vmatpush1.bf16.msra.mxu1 %v5695_v21  ;;  %4015 = vmatprep.subr.bf16.mxu0 %v5700_v22  ;;  %v5785_v21 = vld [vmem:[%s8223_s1 + $0x1088] ss:$24 sps:$4 sm:$0xff]   ;;  %v5790_v22 = vld [vmem:[%s8223_s1 + $0x164] ss:$24 sps:$4 sm:$0xff]  }
 0x145   :  { %4058 = vmatprep.subr.bf16.mxu1 %v5703_v23  ;;  %4045 = vmatprep.mubr.bf16.mxu0 %v7198_v32  ;;  %v5793_v23 = vld [vmem:[%s8223_s1 + $0x464] ss:$24 sps:$4 sm:$0xff]  }
 0x146   :  { %4088 = vmatprep.mubr.bf16.mxu1 %v7204_v33 }
 0x147   :  { %4016 = vmatpush1.bf16.msra.mxu0 %v5698_v24  ;;  %v5788_v24 = vld [vmem:[%s8223_s1 + $0x160] ss:$24 sps:$4 sm:$0xff]  }
 0x148   :  { %4059 = vmatpush1.bf16.msra.mxu1 %v5701_v25  ;;  %4017 = vmatprep.subr.bf16.mxu0 %v5706_v28  ;;  %v5791_v25 = vld [vmem:[%s8223_s1 + $0x460] ss:$24 sps:$4 sm:$0xff]   ;;  %v5796_v28 = vld [vmem:[%s8223_s1 + $0x134] ss:$24 sps:$4 sm:$0xff]  }
 0x149   :  { %4060 = vmatprep.subr.bf16.mxu1 %v5709_v29  ;;  %v5799_v29 = vld [vmem:[%s8223_s1 + $0x434] ss:$24 sps:$4 sm:$0xff]  }
 0x14b   :  { %4018 = vmatpush1.bf16.msra.mxu0 %v5704_v30  ;;  %v7384_v30 = vld [vmem:[%s8224_s0 + $0x20] ss:$48 sps:$4 sm:$0xff]  }
 0x14c   :  { %4061 = vmatpush1.bf16.msra.mxu1 %v5707_v31  ;;  %4019 = vmatprep.subr.bf16.mxu0 %v5712_v34  ;;  %v7390_v31 = vld [vmem:[%s8224_s0 + $0x28] ss:$48 sps:$4 sm:$0xff]  }
 0x14d   :  { %4062 = vmatprep.subr.bf16.mxu1 %v5715_v35  ;;  %v5794_v34 = vld [vmem:[%s8223_s1 + $0x130] ss:$24 sps:$4 sm:$0xff]  }
 0x14e   :  { %v5797_v35 = vld [vmem:[%s8223_s1 + $0x430] ss:$24 sps:$4 sm:$0xff]  }
 0x14f   :  { %4020 = vmatpush1.bf16.msra.mxu0 %v5710_v36  ;;  %v5802_v36 = vld [vmem:[%s8223_s1 + $0x104] ss:$24 sps:$4 sm:$0xff]  }
 0x150   :  { %4063 = vmatpush1.bf16.msra.mxu1 %v5713_v37  ;;  %4021 = vmatprep.subr.bf16.mxu0 %v5718_v38  ;;  %v5805_v37 = vld [vmem:[%s8223_s1 + $0x404] ss:$24 sps:$4 sm:$0xff]  }
 0x151   :  { %4064 = vmatprep.subr.bf16.mxu1 %v5721_v39  ;;  %v6092_v38 = vld [vmem:[%s8224_s0 + $0x4] ss:$48 sps:$4 sm:$0xff]   ;;  %v6093_v39 = vld [vmem:[%s8224_s0 + $0xc] ss:$48 sps:$4 sm:$0xff]  }
 0x153   :  { %4022 = vmatpush1.bf16.msra.mxu0 %v5716_v40  ;;  %v5800_v40 = vld [vmem:[%s8223_s1 + $0x100] ss:$24 sps:$4 sm:$0xff]  }
 0x154   :  { %4065 = vmatpush1.bf16.msra.mxu1 %v5719_v41  ;;  %4023 = vmatprep.subr.bf16.mxu0 %v5724_v42  ;;  %v5803_v41 = vld [vmem:[%s8223_s1 + $0x400] ss:$24 sps:$4 sm:$0xff]   ;;  %v5808_v42 = vld [vmem:[%s8223_s1 + $0xd4] ss:$24 sps:$4 sm:$0xff]  }
 0x155   :  { %4066 = vmatprep.subr.bf16.mxu1 %v5727_v43  ;;  %v5811_v43 = vld [vmem:[%s8223_s1 + $0x3d4] ss:$24 sps:$4 sm:$0xff]  }
 0x157   :  { %4024 = vmatpush1.bf16.msra.mxu0 %v5722_v44  ;;  %v5806_v44 = vld [vmem:[%s8223_s1 + $0xd0] ss:$24 sps:$4 sm:$0xff]  }
 0x158   :  { %4067 = vmatpush1.bf16.msra.mxu1 %v5725_v45  ;;  %4025 = vmatprep.subr.bf16.mxu0 %v5730_v46  ;;  %v5809_v45 = vld [vmem:[%s8223_s1 + $0x3d0] ss:$24 sps:$4 sm:$0xff]   ;;  %v5814_v46 = vld [vmem:[%s8223_s1 + $0xa4] ss:$24 sps:$4 sm:$0xff]  }
 0x159   :  { %4068 = vmatprep.subr.bf16.mxu1 %v5733_v47  ;;  %v5817_v47 = vld [vmem:[%s8223_s1 + $0x3a4] ss:$24 sps:$4 sm:$0xff]  }
 0x15b   :  { %4026 = vmatpush1.bf16.msra.mxu0 %v5728_v48  ;;  %v5812_v48 = vld [vmem:[%s8223_s1 + $0xa0] ss:$24 sps:$4 sm:$0xff]  }
 0x15c   :  { %4069 = vmatpush1.bf16.msra.mxu1 %v5731_v49  ;;  %4027 = vmatprep.subr.bf16.mxu0 %v5736_v50  ;;  %v5815_v49 = vld [vmem:[%s8223_s1 + $0x3a0] ss:$24 sps:$4 sm:$0xff]   ;;  %v5820_v50 = vld [vmem:[%s8223_s1 + $0x74] ss:$24 sps:$4 sm:$0xff]  }
 0x15d   :  { %4070 = vmatprep.subr.bf16.mxu1 %v5739_v51  ;;  %v5823_v51 = vld [vmem:[%s8223_s1 + $0x374] ss:$24 sps:$4 sm:$0xff]  }
 0x15f   :  { %4028 = vmatpush1.bf16.msra.mxu0 %v5734_v52  ;;  %v5818_v52 = vld [vmem:[%s8223_s1 + $0x70] ss:$24 sps:$4 sm:$0xff]  }
 0x160   :  { %4071 = vmatpush1.bf16.msra.mxu1 %v5737_v53  ;;  %4029 = vmatprep.subr.bf16.mxu0 %v5742_v54  ;;  %v5821_v53 = vld [vmem:[%s8223_s1 + $0x370] ss:$24 sps:$4 sm:$0xff]   ;;  %v5826_v54 = vld [vmem:[%s8223_s1 + $0x44] ss:$24 sps:$4 sm:$0xff]  }
 0x161   :  { %4072 = vmatprep.subr.bf16.mxu1 %v5745_v55  ;;  %v5829_v55 = vld [vmem:[%s8223_s1 + $0x344] ss:$24 sps:$4 sm:$0xff]  }
 0x163   :  { %4030 = vmatpush2.bf16.msra.mxu0 %v5740_v56  ;;  %v5824_v56 = vld [vmem:[%s8223_s1 + $0x40] ss:$24 sps:$4 sm:$0xff]  }
 0x164   :  { %4073 = vmatpush2.bf16.msra.mxu1 %v5743_v57  ;;  %4031 = vmatprep.subr.bf16.mxu0 %v5748_v58  ;;  %v5827_v57 = vld [vmem:[%s8223_s1 + $0x340] ss:$24 sps:$4 sm:$0xff]   ;;  %v5832_v58 = vld [vmem:[%s8223_s1 + $0x14] ss:$24 sps:$4 sm:$0xff]  }
 0x165   :  { %4074 = vmatprep.subr.bf16.mxu1 %v5751_v59  ;;  %v5835_v59 = vld [vmem:[%s8223_s1 + $0x314] ss:$24 sps:$4 sm:$0xff]  }
 0x167   :  { %4032 = vmatpush2.bf16.msra.mxu0 %v5746_v60  ;;  %v5830_v60 = vld [vmem:[%s8223_s1 + $0x10] ss:$24 sps:$4 sm:$0xff]  }
 0x168   :  { %4075 = vmatpush2.bf16.msra.mxu1 %v5749_v61  ;;  %4033 = vmatprep.subr.bf16.mxu0 %v5754_v62  ;;  %v5833_v61 = vld [vmem:[%s8223_s1 + $0x310] ss:$24 sps:$4 sm:$0xff]   ;;  %v5838_v62 = vld [vmem:[%s8223_s1 + $0x2e4] ss:$24 sps:$4 sm:$0xff]  }
 0x169   :  { %4076 = vmatprep.subr.bf16.mxu1 %v5757_v63  ;;  %v5841_v63 = vld [vmem:[%s8223_s1 + $0x5e4] ss:$24 sps:$4 sm:$0xff]  }
 0x16b   :  { %4034 = vmatpush2.bf16.msra.mxu0 %v5752_v0  ;;  %v5836_v0 = vld [vmem:[%s8223_s1 + $0x2e0] ss:$24 sps:$4 sm:$0xff]  }
 0x16c   :  { %4077 = vmatpush2.bf16.msra.mxu1 %v5755_v1  ;;  %4035 = vmatprep.subr.bf16.mxu0 %v5760_v2  ;;  %v5839_v1 = vld [vmem:[%s8223_s1 + $0x5e0] ss:$24 sps:$4 sm:$0xff]   ;;  %v5844_v2 = vld [vmem:[%s8223_s1 + $0x2b4] ss:$24 sps:$4 sm:$0xff]  }
 0x16d   :  { %4078 = vmatprep.subr.bf16.mxu1 %v5763_v3  ;;  %v5847_v3 = vld [vmem:[%s8223_s1 + $0x5b4] ss:$24 sps:$4 sm:$0xff]  }
 0x16f   :  { %4036 = vmatpush2.bf16.msra.mxu0 %v5758_v4  ;;  %v5842_v4 = vld [vmem:[%s8223_s1 + $0x2b0] ss:$24 sps:$4 sm:$0xff]  }
 0x170   :  { %4079 = vmatpush2.bf16.msra.mxu1 %v5761_v5  ;;  %4037 = vmatprep.subr.bf16.mxu0 %v5766_v6  ;;  %v5845_v5 = vld [vmem:[%s8223_s1 + $0x5b0] ss:$24 sps:$4 sm:$0xff]   ;;  %v5850_v6 = vld [vmem:[%s8223_s1 + $0x284] ss:$24 sps:$4 sm:$0xff]  }
 0x171   :  { %4080 = vmatprep.subr.bf16.mxu1 %v5769_v7  ;;  %v5853_v7 = vld [vmem:[%s8223_s1 + $0x584] ss:$24 sps:$4 sm:$0xff]  }
 0x173   :  { %4038 = vmatpush2.bf16.msra.mxu0 %v5764_v8  ;;  %v5848_v8 = vld [vmem:[%s8223_s1 + $0x280] ss:$24 sps:$4 sm:$0xff]  }
 0x174   :  { %4081 = vmatpush2.bf16.msra.mxu1 %v5767_v9  ;;  %4039 = vmatprep.subr.bf16.mxu0 %v5772_v10  ;;  %v5851_v9 = vld [vmem:[%s8223_s1 + $0x580] ss:$24 sps:$4 sm:$0xff]   ;;  %v5856_v10 = vld [vmem:[%s8223_s1 + $0x254] ss:$24 sps:$4 sm:$0xff]  }
 0x175   :  { %4082 = vmatprep.subr.bf16.mxu1 %v5775_v11  ;;  %v5859_v11 = vld [vmem:[%s8223_s1 + $0x554] ss:$24 sps:$4 sm:$0xff]  }
 0x177   :  { %4040 = vmatpush2.bf16.msra.mxu0 %v5770_v12  ;;  %v5854_v12 = vld [vmem:[%s8223_s1 + $0x250] ss:$24 sps:$4 sm:$0xff]  }
 0x178   :  { %4083 = vmatpush2.bf16.msra.mxu1 %v5773_v13  ;;  %4041 = vmatprep.subr.bf16.mxu0 %v5778_v14  ;;  %v5857_v13 = vld [vmem:[%s8223_s1 + $0x550] ss:$24 sps:$4 sm:$0xff]   ;;  %v5862_v14 = vld [vmem:[%s8223_s1 + $0x224] ss:$24 sps:$4 sm:$0xff]  }
 0x179   :  { %4084 = vmatprep.subr.bf16.mxu1 %v5781_v15  ;;  %v5865_v15 = vld [vmem:[%s8223_s1 + $0x524] ss:$24 sps:$4 sm:$0xff]  }
 0x17b   :  { %4042 = vmatpush2.bf16.msra.mxu0 %v5776_v16  ;;  %v5860_v16 = vld [vmem:[%s8223_s1 + $0x220] ss:$24 sps:$4 sm:$0xff]  }
 0x17c   :  { %4085 = vmatpush2.bf16.msra.mxu1 %v5779_v17  ;;  %4043 = vmatprep.subr.bf16.mxu0 %v5784_v18  ;;  %v5863_v17 = vld [vmem:[%s8223_s1 + $0x520] ss:$24 sps:$4 sm:$0xff]   ;;  %v5868_v18 = vld [vmem:[%s8223_s1 + $0x1f4] ss:$24 sps:$4 sm:$0xff]  }
 0x17d   :  { %4086 = vmatprep.subr.bf16.mxu1 %v5787_v19  ;;  %v5871_v19 = vld [vmem:[%s8223_s1 + $0x4f4] ss:$24 sps:$4 sm:$0xff]  }
 0x17f   :  { %4044 = vmatpush2.bf16.msra.mxu0 %v5782_v20  ;;  %v5866_v20 = vld [vmem:[%s8223_s1 + $0x1f0] ss:$24 sps:$4 sm:$0xff]  }
 0x180   :  { %4087 = vmatpush2.bf16.msra.mxu1 %v5785_v21  ;;  %4099 = vmatprep.subr.bf16.mxu0 %v5790_v22  ;;  %v5869_v21 = vld [vmem:[%s8223_s1 + $0x4f0] ss:$24 sps:$4 sm:$0xff]   ;;  %v5874_v22 = vld [vmem:[%s8223_s1 + $0x1c4] ss:$24 sps:$4 sm:$0xff]  }
 0x181   :  { %4142 = vmatprep.subr.bf16.mxu1 %v5793_v23  ;;  %v5877_v23 = vld [vmem:[%s8223_s1 + $0x4c4] ss:$24 sps:$4 sm:$0xff]  }
 0x182   :  { %4046 = vmatmul.mubr.bf16.vlgmr.msra.gmra.mxu0 %v7384_v30 }
 0x183   :  { %4089 = vmatmul.mubr.bf16.vlgmr.msra.gmra.mxu1 %v7390_v31  ;;  %4100 = vmatpush1.bf16.msra.mxu0 %v5788_v24  ;;  %v5872_v24 = vld [vmem:[%s8223_s1 + $0x1c0] ss:$24 sps:$4 sm:$0xff]  }
 0x184   :  { %4143 = vmatpush1.bf16.msra.mxu1 %v5791_v25  ;;  %4101 = vmatprep.subr.bf16.mxu0 %v5796_v28  ;;  %v5875_v25 = vld [vmem:[%s8223_s1 + $0x4c0] ss:$24 sps:$4 sm:$0xff]   ;;  %v5880_v28 = vld [vmem:[%s8223_s1 + $0x194] ss:$24 sps:$4 sm:$0xff]  }
 0x185   :  { %4144 = vmatprep.subr.bf16.mxu1 %v5799_v29  ;;  %4131 = vmatprep.mubr.bf16.mxu0 %v6092_v38  ;;  %v5883_v29 = vld [vmem:[%s8223_s1 + $0x494] ss:$24 sps:$4 sm:$0xff]   ;;  %v5884_v38 = vld [vmem:[%s8223_s1 + $0x760] ss:$24 sps:$4 sm:$0xff]  }
 0x186   :  { %4174 = vmatprep.mubr.bf16.mxu1 %v6093_v39  ;;  %v5887_v39 = vld [vmem:[%s8223_s1 + $0xa60] ss:$24 sps:$4 sm:$0xff]  }
 0x187   :  { %4102 = vmatpush1.bf16.msra.mxu0 %v5794_v34  ;;  %v5878_v34 = vld [vmem:[%s8223_s1 + $0x190] ss:$24 sps:$4 sm:$0xff]  }
 0x188   :  { %4145 = vmatpush1.bf16.msra.mxu1 %v5797_v35  ;;  %4103 = vmatprep.subr.bf16.mxu0 %v5802_v36  ;;  %v5881_v35 = vld [vmem:[%s8223_s1 + $0x490] ss:$24 sps:$4 sm:$0xff]   ;;  %v5886_v36 = vld [vmem:[%s8223_s1 + $0x764] ss:$24 sps:$4 sm:$0xff]  }
 0x189   :  { %4146 = vmatprep.subr.bf16.mxu1 %v5805_v37  ;;  %v5889_v37 = vld [vmem:[%s8223_s1 + $0xa64] ss:$24 sps:$4 sm:$0xff]  }
 0x18b   :  { %4104 = vmatpush1.bf16.msra.mxu0 %v5800_v40  ;;  %v5892_v40 = vld [vmem:[%s8223_s1 + $0x734] ss:$24 sps:$4 sm:$0xff]  }
 0x18c   :  { %4147 = vmatpush1.bf16.msra.mxu1 %v5803_v41  ;;  %4105 = vmatprep.subr.bf16.mxu0 %v5808_v42  ;;  %v5895_v41 = vld [vmem:[%s8223_s1 + $0xa34] ss:$24 sps:$4 sm:$0xff]   ;;  %v6094_v42 = vld [vmem:[%s8224_s0] ss:$48 sps:$4 sm:$0xff]  }
 0x18d   :  { %4148 = vmatprep.subr.bf16.mxu1 %v5811_v43  ;;  %v6095_v43 = vld [vmem:[%s8224_s0 + $0x8] ss:$48 sps:$4 sm:$0xff]  }
 0x18f   :  { %4106 = vmatpush1.bf16.msra.mxu0 %v5806_v44  ;;  %v5890_v44 = vld [vmem:[%s8223_s1 + $0x730] ss:$24 sps:$4 sm:$0xff]  }
 0x190   :  { %4149 = vmatpush1.bf16.msra.mxu1 %v5809_v45  ;;  %4107 = vmatprep.subr.bf16.mxu0 %v5814_v46  ;;  %v5893_v45 = vld [vmem:[%s8223_s1 + $0xa30] ss:$24 sps:$4 sm:$0xff]   ;;  %v5898_v46 = vld [vmem:[%s8223_s1 + $0x704] ss:$24 sps:$4 sm:$0xff]  }
 0x191   :  { %4150 = vmatprep.subr.bf16.mxu1 %v5817_v47  ;;  %v5901_v47 = vld [vmem:[%s8223_s1 + $0xa04] ss:$24 sps:$4 sm:$0xff]  }
 0x193   :  { %4108 = vmatpush1.bf16.msra.mxu0 %v5812_v48  ;;  %v6096_v48 = vld [vmem:[%s8224_s0 + $0x14] ss:$48 sps:$4 sm:$0xff]  }
 0x194   :  { %4151 = vmatpush1.bf16.msra.mxu1 %v5815_v49  ;;  %4109 = vmatprep.subr.bf16.mxu0 %v5820_v50  ;;  %v6097_v49 = vld [vmem:[%s8224_s0 + $0x1c] ss:$48 sps:$4 sm:$0xff]   ;;  %v5896_v50 = vld [vmem:[%s8223_s1 + $0x700] ss:$24 sps:$4 sm:$0xff]  }
 0x195   :  { %4152 = vmatprep.subr.bf16.mxu1 %v5823_v51  ;;  %v5899_v51 = vld [vmem:[%s8223_s1 + $0xa00] ss:$24 sps:$4 sm:$0xff]  }
 0x197   :  { %4110 = vmatpush1.bf16.msra.mxu0 %v5818_v52  ;;  %v5904_v52 = vld [vmem:[%s8223_s1 + $0x6d4] ss:$24 sps:$4 sm:$0xff]  }
 0x198   :  { %4153 = vmatpush1.bf16.msra.mxu1 %v5821_v53  ;;  %4111 = vmatprep.subr.bf16.mxu0 %v5826_v54  ;;  %v5907_v53 = vld [vmem:[%s8223_s1 + $0x9d4] ss:$24 sps:$4 sm:$0xff]   ;;  %v5902_v54 = vld [vmem:[%s8223_s1 + $0x6d0] ss:$24 sps:$4 sm:$0xff]  }
 0x199   :  { %4154 = vmatprep.subr.bf16.mxu1 %v5829_v55  ;;  %v5905_v55 = vld [vmem:[%s8223_s1 + $0x9d0] ss:$24 sps:$4 sm:$0xff]  }
 0x19b   :  { %4112 = vmatpush1.bf16.msra.mxu0 %v5824_v56  ;;  %v5910_v56 = vld [vmem:[%s8223_s1 + $0x6a4] ss:$24 sps:$4 sm:$0xff]  }
 0x19c   :  { %4155 = vmatpush1.bf16.msra.mxu1 %v5827_v57  ;;  %4113 = vmatprep.subr.bf16.mxu0 %v5832_v58  ;;  %v5913_v57 = vld [vmem:[%s8223_s1 + $0x9a4] ss:$24 sps:$4 sm:$0xff]   ;;  %v5908_v58 = vld [vmem:[%s8223_s1 + $0x6a0] ss:$24 sps:$4 sm:$0xff]  }
 0x19d   :  { %4156 = vmatprep.subr.bf16.mxu1 %v5835_v59  ;;  %v5911_v59 = vld [vmem:[%s8223_s1 + $0x9a0] ss:$24 sps:$4 sm:$0xff]  }
 0x19f   :  { %4114 = vmatpush1.bf16.msra.mxu0 %v5830_v60  ;;  %v5916_v60 = vld [vmem:[%s8223_s1 + $0x674] ss:$24 sps:$4 sm:$0xff]  }
 0x1a0   :  { %4157 = vmatpush1.bf16.msra.mxu1 %v5833_v61  ;;  %4115 = vmatprep.subr.bf16.mxu0 %v5838_v62  ;;  %v5919_v61 = vld [vmem:[%s8223_s1 + $0x974] ss:$24 sps:$4 sm:$0xff]   ;;  %v5914_v62 = vld [vmem:[%s8223_s1 + $0x670] ss:$24 sps:$4 sm:$0xff]  }
 0x1a1   :  { %4158 = vmatprep.subr.bf16.mxu1 %v5841_v63  ;;  %v5917_v63 = vld [vmem:[%s8223_s1 + $0x970] ss:$24 sps:$4 sm:$0xff]  }
 0x1a3   :  { %4116 = vmatpush2.bf16.msra.mxu0 %v5836_v0  ;;  %v5922_v0 = vld [vmem:[%s8223_s1 + $0x644] ss:$24 sps:$4 sm:$0xff]  }
 0x1a4   :  { %4159 = vmatpush2.bf16.msra.mxu1 %v5839_v1  ;;  %4117 = vmatprep.subr.bf16.mxu0 %v5844_v2  ;;  %v5925_v1 = vld [vmem:[%s8223_s1 + $0x944] ss:$24 sps:$4 sm:$0xff]   ;;  %v5920_v2 = vld [vmem:[%s8223_s1 + $0x640] ss:$24 sps:$4 sm:$0xff]  }
 0x1a5   :  { %4160 = vmatprep.subr.bf16.mxu1 %v5847_v3  ;;  %v5923_v3 = vld [vmem:[%s8223_s1 + $0x940] ss:$24 sps:$4 sm:$0xff]  }
 0x1a7   :  { %4118 = vmatpush2.bf16.msra.mxu0 %v5842_v4  ;;  %v5928_v4 = vld [vmem:[%s8223_s1 + $0x614] ss:$24 sps:$4 sm:$0xff]  }
 0x1a8   :  { %4161 = vmatpush2.bf16.msra.mxu1 %v5845_v5  ;;  %4119 = vmatprep.subr.bf16.mxu0 %v5850_v6  ;;  %v5931_v5 = vld [vmem:[%s8223_s1 + $0x914] ss:$24 sps:$4 sm:$0xff]   ;;  %v5926_v6 = vld [vmem:[%s8223_s1 + $0x610] ss:$24 sps:$4 sm:$0xff]  }
 0x1a9   :  { %4162 = vmatprep.subr.bf16.mxu1 %v5853_v7  ;;  %v5929_v7 = vld [vmem:[%s8223_s1 + $0x910] ss:$24 sps:$4 sm:$0xff]  }
 0x1ab   :  { %4120 = vmatpush2.bf16.msra.mxu0 %v5848_v8  ;;  %v5934_v8 = vld [vmem:[%s8223_s1 + $0x8e4] ss:$24 sps:$4 sm:$0xff]  }
 0x1ac   :  { %4163 = vmatpush2.bf16.msra.mxu1 %v5851_v9  ;;  %4121 = vmatprep.subr.bf16.mxu0 %v5856_v10  ;;  %v5937_v9 = vld [vmem:[%s8223_s1 + $0xbe4] ss:$24 sps:$4 sm:$0xff]   ;;  %v5932_v10 = vld [vmem:[%s8223_s1 + $0x8e0] ss:$24 sps:$4 sm:$0xff]  }
 0x1ad   :  { %4164 = vmatprep.subr.bf16.mxu1 %v5859_v11  ;;  %v5935_v11 = vld [vmem:[%s8223_s1 + $0xbe0] ss:$24 sps:$4 sm:$0xff]  }
 0x1af   :  { %4122 = vmatpush2.bf16.msra.mxu0 %v5854_v12  ;;  %v5940_v12 = vld [vmem:[%s8223_s1 + $0x8b4] ss:$24 sps:$4 sm:$0xff]  }
 0x1b0   :  { %4165 = vmatpush2.bf16.msra.mxu1 %v5857_v13  ;;  %4123 = vmatprep.subr.bf16.mxu0 %v5862_v14  ;;  %v5943_v13 = vld [vmem:[%s8223_s1 + $0xbb4] ss:$24 sps:$4 sm:$0xff]   ;;  %v5938_v14 = vld [vmem:[%s8223_s1 + $0x8b0] ss:$24 sps:$4 sm:$0xff]  }
 0x1b1   :  { %4166 = vmatprep.subr.bf16.mxu1 %v5865_v15  ;;  %v5941_v15 = vld [vmem:[%s8223_s1 + $0xbb0] ss:$24 sps:$4 sm:$0xff]  }
 0x1b3   :  { %4124 = vmatpush2.bf16.msra.mxu0 %v5860_v16  ;;  %v5946_v16 = vld [vmem:[%s8223_s1 + $0x884] ss:$24 sps:$4 sm:$0xff]  }
 0x1b4   :  { %4167 = vmatpush2.bf16.msra.mxu1 %v5863_v17  ;;  %4125 = vmatprep.subr.bf16.mxu0 %v5868_v18  ;;  %v5949_v17 = vld [vmem:[%s8223_s1 + $0xb84] ss:$24 sps:$4 sm:$0xff]   ;;  %v5944_v18 = vld [vmem:[%s8223_s1 + $0x880] ss:$24 sps:$4 sm:$0xff]  }
 0x1b5   :  { %4168 = vmatprep.subr.bf16.mxu1 %v5871_v19  ;;  %v5947_v19 = vld [vmem:[%s8223_s1 + $0xb80] ss:$24 sps:$4 sm:$0xff]  }
 0x1b7   :  { %4126 = vmatpush2.bf16.msra.mxu0 %v5866_v20  ;;  %v5952_v20 = vld [vmem:[%s8223_s1 + $0x854] ss:$24 sps:$4 sm:$0xff]  }
 0x1b8   :  { %4169 = vmatpush2.bf16.msra.mxu1 %v5869_v21  ;;  %4127 = vmatprep.subr.bf16.mxu0 %v5874_v22  ;;  %v5955_v21 = vld [vmem:[%s8223_s1 + $0xb54] ss:$24 sps:$4 sm:$0xff]   ;;  %v5950_v22 = vld [vmem:[%s8223_s1 + $0x850] ss:$24 sps:$4 sm:$0xff]  }
 0x1b9   :  { %4170 = vmatprep.subr.bf16.mxu1 %v5877_v23  ;;  %v5953_v23 = vld [vmem:[%s8223_s1 + $0xb50] ss:$24 sps:$4 sm:$0xff]  }
 0x1bb   :  { %4128 = vmatpush2.bf16.msra.mxu0 %v5872_v24  ;;  %v5958_v24 = vld [vmem:[%s8223_s1 + $0x824] ss:$24 sps:$4 sm:$0xff]  }
 0x1bc   :  { %4171 = vmatpush2.bf16.msra.mxu1 %v5875_v25  ;;  %4129 = vmatprep.subr.bf16.mxu0 %v5880_v28  ;;  %v5961_v25 = vld [vmem:[%s8223_s1 + $0xb24] ss:$24 sps:$4 sm:$0xff]   ;;  %v5956_v28 = vld [vmem:[%s8223_s1 + $0x820] ss:$24 sps:$4 sm:$0xff]  }
 0x1bd   :  { %4172 = vmatprep.subr.bf16.mxu1 %v5883_v29  ;;  %v5959_v29 = vld [vmem:[%s8223_s1 + $0xb20] ss:$24 sps:$4 sm:$0xff]  }
 0x1bf   :  { %4130 = vmatpush2.bf16.msra.mxu0 %v5878_v34  ;;  %v5964_v34 = vld [vmem:[%s8223_s1 + $0x7f4] ss:$24 sps:$4 sm:$0xff]  }
 0x1c0   :  { %4173 = vmatpush2.bf16.msra.mxu1 %v5881_v35  ;;  %4185 = vmatprep.subr.bf16.mxu0 %v5886_v36  ;;  %v5967_v35 = vld [vmem:[%s8223_s1 + $0xaf4] ss:$24 sps:$4 sm:$0xff]   ;;  %v5962_v36 = vld [vmem:[%s8223_s1 + $0x7f0] ss:$24 sps:$4 sm:$0xff]  }
 0x1c1   :  { %4228 = vmatprep.subr.bf16.mxu1 %v5889_v37  ;;  %v5965_v37 = vld [vmem:[%s8223_s1 + $0xaf0] ss:$24 sps:$4 sm:$0xff]  }
 0x1c2   :  { %4132 = vmatmul.mubr.bf16.vlgmr.msra.gmra.mxu0 %v6094_v42  ;;  %v5976_v42 = vld [vmem:[%s8223_s1 + $0x794] ss:$24 sps:$4 sm:$0xff]  }
 0x1c3   :  { %4175 = vmatmul.mubr.bf16.vlgmr.msra.gmra.mxu1 %v6095_v43  ;;  %4186 = vmatpush1.bf16.msra.mxu0 %v5884_v38  ;;  %v5970_v38 = vld [vmem:[%s8223_s1 + $0x7c4] ss:$24 sps:$4 sm:$0xff]   ;;  %v5979_v43 = vld [vmem:[%s8223_s1 + $0xa94] ss:$24 sps:$4 sm:$0xff]  }
 0x1c4   :  { %4229 = vmatpush1.bf16.msra.mxu1 %v5887_v39  ;;  %4187 = vmatprep.subr.bf16.mxu0 %v5892_v40  ;;  %v5973_v39 = vld [vmem:[%s8223_s1 + $0xac4] ss:$24 sps:$4 sm:$0xff]   ;;  %v5968_v40 = vld [vmem:[%s8223_s1 + $0x7c0] ss:$24 sps:$4 sm:$0xff]  }
 0x1c5   :  { %4230 = vmatprep.subr.bf16.mxu1 %v5895_v41  ;;  %4217 = vmatprep.mubr.bf16.mxu0 %v6096_v48  ;;  %v5971_v41 = vld [vmem:[%s8223_s1 + $0xac0] ss:$24 sps:$4 sm:$0xff]  }
 0x1c6   :  { %4260 = vmatprep.mubr.bf16.mxu1 %v6097_v49  ;;  %v5980_v48 = vld [vmem:[%s8223_s1 + $0xd60] ss:$24 sps:$4 sm:$0xff]  }
 0x1c7   :  { %4188 = vmatpush1.bf16.msra.mxu0 %v5890_v44  ;;  %v5974_v44 = vld [vmem:[%s8223_s1 + $0x790] ss:$24 sps:$4 sm:$0xff]   ;;  %v5983_v49 = vld [vmem:[%s8223_s1 + $0x1060] ss:$24 sps:$4 sm:$0xff]  }
 0x1c8   :  { %4231 = vmatpush1.bf16.msra.mxu1 %v5893_v45  ;;  %4189 = vmatprep.subr.bf16.mxu0 %v5898_v46  ;;  %v5977_v45 = vld [vmem:[%s8223_s1 + $0xa90] ss:$24 sps:$4 sm:$0xff]   ;;  %v5982_v46 = vld [vmem:[%s8223_s1 + $0xd64] ss:$24 sps:$4 sm:$0xff]  }
 0x1c9   :  { %4232 = vmatprep.subr.bf16.mxu1 %v5901_v47  ;;  %v5985_v47 = vld [vmem:[%s8223_s1 + $0x1064] ss:$24 sps:$4 sm:$0xff]  }
 0x1cb   :  { %4190 = vmatpush1.bf16.msra.mxu0 %v5896_v50  ;;  %v5988_v50 = vld [vmem:[%s8223_s1 + $0xd34] ss:$24 sps:$4 sm:$0xff]  }
 0x1cc   :  { %4233 = vmatpush1.bf16.msra.mxu1 %v5899_v51  ;;  %4191 = vmatprep.subr.bf16.mxu0 %v5904_v52  ;;  %v5991_v51 = vld [vmem:[%s8223_s1 + $0x1034] ss:$24 sps:$4 sm:$0xff]   ;;  %v5986_v52 = vld [vmem:[%s8223_s1 + $0xd30] ss:$24 sps:$4 sm:$0xff]  }
 0x1cd   :  { %4234 = vmatprep.subr.bf16.mxu1 %v5907_v53  ;;  %v5989_v53 = vld [vmem:[%s8223_s1 + $0x1030] ss:$24 sps:$4 sm:$0xff]  }
 0x1cf   :  { %4192 = vmatpush1.bf16.msra.mxu0 %v5902_v54  ;;  %v5994_v54 = vld [vmem:[%s8223_s1 + $0xd04] ss:$24 sps:$4 sm:$0xff]  }
 0x1d0   :  { %4235 = vmatpush1.bf16.msra.mxu1 %v5905_v55  ;;  %4193 = vmatprep.subr.bf16.mxu0 %v5910_v56  ;;  %v5995_v55 = vld [vmem:[%s8223_s1 + $0x1000] ss:$24 sps:$4 sm:$0xff]   ;;  %v6000_v56 = vld [vmem:[%s8223_s1 + $0xcd4] ss:$24 sps:$4 sm:$0xff]  }
 0x1d1   :  { %4236 = vmatprep.subr.bf16.mxu1 %v5913_v57  ;;  %v6001_v57 = vld [vmem:[%s8223_s1 + $0xfd0] ss:$24 sps:$4 sm:$0xff]  }
 0x1d3   :  { %4194 = vmatpush1.bf16.msra.mxu0 %v5908_v58  ;;  %v6006_v58 = vld [vmem:[%s8223_s1 + $0xca4] ss:$24 sps:$4 sm:$0xff]  }
 0x1d4   :  { %4237 = vmatpush1.bf16.msra.mxu1 %v5911_v59  ;;  %4195 = vmatprep.subr.bf16.mxu0 %v5916_v60  ;;  %v6009_v59 = vld [vmem:[%s8223_s1 + $0xfa4] ss:$24 sps:$4 sm:$0xff]   ;;  %v6004_v60 = vld [vmem:[%s8223_s1 + $0xca0] ss:$24 sps:$4 sm:$0xff]  }
 0x1d5   :  { %4238 = vmatprep.subr.bf16.mxu1 %v5919_v61  ;;  %v6007_v61 = vld [vmem:[%s8223_s1 + $0xfa0] ss:$24 sps:$4 sm:$0xff]  }
 0x1d7   :  { %4196 = vmatpush1.bf16.msra.mxu0 %v5914_v62  ;;  %v6012_v62 = vld [vmem:[%s8223_s1 + $0xc74] ss:$24 sps:$4 sm:$0xff]  }
 0x1d8   :  { %4239 = vmatpush1.bf16.msra.mxu1 %v5917_v63  ;;  %4197 = vmatprep.subr.bf16.mxu0 %v5922_v0  ;;  %v6015_v63 = vld [vmem:[%s8223_s1 + $0xf74] ss:$24 sps:$4 sm:$0xff]   ;;  %v6010_v0 = vld [vmem:[%s8223_s1 + $0xc70] ss:$24 sps:$4 sm:$0xff]  }
 0x1d9   :  { %4240 = vmatprep.subr.bf16.mxu1 %v5925_v1  ;;  %v6013_v1 = vld [vmem:[%s8223_s1 + $0xf70] ss:$24 sps:$4 sm:$0xff]  }
 0x1db   :  { %4198 = vmatpush1.bf16.msra.mxu0 %v5920_v2  ;;  %v6018_v2 = vld [vmem:[%s8223_s1 + $0xc44] ss:$24 sps:$4 sm:$0xff]  }
 0x1dc   :  { %4241 = vmatpush1.bf16.msra.mxu1 %v5923_v3  ;;  %4199 = vmatprep.subr.bf16.mxu0 %v5928_v4  ;;  %v6021_v3 = vld [vmem:[%s8223_s1 + $0xf44] ss:$24 sps:$4 sm:$0xff]   ;;  %v6016_v4 = vld [vmem:[%s8223_s1 + $0xc40] ss:$24 sps:$4 sm:$0xff]  }
 0x1dd   :  { %4242 = vmatprep.subr.bf16.mxu1 %v5931_v5  ;;  %v6019_v5 = vld [vmem:[%s8223_s1 + $0xf40] ss:$24 sps:$4 sm:$0xff]  }
 0x1df   :  { %4200 = vmatpush1.bf16.msra.mxu0 %v5926_v6  ;;  %v6024_v6 = vld [vmem:[%s8223_s1 + $0xc14] ss:$24 sps:$4 sm:$0xff]  }
 0x1e0   :  { %4243 = vmatpush1.bf16.msra.mxu1 %v5929_v7  ;;  %4201 = vmatprep.subr.bf16.mxu0 %v5934_v8  ;;  %v6027_v7 = vld [vmem:[%s8223_s1 + $0xf14] ss:$24 sps:$4 sm:$0xff]   ;;  %v6022_v8 = vld [vmem:[%s8223_s1 + $0xc10] ss:$24 sps:$4 sm:$0xff]  }
 0x1e1   :  { %4244 = vmatprep.subr.bf16.mxu1 %v5937_v9  ;;  %v6025_v9 = vld [vmem:[%s8223_s1 + $0xf10] ss:$24 sps:$4 sm:$0xff]  }
 0x1e3   :  { %4202 = vmatpush2.bf16.msra.mxu0 %v5932_v10  ;;  %v6030_v10 = vld [vmem:[%s8223_s1 + $0xee4] ss:$24 sps:$4 sm:$0xff]  }
 0x1e4   :  { %4245 = vmatpush2.bf16.msra.mxu1 %v5935_v11  ;;  %4203 = vmatprep.subr.bf16.mxu0 %v5940_v12  ;;  %v6033_v11 = vld [vmem:[%s8223_s1 + $0x11e4] ss:$24 sps:$4 sm:$0xff]   ;;  %v6028_v12 = vld [vmem:[%s8223_s1 + $0xee0] ss:$24 sps:$4 sm:$0xff]  }
 0x1e5   :  { %4246 = vmatprep.subr.bf16.mxu1 %v5943_v13  ;;  %v6031_v13 = vld [vmem:[%s8223_s1 + $0x11e0] ss:$24 sps:$4 sm:$0xff]  }
 0x1e7   :  { %4204 = vmatpush2.bf16.msra.mxu0 %v5938_v14  ;;  %v6036_v14 = vld [vmem:[%s8223_s1 + $0xeb4] ss:$24 sps:$4 sm:$0xff]  }
 0x1e8   :  { %4247 = vmatpush2.bf16.msra.mxu1 %v5941_v15  ;;  %4205 = vmatprep.subr.bf16.mxu0 %v5946_v16  ;;  %v6039_v15 = vld [vmem:[%s8223_s1 + $0x11b4] ss:$24 sps:$4 sm:$0xff]   ;;  %v6034_v16 = vld [vmem:[%s8223_s1 + $0xeb0] ss:$24 sps:$4 sm:$0xff]  }
 0x1e9   :  { %4248 = vmatprep.subr.bf16.mxu1 %v5949_v17  ;;  %v6037_v17 = vld [vmem:[%s8223_s1 + $0x11b0] ss:$24 sps:$4 sm:$0xff]  }
 0x1eb   :  { %4206 = vmatpush2.bf16.msra.mxu0 %v5944_v18  ;;  %v6042_v18 = vld [vmem:[%s8223_s1 + $0xe84] ss:$24 sps:$4 sm:$0xff]  }
 0x1ec   :  { %4249 = vmatpush2.bf16.msra.mxu1 %v5947_v19  ;;  %4207 = vmatprep.subr.bf16.mxu0 %v5952_v20  ;;  %v6045_v19 = vld [vmem:[%s8223_s1 + $0x1184] ss:$24 sps:$4 sm:$0xff]   ;;  %v6040_v20 = vld [vmem:[%s8223_s1 + $0xe80] ss:$24 sps:$4 sm:$0xff]  }
 0x1ed   :  { %4250 = vmatprep.subr.bf16.mxu1 %v5955_v21  ;;  %v6043_v21 = vld [vmem:[%s8223_s1 + $0x1180] ss:$24 sps:$4 sm:$0xff]  }
 0x1ef   :  { %4208 = vmatpush2.bf16.msra.mxu0 %v5950_v22  ;;  %v6048_v22 = vld [vmem:[%s8223_s1 + $0xe54] ss:$24 sps:$4 sm:$0xff]  }
 0x1f0   :  { %4251 = vmatpush2.bf16.msra.mxu1 %v5953_v23  ;;  %4209 = vmatprep.subr.bf16.mxu0 %v5958_v24  ;;  %v6051_v23 = vld [vmem:[%s8223_s1 + $0x1154] ss:$24 sps:$4 sm:$0xff]   ;;  %v6046_v24 = vld [vmem:[%s8223_s1 + $0xe50] ss:$24 sps:$4 sm:$0xff]  }
 0x1f1   :  { %4252 = vmatprep.subr.bf16.mxu1 %v5961_v25  ;;  %v6049_v25 = vld [vmem:[%s8223_s1 + $0x1150] ss:$24 sps:$4 sm:$0xff]  }
 0x1f3   :  { %4210 = vmatpush2.bf16.msra.mxu0 %v5956_v28  ;;  %v6054_v28 = vld [vmem:[%s8223_s1 + $0xe24] ss:$24 sps:$4 sm:$0xff]  }
 0x1f4   :  { %4253 = vmatpush2.bf16.msra.mxu1 %v5959_v29  ;;  %4211 = vmatprep.subr.bf16.mxu0 %v5964_v34  ;;  %v6057_v29 = vld [vmem:[%s8223_s1 + $0x1124] ss:$24 sps:$4 sm:$0xff]   ;;  %v6052_v34 = vld [vmem:[%s8223_s1 + $0xe20] ss:$24 sps:$4 sm:$0xff]  }
 0x1f5   :  { %4254 = vmatprep.subr.bf16.mxu1 %v5967_v35  ;;  %v6055_v35 = vld [vmem:[%s8223_s1 + $0x1120] ss:$24 sps:$4 sm:$0xff]  }
 0x1f7   :  { %4212 = vmatpush2.bf16.msra.mxu0 %v5962_v36  ;;  %v6060_v36 = vld [vmem:[%s8223_s1 + $0xdf4] ss:$24 sps:$4 sm:$0xff]  }
 0x1f8   :  { %4255 = vmatpush2.bf16.msra.mxu1 %v5965_v37  ;;  %4213 = vmatprep.subr.bf16.mxu0 %v5970_v38  ;;  %v6063_v37 = vld [vmem:[%s8223_s1 + $0x10f4] ss:$24 sps:$4 sm:$0xff]   ;;  %v6058_v38 = vld [vmem:[%s8223_s1 + $0xdf0] ss:$24 sps:$4 sm:$0xff]  }
 0x1f9   :  { %4256 = vmatprep.subr.bf16.mxu1 %v5973_v39  ;;  %v6061_v39 = vld [vmem:[%s8223_s1 + $0x10f0] ss:$24 sps:$4 sm:$0xff]  }
 0x1fb   :  { %4214 = vmatpush2.bf16.msra.mxu0 %v5968_v40  ;;  %v6066_v40 = vld [vmem:[%s8223_s1 + $0xdc4] ss:$24 sps:$4 sm:$0xff]  }
 0x1fc   :  { %4257 = vmatpush2.bf16.msra.mxu1 %v5971_v41  ;;  %4215 = vmatprep.subr.bf16.mxu0 %v5976_v42  ;;  %v6069_v41 = vld [vmem:[%s8223_s1 + $0x10c4] ss:$24 sps:$4 sm:$0xff]   ;;  %v6064_v42 = vld [vmem:[%s8223_s1 + $0xdc0] ss:$24 sps:$4 sm:$0xff]  }
 0x1fd   :  { %4258 = vmatprep.subr.bf16.mxu1 %v5979_v43  ;;  %v6067_v43 = vld [vmem:[%s8223_s1 + $0x10c0] ss:$24 sps:$4 sm:$0xff]  }
 0x1ff   :  { %4216 = vmatpush2.bf16.msra.mxu0 %v5974_v44  ;;  %v6072_v44 = vld [vmem:[%s8223_s1 + $0xd94] ss:$24 sps:$4 sm:$0xff]  }
 0x200   :  { %4259 = vmatpush2.bf16.msra.mxu1 %v5977_v45  ;;  %4271 = vmatprep.subr.bf16.mxu0 %v5982_v46  ;;  %v6075_v45 = vld [vmem:[%s8223_s1 + $0x1094] ss:$24 sps:$4 sm:$0xff]   ;;  %v6070_v46 = vld [vmem:[%s8223_s1 + $0xd90] ss:$24 sps:$4 sm:$0xff]  }
 0x201   :  { %4314 = vmatprep.subr.bf16.mxu1 %v5985_v47  ;;  %v6073_v47 = vld [vmem:[%s8223_s1 + $0x1090] ss:$24 sps:$4 sm:$0xff]  }
 0x202   :  { %4218 = vmatmul.mubr.bf16.vlgmr.msra.gmra.mxu0 %v7174_v26  ;;  %v5997_v26 = vld [vmem:[%s8223_s1 + $0x1004] ss:$24 sps:$4 sm:$0xff]  }
 0x203   :  { %4261 = vmatmul.mubr.bf16.vlgmr.msra.gmra.mxu1 %v7180_v27  ;;  %4272 = vmatpush1.bf16.msra.mxu0 %v5980_v48  ;;  %v5992_v27 = vld [vmem:[%s8223_s1 + $0xd00] ss:$24 sps:$4 sm:$0xff]   ;;  %v3617_v48 = vpop.f32.mrf.mxu0 }
 0x204   :  { %4315 = vmatpush1.bf16.msra.mxu1 %v5983_v49  ;;  %4273 = vmatprep.subr.bf16.mxu0 %v5988_v50  ;;  %v7975_v49 = vpop.f32.mrf.mxu1 }
 0x205   :  { %4316 = vmatprep.subr.bf16.mxu1 %v5991_v51  ;;  %4303 = vmatprep.mubr.bf16.mxu0 %v7198_v32  ;;  %v6003_v32 = vld [vmem:[%s8223_s1 + $0xfd4] ss:$24 sps:$4 sm:$0xff]   ;;  %v3619_v50 = vpop.f32.mrf.mxu0 }
 0x206   :  { %4346 = vmatprep.mubr.bf16.mxu1 %v7204_v33  ;;  %v5998_v33 = vld [vmem:[%s8223_s1 + $0xcd0] ss:$24 sps:$4 sm:$0xff]   ;;  %v7977_v51 = vpop.f32.mrf.mxu1 }
 0x207   :  { %4274 = vmatpush1.bf16.msra.mxu0 %v5986_v52  ;;  %v7979_v52 = vpop.f32.mrf.mxu0 }
 0x208   :  { %4317 = vmatpush1.bf16.msra.mxu1 %v5989_v53  ;;  %4275 = vmatprep.subr.bf16.mxu0 %v5994_v54  ;;  %v7981_v53 = vpop.f32.mrf.mxu1 }
 0x209   :  { %4318 = vmatprep.subr.bf16.mxu1 %v5997_v26  ;;  %v7983_v54 = vpop.f32.mrf.mxu0 }
 0x20a   :  { %v7985_v26 = vpop.f32.mrf.mxu1 }
 0x20b   :  { %4276 = vmatpush1.bf16.msra.mxu0 %v5992_v27  ;;  %v7987_v27 = vpop.f32.mrf.mxu0 }
 0x20c   :  { %4319 = vmatpush1.bf16.msra.mxu1 %v5995_v55  ;;  %4277 = vmatprep.subr.bf16.mxu0 %v6000_v56  ;;  %v7989_v55 = vpop.f32.mrf.mxu1 }
 0x20d   :  { %4320 = vmatprep.subr.bf16.mxu1 %v6003_v32 }
 0x20f   :  { %4278 = vmatpush1.bf16.msra.mxu0 %v5998_v33 }
 0x210   :  { %4321 = vmatpush1.bf16.msra.mxu1 %v6001_v57  ;;  %4279 = vmatprep.subr.bf16.mxu0 %v6006_v58 }
 0x211   :  { %4322 = vmatprep.subr.bf16.mxu1 %v6009_v59 }
 0x213   :  { %4280 = vmatpush1.bf16.msra.mxu0 %v6004_v60 }
 0x214   :  { %4323 = vmatpush1.bf16.msra.mxu1 %v6007_v61  ;;  %4281 = vmatprep.subr.bf16.mxu0 %v6012_v62 }
 0x215   :  { %4324 = vmatprep.subr.bf16.mxu1 %v6015_v63 }
 0x217   :  { %4282 = vmatpush1.bf16.msra.mxu0 %v6010_v0 }
 0x218   :  { %4325 = vmatpush1.bf16.msra.mxu1 %v6013_v1  ;;  %4283 = vmatprep.subr.bf16.mxu0 %v6018_v2 }
 0x219   :  { %4326 = vmatprep.subr.bf16.mxu1 %v6021_v3 }
 0x21b   :  { %4284 = vmatpush1.bf16.msra.mxu0 %v6016_v4 }
 0x21c   :  { %4327 = vmatpush1.bf16.msra.mxu1 %v6019_v5  ;;  %4285 = vmatprep.subr.bf16.mxu0 %v6024_v6 }
 0x21d   :  { %4328 = vmatprep.subr.bf16.mxu1 %v6027_v7 }
 0x21f   :  { %4286 = vmatpush1.bf16.msra.mxu0 %v6022_v8 }
 0x220   :  { %4329 = vmatpush1.bf16.msra.mxu1 %v6025_v9  ;;  %4287 = vmatprep.subr.bf16.mxu0 %v6030_v10 }
 0x221   :  { %4330 = vmatprep.subr.bf16.mxu1 %v6033_v11 }
 0x223   :  { %4288 = vmatpush2.bf16.msra.mxu0 %v6028_v12 }
 0x224   :  { %4331 = vmatpush2.bf16.msra.mxu1 %v6031_v13  ;;  %4289 = vmatprep.subr.bf16.mxu0 %v6036_v14 }
 0x225   :  { %4332 = vmatprep.subr.bf16.mxu1 %v6039_v15 }
 0x227   :  { %4290 = vmatpush2.bf16.msra.mxu0 %v6034_v16 }
 0x228   :  { %4333 = vmatpush2.bf16.msra.mxu1 %v6037_v17  ;;  %4291 = vmatprep.subr.bf16.mxu0 %v6042_v18  ;;  %v613_v18 = vlaneseq }
 0x229   :  { %4334 = vmatprep.subr.bf16.mxu1 %v6045_v19 }
 0x22b   :  { %4292 = vmatpush2.bf16.msra.mxu0 %v6040_v20 }
 0x22c   :  { %4335 = vmatpush2.bf16.msra.mxu1 %v6043_v21  ;;  %4293 = vmatprep.subr.bf16.mxu0 %v6048_v22  ;;  %v614_v21 = vshrl.u32 %v613_v18, 7 }
 0x22d   :  { %4336 = vmatprep.subr.bf16.mxu1 %v6051_v23 }
 0x22f   :  { %4294 = vmatpush2.bf16.msra.mxu0 %v6046_v24  ;;  %v8041_v24 = vsub.s32 0, %v614_v21 }
 0x230   :  { %4337 = vmatpush2.bf16.msra.mxu1 %v6049_v25  ;;  %4295 = vmatprep.subr.bf16.mxu0 %v6054_v28  ;;  %v8043_v25 = vsub.s32 1, %v614_v21  ;;  %v611_v28 = vld [vmem:[%s8225_s2] sm:$0x3f] }
 0x231   :  { %4338 = vmatprep.subr.bf16.mxu1 %v6057_v29  ;;  %8241 = vst [vmem:[#allocation5_spill] sm:$0xff] %v8041_v24 }
 0x232   :  { %8242 = vst [vmem:[#allocation6_spill] sm:$0xff] %v8043_v25 }
 0x233   :  { %4296 = vmatpush2.bf16.msra.mxu0 %v6052_v34 }
 0x234   :  { %4339 = vmatpush2.bf16.msra.mxu1 %v6055_v35  ;;  %4297 = vmatprep.subr.bf16.mxu0 %v6060_v36  ;;  %v8052_v35 = vsub.s32 2, %v614_v21  ;;  %v616_v36 = vrot.slane %v611_v28, %v8041_v24 }
 0x235   :  { %4340 = vmatprep.subr.bf16.mxu1 %v6063_v37  ;;  %v620_v37 = vrot.slane %v611_v28, %v8043_v25 }
 0x236   :  { %8244 = vst [vmem:[#allocation8_spill] sm:$0xff] %v8052_v35 }
 0x237   :  { %4298 = vmatpush2.bf16.msra.mxu0 %v6058_v38 }
 0x238   :  { %4341 = vmatpush2.bf16.msra.mxu1 %v6061_v39  ;;  %4299 = vmatprep.subr.bf16.mxu0 %v6066_v40  ;;  %v624_v40 = vrot.slane %v611_v28, %v8052_v35  ;;  %v3624_v35 = vadd.f32 %v7983_v54, %v620_v37 }
 0x239   :  { %4342 = vmatprep.subr.bf16.mxu1 %v6069_v41  ;;  %v8061_v41 = vsub.s32 3, %v614_v21 }
 0x23b   :  { %4300 = vmatpush2.bf16.msra.mxu0 %v6064_v42  ;;  %8247 = vst [vmem:[#allocation11_spill] sm:$0xff] %v8061_v41 }
 0x23c   :  { %4343 = vmatpush2.bf16.msra.mxu1 %v6067_v43  ;;  %4301 = vmatprep.subr.bf16.mxu0 %v6072_v44  ;;  %v3618_v44 = vadd.f32 %v3617_v48, %v616_v36 }
 0x23d   :  { %4344 = vmatprep.subr.bf16.mxu1 %v6075_v45  ;;  %v3620_v45 = vadd.f32 %v3619_v50, %v620_v37 }
 0x23e   :  { %v3661_v25 = vadd.f32 %v7975_v49, %v3618_v44  ;;  %v3667_v49 = vadd.f32 %v7985_v26, %v3624_v35 }
 0x23f   :  { %4302 = vmatpush2.bf16.msra.mxu0 %v6070_v46 }
 0x240   :  { %4345 = vmatpush2.bf16.msra.mxu1 %v6073_v47  ;;  %v628_v47 = vrot.slane %v611_v28, %v8061_v41 }
 0x242   :  { %4304 = vmatmul.mubr.bf16.vlgmr.msra.gmra.mxu0 %v7384_v30  ;;  %v3705_v30 = vpop.f32.mrf.mxu0 }
 0x243   :  { %4347 = vmatmul.mubr.bf16.vlgmr.msra.gmra.mxu1 %v7390_v31  ;;  %v7991_v31 = vpop.f32.mrf.mxu1 }
 0x244   :  { %v7993_v56 = vpop.f32.mrf.mxu0 }
 0x245   :  { %v7995_v32 = vpop.f32.mrf.mxu1 }
 0x246   :  { %v7997_v33 = vpop.f32.mrf.mxu0 }
 0x247   :  { %v7999_v57 = vpop.f32.mrf.mxu1 }
 0x248   :  { %v8001_v58 = vpop.f32.mrf.mxu0 }
 0x249   :  { %v8003_v59 = vpop.f32.mrf.mxu1 }
 0x24a   :  { %v8005_v60 = vpop.f32.mrf.mxu0 }
 0x24b   :  { %v8007_v61 = vpop.f32.mrf.mxu1 }
 0x24c   :  { %v8009_v62 = vpop.f32.mrf.mxu0 }
 0x24d   :  { %v8011_v63 = vpop.f32.mrf.mxu1 }
 0x24e   :  { %v8013_v0 = vpop.f32.mrf.mxu0 }
 0x24f   :  { %v8015_v1 = vpop.f32.mrf.mxu1 }
 0x250   :  { %8238 = vst [vmem:[#allocation2_spill] sm:$0xff] %v8015_v1  ;;  %v3875_v2 = vpop.f32.mrf.mxu0 }
 0x251   :  { %v3918_v3 = vpop.f32.mrf.mxu1  ;;  %v3876_v46 = vadd.f32 %v3875_v2, %v624_v40 }
 0x252   :  { %v3877_v4 = vpop.f32.mrf.mxu0 }
 0x253   :  { %v3920_v5 = vpop.f32.mrf.mxu1  ;;  %v3878_v48 = vadd.f32 %v3877_v4, %v628_v47  ;;  %v4357_v4 = vld [vmem:[%s8226_s3] sm:$0xff] }
 0x254   :  { %v3879_v6 = vpop.f32.mrf.mxu0 }
 0x255   :  { %v3922_v7 = vpop.f32.mrf.mxu1  ;;  %v3880_v50 = vadd.f32 %v3879_v6, %v624_v40 }
 0x256   :  { %v3881_v8 = vpop.f32.mrf.mxu0 }
 0x257   :  { %v8017_v9 = vpop.f32.mrf.mxu1  ;;  %v3923_v6 = vadd.f32 %v3922_v7, %v3880_v50  ;;  %v4363_v7 = vunpack.c.l.bf16 %v4357_v4 }
 0x258   :  { %v3961_v10 = vpop.f32.mrf.mxu0 }
 0x259   :  { %v8019_v11 = vpop.f32.mrf.mxu1 }
 0x25a   :  { %v8021_v12 = vpop.f32.mrf.mxu0 }
 0x25b   :  { %v8023_v13 = vpop.f32.mrf.mxu1 }
 0x25c   :  { %v8025_v14 = vpop.f32.mrf.mxu0 }
 0x25d   :  { %v8027_v15 = vpop.f32.mrf.mxu1 }
 0x25e   :  { %v8029_v16 = vpop.f32.mrf.mxu0 }
 0x25f   :  { %v8031_v17 = vpop.f32.mrf.mxu1 }
 0x260   :  { %8239 = vst [vmem:[#allocation3_spill] sm:$0xff] %v8031_v17  ;;  %v8033_v19 = vpop.f32.mrf.mxu0  ;;  %v3919_v17 = vadd.f32 %v3918_v3, %v3876_v46  ;;  %v3710_v3 = vadd.f32 %v7997_v33, %v3667_v49 }
 0x261   :  { %v8035_v20 = vpop.f32.mrf.mxu1 }
 0x262   :  { %v8037_v22 = vpop.f32.mrf.mxu0 }
 0x263   :  { %v8039_v23 = vpop.f32.mrf.mxu1 }
 0x264   :  { %8240 = vst [vmem:[#allocation4_spill] sm:$0xff] %v8039_v23  ;;  %v8048_v29 = vpop.f32.mrf.mxu0 }
 0x265   :  { %v8050_v34 = vpop.f32.mrf.mxu1 }
 0x266   :  { %8243 = vst [vmem:[#allocation7_spill] sm:$0xff] %v8050_v34  ;;  %v8056_v38 = vpop.f32.mrf.mxu0  ;;  %v3704_v34 = vadd.f32 %v7987_v27, %v3661_v25  ;;  %v3882_v25 = vadd.f32 %v3881_v8, %v628_v47 }
 0x267   :  { %8245 = vst [vmem:[#allocation9_spill] sm:$0xff] %v8056_v38  ;;  %v8058_v39 = vpop.f32.mrf.mxu1  ;;  %v3663_v38 = vadd.f32 %v7977_v51, %v3620_v45  ;;  %v3962_v51 = vadd.f32 %v3961_v10, %v3919_v17  ;;  %v3966_v17 = vadd.f32 %v8025_v14, %v3923_v6 }
 0x268   :  { %8246 = vst [vmem:[#allocation10_spill] sm:$0xff] %v8058_v39  ;;  %v3622_v39 = vadd.f32 %v7979_v52, %v616_v36  ;;  %v3747_v52 = vadd.f32 %v7989_v55, %v3704_v34  ;;  %v3753_v34 = vadd.f32 %v7999_v57, %v3710_v3 }
 0x269   :  { %v3706_v23 = vadd.f32 %v3705_v30, %v3663_v38  ;;  %v8082_v30 = vsub.s32 5, %v614_v21  ;;  %v4005_v10 = vadd.f32 %v8019_v11, %v3962_v51  ;;  %v3925_v11 = vadd.f32 %v8017_v9, %v3882_v25 }
 0x26a   :  { %v3665_v41 = vadd.f32 %v7981_v53, %v3622_v39  ;;  %v3921_v53 = vadd.f32 %v3920_v5, %v3878_v48  ;;  %v3790_v55 = vadd.f32 %v8001_v58, %v3747_v52  ;;  %v4364_v58 = vunpack.c.h.bf16 %v4357_v4  ;;  %v8250_v48 = vld [vmem:[#allocation3_spill] sm:$0xff] }
 0x26b   :  { %v3749_v54 = vadd.f32 %v7991_v31, %v3706_v23  ;;  %v636_v8 = vrot.slane %v611_v28, %v8082_v30  ;;  %v3796_v37 = vadd.f32 %v8013_v0, %v3753_v34  ;;  %v4009_v39 = vadd.f32 %v8027_v15, %v3966_v17  ;;  %v4361_v0 = vld [vmem:[%s8226_s3 + $0x20] sm:$0xff] }
 0x26c   :  { %v3708_v27 = vadd.f32 %v7993_v56, %v3665_v41  ;;  %v3964_v33 = vadd.f32 %v8021_v12, %v3921_v53  ;;  %v4048_v12 = vadd.f32 %v8033_v19, %v4005_v10  ;;  %v3833_v14 = vadd.f32 %v8003_v59, %v3790_v55  ;;  %v8252_v53 = vld [vmem:[#allocation4_spill] sm:$0xff] }
 0x26d   :  { %v3792_v31 = vadd.f32 %v8005_v60, %v3749_v54  ;;  %v4360_v60 = vld [vmem:[%s8226_s3 + $0x18] sm:$0xff]  ;;  %v3968_v9 = vadd.f32 %v8029_v16, %v3925_v11  ;;  %v4371_v51 = vunpack.c.l.bf16 %v4361_v0 }
 0x26e   :  { %v3751_v5 = vadd.f32 %v7995_v32, %v3708_v27  ;;  %v4007_v38 = vadd.f32 %v8023_v13, %v3964_v33  ;;  %v4369_v59 = vunpack.c.l.bf16 %v4360_v60  ;;  %v4370_v41 = vunpack.c.h.bf16 %v4360_v60  ;;  %v8254_v25 = vld [vmem:[#allocation9_spill] sm:$0xff] }
 0x26f   :  { %v3835_v35 = vadd.f32 %v8007_v61, %v3792_v31  ;;  %v8120_v13 = vadd.f32 %v4363_v7, %v3833_v14  ;;  %v4011_v50 = vadd.f32 %v8250_v48, %v3968_v9  ;;  %v8255_v11 = vld [vmem:[#allocation10_spill] sm:$0xff] }
 0x270   :  { %v3794_v32 = vadd.f32 %v8009_v62, %v3751_v5  ;;  %v4091_v62 = vadd.f32 %v8035_v20, %v4048_v12  ;;  %v4050_v45 = vadd.f32 %v8037_v22, %v4007_v38  ;;  %v4372_v5 = vunpack.c.h.bf16 %v4361_v0  ;;  %v4362_v38 = vld [vmem:[%s8226_s3 + $0x28] sm:$0xff] }
 0x271   :  { %v8122_v15 = vadd.f32 %v4364_v58, %v3835_v35 }
 0x272   :  { %v3837_v47 = vadd.f32 %v8011_v63, %v3794_v32  ;;  %v4093_v6 = vadd.f32 %v8252_v53, %v4050_v45  ;;  %v4054_v63 = vadd.f32 %v8254_v25, %v4011_v50  ;;  %v4373_v45 = vunpack.c.l.bf16 %v4362_v38 }
 0x274   :  { %v8137_v10 = vadd.f32 %v4369_v59, %v3837_v47  ;;  %v4097_v12 = vadd.f32 %v8255_v11, %v4054_v63 }
 0x282   :  { %v4133_v42 = vpop.f32.mrf.mxu0 }
 0x283   :  { %v8063_v43 = vpop.f32.mrf.mxu1 }
 0x284   :  { %v4135_v18 = vpop.f32.mrf.mxu0 }
 0x285   :  { %v8066_v24 = vpop.f32.mrf.mxu1  ;;  %v4136_v61 = vadd.f32 %v4135_v18, %v636_v8  ;;  %v8249_v18 = vld [vmem:[#allocation2_spill] sm:$0xff] }
 0x286   :  { %8248 = vst [vmem:[#allocation12_spill] sm:$0xff] %v8066_v24  ;;  %v4137_v2 = vpop.f32.mrf.mxu0  ;;  %v8076_v24 = vsub.s32 4, %v614_v21  ;;  %v3839_v20 = vadd.f32 %v8249_v18, %v3796_v37 }
 0x287   :  { %v8073_v1 = vpop.f32.mrf.mxu1 }
 0x288   :  { %v4139_v36 = vpop.f32.mrf.mxu0  ;;  %v632_v56 = vrot.slane %v611_v28, %v8076_v24  ;;  %v4358_v28 = vld [vmem:[%s8226_s3 + $0x8] sm:$0xff]  ;;  %v8139_v33 = vadd.f32 %v4370_v41, %v3839_v20  ;;  %v4374_v20 = vunpack.c.h.bf16 %v4362_v38 }
 0x289   :  { %v8088_v26 = vpop.f32.mrf.mxu1  ;;  %v4365_v44 = vunpack.c.l.bf16 %v4358_v28  ;;  %v4366_v22 = vunpack.c.h.bf16 %v4358_v28  ;;  %v4140_v27 = vadd.f32 %v4139_v36, %v636_v8 }
 0x28a   :  { %v4134_v57 = vadd.f32 %v4133_v42, %v632_v56  ;;  %v4052_v42 = vadd.f32 %v8048_v29, %v4009_v39  ;;  %v4138_v46 = vadd.f32 %v4137_v2, %v632_v56  ;;  %v4387_v56 = vadd.f32 %v8122_v15, %v8120_v13 }
 0x28b   :  { %v8129_v4 = vadd.f32 %v4365_v44, %v4091_v62  ;;  %v4183_v7 = vadd.f32 %v8088_v26, %v4140_v27  ;;  %v4378_v58 = vadd.f32 %v4366_v22, %v4093_v6  ;;  %v4394_v26 = vadd.f32 %v8139_v33, %v8137_v10 }
 0x28c   :  { %v4177_v16 = vadd.f32 %v8063_v43, %v4134_v57  ;;  %v8253_v43 = vld [vmem:[#allocation7_spill] sm:$0xff]  ;;  %v4181_v55 = vadd.f32 %v8073_v1, %v4138_v46  ;;  %v4384_v62 = vadd.f32 %v4372_v5, %v4097_v12 }
 0x28d   :  { %v8251_v52 = vld [vmem:[#allocation12_spill] sm:$0xff]  ;;  %v4095_v2 = vadd.f32 %v8253_v43, %v4052_v42  ;;  %v4388_v1 = vadd.f32 %v4387_v56, %v8129_v4 }
 0x28e   :  { %v4179_v54 = vadd.f32 %v8251_v52, %v4136_v61 }
 0x28f   :  { %v4383_v60 = vadd.f32 %v4371_v51, %v4095_v2  ;;  %v4389_v42 = vadd.f32 %v4388_v1, %v4378_v58 }
 0x291   :  { %v4395_v61 = vadd.f32 %v4394_v26, %v4383_v60 }
 0x293   :  { %v4396_v51 = vadd.f32 %v4395_v61, %v4384_v62 }
 0x2c2   :  { %v4219_v21 = vpop.f32.mrf.mxu0 }
 0x2c3   :  { %v4262_v23 = vpop.f32.mrf.mxu1  ;;  %v4220_v3 = vadd.f32 %v4219_v21, %v4177_v16  ;;  %v4359_v21 = vld [vmem:[%s8226_s3 + $0x10] sm:$0xff] }
 0x2c4   :  { %v4221_v19 = vpop.f32.mrf.mxu0  ;;  %v4367_v37 = vunpack.c.l.bf16 %v4359_v21  ;;  %v4368_v41 = vunpack.c.h.bf16 %v4359_v21 }
 0x2c5   :  { %v4264_v40 = vpop.f32.mrf.mxu1  ;;  %v4222_v31 = vadd.f32 %v4221_v19, %v4179_v54  ;;  %v4263_v8 = vadd.f32 %v4262_v23, %v4220_v3 }
 0x2c6   :  { %v4223_v49 = vpop.f32.mrf.mxu0 }
 0x2c7   :  { %v4266_v29 = vpop.f32.mrf.mxu1  ;;  %v4224_v34 = vadd.f32 %v4223_v49, %v4181_v55  ;;  %v4265_v32 = vadd.f32 %v4264_v40, %v4222_v31 }
 0x2c8   :  { %v4225_v36 = vpop.f32.mrf.mxu0 }
 0x2c9   :  { %v4268_v17 = vpop.f32.mrf.mxu1  ;;  %v4226_v28 = vadd.f32 %v4225_v36, %v4183_v7  ;;  %v4267_v9 = vadd.f32 %v4266_v29, %v4224_v34 }
 0x2cb   :  { %v4269_v0 = vadd.f32 %v4268_v17, %v4226_v28 }
 0x302   :  { %v4305_v14 = vpop.f32.mrf.mxu0 }
 0x303   :  { %v4348_v35 = vpop.f32.mrf.mxu1  ;;  %v4306_v57 = vadd.f32 %v4305_v14, %v4263_v8 }
 0x304   :  { %v4307_v23 = vpop.f32.mrf.mxu0 }
 0x305   :  { %v4350_v39 = vpop.f32.mrf.mxu1  ;;  %v4349_v19 = vadd.f32 %v4348_v35, %v4306_v57  ;;  %v4308_v59 = vadd.f32 %v4307_v23, %v4265_v32 }
 0x306   :  { %v4309_v44 = vpop.f32.mrf.mxu0 }
 0x307   :  { %v4352_v40 = vpop.f32.mrf.mxu1  ;;  %v4379_v16 = vadd.f32 %v4367_v37, %v4349_v19  ;;  %v4351_v46 = vadd.f32 %v4350_v39, %v4308_v59  ;;  %v4310_v47 = vadd.f32 %v4309_v44, %v4267_v9 }
 0x308   :  { %v4311_v18 = vpop.f32.mrf.mxu0 }
 0x309   :  { %v4353_v48 = vadd.f32 %v4352_v40, %v4310_v47  ;;  %v4312_v50 = vadd.f32 %v4311_v18, %v4269_v0  ;;  %v4380_v22 = vadd.f32 %v4368_v41, %v4351_v46  ;;  %v4390_v49 = vadd.f32 %v4389_v42, %v4379_v16  ;;  %v4354_v29 = vpop.f32.mrf.mxu1  ;;  %v4460_v0 = vld [vmem:[%s8227_s4] sm:$0x3f]  ;;  %v8256_v46 = vld [vmem:[#allocation5_spill] sm:$0xff] }
 0x30a   :  { %v4465_v47 = vrot.slane %v4460_v0, %v8256_v46 }
 0x30b   :  { %v4385_v52 = vadd.f32 %v4373_v45, %v4353_v48  ;;  %v4355_v54 = vadd.f32 %v4354_v29, %v4312_v50  ;;  %v4391_v27 = vadd.f32 %v4390_v49, %v4380_v22  ;;  %v8259_v29 = vld [vmem:[#allocation11_spill] sm:$0xff] }
 0x30d   :  { %v4386_v3 = vadd.f32 %v4374_v20, %v4355_v54  ;;  %4392 = vadd.xlane.f32.xlu0 %v4391_v27  ;;  %v4397_v53 = vadd.f32 %v4396_v51, %v4385_v52  ;;  %v8257_v20 = vld [vmem:[#allocation6_spill] sm:$0xff]  ;;  %v4477_v51 = vrot.slane %v4460_v0, %v8259_v29 }
 0x30e   :  { %v4469_v48 = vrot.slane %v4460_v0, %v8257_v20 }
 0x30f   :  { %v4398_v6 = vadd.f32 %v4397_v53, %v4386_v3  ;;  %v4485_v53 = vrot.slane %v4460_v0, %v8082_v30 }
 0x311   :  { %4399 = vadd.xlane.f32.xlu0 %v4398_v6 }
 0x396   :  { %v4393_v43 = vpop.xlane.xlu0 %4392 }
 0x397   :  { %v4402_v2 = vmul.f32 0.0013020834, %v4393_v43 }
 0x399   :  { %v4404_v25 = vsub.f32 %v8120_v13, %v4402_v2  ;;  %v4405_v63 = vsub.f32 %v8122_v15, %v4402_v2  ;;  %v4406_v55 = vsub.f32 %v8129_v4, %v4402_v2  ;;  %v4407_v56 = vsub.f32 %v4378_v58, %v4402_v2 }
 0x39a   :  { %v4400_v31 = vpop.xlane.xlu0 %4399  ;;  %v4408_v5 = vsub.f32 %v4379_v16, %v4402_v2  ;;  %v4409_v13 = vsub.f32 %v4380_v22, %v4402_v2  ;;  %v4504_v16 = vld [vmem:[%s8228_s5] sm:$0x3f]  ;;  %v8258_v22 = vld [vmem:[#allocation8_spill] sm:$0xff] }
 0x39b   :  { %v4403_v36 = vmul.f32 0.0013020834, %v4400_v31  ;;  %v4416_v17 = vmul.f32 %v4404_v25, %v4404_v25  ;;  %v4417_v21 = vmul.f32 %v4405_v63, %v4405_v63  ;;  %v4418_v7 = vmul.f32 %v4406_v55, %v4406_v55 }
 0x39c   :  { %v4419_v15 = vmul.f32 %v4407_v56, %v4407_v56  ;;  %v4420_v35 = vmul.f32 %v4408_v5, %v4408_v5  ;;  %v4421_v28 = vmul.f32 %v4409_v13, %v4409_v13  ;;  %v4509_v18 = vrot.slane %v4504_v16, %v8256_v46 }
 0x39d   :  { %v4428_v8 = vadd.f32 %v4417_v21, %v4416_v17  ;;  %v8156_v34 = vsub.f32 %v8137_v10, %v4403_v36  ;;  %v8159_v1 = vsub.f32 %v8139_v33, %v4403_v36  ;;  %v8161_v11 = vsub.f32 %v4383_v60, %v4403_v36 }
 0x39e   :  { %v8163_v4 = vsub.f32 %v4384_v62, %v4403_v36  ;;  %v8169_v10 = vsub.f32 %v4385_v52, %v4403_v36  ;;  %v8173_v37 = vsub.f32 %v4386_v3, %v4403_v36  ;;  %v4513_v50 = vrot.slane %v4504_v16, %v8257_v20 }
 0x39f   :  { %v4429_v12 = vadd.f32 %v4428_v8, %v4418_v7  ;;  %v4422_v58 = vmul.f32 %v8156_v34, %v8156_v34  ;;  %v4423_v14 = vmul.f32 %v8159_v1, %v8159_v1  ;;  %v4424_v33 = vmul.f32 %v8161_v11, %v8161_v11 }
 0x3a0   :  { %v4425_v38 = vmul.f32 %v8163_v4, %v8163_v4  ;;  %v4426_v39 = vmul.f32 %v8169_v10, %v8169_v10  ;;  %v4427_v19 = vmul.f32 %v8173_v37, %v8173_v37  ;;  %v4473_v49 = vrot.slane %v4460_v0, %v8258_v22 }
 0x3a1   :  { %v4430_v32 = vadd.f32 %v4429_v12, %v4419_v15  ;;  %v4435_v60 = vadd.f32 %v4423_v14, %v4422_v58  ;;  %v4517_v54 = vrot.slane %v4504_v16, %v8258_v22  ;;  %v4521_v27 = vrot.slane %v4504_v16, %v8259_v29 }
 0x3a2   :  { %v4481_v3 = vrot.slane %v4460_v0, %v8076_v24  ;;  %v4525_v36 = vrot.slane %v4504_v16, %v8076_v24  ;;  %v4529_v17 = vrot.slane %v4504_v16, %v8082_v30 }
 0x3a3   :  { %v4431_v57 = vadd.f32 %v4430_v32, %v4420_v35  ;;  %v4436_v26 = vadd.f32 %v4435_v60, %v4424_v33 }
 0x3a5   :  { %v4432_v23 = vadd.f32 %v4431_v57, %v4421_v28  ;;  %v4437_v9 = vadd.f32 %v4436_v26, %v4425_v38 }
 0x3a7   :  { %4433 = vadd.xlane.f32.xlu1 %v4432_v23  ;;  %v4438_v59 = vadd.f32 %v4437_v9, %v4426_v39 }
 0x3a9   :  { %v4439_v41 = vadd.f32 %v4438_v59, %v4427_v19 }
 0x3ab   :  { %4440 = vadd.xlane.f32.xlu1 %v4439_v41 }
 0x430   :  { %v4434_v61 = vpop.xlane.xlu1 %4433 }
 0x431   :  { %v4442_v62 = vmul.f32 0.0013020834, %v4434_v61 }
 0x433   :  { %v4444_v44 = vadd.f32 1e-12, %v4442_v62 }
 0x434   :  { %v4441_v40 = vpop.xlane.xlu1 %4440 }
 0x435   :  { %6076 = vrsqrt.f32 %v4444_v44  ;;  %v4443_v45 = vmul.f32 0.0013020834, %v4441_v40 }
 0x437   :  { %v4445_v42 = vadd.f32 1e-12, %v4443_v45 }
 0x439   :  { %6078 = vrsqrt.f32 %v4445_v42 }
 0x442   :  { %v6077_v52 = vpop.eup %6076 }
 0x443   :  { %v4448_v6 = vmul.f32 %v6077_v52, %v4404_v25  ;;  %v4449_v43 = vmul.f32 %v6077_v52, %v4405_v63  ;;  %v4450_v2 = vmul.f32 %v6077_v52, %v4406_v55  ;;  %v4451_v31 = vmul.f32 %v6077_v52, %v4407_v56 }
 0x444   :  { %v4452_v21 = vmul.f32 %v6077_v52, %v4408_v5  ;;  %v4453_v7 = vmul.f32 %v6077_v52, %v4409_v13 }
 0x445   :  { %v4492_v8 = vmul.f32 %v4465_v47, %v4448_v6  ;;  %v4493_v15 = vmul.f32 %v4469_v48, %v4449_v43  ;;  %v4494_v12 = vmul.f32 %v4473_v49, %v4450_v2  ;;  %v4495_v58 = vmul.f32 %v4477_v51, %v4451_v31 }
 0x446   :  { %v6079_v14 = vpop.eup %6078  ;;  %v4496_v35 = vmul.f32 %v4481_v3, %v4452_v21  ;;  %v4497_v32 = vmul.f32 %v4485_v53, %v4453_v7 }
 0x447   :  { %v4536_v33 = vadd.f32 %v4509_v18, %v4492_v8  ;;  %v4537_v60 = vadd.f32 %v4513_v50, %v4493_v15  ;;  %v4538_v28 = vadd.f32 %v4517_v54, %v4494_v12  ;;  %v4539_v25 = vadd.f32 %v4521_v27, %v4495_v58 }
 0x448   :  { %v4540_v63 = vadd.f32 %v4525_v36, %v4496_v35  ;;  %v4541_v55 = vadd.f32 %v4529_v17, %v4497_v32  ;;  %v4454_v56 = vmul.f32 %v6079_v14, %v8156_v34  ;;  %v4455_v24 = vmul.f32 %v6079_v14, %v8159_v1 }
 0x449   :  { %v5188_v30 = vpack.c.bf16 %v4537_v60, %v4536_v33  ;;  %v5189_v5 = vpack.c.bf16 %v4539_v25, %v4538_v28  ;;  %v4456_v13 = vmul.f32 %v6079_v14, %v8161_v11  ;;  %v4457_v57 = vmul.f32 %v6079_v14, %v8163_v4 }
 0x44a   :  { %v5190_v38 = vpack.c.bf16 %v4541_v55, %v4540_v63  ;;  %v4458_v26 = vmul.f32 %v6079_v14, %v8169_v10  ;;  %v4459_v23 = vmul.f32 %v6079_v14, %v8173_v37  ;;  %v4498_v39 = vmul.f32 %v4465_v47, %v4454_v56 }
 0x44b   :  { %4584 = vst [vmem:[%s8229_s6] sm:$0xff] %v5188_v30  ;;  %4585 = vst [vmem:[%s8229_s6 + $0x8] sm:$0xff] %v5189_v5  ;;  %v4499_v34 = vmul.f32 %v4469_v48, %v4455_v24  ;;  %v4500_v1 = vmul.f32 %v4473_v49, %v4456_v13  ;;  %v4501_v9 = vmul.f32 %v4477_v51, %v4457_v57 }
 0x44c   :  { %4586 = vst [vmem:[%s8229_s6 + $0x10] sm:$0xff] %v5190_v38  ;;  %v4502_v11 = vmul.f32 %v4481_v3, %v4458_v26  ;;  %v4503_v4 = vmul.f32 %v4485_v53, %v4459_v23  ;;  %v4542_v10 = vadd.f32 %v4509_v18, %v4498_v39 }
 0x44d   :  { %v4543_v37 = vadd.f32 %v4513_v50, %v4499_v34  ;;  %v4544_v19 = vadd.f32 %v4517_v54, %v4500_v1  ;;  %v4545_v59 = vadd.f32 %v4521_v27, %v4501_v9 }
 0x44e   :  { %v4546_v41 = vadd.f32 %v4525_v36, %v4502_v11  ;;  %v4547_v61 = vadd.f32 %v4529_v17, %v4503_v4 }
 0x44f   :  { %v5191_v62 = vpack.c.bf16 %v4543_v37, %v4542_v10  ;;  %v5192_v44 = vpack.c.bf16 %v4545_v59, %v4544_v19 }
 0x450   :  { %v5193_v40 = vpack.c.bf16 %v4547_v61, %v4546_v41 }
 0x451   :  { %4587 = vst [vmem:[%s8229_s6 + $0x18] sm:$0xff] %v5191_v62  ;;  %4588 = vst [vmem:[%s8229_s6 + $0x20] sm:$0xff] %v5192_v44 }
 0x452   :  { %4589 = vst [vmem:[%s8229_s6 + $0x28] sm:$0xff] %v5193_v40 }

</bundles_post_ra>
